<compile_context>
chip_gen: v6e
topology: v6e:2x2x1
jax: 0.10.0
libtpu: 0.0.40
codegen_flags: <defaults>
</compile_context>

<pallas_src>
import functools

import jax
import jax.numpy as jnp
from jax.experimental import pallas as pl
from jax.experimental.pallas import tpu as pltpu

NUM_CLASSES = 5
BN_EPS = 1e-5


def _round_up(x, m):
    return -(-x // m) * m


# ---------------------------------------------------------------------------
# Fused tiled matmul kernel:  out = act(x @ w + bias [+ residual])
# (BN scale already folded into w; bias = beta - mean * scale.)
# ---------------------------------------------------------------------------

def _mm_kernel(x_ref, w_ref, b_ref, *rest, relu, has_residual):
    if has_residual:
        r_ref, o_ref, acc_ref = rest
    else:
        o_ref, acc_ref = rest

    k = pl.program_id(2)

    @pl.when(k == 0)
    def _():
        acc_ref[...] = jnp.zeros_like(acc_ref)

    acc_ref[...] += jnp.dot(x_ref[...], w_ref[...],
                            preferred_element_type=jnp.float32)

    @pl.when(k == pl.num_programs(2) - 1)
    def _():
        y = acc_ref[...] + b_ref[...]
        if has_residual:
            y = y + r_ref[...].astype(jnp.float32)
        if relu:
            y = jnp.maximum(y, 0.0)
        o_ref[...] = y.astype(o_ref.dtype)


def matmul_bias_act(x, w, bias, residual=None, relu=True,
                    out_dtype=jnp.bfloat16):
    """x:(M,K)  w:(K,N)  bias:(N,)  residual:(M,N)|None  ->  (M,N) out_dtype."""
    M, K = x.shape
    Kw, N = w.shape
    assert K == Kw, (K, Kw)

    # Pad to TPU-friendly tiles (zero padding is exact for the matmul).
    Kp = _round_up(K, 128)
    tk = 512 if Kp % 512 == 0 else (256 if Kp % 256 == 0 else 128)
    Np = _round_up(N, 128)
    tn = 256 if (Np >= 256 and Np % 256 == 0) else 128
    Mp = _round_up(M, 8)
    if Mp >= 256:
        tm = 256
        Mp = _round_up(M, tm)
    else:
        tm = Mp
    grid = (Mp // tm, Np // tn, Kp // tk)

    xp = jnp.pad(x.astype(jnp.bfloat16), ((0, Mp - M), (0, Kp - K)))
    wp = jnp.pad(w.astype(jnp.bfloat16), ((0, Kp - K), (0, Np - N)))
    bp = jnp.pad(bias.astype(jnp.float32).reshape(1, N),
                 ((0, 0), (0, Np - N)))

    args = [xp, wp, bp]
    in_specs = [
        pl.BlockSpec((tm, tk), lambda i, j, k: (i, k)),
        pl.BlockSpec((tk, tn), lambda i, j, k: (k, j)),
        pl.BlockSpec((1, tn), lambda i, j, k: (0, j)),
    ]
    if residual is not None:
        rp = jnp.pad(residual.astype(jnp.bfloat16),
                     ((0, Mp - M), (0, Np - N)))
        args.append(rp)
        in_specs.append(pl.BlockSpec((tm, tn), lambda i, j, k: (i, j)))

    kernel = functools.partial(_mm_kernel, relu=relu,
                               has_residual=residual is not None)
    bytes_acc = 2 * (Mp * Kp + Kp * Np + Mp * Np) + 4 * Np
    if residual is not None:
        bytes_acc += 2 * Mp * Np

    out = pl.pallas_call(
        kernel,
        out_shape=jax.ShapeDtypeStruct((Mp, Np), out_dtype),
        grid_spec=pltpu.PrefetchScalarGridSpec(
            num_scalar_prefetch=0,
            grid=grid,
            in_specs=in_specs,
            out_specs=pl.BlockSpec((tm, tn), lambda i, j, k: (i, j)),
            scratch_shapes=[pltpu.VMEM((tm, tn), jnp.float32)],
        ),
        compiler_params=pltpu.CompilerParams(
            dimension_semantics=("parallel", "parallel", "arbitrary")),
        cost_estimate=pl.CostEstimate(flops=2 * Mp * Np * Kp,
                                      transcendentals=0,
                                      bytes_accessed=bytes_acc),
    )(*args)
    return out[:M, :N]


# ---------------------------------------------------------------------------
# Fused AdaptiveAvgPool2d((1,1)) + Linear  (lane-dense padded output)
# ---------------------------------------------------------------------------

def avgpool_fc(x, w, b):
    """x: (B, H, W, C),  w: (C, N),  b: (N,)  ->  (B, N) float32 logits."""
    B, H, W, C = x.shape
    N = w.shape[1]
    Np = _round_up(N, 128)
    HW = H * W
    inv_hw = 1.0 / HW

    xf = x.reshape(B, HW, C).astype(jnp.bfloat16)
    wp = jnp.pad(w.astype(jnp.bfloat16), ((0, 0), (0, Np - N)))
    bp = jnp.pad(b.astype(jnp.float32).reshape(1, N), ((0, 0), (0, Np - N)))

    def kernel(x_ref, w_ref, b_ref, o_ref):
        pooled = jnp.sum(x_ref[...].astype(jnp.float32), axis=1) * inv_hw
        o_ref[...] = (jnp.dot(pooled.astype(jnp.bfloat16), w_ref[...],
                              preferred_element_type=jnp.float32)
                      + b_ref[...])

    out = pl.pallas_call(
        kernel,
        out_shape=jax.ShapeDtypeStruct((B, Np), jnp.float32),
    )(xf, wp, bp)
    return out[:, :N]


# ---------------------------------------------------------------------------
# Layout glue (plain JAX; XLA fuses these into cheap strided reads)
# ---------------------------------------------------------------------------

def im2col(x, kh, kw, stride, pad):
    """NHWC -> (B*Ho*Wo, kh*kw*Cin) patch matrix (layout glue)."""
    # TODO(synk): for large activations replace with in-kernel shifted-window
    # reads (kh*kw as a grid reduction axis); at these shapes the patch matrix
    # is a few hundred KiB so the amplification is negligible.
    B, H, W, C = x.shape
    Ho = (H + 2 * pad - kh) // stride + 1
    Wo = (W + 2 * pad - kw) // stride + 1
    xp = jnp.pad(x, ((0, 0), (pad, pad), (pad, pad), (0, 0)))
    cols = []
    for i in range(kh):
        for j in range(kw):
            cols.append(xp[:, i:i + stride * Ho:stride,
                           j:j + stride * Wo:stride, :])
    patches = jnp.stack(cols, axis=3)              # (B, Ho, Wo, kh*kw, C)
    return patches.reshape(B * Ho * Wo, kh * kw * C), Ho, Wo


def maxpool_3x3_s2_p1(x):
    """MaxPool2d(3, stride=2, padding=1) on NHWC.

    Fused jnp.maximum tree over 9 strided views (per perf review) instead of
    materializing a 9x patch stack in HBM.
    """
    B, H, W, C = x.shape
    Ho = (H + 2 - 3) // 2 + 1
    Wo = (W + 2 - 3) // 2 + 1
    xp = jnp.pad(x, ((0, 0), (1, 1), (1, 1), (0, 0)),
                 constant_values=-jnp.inf)
    out = None
    for i in range(3):
        for j in range(3):
            v = xp[:, i:i + 2 * Ho:2, j:j + 2 * Wo:2, :]
            out = v if out is None else jnp.maximum(out, v)
    return out


# ---------------------------------------------------------------------------
# Parameters (BN folded into weights) + static block config
# ---------------------------------------------------------------------------

def conv_w(key, cin, cout, k):
    std = (2.0 / (cin * k * k)) ** 0.5
    w = jax.random.normal(key, (cout, cin, k, k), jnp.float32) * std   # OIHW
    if k == 1:
        return w.reshape(cout, cin).T                                  # (Cin, Cout)
    return jnp.transpose(w, (2, 3, 1, 0)).reshape(k * k * cin, cout)   # (k*k*Cin, Cout)


def bn_params(key, c, eps=BN_EPS):
    k1, k2, k3, k4 = jax.random.split(key, 4)
    gamma = 1.0 + 0.1 * jax.random.normal(k1, (c,), jnp.float32)
    beta = 0.1 * jax.random.normal(k2, (c,), jnp.float32)
    mean = 0.1 * jax.random.normal(k3, (c,), jnp.float32)
    var = 1.0 + 0.1 * jax.random.uniform(k4, (c,), jnp.float32)
    scale = gamma / jnp.sqrt(var + eps)
    bias = beta - mean * scale
    return scale, bias


def block_config(layers):
    """Static (stride, has_ds) structure — kept OUT of the jit-traced pytree."""
    cfg = []
    in_c = 64
    for n_blocks, out_c in zip(layers, (64, 128, 256, 512)):
        stage = []
        for bi in range(n_blocks):
            s = 2 if bi == 0 else 1
            has_ds = (s != 1) or (in_c != out_c * 4)
            stage.append((s, has_ds))
            in_c = out_c * 4
        cfg.append(tuple(stage))
    return tuple(cfg)


def init_resnet(key, layers, image_channels, num_classes):
    keys = iter(jax.random.split(key, 4096))

    def conv_bn(cin, cout, k):
        w = conv_w(next(keys), cin, cout, k)
        scale, bias = bn_params(next(keys), cout)
        # Fold inference-mode BN scale into the weight columns (bf16 weights).
        return (w * scale[None, :]).astype(jnp.bfloat16), bias

    params = {}
    params["conv1_w"], params["conv1_b"] = conv_bn(image_channels, 64, 7)

    blocks = []
    in_c = 64
    for n_blocks, out_c in zip(layers, (64, 128, 256, 512)):
        stage = []
        for bi in range(n_blocks):
            s = 2 if bi == 0 else 1
            has_ds = (s != 1) or (in_c != out_c * 4)
            bp = {}
            bp["w1"], bp["b1"] = conv_bn(in_c, out_c, 1)
            bp["w2"], bp["b2"] = conv_bn(out_c, out_c, 3)
            bp["w3"], bp["b3"] = conv_bn(out_c, out_c * 4, 1)
            if has_ds:
                bp["wd"], bp["bd"] = conv_bn(in_c, out_c * 4, 1)
            stage.append(bp)
            in_c = out_c * 4
        blocks.append(stage)
    params["blocks"] = blocks

    fan_in = 512 * 4
    bound = 1.0 / (fan_in ** 0.5)
    params["fc_w"] = jax.random.uniform(
        next(keys), (fan_in, num_classes), jnp.float32, -bound, bound
    ).astype(jnp.bfloat16)
    params["fc_b"] = jax.random.uniform(
        next(keys), (num_classes,), jnp.float32, -bound, bound)
    return params


# ---------------------------------------------------------------------------
# Forward pass (mirrors ResNet.forward / Block.forward)
# ---------------------------------------------------------------------------

def bottleneck(x, p, stride, has_ds):
    """1x1 -> 3x3(stride) -> 1x1(x4) + residual, each a fused Pallas matmul."""
    B, H, W, C = x.shape
    out_c = p["w1"].shape[1]

    # conv1 1x1 + BN + ReLU
    y = matmul_bias_act(x.reshape(B * H * W, C), p["w1"], p["b1"], relu=True)
    y = y.reshape(B, H, W, out_c)

    # conv2 3x3 (stride) + BN + ReLU
    patches, Ho, Wo = im2col(y, 3, 3, stride, 1)
    y = matmul_bias_act(patches, p["w2"], p["b2"], relu=True)   # (B*Ho*Wo, out_c)

    # identity path (optional 1x1 stride conv + BN)
    if has_ds:
        ids = x[:, ::stride, ::stride, :].reshape(B * Ho * Wo, C)
        # TODO(synk): fuse this downsample matmul into the conv3 kernel to save
        # one HBM round trip of the residual tensor per downsampling block.
        identity = matmul_bias_act(ids, p["wd"], p["bd"], relu=False)
    else:
        identity = x.reshape(B * Ho * Wo, C)

    # conv3 1x1 + BN + residual add + ReLU (fused in the kernel epilogue)
    y = matmul_bias_act(y, p["w3"], p["b3"], residual=identity, relu=True)
    return y.reshape(B, Ho, Wo, out_c * 4)


def make_forward(layers):
    cfg = block_config(layers)   # static: strides / downsample flags

    @jax.jit
    def forward(params, x_nchw):
        # PyTorch NCHW -> TPU-friendly NHWC (channels on the lane dim), bf16.
        x = jnp.transpose(x_nchw, (0, 2, 3, 1)).astype(jnp.bfloat16)
        B = x.shape[0]

        # Stem: 7x7 s2 p3 conv + BN + ReLU (fused matmul), then 3x3 s2 maxpool.
        patches, Ho, Wo = im2col(x, 7, 7, 2, 3)
        y = matmul_bias_act(patches, params["conv1_w"], params["conv1_b"],
                            relu=True).reshape(B, Ho, Wo, 64)
        y = maxpool_3x3_s2_p1(y)

        # Residual stages.
        for stage_cfg, stage_params in zip(cfg, params["blocks"]):
            for (stride, has_ds), bp in zip(stage_cfg, stage_params):
                y = bottleneck(y, bp, stride, has_ds)

        # AdaptiveAvgPool2d((1,1)) + flatten + Linear (fused Pallas kernel).
        return avgpool_fc(y, params["fc_w"], params["fc_b"])

    return forward


# ---------------------------------------------------------------------------

if __name__ == "__main__":
    key = jax.random.PRNGKey(0)
    k_params, k_x = jax.random.split(key)

    layers = (1, 1, 1, 1)          # one bottleneck block per stage (small cfg)
    image_channels = 3
    params = init_resnet(k_params, layers, image_channels, NUM_CLASSES)
    forward = make_forward(layers)

    # Input in PyTorch NCHW convention.
    x = jax.random.normal(k_x, (2, image_channels, 32, 32), jnp.float32)

    out = forward(params, x)
    out = jax.block_until_ready(out)
    assert out.shape == (2, NUM_CLASSES), out.shape
    assert bool(jnp.all(jnp.isfinite(out)))
    print("KERNEL_OK")
</pallas_src>

<mosaic_0001>
module attributes {stable_mosaic.version = 11 : i64} {
  func.func @_mm_kernel(%arg0: i32, %arg1: i32, %arg2: i32, %arg3: memref<256x256xbf16, #tpu.memory_space<vmem>>, %arg4: memref<256x128xbf16, #tpu.memory_space<vmem>>, %arg5: memref<1x128xf32, #tpu.memory_space<vmem>>, %arg6: memref<256x128xbf16, #tpu.memory_space<vmem>>, %arg7: memref<256x128xf32, #tpu.memory_space<vmem>>) attributes {dimension_semantics = [#tpu.dimension_semantics<parallel>, #tpu.dimension_semantics<parallel>, #tpu.dimension_semantics<arbitrary>], iteration_bounds = array<i64: 2, 1, 1>, scalar_prefetch = 0 : i64, scratch_operands = 1 : i64, tpu.core_type = #tpu.core_type<tc>, window_params = [{transform_indices = @transform_0, window_bounds = array<i64: 256, 256>}, {transform_indices = @transform_1, window_bounds = array<i64: 256, 128>}, {transform_indices = @transform_2, window_bounds = array<i64: 1, 128>}, {transform_indices = @transform_3, window_bounds = array<i64: 256, 128>}]} {
    %c0_i32 = arith.constant 0 : i32
    %0 = arith.cmpi eq, %arg2, %c0_i32 : i32
    %1 = arith.extui %0 : i1 to i32
    %c0_i32_0 = arith.constant 0 : i32
    %2 = arith.cmpi ne, %1, %c0_i32_0 : i32
    scf.if %2 {
      %cst_10 = arith.constant 0.000000e+00 : f32
      %12 = vector.broadcast %cst_10 : f32 to vector<256x128xf32>
      %c0_11 = arith.constant 0 : index
      %c0_12 = arith.constant 0 : index
      %13 = vector.load %arg7[%c0_11, %c0_12] : memref<256x128xf32, #tpu.memory_space<vmem>>, vector<256x128xf32>
      tpu.vector_store %arg7[%c0_11, %c0_12], %12 {strides = array<i32>} : memref<256x128xf32, #tpu.memory_space<vmem>>, vector<256x128xf32>,
    } else {
    }
    %c0 = arith.constant 0 : index
    %c0_1 = arith.constant 0 : index
    %3 = vector.load %arg7[%c0, %c0_1] : memref<256x128xf32, #tpu.memory_space<vmem>>, vector<256x128xf32>
    %c0_2 = arith.constant 0 : index
    %c0_3 = arith.constant 0 : index
    %4 = vector.load %arg3[%c0_2, %c0_3] : memref<256x256xbf16, #tpu.memory_space<vmem>>, vector<256x256xbf16>
    %c0_4 = arith.constant 0 : index
    %c0_5 = arith.constant 0 : index
    %5 = vector.load %arg4[%c0_4, %c0_5] : memref<256x128xbf16, #tpu.memory_space<vmem>>, vector<256x128xbf16>
    %cst = arith.constant dense<0.000000e+00> : vector<256x128xf32>
    %6 = tpu.matmul %4, %5, %cst {dimension_numbers = #tpu.dot_dimension_numbers<[1], [0], [0], [1], [0, 0, 1, 1], [], []>} : vector<256x256xbf16>, vector<256x128xbf16>, vector<256x128xf32> -> vector<256x128xf32>
    %7 = arith.addf %3, %6 : vector<256x128xf32>
    %c0_6 = arith.constant 0 : index
    %c0_7 = arith.constant 0 : index
    %8 = vector.load %arg7[%c0_6, %c0_7] : memref<256x128xf32, #tpu.memory_space<vmem>>, vector<256x128xf32>
    tpu.vector_store %arg7[%c0_6, %c0_7], %7 {strides = array<i32>} : memref<256x128xf32, #tpu.memory_space<vmem>>, vector<256x128xf32>,
    %c0_i32_8 = arith.constant 0 : i32
    %9 = arith.cmpi eq, %arg2, %c0_i32_8 : i32
    %10 = arith.extui %9 : i1 to i32
    %c0_i32_9 = arith.constant 0 : i32
    %11 = arith.cmpi ne, %10, %c0_i32_9 : i32
    scf.if %11 {
      %c0_10 = arith.constant 0 : index
      %c0_11 = arith.constant 0 : index
      %12 = vector.load %arg7[%c0_10, %c0_11] : memref<256x128xf32, #tpu.memory_space<vmem>>, vector<256x128xf32>
      %c0_12 = arith.constant 0 : index
      %c0_13 = arith.constant 0 : index
      %13 = vector.load %arg5[%c0_12, %c0_13] : memref<1x128xf32, #tpu.memory_space<vmem>>, vector<1x128xf32>
      %14 = vector.broadcast %13 : vector<1x128xf32> to vector<256x128xf32>
      %15 = arith.addf %12, %14 : vector<256x128xf32>
      %cst_14 = arith.constant 0.000000e+00 : f32
      %16 = vector.broadcast %cst_14 : f32 to vector<256x128xf32>
      %17 = arith.maximumf %15, %16 : vector<256x128xf32>
      %18 = arith.truncf %17 : vector<256x128xf32> to vector<256x128xbf16>
      %c0_15 = arith.constant 0 : index
      %c0_16 = arith.constant 0 : index
      %19 = vector.load %arg6[%c0_15, %c0_16] : memref<256x128xbf16, #tpu.memory_space<vmem>>, vector<256x128xbf16>
      tpu.vector_store %arg6[%c0_15, %c0_16], %18 {strides = array<i32>} : memref<256x128xbf16, #tpu.memory_space<vmem>>, vector<256x128xbf16>,
    } else {
    }
    return
  }
  func.func @transform_0(%arg0: i32, %arg1: i32, %arg2: i32) -> (i32, i32) {
    %c0_i32 = arith.constant 0 : i32
    return %arg0, %arg2 : i32, i32
  }
  func.func @transform_1(%arg0: i32, %arg1: i32, %arg2: i32) -> (i32, i32) {
    %c0_i32 = arith.constant 0 : i32
    return %arg2, %arg1 : i32, i32
  }
  func.func @transform_2(%arg0: i32, %arg1: i32, %arg2: i32) -> (i32, i32) {
    %c0_i32 = arith.constant 0 : i32
    %c0_i32_0 = arith.constant 0 : i32
    return %c0_i32, %arg1 : i32, i32
  }
  func.func @transform_3(%arg0: i32, %arg1: i32, %arg2: i32) -> (i32, i32) {
    %c0_i32 = arith.constant 0 : i32
    return %arg0, %arg1 : i32, i32
  }
}

module attributes {stable_mosaic.version = 11 : i64} {
  func.func @_mm_kernel(%arg0: i32, %arg1: i32, %arg2: i32, %arg3: memref<128x128xbf16, #tpu.memory_space<vmem>>, %arg4: memref<128x128xbf16, #tpu.memory_space<vmem>>, %arg5: memref<1x128xf32, #tpu.memory_space<vmem>>, %arg6: memref<128x128xbf16, #tpu.memory_space<vmem>>, %arg7: memref<128x128xf32, #tpu.memory_space<vmem>>) attributes {dimension_semantics = [#tpu.dimension_semantics<parallel>, #tpu.dimension_semantics<parallel>, #tpu.dimension_semantics<arbitrary>], iteration_bounds = array<i64: 1, 1, 1>, scalar_prefetch = 0 : i64, scratch_operands = 1 : i64, tpu.core_type = #tpu.core_type<tc>, window_params = [{transform_indices = @transform_0, window_bounds = array<i64: 128, 128>}, {transform_indices = @transform_1, window_bounds = array<i64: 128, 128>}, {transform_indices = @transform_2, window_bounds = array<i64: 1, 128>}, {transform_indices = @transform_3, window_bounds = array<i64: 128, 128>}]} {
    %c0_i32 = arith.constant 0 : i32
    %0 = arith.cmpi eq, %arg2, %c0_i32 : i32
    %1 = arith.extui %0 : i1 to i32
    %c0_i32_0 = arith.constant 0 : i32
    %2 = arith.cmpi ne, %1, %c0_i32_0 : i32
    scf.if %2 {
      %cst_10 = arith.constant 0.000000e+00 : f32
      %12 = vector.broadcast %cst_10 : f32 to vector<128x128xf32>
      %c0_11 = arith.constant 0 : index
      %c0_12 = arith.constant 0 : index
      %13 = vector.load %arg7[%c0_11, %c0_12] : memref<128x128xf32, #tpu.memory_space<vmem>>, vector<128x128xf32>
      tpu.vector_store %arg7[%c0_11, %c0_12], %12 {strides = array<i32>} : memref<128x128xf32, #tpu.memory_space<vmem>>, vector<128x128xf32>,
    } else {
    }
    %c0 = arith.constant 0 : index
    %c0_1 = arith.constant 0 : index
    %3 = vector.load %arg7[%c0, %c0_1] : memref<128x128xf32, #tpu.memory_space<vmem>>, vector<128x128xf32>
    %c0_2 = arith.constant 0 : index
    %c0_3 = arith.constant 0 : index
    %4 = vector.load %arg3[%c0_2, %c0_3] : memref<128x128xbf16, #tpu.memory_space<vmem>>, vector<128x128xbf16>
    %c0_4 = arith.constant 0 : index
    %c0_5 = arith.constant 0 : index
    %5 = vector.load %arg4[%c0_4, %c0_5] : memref<128x128xbf16, #tpu.memory_space<vmem>>, vector<128x128xbf16>
    %cst = arith.constant dense<0.000000e+00> : vector<128x128xf32>
    %6 = tpu.matmul %4, %5, %cst {dimension_numbers = #tpu.dot_dimension_numbers<[1], [0], [0], [1], [0, 0, 1, 1], [], []>} : vector<128x128xbf16>, vector<128x128xbf16>, vector<128x128xf32> -> vector<128x128xf32>
    %7 = arith.addf %3, %6 : vector<128x128xf32>
    %c0_6 = arith.constant 0 : index
    %c0_7 = arith.constant 0 : index
    %8 = vector.load %arg7[%c0_6, %c0_7] : memref<128x128xf32, #tpu.memory_space<vmem>>, vector<128x128xf32>
    tpu.vector_store %arg7[%c0_6, %c0_7], %7 {strides = array<i32>} : memref<128x128xf32, #tpu.memory_space<vmem>>, vector<128x128xf32>,
    %c0_i32_8 = arith.constant 0 : i32
    %9 = arith.cmpi eq, %arg2, %c0_i32_8 : i32
    %10 = arith.extui %9 : i1 to i32
    %c0_i32_9 = arith.constant 0 : i32
    %11 = arith.cmpi ne, %10, %c0_i32_9 : i32
    scf.if %11 {
      %c0_10 = arith.constant 0 : index
      %c0_11 = arith.constant 0 : index
      %12 = vector.load %arg7[%c0_10, %c0_11] : memref<128x128xf32, #tpu.memory_space<vmem>>, vector<128x128xf32>
      %c0_12 = arith.constant 0 : index
      %c0_13 = arith.constant 0 : index
      %13 = vector.load %arg5[%c0_12, %c0_13] : memref<1x128xf32, #tpu.memory_space<vmem>>, vector<1x128xf32>
      %14 = vector.broadcast %13 : vector<1x128xf32> to vector<128x128xf32>
      %15 = arith.addf %12, %14 : vector<128x128xf32>
      %cst_14 = arith.constant 0.000000e+00 : f32
      %16 = vector.broadcast %cst_14 : f32 to vector<128x128xf32>
      %17 = arith.maximumf %15, %16 : vector<128x128xf32>
      %18 = arith.truncf %17 : vector<128x128xf32> to vector<128x128xbf16>
      %c0_15 = arith.constant 0 : index
      %c0_16 = arith.constant 0 : index
      %19 = vector.load %arg6[%c0_15, %c0_16] : memref<128x128xbf16, #tpu.memory_space<vmem>>, vector<128x128xbf16>
      tpu.vector_store %arg6[%c0_15, %c0_16], %18 {strides = array<i32>} : memref<128x128xbf16, #tpu.memory_space<vmem>>, vector<128x128xbf16>,
    } else {
    }
    return
  }
  func.func @transform_0(%arg0: i32, %arg1: i32, %arg2: i32) -> (i32, i32) {
    %c0_i32 = arith.constant 0 : i32
    return %arg0, %arg2 : i32, i32
  }
  func.func @transform_1(%arg0: i32, %arg1: i32, %arg2: i32) -> (i32, i32) {
    %c0_i32 = arith.constant 0 : i32
    return %arg2, %arg1 : i32, i32
  }
  func.func @transform_2(%arg0: i32, %arg1: i32, %arg2: i32) -> (i32, i32) {
    %c0_i32 = arith.constant 0 : i32
    %c0_i32_0 = arith.constant 0 : i32
    return %c0_i32, %arg1 : i32, i32
  }
  func.func @transform_3(%arg0: i32, %arg1: i32, %arg2: i32) -> (i32, i32) {
    %c0_i32 = arith.constant 0 : i32
    return %arg0, %arg1 : i32, i32
  }
}

module attributes {stable_mosaic.version = 11 : i64} {
  func.func @_mm_kernel(%arg0: i32, %arg1: i32, %arg2: i32, %arg3: memref<32x128xbf16, #tpu.memory_space<vmem>>, %arg4: memref<128x128xbf16, #tpu.memory_space<vmem>>, %arg5: memref<1x128xf32, #tpu.memory_space<vmem>>, %arg6: memref<32x128xbf16, #tpu.memory_space<vmem>>, %arg7: memref<32x128xf32, #tpu.memory_space<vmem>>) attributes {dimension_semantics = [#tpu.dimension_semantics<parallel>, #tpu.dimension_semantics<parallel>, #tpu.dimension_semantics<arbitrary>], iteration_bounds = array<i64: 1, 1, 5>, scalar_prefetch = 0 : i64, scratch_operands = 1 : i64, tpu.core_type = #tpu.core_type<tc>, window_params = [{transform_indices = @transform_0, window_bounds = array<i64: 32, 128>}, {transform_indices = @transform_1, window_bounds = array<i64: 128, 128>}, {transform_indices = @transform_2, window_bounds = array<i64: 1, 128>}, {transform_indices = @transform_3, window_bounds = array<i64: 32, 128>}]} {
    %c0_i32 = arith.constant 0 : i32
    %0 = arith.cmpi eq, %arg2, %c0_i32 : i32
    %1 = arith.extui %0 : i1 to i32
    %c0_i32_0 = arith.constant 0 : i32
    %2 = arith.cmpi ne, %1, %c0_i32_0 : i32
    scf.if %2 {
      %cst_9 = arith.constant 0.000000e+00 : f32
      %12 = vector.broadcast %cst_9 : f32 to vector<32x128xf32>
      %c0_10 = arith.constant 0 : index
      %c0_11 = arith.constant 0 : index
      %13 = vector.load %arg7[%c0_10, %c0_11] : memref<32x128xf32, #tpu.memory_space<vmem>>, vector<32x128xf32>
      tpu.vector_store %arg7[%c0_10, %c0_11], %12 {strides = array<i32>} : memref<32x128xf32, #tpu.memory_space<vmem>>, vector<32x128xf32>,
    } else {
    }
    %c0 = arith.constant 0 : index
    %c0_1 = arith.constant 0 : index
    %3 = vector.load %arg7[%c0, %c0_1] : memref<32x128xf32, #tpu.memory_space<vmem>>, vector<32x128xf32>
    %c0_2 = arith.constant 0 : index
    %c0_3 = arith.constant 0 : index
    %4 = vector.load %arg3[%c0_2, %c0_3] : memref<32x128xbf16, #tpu.memory_space<vmem>>, vector<32x128xbf16>
    %c0_4 = arith.constant 0 : index
    %c0_5 = arith.constant 0 : index
    %5 = vector.load %arg4[%c0_4, %c0_5] : memref<128x128xbf16, #tpu.memory_space<vmem>>, vector<128x128xbf16>
    %cst = arith.constant dense<0.000000e+00> : vector<32x128xf32>
    %6 = tpu.matmul %4, %5, %cst {dimension_numbers = #tpu.dot_dimension_numbers<[1], [0], [0], [1], [0, 0, 1, 1], [], []>} : vector<32x128xbf16>, vector<128x128xbf16>, vector<32x128xf32> -> vector<32x128xf32>
    %7 = arith.addf %3, %6 : vector<32x128xf32>
    %c0_6 = arith.constant 0 : index
    %c0_7 = arith.constant 0 : index
    %8 = vector.load %arg7[%c0_6, %c0_7] : memref<32x128xf32, #tpu.memory_space<vmem>>, vector<32x128xf32>
    tpu.vector_store %arg7[%c0_6, %c0_7], %7 {strides = array<i32>} : memref<32x128xf32, #tpu.memory_space<vmem>>, vector<32x128xf32>,
    %c4_i32 = arith.constant 4 : i32
    %9 = arith.cmpi eq, %arg2, %c4_i32 : i32
    %10 = arith.extui %9 : i1 to i32
    %c0_i32_8 = arith.constant 0 : i32
    %11 = arith.cmpi ne, %10, %c0_i32_8 : i32
    scf.if %11 {
      %c0_9 = arith.constant 0 : index
      %c0_10 = arith.constant 0 : index
      %12 = vector.load %arg7[%c0_9, %c0_10] : memref<32x128xf32, #tpu.memory_space<vmem>>, vector<32x128xf32>
      %c0_11 = arith.constant 0 : index
      %c0_12 = arith.constant 0 : index
      %13 = vector.load %arg5[%c0_11, %c0_12] : memref<1x128xf32, #tpu.memory_space<vmem>>, vector<1x128xf32>
      %14 = vector.broadcast %13 : vector<1x128xf32> to vector<32x128xf32>
      %15 = arith.addf %12, %14 : vector<32x128xf32>
      %cst_13 = arith.constant 0.000000e+00 : f32
      %16 = vector.broadcast %cst_13 : f32 to vector<32x128xf32>
      %17 = arith.maximumf %15, %16 : vector<32x128xf32>
      %18 = arith.truncf %17 : vector<32x128xf32> to vector<32x128xbf16>
      %c0_14 = arith.constant 0 : index
      %c0_15 = arith.constant 0 : index
      %19 = vector.load %arg6[%c0_14, %c0_15] : memref<32x128xbf16, #tpu.memory_space<vmem>>, vector<32x128xbf16>
      tpu.vector_store %arg6[%c0_14, %c0_15], %18 {strides = array<i32>} : memref<32x128xbf16, #tpu.memory_space<vmem>>, vector<32x128xbf16>,
    } else {
    }
    return
  }
  func.func @transform_0(%arg0: i32, %arg1: i32, %arg2: i32) -> (i32, i32) {
    %c0_i32 = arith.constant 0 : i32
    return %arg0, %arg2 : i32, i32
  }
  func.func @transform_1(%arg0: i32, %arg1: i32, %arg2: i32) -> (i32, i32) {
    %c0_i32 = arith.constant 0 : i32
    return %arg2, %arg1 : i32, i32
  }
  func.func @transform_2(%arg0: i32, %arg1: i32, %arg2: i32) -> (i32, i32) {
    %c0_i32 = arith.constant 0 : i32
    %c0_i32_0 = arith.constant 0 : i32
    return %c0_i32, %arg1 : i32, i32
  }
  func.func @transform_3(%arg0: i32, %arg1: i32, %arg2: i32) -> (i32, i32) {
    %c0_i32 = arith.constant 0 : i32
    return %arg0, %arg1 : i32, i32
  }
}

module attributes {stable_mosaic.version = 11 : i64} {
  func.func @_mm_kernel(%arg0: i32, %arg1: i32, %arg2: i32, %arg3: memref<32x128xbf16, #tpu.memory_space<vmem>>, %arg4: memref<128x256xbf16, #tpu.memory_space<vmem>>, %arg5: memref<1x256xf32, #tpu.memory_space<vmem>>, %arg6: memref<32x256xbf16, #tpu.memory_space<vmem>>, %arg7: memref<32x256xbf16, #tpu.memory_space<vmem>>, %arg8: memref<32x256xf32, #tpu.memory_space<vmem>>) attributes {dimension_semantics = [#tpu.dimension_semantics<parallel>, #tpu.dimension_semantics<parallel>, #tpu.dimension_semantics<arbitrary>], iteration_bounds = array<i64: 1, 1, 1>, scalar_prefetch = 0 : i64, scratch_operands = 1 : i64, tpu.core_type = #tpu.core_type<tc>, window_params = [{transform_indices = @transform_0, window_bounds = array<i64: 32, 128>}, {transform_indices = @transform_1, window_bounds = array<i64: 128, 256>}, {transform_indices = @transform_2, window_bounds = array<i64: 1, 256>}, {transform_indices = @transform_3, window_bounds = array<i64: 32, 256>}, {transform_indices = @transform_4, window_bounds = array<i64: 32, 256>}]} {
    %c0_i32 = arith.constant 0 : i32
    %0 = arith.cmpi eq, %arg2, %c0_i32 : i32
    %1 = arith.extui %0 : i1 to i32
    %c0_i32_0 = arith.constant 0 : i32
    %2 = arith.cmpi ne, %1, %c0_i32_0 : i32
    scf.if %2 {
      %cst_10 = arith.constant 0.000000e+00 : f32
      %12 = vector.broadcast %cst_10 : f32 to vector<32x256xf32>
      %c0_11 = arith.constant 0 : index
      %c0_12 = arith.constant 0 : index
      %13 = vector.load %arg8[%c0_11, %c0_12] : memref<32x256xf32, #tpu.memory_space<vmem>>, vector<32x256xf32>
      tpu.vector_store %arg8[%c0_11, %c0_12], %12 {strides = array<i32>} : memref<32x256xf32, #tpu.memory_space<vmem>>, vector<32x256xf32>,
    } else {
    }
    %c0 = arith.constant 0 : index
    %c0_1 = arith.constant 0 : index
    %3 = vector.load %arg8[%c0, %c0_1] : memref<32x256xf32, #tpu.memory_space<vmem>>, vector<32x256xf32>
    %c0_2 = arith.constant 0 : index
    %c0_3 = arith.constant 0 : index
    %4 = vector.load %arg3[%c0_2, %c0_3] : memref<32x128xbf16, #tpu.memory_space<vmem>>, vector<32x128xbf16>
    %c0_4 = arith.constant 0 : index
    %c0_5 = arith.constant 0 : index
    %5 = vector.load %arg4[%c0_4, %c0_5] : memref<128x256xbf16, #tpu.memory_space<vmem>>, vector<128x256xbf16>
    %cst = arith.constant dense<0.000000e+00> : vector<32x256xf32>
    %6 = tpu.matmul %4, %5, %cst {dimension_numbers = #tpu.dot_dimension_numbers<[1], [0], [0], [1], [0, 0, 1, 1], [], []>} : vector<32x128xbf16>, vector<128x256xbf16>, vector<32x256xf32> -> vector<32x256xf32>
    %7 = arith.addf %3, %6 : vector<32x256xf32>
    %c0_6 = arith.constant 0 : index
    %c0_7 = arith.constant 0 : index
    %8 = vector.load %arg8[%c0_6, %c0_7] : memref<32x256xf32, #tpu.memory_space<vmem>>, vector<32x256xf32>
    tpu.vector_store %arg8[%c0_6, %c0_7], %7 {strides = array<i32>} : memref<32x256xf32, #tpu.memory_space<vmem>>, vector<32x256xf32>,
    %c0_i32_8 = arith.constant 0 : i32
    %9 = arith.cmpi eq, %arg2, %c0_i32_8 : i32
    %10 = arith.extui %9 : i1 to i32
    %c0_i32_9 = arith.constant 0 : i32
    %11 = arith.cmpi ne, %10, %c0_i32_9 : i32
    scf.if %11 {
      %c0_10 = arith.constant 0 : index
      %c0_11 = arith.constant 0 : index
      %12 = vector.load %arg8[%c0_10, %c0_11] : memref<32x256xf32, #tpu.memory_space<vmem>>, vector<32x256xf32>
      %c0_12 = arith.constant 0 : index
      %c0_13 = arith.constant 0 : index
      %13 = vector.load %arg5[%c0_12, %c0_13] : memref<1x256xf32, #tpu.memory_space<vmem>>, vector<1x256xf32>
      %14 = vector.broadcast %13 : vector<1x256xf32> to vector<32x256xf32>
      %15 = arith.addf %12, %14 : vector<32x256xf32>
      %c0_14 = arith.constant 0 : index
      %c0_15 = arith.constant 0 : index
      %16 = vector.load %arg6[%c0_14, %c0_15] : memref<32x256xbf16, #tpu.memory_space<vmem>>, vector<32x256xbf16>
      %17 = arith.extf %16 : vector<32x256xbf16> to vector<32x256xf32>
      %18 = arith.addf %15, %17 : vector<32x256xf32>
      %cst_16 = arith.constant 0.000000e+00 : f32
      %19 = vector.broadcast %cst_16 : f32 to vector<32x256xf32>
      %20 = arith.maximumf %18, %19 : vector<32x256xf32>
      %21 = arith.truncf %20 : vector<32x256xf32> to vector<32x256xbf16>
      %c0_17 = arith.constant 0 : index
      %c0_18 = arith.constant 0 : index
      %22 = vector.load %arg7[%c0_17, %c0_18] : memref<32x256xbf16, #tpu.memory_space<vmem>>, vector<32x256xbf16>
      tpu.vector_store %arg7[%c0_17, %c0_18], %21 {strides = array<i32>} : memref<32x256xbf16, #tpu.memory_space<vmem>>, vector<32x256xbf16>,
    } else {
    }
    return
  }
  func.func @transform_0(%arg0: i32, %arg1: i32, %arg2: i32) -> (i32, i32) {
    %c0_i32 = arith.constant 0 : i32
    return %arg0, %arg2 : i32, i32
  }
  func.func @transform_1(%arg0: i32, %arg1: i32, %arg2: i32) -> (i32, i32) {
    %c0_i32 = arith.constant 0 : i32
    return %arg2, %arg1 : i32, i32
  }
  func.func @transform_2(%arg0: i32, %arg1: i32, %arg2: i32) -> (i32, i32) {
    %c0_i32 = arith.constant 0 : i32
    %c0_i32_0 = arith.constant 0 : i32
    return %c0_i32, %arg1 : i32, i32
  }
  func.func @transform_3(%arg0: i32, %arg1: i32, %arg2: i32) -> (i32, i32) {
    %c0_i32 = arith.constant 0 : i32
    return %arg0, %arg1 : i32, i32
  }
  func.func @transform_4(%arg0: i32, %arg1: i32, %arg2: i32) -> (i32, i32) {
    %c0_i32 = arith.constant 0 : i32
    return %arg0, %arg1 : i32, i32
  }
}

module attributes {stable_mosaic.version = 11 : i64} {
  func.func @_mm_kernel(%arg0: i32, %arg1: i32, %arg2: i32, %arg3: memref<32x128xbf16, #tpu.memory_space<vmem>>, %arg4: memref<128x256xbf16, #tpu.memory_space<vmem>>, %arg5: memref<1x256xf32, #tpu.memory_space<vmem>>, %arg6: memref<32x256xbf16, #tpu.memory_space<vmem>>, %arg7: memref<32x256xf32, #tpu.memory_space<vmem>>) attributes {dimension_semantics = [#tpu.dimension_semantics<parallel>, #tpu.dimension_semantics<parallel>, #tpu.dimension_semantics<arbitrary>], iteration_bounds = array<i64: 1, 1, 1>, scalar_prefetch = 0 : i64, scratch_operands = 1 : i64, tpu.core_type = #tpu.core_type<tc>, window_params = [{transform_indices = @transform_0, window_bounds = array<i64: 32, 128>}, {transform_indices = @transform_1, window_bounds = array<i64: 128, 256>}, {transform_indices = @transform_2, window_bounds = array<i64: 1, 256>}, {transform_indices = @transform_3, window_bounds = array<i64: 32, 256>}]} {
    %c0_i32 = arith.constant 0 : i32
    %0 = arith.cmpi eq, %arg2, %c0_i32 : i32
    %1 = arith.extui %0 : i1 to i32
    %c0_i32_0 = arith.constant 0 : i32
    %2 = arith.cmpi ne, %1, %c0_i32_0 : i32
    scf.if %2 {
      %cst_10 = arith.constant 0.000000e+00 : f32
      %12 = vector.broadcast %cst_10 : f32 to vector<32x256xf32>
      %c0_11 = arith.constant 0 : index
      %c0_12 = arith.constant 0 : index
      %13 = vector.load %arg7[%c0_11, %c0_12] : memref<32x256xf32, #tpu.memory_space<vmem>>, vector<32x256xf32>
      tpu.vector_store %arg7[%c0_11, %c0_12], %12 {strides = array<i32>} : memref<32x256xf32, #tpu.memory_space<vmem>>, vector<32x256xf32>,
    } else {
    }
    %c0 = arith.constant 0 : index
    %c0_1 = arith.constant 0 : index
    %3 = vector.load %arg7[%c0, %c0_1] : memref<32x256xf32, #tpu.memory_space<vmem>>, vector<32x256xf32>
    %c0_2 = arith.constant 0 : index
    %c0_3 = arith.constant 0 : index
    %4 = vector.load %arg3[%c0_2, %c0_3] : memref<32x128xbf16, #tpu.memory_space<vmem>>, vector<32x128xbf16>
    %c0_4 = arith.constant 0 : index
    %c0_5 = arith.constant 0 : index
    %5 = vector.load %arg4[%c0_4, %c0_5] : memref<128x256xbf16, #tpu.memory_space<vmem>>, vector<128x256xbf16>
    %cst = arith.constant dense<0.000000e+00> : vector<32x256xf32>
    %6 = tpu.matmul %4, %5, %cst {dimension_numbers = #tpu.dot_dimension_numbers<[1], [0], [0], [1], [0, 0, 1, 1], [], []>} : vector<32x128xbf16>, vector<128x256xbf16>, vector<32x256xf32> -> vector<32x256xf32>
    %7 = arith.addf %3, %6 : vector<32x256xf32>
    %c0_6 = arith.constant 0 : index
    %c0_7 = arith.constant 0 : index
    %8 = vector.load %arg7[%c0_6, %c0_7] : memref<32x256xf32, #tpu.memory_space<vmem>>, vector<32x256xf32>
    tpu.vector_store %arg7[%c0_6, %c0_7], %7 {strides = array<i32>} : memref<32x256xf32, #tpu.memory_space<vmem>>, vector<32x256xf32>,
    %c0_i32_8 = arith.constant 0 : i32
    %9 = arith.cmpi eq, %arg2, %c0_i32_8 : i32
    %10 = arith.extui %9 : i1 to i32
    %c0_i32_9 = arith.constant 0 : i32
    %11 = arith.cmpi ne, %10, %c0_i32_9 : i32
    scf.if %11 {
      %c0_10 = arith.constant 0 : index
      %c0_11 = arith.constant 0 : index
      %12 = vector.load %arg7[%c0_10, %c0_11] : memref<32x256xf32, #tpu.memory_space<vmem>>, vector<32x256xf32>
      %c0_12 = arith.constant 0 : index
      %c0_13 = arith.constant 0 : index
      %13 = vector.load %arg5[%c0_12, %c0_13] : memref<1x256xf32, #tpu.memory_space<vmem>>, vector<1x256xf32>
      %14 = vector.broadcast %13 : vector<1x256xf32> to vector<32x256xf32>
      %15 = arith.addf %12, %14 : vector<32x256xf32>
      %16 = arith.truncf %15 : vector<32x256xf32> to vector<32x256xbf16>
      %c0_14 = arith.constant 0 : index
      %c0_15 = arith.constant 0 : index
      %17 = vector.load %arg6[%c0_14, %c0_15] : memref<32x256xbf16, #tpu.memory_space<vmem>>, vector<32x256xbf16>
      tpu.vector_store %arg6[%c0_14, %c0_15], %16 {strides = array<i32>} : memref<32x256xbf16, #tpu.memory_space<vmem>>, vector<32x256xbf16>,
    } else {
    }
    return
  }
  func.func @transform_0(%arg0: i32, %arg1: i32, %arg2: i32) -> (i32, i32) {
    %c0_i32 = arith.constant 0 : i32
    return %arg0, %arg2 : i32, i32
  }
  func.func @transform_1(%arg0: i32, %arg1: i32, %arg2: i32) -> (i32, i32) {
    %c0_i32 = arith.constant 0 : i32
    return %arg2, %arg1 : i32, i32
  }
  func.func @transform_2(%arg0: i32, %arg1: i32, %arg2: i32) -> (i32, i32) {
    %c0_i32 = arith.constant 0 : i32
    %c0_i32_0 = arith.constant 0 : i32
    return %c0_i32, %arg1 : i32, i32
  }
  func.func @transform_3(%arg0: i32, %arg1: i32, %arg2: i32) -> (i32, i32) {
    %c0_i32 = arith.constant 0 : i32
    return %arg0, %arg1 : i32, i32
  }
}

module attributes {stable_mosaic.version = 11 : i64} {
  func.func @_mm_kernel(%arg0: i32, %arg1: i32, %arg2: i32, %arg3: memref<32x256xbf16, #tpu.memory_space<vmem>>, %arg4: memref<256x128xbf16, #tpu.memory_space<vmem>>, %arg5: memref<1x128xf32, #tpu.memory_space<vmem>>, %arg6: memref<32x128xbf16, #tpu.memory_space<vmem>>, %arg7: memref<32x128xf32, #tpu.memory_space<vmem>>) attributes {dimension_semantics = [#tpu.dimension_semantics<parallel>, #tpu.dimension_semantics<parallel>, #tpu.dimension_semantics<arbitrary>], iteration_bounds = array<i64: 1, 1, 1>, scalar_prefetch = 0 : i64, scratch_operands = 1 : i64, tpu.core_type = #tpu.core_type<tc>, window_params = [{transform_indices = @transform_0, window_bounds = array<i64: 32, 256>}, {transform_indices = @transform_1, window_bounds = array<i64: 256, 128>}, {transform_indices = @transform_2, window_bounds = array<i64: 1, 128>}, {transform_indices = @transform_3, window_bounds = array<i64: 32, 128>}]} {
    %c0_i32 = arith.constant 0 : i32
    %0 = arith.cmpi eq, %arg2, %c0_i32 : i32
    %1 = arith.extui %0 : i1 to i32
    %c0_i32_0 = arith.constant 0 : i32
    %2 = arith.cmpi ne, %1, %c0_i32_0 : i32
    scf.if %2 {
      %cst_10 = arith.constant 0.000000e+00 : f32
      %12 = vector.broadcast %cst_10 : f32 to vector<32x128xf32>
      %c0_11 = arith.constant 0 : index
      %c0_12 = arith.constant 0 : index
      %13 = vector.load %arg7[%c0_11, %c0_12] : memref<32x128xf32, #tpu.memory_space<vmem>>, vector<32x128xf32>
      tpu.vector_store %arg7[%c0_11, %c0_12], %12 {strides = array<i32>} : memref<32x128xf32, #tpu.memory_space<vmem>>, vector<32x128xf32>,
    } else {
    }
    %c0 = arith.constant 0 : index
    %c0_1 = arith.constant 0 : index
    %3 = vector.load %arg7[%c0, %c0_1] : memref<32x128xf32, #tpu.memory_space<vmem>>, vector<32x128xf32>
    %c0_2 = arith.constant 0 : index
    %c0_3 = arith.constant 0 : index
    %4 = vector.load %arg3[%c0_2, %c0_3] : memref<32x256xbf16, #tpu.memory_space<vmem>>, vector<32x256xbf16>
    %c0_4 = arith.constant 0 : index
    %c0_5 = arith.constant 0 : index
    %5 = vector.load %arg4[%c0_4, %c0_5] : memref<256x128xbf16, #tpu.memory_space<vmem>>, vector<256x128xbf16>
    %cst = arith.constant dense<0.000000e+00> : vector<32x128xf32>
    %6 = tpu.matmul %4, %5, %cst {dimension_numbers = #tpu.dot_dimension_numbers<[1], [0], [0], [1], [0, 0, 1, 1], [], []>} : vector<32x256xbf16>, vector<256x128xbf16>, vector<32x128xf32> -> vector<32x128xf32>
    %7 = arith.addf %3, %6 : vector<32x128xf32>
    %c0_6 = arith.constant 0 : index
    %c0_7 = arith.constant 0 : index
    %8 = vector.load %arg7[%c0_6, %c0_7] : memref<32x128xf32, #tpu.memory_space<vmem>>, vector<32x128xf32>
    tpu.vector_store %arg7[%c0_6, %c0_7], %7 {strides = array<i32>} : memref<32x128xf32, #tpu.memory_space<vmem>>, vector<32x128xf32>,
    %c0_i32_8 = arith.constant 0 : i32
    %9 = arith.cmpi eq, %arg2, %c0_i32_8 : i32
    %10 = arith.extui %9 : i1 to i32
    %c0_i32_9 = arith.constant 0 : i32
    %11 = arith.cmpi ne, %10, %c0_i32_9 : i32
    scf.if %11 {
      %c0_10 = arith.constant 0 : index
      %c0_11 = arith.constant 0 : index
      %12 = vector.load %arg7[%c0_10, %c0_11] : memref<32x128xf32, #tpu.memory_space<vmem>>, vector<32x128xf32>
      %c0_12 = arith.constant 0 : index
      %c0_13 = arith.constant 0 : index
      %13 = vector.load %arg5[%c0_12, %c0_13] : memref<1x128xf32, #tpu.memory_space<vmem>>, vector<1x128xf32>
      %14 = vector.broadcast %13 : vector<1x128xf32> to vector<32x128xf32>
      %15 = arith.addf %12, %14 : vector<32x128xf32>
      %cst_14 = arith.constant 0.000000e+00 : f32
      %16 = vector.broadcast %cst_14 : f32 to vector<32x128xf32>
      %17 = arith.maximumf %15, %16 : vector<32x128xf32>
      %18 = arith.truncf %17 : vector<32x128xf32> to vector<32x128xbf16>
      %c0_15 = arith.constant 0 : index
      %c0_16 = arith.constant 0 : index
      %19 = vector.load %arg6[%c0_15, %c0_16] : memref<32x128xbf16, #tpu.memory_space<vmem>>, vector<32x128xbf16>
      tpu.vector_store %arg6[%c0_15, %c0_16], %18 {strides = array<i32>} : memref<32x128xbf16, #tpu.memory_space<vmem>>, vector<32x128xbf16>,
    } else {
    }
    return
  }
  func.func @transform_0(%arg0: i32, %arg1: i32, %arg2: i32) -> (i32, i32) {
    %c0_i32 = arith.constant 0 : i32
    return %arg0, %arg2 : i32, i32
  }
  func.func @transform_1(%arg0: i32, %arg1: i32, %arg2: i32) -> (i32, i32) {
    %c0_i32 = arith.constant 0 : i32
    return %arg2, %arg1 : i32, i32
  }
  func.func @transform_2(%arg0: i32, %arg1: i32, %arg2: i32) -> (i32, i32) {
    %c0_i32 = arith.constant 0 : i32
    %c0_i32_0 = arith.constant 0 : i32
    return %c0_i32, %arg1 : i32, i32
  }
  func.func @transform_3(%arg0: i32, %arg1: i32, %arg2: i32) -> (i32, i32) {
    %c0_i32 = arith.constant 0 : i32
    return %arg0, %arg1 : i32, i32
  }
}

module attributes {stable_mosaic.version = 11 : i64} {
  func.func @_mm_kernel(%arg0: i32, %arg1: i32, %arg2: i32, %arg3: memref<8x128xbf16, #tpu.memory_space<vmem>>, %arg4: memref<128x256xbf16, #tpu.memory_space<vmem>>, %arg5: memref<1x256xf32, #tpu.memory_space<vmem>>, %arg6: memref<8x256xbf16, #tpu.memory_space<vmem>>, %arg7: memref<8x256xbf16, #tpu.memory_space<vmem>>, %arg8: memref<8x256xf32, #tpu.memory_space<vmem>>) attributes {dimension_semantics = [#tpu.dimension_semantics<parallel>, #tpu.dimension_semantics<parallel>, #tpu.dimension_semantics<arbitrary>], iteration_bounds = array<i64: 1, 2, 1>, scalar_prefetch = 0 : i64, scratch_operands = 1 : i64, tpu.core_type = #tpu.core_type<tc>, window_params = [{transform_indices = @transform_0, window_bounds = array<i64: 8, 128>}, {transform_indices = @transform_1, window_bounds = array<i64: 128, 256>}, {transform_indices = @transform_2, window_bounds = array<i64: 1, 256>}, {transform_indices = @transform_3, window_bounds = array<i64: 8, 256>}, {transform_indices = @transform_4, window_bounds = array<i64: 8, 256>}]} {
    %c0_i32 = arith.constant 0 : i32
    %0 = arith.cmpi eq, %arg2, %c0_i32 : i32
    %1 = arith.extui %0 : i1 to i32
    %c0_i32_0 = arith.constant 0 : i32
    %2 = arith.cmpi ne, %1, %c0_i32_0 : i32
    scf.if %2 {
      %cst_10 = arith.constant 0.000000e+00 : f32
      %12 = vector.broadcast %cst_10 : f32 to vector<8x256xf32>
      %c0_11 = arith.constant 0 : index
      %c0_12 = arith.constant 0 : index
      %13 = vector.load %arg8[%c0_11, %c0_12] : memref<8x256xf32, #tpu.memory_space<vmem>>, vector<8x256xf32>
      tpu.vector_store %arg8[%c0_11, %c0_12], %12 {strides = array<i32>} : memref<8x256xf32, #tpu.memory_space<vmem>>, vector<8x256xf32>,
    } else {
    }
    %c0 = arith.constant 0 : index
    %c0_1 = arith.constant 0 : index
    %3 = vector.load %arg8[%c0, %c0_1] : memref<8x256xf32, #tpu.memory_space<vmem>>, vector<8x256xf32>
    %c0_2 = arith.constant 0 : index
    %c0_3 = arith.constant 0 : index
    %4 = vector.load %arg3[%c0_2, %c0_3] : memref<8x128xbf16, #tpu.memory_space<vmem>>, vector<8x128xbf16>
    %c0_4 = arith.constant 0 : index
    %c0_5 = arith.constant 0 : index
    %5 = vector.load %arg4[%c0_4, %c0_5] : memref<128x256xbf16, #tpu.memory_space<vmem>>, vector<128x256xbf16>
    %cst = arith.constant dense<0.000000e+00> : vector<8x256xf32>
    %6 = tpu.matmul %4, %5, %cst {dimension_numbers = #tpu.dot_dimension_numbers<[1], [0], [0], [1], [0, 0, 1, 1], [], []>} : vector<8x128xbf16>, vector<128x256xbf16>, vector<8x256xf32> -> vector<8x256xf32>
    %7 = arith.addf %3, %6 : vector<8x256xf32>
    %c0_6 = arith.constant 0 : index
    %c0_7 = arith.constant 0 : index
    %8 = vector.load %arg8[%c0_6, %c0_7] : memref<8x256xf32, #tpu.memory_space<vmem>>, vector<8x256xf32>
    tpu.vector_store %arg8[%c0_6, %c0_7], %7 {strides = array<i32>} : memref<8x256xf32, #tpu.memory_space<vmem>>, vector<8x256xf32>,
    %c0_i32_8 = arith.constant 0 : i32
    %9 = arith.cmpi eq, %arg2, %c0_i32_8 : i32
    %10 = arith.extui %9 : i1 to i32
    %c0_i32_9 = arith.constant 0 : i32
    %11 = arith.cmpi ne, %10, %c0_i32_9 : i32
    scf.if %11 {
      %c0_10 = arith.constant 0 : index
      %c0_11 = arith.constant 0 : index
      %12 = vector.load %arg8[%c0_10, %c0_11] : memref<8x256xf32, #tpu.memory_space<vmem>>, vector<8x256xf32>
      %c0_12 = arith.constant 0 : index
      %c0_13 = arith.constant 0 : index
      %13 = vector.load %arg5[%c0_12, %c0_13] : memref<1x256xf32, #tpu.memory_space<vmem>>, vector<1x256xf32>
      %14 = vector.broadcast %13 : vector<1x256xf32> to vector<8x256xf32>
      %15 = arith.addf %12, %14 : vector<8x256xf32>
      %c0_14 = arith.constant 0 : index
      %c0_15 = arith.constant 0 : index
      %16 = vector.load %arg6[%c0_14, %c0_15] : memref<8x256xbf16, #tpu.memory_space<vmem>>, vector<8x256xbf16>
      %17 = arith.extf %16 : vector<8x256xbf16> to vector<8x256xf32>
      %18 = arith.addf %15, %17 : vector<8x256xf32>
      %cst_16 = arith.constant 0.000000e+00 : f32
      %19 = vector.broadcast %cst_16 : f32 to vector<8x256xf32>
      %20 = arith.maximumf %18, %19 : vector<8x256xf32>
      %21 = arith.truncf %20 : vector<8x256xf32> to vector<8x256xbf16>
      %c0_17 = arith.constant 0 : index
      %c0_18 = arith.constant 0 : index
      %22 = vector.load %arg7[%c0_17, %c0_18] : memref<8x256xbf16, #tpu.memory_space<vmem>>, vector<8x256xbf16>
      tpu.vector_store %arg7[%c0_17, %c0_18], %21 {strides = array<i32>} : memref<8x256xbf16, #tpu.memory_space<vmem>>, vector<8x256xbf16>,
    } else {
    }
    return
  }
  func.func @transform_0(%arg0: i32, %arg1: i32, %arg2: i32) -> (i32, i32) {
    %c0_i32 = arith.constant 0 : i32
    return %arg0, %arg2 : i32, i32
  }
  func.func @transform_1(%arg0: i32, %arg1: i32, %arg2: i32) -> (i32, i32) {
    %c0_i32 = arith.constant 0 : i32
    return %arg2, %arg1 : i32, i32
  }
  func.func @transform_2(%arg0: i32, %arg1: i32, %arg2: i32) -> (i32, i32) {
    %c0_i32 = arith.constant 0 : i32
    %c0_i32_0 = arith.constant 0 : i32
    return %c0_i32, %arg1 : i32, i32
  }
  func.func @transform_3(%arg0: i32, %arg1: i32, %arg2: i32) -> (i32, i32) {
    %c0_i32 = arith.constant 0 : i32
    return %arg0, %arg1 : i32, i32
  }
  func.func @transform_4(%arg0: i32, %arg1: i32, %arg2: i32) -> (i32, i32) {
    %c0_i32 = arith.constant 0 : i32
    return %arg0, %arg1 : i32, i32
  }
}

module attributes {stable_mosaic.version = 11 : i64} {
  func.func @_mm_kernel(%arg0: i32, %arg1: i32, %arg2: i32, %arg3: memref<8x256xbf16, #tpu.memory_space<vmem>>, %arg4: memref<256x256xbf16, #tpu.memory_space<vmem>>, %arg5: memref<1x256xf32, #tpu.memory_space<vmem>>, %arg6: memref<8x256xbf16, #tpu.memory_space<vmem>>, %arg7: memref<8x256xf32, #tpu.memory_space<vmem>>) attributes {dimension_semantics = [#tpu.dimension_semantics<parallel>, #tpu.dimension_semantics<parallel>, #tpu.dimension_semantics<arbitrary>], iteration_bounds = array<i64: 1, 2, 1>, scalar_prefetch = 0 : i64, scratch_operands = 1 : i64, tpu.core_type = #tpu.core_type<tc>, window_params = [{transform_indices = @transform_0, window_bounds = array<i64: 8, 256>}, {transform_indices = @transform_1, window_bounds = array<i64: 256, 256>}, {transform_indices = @transform_2, window_bounds = array<i64: 1, 256>}, {transform_indices = @transform_3, window_bounds = array<i64: 8, 256>}]} {
    %c0_i32 = arith.constant 0 : i32
    %0 = arith.cmpi eq, %arg2, %c0_i32 : i32
    %1 = arith.extui %0 : i1 to i32
    %c0_i32_0 = arith.constant 0 : i32
    %2 = arith.cmpi ne, %1, %c0_i32_0 : i32
    scf.if %2 {
      %cst_10 = arith.constant 0.000000e+00 : f32
      %12 = vector.broadcast %cst_10 : f32 to vector<8x256xf32>
      %c0_11 = arith.constant 0 : index
      %c0_12 = arith.constant 0 : index
      %13 = vector.load %arg7[%c0_11, %c0_12] : memref<8x256xf32, #tpu.memory_space<vmem>>, vector<8x256xf32>
      tpu.vector_store %arg7[%c0_11, %c0_12], %12 {strides = array<i32>} : memref<8x256xf32, #tpu.memory_space<vmem>>, vector<8x256xf32>,
    } else {
    }
    %c0 = arith.constant 0 : index
    %c0_1 = arith.constant 0 : index
    %3 = vector.load %arg7[%c0, %c0_1] : memref<8x256xf32, #tpu.memory_space<vmem>>, vector<8x256xf32>
    %c0_2 = arith.constant 0 : index
    %c0_3 = arith.constant 0 : index
    %4 = vector.load %arg3[%c0_2, %c0_3] : memref<8x256xbf16, #tpu.memory_space<vmem>>, vector<8x256xbf16>
    %c0_4 = arith.constant 0 : index
    %c0_5 = arith.constant 0 : index
    %5 = vector.load %arg4[%c0_4, %c0_5] : memref<256x256xbf16, #tpu.memory_space<vmem>>, vector<256x256xbf16>
    %cst = arith.constant dense<0.000000e+00> : vector<8x256xf32>
    %6 = tpu.matmul %4, %5, %cst {dimension_numbers = #tpu.dot_dimension_numbers<[1], [0], [0], [1], [0, 0, 1, 1], [], []>} : vector<8x256xbf16>, vector<256x256xbf16>, vector<8x256xf32> -> vector<8x256xf32>
    %7 = arith.addf %3, %6 : vector<8x256xf32>
    %c0_6 = arith.constant 0 : index
    %c0_7 = arith.constant 0 : index
    %8 = vector.load %arg7[%c0_6, %c0_7] : memref<8x256xf32, #tpu.memory_space<vmem>>, vector<8x256xf32>
    tpu.vector_store %arg7[%c0_6, %c0_7], %7 {strides = array<i32>} : memref<8x256xf32, #tpu.memory_space<vmem>>, vector<8x256xf32>,
    %c0_i32_8 = arith.constant 0 : i32
    %9 = arith.cmpi eq, %arg2, %c0_i32_8 : i32
    %10 = arith.extui %9 : i1 to i32
    %c0_i32_9 = arith.constant 0 : i32
    %11 = arith.cmpi ne, %10, %c0_i32_9 : i32
    scf.if %11 {
      %c0_10 = arith.constant 0 : index
      %c0_11 = arith.constant 0 : index
      %12 = vector.load %arg7[%c0_10, %c0_11] : memref<8x256xf32, #tpu.memory_space<vmem>>, vector<8x256xf32>
      %c0_12 = arith.constant 0 : index
      %c0_13 = arith.constant 0 : index
      %13 = vector.load %arg5[%c0_12, %c0_13] : memref<1x256xf32, #tpu.memory_space<vmem>>, vector<1x256xf32>
      %14 = vector.broadcast %13 : vector<1x256xf32> to vector<8x256xf32>
      %15 = arith.addf %12, %14 : vector<8x256xf32>
      %16 = arith.truncf %15 : vector<8x256xf32> to vector<8x256xbf16>
      %c0_14 = arith.constant 0 : index
      %c0_15 = arith.constant 0 : index
      %17 = vector.load %arg6[%c0_14, %c0_15] : memref<8x256xbf16, #tpu.memory_space<vmem>>, vector<8x256xbf16>
      tpu.vector_store %arg6[%c0_14, %c0_15], %16 {strides = array<i32>} : memref<8x256xbf16, #tpu.memory_space<vmem>>, vector<8x256xbf16>,
    } else {
    }
    return
  }
  func.func @transform_0(%arg0: i32, %arg1: i32, %arg2: i32) -> (i32, i32) {
    %c0_i32 = arith.constant 0 : i32
    return %arg0, %arg2 : i32, i32
  }
  func.func @transform_1(%arg0: i32, %arg1: i32, %arg2: i32) -> (i32, i32) {
    %c0_i32 = arith.constant 0 : i32
    return %arg2, %arg1 : i32, i32
  }
  func.func @transform_2(%arg0: i32, %arg1: i32, %arg2: i32) -> (i32, i32) {
    %c0_i32 = arith.constant 0 : i32
    %c0_i32_0 = arith.constant 0 : i32
    return %c0_i32, %arg1 : i32, i32
  }
  func.func @transform_3(%arg0: i32, %arg1: i32, %arg2: i32) -> (i32, i32) {
    %c0_i32 = arith.constant 0 : i32
    return %arg0, %arg1 : i32, i32
  }
}

module attributes {stable_mosaic.version = 11 : i64} {
  func.func @_mm_kernel(%arg0: i32, %arg1: i32, %arg2: i32, %arg3: memref<8x128xbf16, #tpu.memory_space<vmem>>, %arg4: memref<128x128xbf16, #tpu.memory_space<vmem>>, %arg5: memref<1x128xf32, #tpu.memory_space<vmem>>, %arg6: memref<8x128xbf16, #tpu.memory_space<vmem>>, %arg7: memref<8x128xf32, #tpu.memory_space<vmem>>) attributes {dimension_semantics = [#tpu.dimension_semantics<parallel>, #tpu.dimension_semantics<parallel>, #tpu.dimension_semantics<arbitrary>], iteration_bounds = array<i64: 1, 1, 9>, scalar_prefetch = 0 : i64, scratch_operands = 1 : i64, tpu.core_type = #tpu.core_type<tc>, window_params = [{transform_indices = @transform_0, window_bounds = array<i64: 8, 128>}, {transform_indices = @transform_1, window_bounds = array<i64: 128, 128>}, {transform_indices = @transform_2, window_bounds = array<i64: 1, 128>}, {transform_indices = @transform_3, window_bounds = array<i64: 8, 128>}]} {
    %c0_i32 = arith.constant 0 : i32
    %0 = arith.cmpi eq, %arg2, %c0_i32 : i32
    %1 = arith.extui %0 : i1 to i32
    %c0_i32_0 = arith.constant 0 : i32
    %2 = arith.cmpi ne, %1, %c0_i32_0 : i32
    scf.if %2 {
      %cst_9 = arith.constant 0.000000e+00 : f32
      %12 = vector.broadcast %cst_9 : f32 to vector<8x128xf32>
      %c0_10 = arith.constant 0 : index
      %c0_11 = arith.constant 0 : index
      %13 = vector.load %arg7[%c0_10, %c0_11] : memref<8x128xf32, #tpu.memory_space<vmem>>, vector<8x128xf32>
      tpu.vector_store %arg7[%c0_10, %c0_11], %12 {strides = array<i32>} : memref<8x128xf32, #tpu.memory_space<vmem>>, vector<8x128xf32>,
    } else {
    }
    %c0 = arith.constant 0 : index
    %c0_1 = arith.constant 0 : index
    %3 = vector.load %arg7[%c0, %c0_1] : memref<8x128xf32, #tpu.memory_space<vmem>>, vector<8x128xf32>
    %c0_2 = arith.constant 0 : index
    %c0_3 = arith.constant 0 : index
    %4 = vector.load %arg3[%c0_2, %c0_3] : memref<8x128xbf16, #tpu.memory_space<vmem>>, vector<8x128xbf16>
    %c0_4 = arith.constant 0 : index
    %c0_5 = arith.constant 0 : index
    %5 = vector.load %arg4[%c0_4, %c0_5] : memref<128x128xbf16, #tpu.memory_space<vmem>>, vector<128x128xbf16>
    %cst = arith.constant dense<0.000000e+00> : vector<8x128xf32>
    %6 = tpu.matmul %4, %5, %cst {dimension_numbers = #tpu.dot_dimension_numbers<[1], [0], [0], [1], [0, 0, 1, 1], [], []>} : vector<8x128xbf16>, vector<128x128xbf16>, vector<8x128xf32> -> vector<8x128xf32>
    %7 = arith.addf %3, %6 : vector<8x128xf32>
    %c0_6 = arith.constant 0 : index
    %c0_7 = arith.constant 0 : index
    %8 = vector.load %arg7[%c0_6, %c0_7] : memref<8x128xf32, #tpu.memory_space<vmem>>, vector<8x128xf32>
    tpu.vector_store %arg7[%c0_6, %c0_7], %7 {strides = array<i32>} : memref<8x128xf32, #tpu.memory_space<vmem>>, vector<8x128xf32>,
    %c8_i32 = arith.constant 8 : i32
    %9 = arith.cmpi eq, %arg2, %c8_i32 : i32
    %10 = arith.extui %9 : i1 to i32
    %c0_i32_8 = arith.constant 0 : i32
    %11 = arith.cmpi ne, %10, %c0_i32_8 : i32
    scf.if %11 {
      %c0_9 = arith.constant 0 : index
      %c0_10 = arith.constant 0 : index
      %12 = vector.load %arg7[%c0_9, %c0_10] : memref<8x128xf32, #tpu.memory_space<vmem>>, vector<8x128xf32>
      %c0_11 = arith.constant 0 : index
      %c0_12 = arith.constant 0 : index
      %13 = vector.load %arg5[%c0_11, %c0_12] : memref<1x128xf32, #tpu.memory_space<vmem>>, vector<1x128xf32>
      %14 = vector.broadcast %13 : vector<1x128xf32> to vector<8x128xf32>
      %15 = arith.addf %12, %14 : vector<8x128xf32>
      %cst_13 = arith.constant 0.000000e+00 : f32
      %16 = vector.broadcast %cst_13 : f32 to vector<8x128xf32>
      %17 = arith.maximumf %15, %16 : vector<8x128xf32>
      %18 = arith.truncf %17 : vector<8x128xf32> to vector<8x128xbf16>
      %c0_14 = arith.constant 0 : index
      %c0_15 = arith.constant 0 : index
      %19 = vector.load %arg6[%c0_14, %c0_15] : memref<8x128xbf16, #tpu.memory_space<vmem>>, vector<8x128xbf16>
      tpu.vector_store %arg6[%c0_14, %c0_15], %18 {strides = array<i32>} : memref<8x128xbf16, #tpu.memory_space<vmem>>, vector<8x128xbf16>,
    } else {
    }
    return
  }
  func.func @transform_0(%arg0: i32, %arg1: i32, %arg2: i32) -> (i32, i32) {
    %c0_i32 = arith.constant 0 : i32
    return %arg0, %arg2 : i32, i32
  }
  func.func @transform_1(%arg0: i32, %arg1: i32, %arg2: i32) -> (i32, i32) {
    %c0_i32 = arith.constant 0 : i32
    return %arg2, %arg1 : i32, i32
  }
  func.func @transform_2(%arg0: i32, %arg1: i32, %arg2: i32) -> (i32, i32) {
    %c0_i32 = arith.constant 0 : i32
    %c0_i32_0 = arith.constant 0 : i32
    return %c0_i32, %arg1 : i32, i32
  }
  func.func @transform_3(%arg0: i32, %arg1: i32, %arg2: i32) -> (i32, i32) {
    %c0_i32 = arith.constant 0 : i32
    return %arg0, %arg1 : i32, i32
  }
}

module attributes {stable_mosaic.version = 11 : i64} {
  func.func @_mm_kernel(%arg0: i32, %arg1: i32, %arg2: i32, %arg3: memref<8x512xbf16, #tpu.memory_space<vmem>>, %arg4: memref<512x256xbf16, #tpu.memory_space<vmem>>, %arg5: memref<1x256xf32, #tpu.memory_space<vmem>>, %arg6: memref<8x256xbf16, #tpu.memory_space<vmem>>, %arg7: memref<8x256xf32, #tpu.memory_space<vmem>>) attributes {dimension_semantics = [#tpu.dimension_semantics<parallel>, #tpu.dimension_semantics<parallel>, #tpu.dimension_semantics<arbitrary>], iteration_bounds = array<i64: 1, 1, 1>, scalar_prefetch = 0 : i64, scratch_operands = 1 : i64, tpu.core_type = #tpu.core_type<tc>, window_params = [{transform_indices = @transform_0, window_bounds = array<i64: 8, 512>}, {transform_indices = @transform_1, window_bounds = array<i64: 512, 256>}, {transform_indices = @transform_2, window_bounds = array<i64: 1, 256>}, {transform_indices = @transform_3, window_bounds = array<i64: 8, 256>}]} {
    %c0_i32 = arith.constant 0 : i32
    %0 = arith.cmpi eq, %arg2, %c0_i32 : i32
    %1 = arith.extui %0 : i1 to i32
    %c0_i32_0 = arith.constant 0 : i32
    %2 = arith.cmpi ne, %1, %c0_i32_0 : i32
    scf.if %2 {
      %cst_10 = arith.constant 0.000000e+00 : f32
      %12 = vector.broadcast %cst_10 : f32 to vector<8x256xf32>
      %c0_11 = arith.constant 0 : index
      %c0_12 = arith.constant 0 : index
      %13 = vector.load %arg7[%c0_11, %c0_12] : memref<8x256xf32, #tpu.memory_space<vmem>>, vector<8x256xf32>
      tpu.vector_store %arg7[%c0_11, %c0_12], %12 {strides = array<i32>} : memref<8x256xf32, #tpu.memory_space<vmem>>, vector<8x256xf32>,
    } else {
    }
    %c0 = arith.constant 0 : index
    %c0_1 = arith.constant 0 : index
    %3 = vector.load %arg7[%c0, %c0_1] : memref<8x256xf32, #tpu.memory_space<vmem>>, vector<8x256xf32>
    %c0_2 = arith.constant 0 : index
    %c0_3 = arith.constant 0 : index
    %4 = vector.load %arg3[%c0_2, %c0_3] : memref<8x512xbf16, #tpu.memory_space<vmem>>, vector<8x512xbf16>
    %c0_4 = arith.constant 0 : index
    %c0_5 = arith.constant 0 : index
    %5 = vector.load %arg4[%c0_4, %c0_5] : memref<512x256xbf16, #tpu.memory_space<vmem>>, vector<512x256xbf16>
    %cst = arith.constant dense<0.000000e+00> : vector<8x256xf32>
    %6 = tpu.matmul %4, %5, %cst {dimension_numbers = #tpu.dot_dimension_numbers<[1], [0], [0], [1], [0, 0, 1, 1], [], []>} : vector<8x512xbf16>, vector<512x256xbf16>, vector<8x256xf32> -> vector<8x256xf32>
    %7 = arith.addf %3, %6 : vector<8x256xf32>
    %c0_6 = arith.constant 0 : index
    %c0_7 = arith.constant 0 : index
    %8 = vector.load %arg7[%c0_6, %c0_7] : memref<8x256xf32, #tpu.memory_space<vmem>>, vector<8x256xf32>
    tpu.vector_store %arg7[%c0_6, %c0_7], %7 {strides = array<i32>} : memref<8x256xf32, #tpu.memory_space<vmem>>, vector<8x256xf32>,
    %c0_i32_8 = arith.constant 0 : i32
    %9 = arith.cmpi eq, %arg2, %c0_i32_8 : i32
    %10 = arith.extui %9 : i1 to i32
    %c0_i32_9 = arith.constant 0 : i32
    %11 = arith.cmpi ne, %10, %c0_i32_9 : i32
    scf.if %11 {
      %c0_10 = arith.constant 0 : index
      %c0_11 = arith.constant 0 : index
      %12 = vector.load %arg7[%c0_10, %c0_11] : memref<8x256xf32, #tpu.memory_space<vmem>>, vector<8x256xf32>
      %c0_12 = arith.constant 0 : index
      %c0_13 = arith.constant 0 : index
      %13 = vector.load %arg5[%c0_12, %c0_13] : memref<1x256xf32, #tpu.memory_space<vmem>>, vector<1x256xf32>
      %14 = vector.broadcast %13 : vector<1x256xf32> to vector<8x256xf32>
      %15 = arith.addf %12, %14 : vector<8x256xf32>
      %cst_14 = arith.constant 0.000000e+00 : f32
      %16 = vector.broadcast %cst_14 : f32 to vector<8x256xf32>
      %17 = arith.maximumf %15, %16 : vector<8x256xf32>
      %18 = arith.truncf %17 : vector<8x256xf32> to vector<8x256xbf16>
      %c0_15 = arith.constant 0 : index
      %c0_16 = arith.constant 0 : index
      %19 = vector.load %arg6[%c0_15, %c0_16] : memref<8x256xbf16, #tpu.memory_space<vmem>>, vector<8x256xbf16>
      tpu.vector_store %arg6[%c0_15, %c0_16], %18 {strides = array<i32>} : memref<8x256xbf16, #tpu.memory_space<vmem>>, vector<8x256xbf16>,
    } else {
    }
    return
  }
  func.func @transform_0(%arg0: i32, %arg1: i32, %arg2: i32) -> (i32, i32) {
    %c0_i32 = arith.constant 0 : i32
    return %arg0, %arg2 : i32, i32
  }
  func.func @transform_1(%arg0: i32, %arg1: i32, %arg2: i32) -> (i32, i32) {
    %c0_i32 = arith.constant 0 : i32
    return %arg2, %arg1 : i32, i32
  }
  func.func @transform_2(%arg0: i32, %arg1: i32, %arg2: i32) -> (i32, i32) {
    %c0_i32 = arith.constant 0 : i32
    %c0_i32_0 = arith.constant 0 : i32
    return %c0_i32, %arg1 : i32, i32
  }
  func.func @transform_3(%arg0: i32, %arg1: i32, %arg2: i32) -> (i32, i32) {
    %c0_i32 = arith.constant 0 : i32
    return %arg0, %arg1 : i32, i32
  }
}

module attributes {stable_mosaic.version = 11 : i64} {
  func.func @_mm_kernel(%arg0: i32, %arg1: i32, %arg2: i32, %arg3: memref<8x256xbf16, #tpu.memory_space<vmem>>, %arg4: memref<256x256xbf16, #tpu.memory_space<vmem>>, %arg5: memref<1x256xf32, #tpu.memory_space<vmem>>, %arg6: memref<8x256xbf16, #tpu.memory_space<vmem>>, %arg7: memref<8x256xf32, #tpu.memory_space<vmem>>) attributes {dimension_semantics = [#tpu.dimension_semantics<parallel>, #tpu.dimension_semantics<parallel>, #tpu.dimension_semantics<arbitrary>], iteration_bounds = array<i64: 1, 1, 9>, scalar_prefetch = 0 : i64, scratch_operands = 1 : i64, tpu.core_type = #tpu.core_type<tc>, window_params = [{transform_indices = @transform_0, window_bounds = array<i64: 8, 256>}, {transform_indices = @transform_1, window_bounds = array<i64: 256, 256>}, {transform_indices = @transform_2, window_bounds = array<i64: 1, 256>}, {transform_indices = @transform_3, window_bounds = array<i64: 8, 256>}]} {
    %c0_i32 = arith.constant 0 : i32
    %0 = arith.cmpi eq, %arg2, %c0_i32 : i32
    %1 = arith.extui %0 : i1 to i32
    %c0_i32_0 = arith.constant 0 : i32
    %2 = arith.cmpi ne, %1, %c0_i32_0 : i32
    scf.if %2 {
      %cst_9 = arith.constant 0.000000e+00 : f32
      %12 = vector.broadcast %cst_9 : f32 to vector<8x256xf32>
      %c0_10 = arith.constant 0 : index
      %c0_11 = arith.constant 0 : index
      %13 = vector.load %arg7[%c0_10, %c0_11] : memref<8x256xf32, #tpu.memory_space<vmem>>, vector<8x256xf32>
      tpu.vector_store %arg7[%c0_10, %c0_11], %12 {strides = array<i32>} : memref<8x256xf32, #tpu.memory_space<vmem>>, vector<8x256xf32>,
    } else {
    }
    %c0 = arith.constant 0 : index
    %c0_1 = arith.constant 0 : index
    %3 = vector.load %arg7[%c0, %c0_1] : memref<8x256xf32, #tpu.memory_space<vmem>>, vector<8x256xf32>
    %c0_2 = arith.constant 0 : index
    %c0_3 = arith.constant 0 : index
    %4 = vector.load %arg3[%c0_2, %c0_3] : memref<8x256xbf16, #tpu.memory_space<vmem>>, vector<8x256xbf16>
    %c0_4 = arith.constant 0 : index
    %c0_5 = arith.constant 0 : index
    %5 = vector.load %arg4[%c0_4, %c0_5] : memref<256x256xbf16, #tpu.memory_space<vmem>>, vector<256x256xbf16>
    %cst = arith.constant dense<0.000000e+00> : vector<8x256xf32>
    %6 = tpu.matmul %4, %5, %cst {dimension_numbers = #tpu.dot_dimension_numbers<[1], [0], [0], [1], [0, 0, 1, 1], [], []>} : vector<8x256xbf16>, vector<256x256xbf16>, vector<8x256xf32> -> vector<8x256xf32>
    %7 = arith.addf %3, %6 : vector<8x256xf32>
    %c0_6 = arith.constant 0 : index
    %c0_7 = arith.constant 0 : index
    %8 = vector.load %arg7[%c0_6, %c0_7] : memref<8x256xf32, #tpu.memory_space<vmem>>, vector<8x256xf32>
    tpu.vector_store %arg7[%c0_6, %c0_7], %7 {strides = array<i32>} : memref<8x256xf32, #tpu.memory_space<vmem>>, vector<8x256xf32>,
    %c8_i32 = arith.constant 8 : i32
    %9 = arith.cmpi eq, %arg2, %c8_i32 : i32
    %10 = arith.extui %9 : i1 to i32
    %c0_i32_8 = arith.constant 0 : i32
    %11 = arith.cmpi ne, %10, %c0_i32_8 : i32
    scf.if %11 {
      %c0_9 = arith.constant 0 : index
      %c0_10 = arith.constant 0 : index
      %12 = vector.load %arg7[%c0_9, %c0_10] : memref<8x256xf32, #tpu.memory_space<vmem>>, vector<8x256xf32>
      %c0_11 = arith.constant 0 : index
      %c0_12 = arith.constant 0 : index
      %13 = vector.load %arg5[%c0_11, %c0_12] : memref<1x256xf32, #tpu.memory_space<vmem>>, vector<1x256xf32>
      %14 = vector.broadcast %13 : vector<1x256xf32> to vector<8x256xf32>
      %15 = arith.addf %12, %14 : vector<8x256xf32>
      %cst_13 = arith.constant 0.000000e+00 : f32
      %16 = vector.broadcast %cst_13 : f32 to vector<8x256xf32>
      %17 = arith.maximumf %15, %16 : vector<8x256xf32>
      %18 = arith.truncf %17 : vector<8x256xf32> to vector<8x256xbf16>
      %c0_14 = arith.constant 0 : index
      %c0_15 = arith.constant 0 : index
      %19 = vector.load %arg6[%c0_14, %c0_15] : memref<8x256xbf16, #tpu.memory_space<vmem>>, vector<8x256xbf16>
      tpu.vector_store %arg6[%c0_14, %c0_15], %18 {strides = array<i32>} : memref<8x256xbf16, #tpu.memory_space<vmem>>, vector<8x256xbf16>,
    } else {
    }
    return
  }
  func.func @transform_0(%arg0: i32, %arg1: i32, %arg2: i32) -> (i32, i32) {
    %c0_i32 = arith.constant 0 : i32
    return %arg0, %arg2 : i32, i32
  }
  func.func @transform_1(%arg0: i32, %arg1: i32, %arg2: i32) -> (i32, i32) {
    %c0_i32 = arith.constant 0 : i32
    return %arg2, %arg1 : i32, i32
  }
  func.func @transform_2(%arg0: i32, %arg1: i32, %arg2: i32) -> (i32, i32) {
    %c0_i32 = arith.constant 0 : i32
    %c0_i32_0 = arith.constant 0 : i32
    return %c0_i32, %arg1 : i32, i32
  }
  func.func @transform_3(%arg0: i32, %arg1: i32, %arg2: i32) -> (i32, i32) {
    %c0_i32 = arith.constant 0 : i32
    return %arg0, %arg1 : i32, i32
  }
}

module attributes {stable_mosaic.version = 11 : i64} {
  func.func @_mm_kernel(%arg0: i32, %arg1: i32, %arg2: i32, %arg3: memref<8x512xbf16, #tpu.memory_space<vmem>>, %arg4: memref<512x256xbf16, #tpu.memory_space<vmem>>, %arg5: memref<1x256xf32, #tpu.memory_space<vmem>>, %arg6: memref<8x256xbf16, #tpu.memory_space<vmem>>, %arg7: memref<8x256xf32, #tpu.memory_space<vmem>>) attributes {dimension_semantics = [#tpu.dimension_semantics<parallel>, #tpu.dimension_semantics<parallel>, #tpu.dimension_semantics<arbitrary>], iteration_bounds = array<i64: 1, 4, 1>, scalar_prefetch = 0 : i64, scratch_operands = 1 : i64, tpu.core_type = #tpu.core_type<tc>, window_params = [{transform_indices = @transform_0, window_bounds = array<i64: 8, 512>}, {transform_indices = @transform_1, window_bounds = array<i64: 512, 256>}, {transform_indices = @transform_2, window_bounds = array<i64: 1, 256>}, {transform_indices = @transform_3, window_bounds = array<i64: 8, 256>}]} {
    %c0_i32 = arith.constant 0 : i32
    %0 = arith.cmpi eq, %arg2, %c0_i32 : i32
    %1 = arith.extui %0 : i1 to i32
    %c0_i32_0 = arith.constant 0 : i32
    %2 = arith.cmpi ne, %1, %c0_i32_0 : i32
    scf.if %2 {
      %cst_10 = arith.constant 0.000000e+00 : f32
      %12 = vector.broadcast %cst_10 : f32 to vector<8x256xf32>
      %c0_11 = arith.constant 0 : index
      %c0_12 = arith.constant 0 : index
      %13 = vector.load %arg7[%c0_11, %c0_12] : memref<8x256xf32, #tpu.memory_space<vmem>>, vector<8x256xf32>
      tpu.vector_store %arg7[%c0_11, %c0_12], %12 {strides = array<i32>} : memref<8x256xf32, #tpu.memory_space<vmem>>, vector<8x256xf32>,
    } else {
    }
    %c0 = arith.constant 0 : index
    %c0_1 = arith.constant 0 : index
    %3 = vector.load %arg7[%c0, %c0_1] : memref<8x256xf32, #tpu.memory_space<vmem>>, vector<8x256xf32>
    %c0_2 = arith.constant 0 : index
    %c0_3 = arith.constant 0 : index
    %4 = vector.load %arg3[%c0_2, %c0_3] : memref<8x512xbf16, #tpu.memory_space<vmem>>, vector<8x512xbf16>
    %c0_4 = arith.constant 0 : index
    %c0_5 = arith.constant 0 : index
    %5 = vector.load %arg4[%c0_4, %c0_5] : memref<512x256xbf16, #tpu.memory_space<vmem>>, vector<512x256xbf16>
    %cst = arith.constant dense<0.000000e+00> : vector<8x256xf32>
    %6 = tpu.matmul %4, %5, %cst {dimension_numbers = #tpu.dot_dimension_numbers<[1], [0], [0], [1], [0, 0, 1, 1], [], []>} : vector<8x512xbf16>, vector<512x256xbf16>, vector<8x256xf32> -> vector<8x256xf32>
    %7 = arith.addf %3, %6 : vector<8x256xf32>
    %c0_6 = arith.constant 0 : index
    %c0_7 = arith.constant 0 : index
    %8 = vector.load %arg7[%c0_6, %c0_7] : memref<8x256xf32, #tpu.memory_space<vmem>>, vector<8x256xf32>
    tpu.vector_store %arg7[%c0_6, %c0_7], %7 {strides = array<i32>} : memref<8x256xf32, #tpu.memory_space<vmem>>, vector<8x256xf32>,
    %c0_i32_8 = arith.constant 0 : i32
    %9 = arith.cmpi eq, %arg2, %c0_i32_8 : i32
    %10 = arith.extui %9 : i1 to i32
    %c0_i32_9 = arith.constant 0 : i32
    %11 = arith.cmpi ne, %10, %c0_i32_9 : i32
    scf.if %11 {
      %c0_10 = arith.constant 0 : index
      %c0_11 = arith.constant 0 : index
      %12 = vector.load %arg7[%c0_10, %c0_11] : memref<8x256xf32, #tpu.memory_space<vmem>>, vector<8x256xf32>
      %c0_12 = arith.constant 0 : index
      %c0_13 = arith.constant 0 : index
      %13 = vector.load %arg5[%c0_12, %c0_13] : memref<1x256xf32, #tpu.memory_space<vmem>>, vector<1x256xf32>
      %14 = vector.broadcast %13 : vector<1x256xf32> to vector<8x256xf32>
      %15 = arith.addf %12, %14 : vector<8x256xf32>
      %16 = arith.truncf %15 : vector<8x256xf32> to vector<8x256xbf16>
      %c0_14 = arith.constant 0 : index
      %c0_15 = arith.constant 0 : index
      %17 = vector.load %arg6[%c0_14, %c0_15] : memref<8x256xbf16, #tpu.memory_space<vmem>>, vector<8x256xbf16>
      tpu.vector_store %arg6[%c0_14, %c0_15], %16 {strides = array<i32>} : memref<8x256xbf16, #tpu.memory_space<vmem>>, vector<8x256xbf16>,
    } else {
    }
    return
  }
  func.func @transform_0(%arg0: i32, %arg1: i32, %arg2: i32) -> (i32, i32) {
    %c0_i32 = arith.constant 0 : i32
    return %arg0, %arg2 : i32, i32
  }
  func.func @transform_1(%arg0: i32, %arg1: i32, %arg2: i32) -> (i32, i32) {
    %c0_i32 = arith.constant 0 : i32
    return %arg2, %arg1 : i32, i32
  }
  func.func @transform_2(%arg0: i32, %arg1: i32, %arg2: i32) -> (i32, i32) {
    %c0_i32 = arith.constant 0 : i32
    %c0_i32_0 = arith.constant 0 : i32
    return %c0_i32, %arg1 : i32, i32
  }
  func.func @transform_3(%arg0: i32, %arg1: i32, %arg2: i32) -> (i32, i32) {
    %c0_i32 = arith.constant 0 : i32
    return %arg0, %arg1 : i32, i32
  }
}

module attributes {stable_mosaic.version = 11 : i64} {
  func.func @_mm_kernel(%arg0: i32, %arg1: i32, %arg2: i32, %arg3: memref<8x256xbf16, #tpu.memory_space<vmem>>, %arg4: memref<256x256xbf16, #tpu.memory_space<vmem>>, %arg5: memref<1x256xf32, #tpu.memory_space<vmem>>, %arg6: memref<8x256xbf16, #tpu.memory_space<vmem>>, %arg7: memref<8x256xbf16, #tpu.memory_space<vmem>>, %arg8: memref<8x256xf32, #tpu.memory_space<vmem>>) attributes {dimension_semantics = [#tpu.dimension_semantics<parallel>, #tpu.dimension_semantics<parallel>, #tpu.dimension_semantics<arbitrary>], iteration_bounds = array<i64: 1, 4, 1>, scalar_prefetch = 0 : i64, scratch_operands = 1 : i64, tpu.core_type = #tpu.core_type<tc>, window_params = [{transform_indices = @transform_0, window_bounds = array<i64: 8, 256>}, {transform_indices = @transform_1, window_bounds = array<i64: 256, 256>}, {transform_indices = @transform_2, window_bounds = array<i64: 1, 256>}, {transform_indices = @transform_3, window_bounds = array<i64: 8, 256>}, {transform_indices = @transform_4, window_bounds = array<i64: 8, 256>}]} {
    %c0_i32 = arith.constant 0 : i32
    %0 = arith.cmpi eq, %arg2, %c0_i32 : i32
    %1 = arith.extui %0 : i1 to i32
    %c0_i32_0 = arith.constant 0 : i32
    %2 = arith.cmpi ne, %1, %c0_i32_0 : i32
    scf.if %2 {
      %cst_10 = arith.constant 0.000000e+00 : f32
      %12 = vector.broadcast %cst_10 : f32 to vector<8x256xf32>
      %c0_11 = arith.constant 0 : index
      %c0_12 = arith.constant 0 : index
      %13 = vector.load %arg8[%c0_11, %c0_12] : memref<8x256xf32, #tpu.memory_space<vmem>>, vector<8x256xf32>
      tpu.vector_store %arg8[%c0_11, %c0_12], %12 {strides = array<i32>} : memref<8x256xf32, #tpu.memory_space<vmem>>, vector<8x256xf32>,
    } else {
    }
    %c0 = arith.constant 0 : index
    %c0_1 = arith.constant 0 : index
    %3 = vector.load %arg8[%c0, %c0_1] : memref<8x256xf32, #tpu.memory_space<vmem>>, vector<8x256xf32>
    %c0_2 = arith.constant 0 : index
    %c0_3 = arith.constant 0 : index
    %4 = vector.load %arg3[%c0_2, %c0_3] : memref<8x256xbf16, #tpu.memory_space<vmem>>, vector<8x256xbf16>
    %c0_4 = arith.constant 0 : index
    %c0_5 = arith.constant 0 : index
    %5 = vector.load %arg4[%c0_4, %c0_5] : memref<256x256xbf16, #tpu.memory_space<vmem>>, vector<256x256xbf16>
    %cst = arith.constant dense<0.000000e+00> : vector<8x256xf32>
    %6 = tpu.matmul %4, %5, %cst {dimension_numbers = #tpu.dot_dimension_numbers<[1], [0], [0], [1], [0, 0, 1, 1], [], []>} : vector<8x256xbf16>, vector<256x256xbf16>, vector<8x256xf32> -> vector<8x256xf32>
    %7 = arith.addf %3, %6 : vector<8x256xf32>
    %c0_6 = arith.constant 0 : index
    %c0_7 = arith.constant 0 : index
    %8 = vector.load %arg8[%c0_6, %c0_7] : memref<8x256xf32, #tpu.memory_space<vmem>>, vector<8x256xf32>
    tpu.vector_store %arg8[%c0_6, %c0_7], %7 {strides = array<i32>} : memref<8x256xf32, #tpu.memory_space<vmem>>, vector<8x256xf32>,
    %c0_i32_8 = arith.constant 0 : i32
    %9 = arith.cmpi eq, %arg2, %c0_i32_8 : i32
    %10 = arith.extui %9 : i1 to i32
    %c0_i32_9 = arith.constant 0 : i32
    %11 = arith.cmpi ne, %10, %c0_i32_9 : i32
    scf.if %11 {
      %c0_10 = arith.constant 0 : index
      %c0_11 = arith.constant 0 : index
      %12 = vector.load %arg8[%c0_10, %c0_11] : memref<8x256xf32, #tpu.memory_space<vmem>>, vector<8x256xf32>
      %c0_12 = arith.constant 0 : index
      %c0_13 = arith.constant 0 : index
      %13 = vector.load %arg5[%c0_12, %c0_13] : memref<1x256xf32, #tpu.memory_space<vmem>>, vector<1x256xf32>
      %14 = vector.broadcast %13 : vector<1x256xf32> to vector<8x256xf32>
      %15 = arith.addf %12, %14 : vector<8x256xf32>
      %c0_14 = arith.constant 0 : index
      %c0_15 = arith.constant 0 : index
      %16 = vector.load %arg6[%c0_14, %c0_15] : memref<8x256xbf16, #tpu.memory_space<vmem>>, vector<8x256xbf16>
      %17 = arith.extf %16 : vector<8x256xbf16> to vector<8x256xf32>
      %18 = arith.addf %15, %17 : vector<8x256xf32>
      %cst_16 = arith.constant 0.000000e+00 : f32
      %19 = vector.broadcast %cst_16 : f32 to vector<8x256xf32>
      %20 = arith.maximumf %18, %19 : vector<8x256xf32>
      %21 = arith.truncf %20 : vector<8x256xf32> to vector<8x256xbf16>
      %c0_17 = arith.constant 0 : index
      %c0_18 = arith.constant 0 : index
      %22 = vector.load %arg7[%c0_17, %c0_18] : memref<8x256xbf16, #tpu.memory_space<vmem>>, vector<8x256xbf16>
      tpu.vector_store %arg7[%c0_17, %c0_18], %21 {strides = array<i32>} : memref<8x256xbf16, #tpu.memory_space<vmem>>, vector<8x256xbf16>,
    } else {
    }
    return
  }
  func.func @transform_0(%arg0: i32, %arg1: i32, %arg2: i32) -> (i32, i32) {
    %c0_i32 = arith.constant 0 : i32
    return %arg0, %arg2 : i32, i32
  }
  func.func @transform_1(%arg0: i32, %arg1: i32, %arg2: i32) -> (i32, i32) {
    %c0_i32 = arith.constant 0 : i32
    return %arg2, %arg1 : i32, i32
  }
  func.func @transform_2(%arg0: i32, %arg1: i32, %arg2: i32) -> (i32, i32) {
    %c0_i32 = arith.constant 0 : i32
    %c0_i32_0 = arith.constant 0 : i32
    return %c0_i32, %arg1 : i32, i32
  }
  func.func @transform_3(%arg0: i32, %arg1: i32, %arg2: i32) -> (i32, i32) {
    %c0_i32 = arith.constant 0 : i32
    return %arg0, %arg1 : i32, i32
  }
  func.func @transform_4(%arg0: i32, %arg1: i32, %arg2: i32) -> (i32, i32) {
    %c0_i32 = arith.constant 0 : i32
    return %arg0, %arg1 : i32, i32
  }
}

module attributes {stable_mosaic.version = 11 : i64} {
  func.func @_mm_kernel(%arg0: i32, %arg1: i32, %arg2: i32, %arg3: memref<8x512xbf16, #tpu.memory_space<vmem>>, %arg4: memref<512x256xbf16, #tpu.memory_space<vmem>>, %arg5: memref<1x256xf32, #tpu.memory_space<vmem>>, %arg6: memref<8x256xbf16, #tpu.memory_space<vmem>>, %arg7: memref<8x256xf32, #tpu.memory_space<vmem>>) attributes {dimension_semantics = [#tpu.dimension_semantics<parallel>, #tpu.dimension_semantics<parallel>, #tpu.dimension_semantics<arbitrary>], iteration_bounds = array<i64: 1, 2, 2>, scalar_prefetch = 0 : i64, scratch_operands = 1 : i64, tpu.core_type = #tpu.core_type<tc>, window_params = [{transform_indices = @transform_0, window_bounds = array<i64: 8, 512>}, {transform_indices = @transform_1, window_bounds = array<i64: 512, 256>}, {transform_indices = @transform_2, window_bounds = array<i64: 1, 256>}, {transform_indices = @transform_3, window_bounds = array<i64: 8, 256>}]} {
    %c0_i32 = arith.constant 0 : i32
    %0 = arith.cmpi eq, %arg2, %c0_i32 : i32
    %1 = arith.extui %0 : i1 to i32
    %c0_i32_0 = arith.constant 0 : i32
    %2 = arith.cmpi ne, %1, %c0_i32_0 : i32
    scf.if %2 {
      %cst_9 = arith.constant 0.000000e+00 : f32
      %12 = vector.broadcast %cst_9 : f32 to vector<8x256xf32>
      %c0_10 = arith.constant 0 : index
      %c0_11 = arith.constant 0 : index
      %13 = vector.load %arg7[%c0_10, %c0_11] : memref<8x256xf32, #tpu.memory_space<vmem>>, vector<8x256xf32>
      tpu.vector_store %arg7[%c0_10, %c0_11], %12 {strides = array<i32>} : memref<8x256xf32, #tpu.memory_space<vmem>>, vector<8x256xf32>,
    } else {
    }
    %c0 = arith.constant 0 : index
    %c0_1 = arith.constant 0 : index
    %3 = vector.load %arg7[%c0, %c0_1] : memref<8x256xf32, #tpu.memory_space<vmem>>, vector<8x256xf32>
    %c0_2 = arith.constant 0 : index
    %c0_3 = arith.constant 0 : index
    %4 = vector.load %arg3[%c0_2, %c0_3] : memref<8x512xbf16, #tpu.memory_space<vmem>>, vector<8x512xbf16>
    %c0_4 = arith.constant 0 : index
    %c0_5 = arith.constant 0 : index
    %5 = vector.load %arg4[%c0_4, %c0_5] : memref<512x256xbf16, #tpu.memory_space<vmem>>, vector<512x256xbf16>
    %cst = arith.constant dense<0.000000e+00> : vector<8x256xf32>
    %6 = tpu.matmul %4, %5, %cst {dimension_numbers = #tpu.dot_dimension_numbers<[1], [0], [0], [1], [0, 0, 1, 1], [], []>} : vector<8x512xbf16>, vector<512x256xbf16>, vector<8x256xf32> -> vector<8x256xf32>
    %7 = arith.addf %3, %6 : vector<8x256xf32>
    %c0_6 = arith.constant 0 : index
    %c0_7 = arith.constant 0 : index
    %8 = vector.load %arg7[%c0_6, %c0_7] : memref<8x256xf32, #tpu.memory_space<vmem>>, vector<8x256xf32>
    tpu.vector_store %arg7[%c0_6, %c0_7], %7 {strides = array<i32>} : memref<8x256xf32, #tpu.memory_space<vmem>>, vector<8x256xf32>,
    %c1_i32 = arith.constant 1 : i32
    %9 = arith.cmpi eq, %arg2, %c1_i32 : i32
    %10 = arith.extui %9 : i1 to i32
    %c0_i32_8 = arith.constant 0 : i32
    %11 = arith.cmpi ne, %10, %c0_i32_8 : i32
    scf.if %11 {
      %c0_9 = arith.constant 0 : index
      %c0_10 = arith.constant 0 : index
      %12 = vector.load %arg7[%c0_9, %c0_10] : memref<8x256xf32, #tpu.memory_space<vmem>>, vector<8x256xf32>
      %c0_11 = arith.constant 0 : index
      %c0_12 = arith.constant 0 : index
      %13 = vector.load %arg5[%c0_11, %c0_12] : memref<1x256xf32, #tpu.memory_space<vmem>>, vector<1x256xf32>
      %14 = vector.broadcast %13 : vector<1x256xf32> to vector<8x256xf32>
      %15 = arith.addf %12, %14 : vector<8x256xf32>
      %cst_13 = arith.constant 0.000000e+00 : f32
      %16 = vector.broadcast %cst_13 : f32 to vector<8x256xf32>
      %17 = arith.maximumf %15, %16 : vector<8x256xf32>
      %18 = arith.truncf %17 : vector<8x256xf32> to vector<8x256xbf16>
      %c0_14 = arith.constant 0 : index
      %c0_15 = arith.constant 0 : index
      %19 = vector.load %arg6[%c0_14, %c0_15] : memref<8x256xbf16, #tpu.memory_space<vmem>>, vector<8x256xbf16>
      tpu.vector_store %arg6[%c0_14, %c0_15], %18 {strides = array<i32>} : memref<8x256xbf16, #tpu.memory_space<vmem>>, vector<8x256xbf16>,
    } else {
    }
    return
  }
  func.func @transform_0(%arg0: i32, %arg1: i32, %arg2: i32) -> (i32, i32) {
    %c0_i32 = arith.constant 0 : i32
    return %arg0, %arg2 : i32, i32
  }
  func.func @transform_1(%arg0: i32, %arg1: i32, %arg2: i32) -> (i32, i32) {
    %c0_i32 = arith.constant 0 : i32
    return %arg2, %arg1 : i32, i32
  }
  func.func @transform_2(%arg0: i32, %arg1: i32, %arg2: i32) -> (i32, i32) {
    %c0_i32 = arith.constant 0 : i32
    %c0_i32_0 = arith.constant 0 : i32
    return %c0_i32, %arg1 : i32, i32
  }
  func.func @transform_3(%arg0: i32, %arg1: i32, %arg2: i32) -> (i32, i32) {
    %c0_i32 = arith.constant 0 : i32
    return %arg0, %arg1 : i32, i32
  }
}

module attributes {stable_mosaic.version = 11 : i64} {
  func.func @_mm_kernel(%arg0: i32, %arg1: i32, %arg2: i32, %arg3: memref<8x512xbf16, #tpu.memory_space<vmem>>, %arg4: memref<512x256xbf16, #tpu.memory_space<vmem>>, %arg5: memref<1x256xf32, #tpu.memory_space<vmem>>, %arg6: memref<8x256xbf16, #tpu.memory_space<vmem>>, %arg7: memref<8x256xf32, #tpu.memory_space<vmem>>) attributes {dimension_semantics = [#tpu.dimension_semantics<parallel>, #tpu.dimension_semantics<parallel>, #tpu.dimension_semantics<arbitrary>], iteration_bounds = array<i64: 1, 2, 9>, scalar_prefetch = 0 : i64, scratch_operands = 1 : i64, tpu.core_type = #tpu.core_type<tc>, window_params = [{transform_indices = @transform_0, window_bounds = array<i64: 8, 512>}, {transform_indices = @transform_1, window_bounds = array<i64: 512, 256>}, {transform_indices = @transform_2, window_bounds = array<i64: 1, 256>}, {transform_indices = @transform_3, window_bounds = array<i64: 8, 256>}]} {
    %c0_i32 = arith.constant 0 : i32
    %0 = arith.cmpi eq, %arg2, %c0_i32 : i32
    %1 = arith.extui %0 : i1 to i32
    %c0_i32_0 = arith.constant 0 : i32
    %2 = arith.cmpi ne, %1, %c0_i32_0 : i32
    scf.if %2 {
      %cst_9 = arith.constant 0.000000e+00 : f32
      %12 = vector.broadcast %cst_9 : f32 to vector<8x256xf32>
      %c0_10 = arith.constant 0 : index
      %c0_11 = arith.constant 0 : index
      %13 = vector.load %arg7[%c0_10, %c0_11] : memref<8x256xf32, #tpu.memory_space<vmem>>, vector<8x256xf32>
      tpu.vector_store %arg7[%c0_10, %c0_11], %12 {strides = array<i32>} : memref<8x256xf32, #tpu.memory_space<vmem>>, vector<8x256xf32>,
    } else {
    }
    %c0 = arith.constant 0 : index
    %c0_1 = arith.constant 0 : index
    %3 = vector.load %arg7[%c0, %c0_1] : memref<8x256xf32, #tpu.memory_space<vmem>>, vector<8x256xf32>
    %c0_2 = arith.constant 0 : index
    %c0_3 = arith.constant 0 : index
    %4 = vector.load %arg3[%c0_2, %c0_3] : memref<8x512xbf16, #tpu.memory_space<vmem>>, vector<8x512xbf16>
    %c0_4 = arith.constant 0 : index
    %c0_5 = arith.constant 0 : index
    %5 = vector.load %arg4[%c0_4, %c0_5] : memref<512x256xbf16, #tpu.memory_space<vmem>>, vector<512x256xbf16>
    %cst = arith.constant dense<0.000000e+00> : vector<8x256xf32>
    %6 = tpu.matmul %4, %5, %cst {dimension_numbers = #tpu.dot_dimension_numbers<[1], [0], [0], [1], [0, 0, 1, 1], [], []>} : vector<8x512xbf16>, vector<512x256xbf16>, vector<8x256xf32> -> vector<8x256xf32>
    %7 = arith.addf %3, %6 : vector<8x256xf32>
    %c0_6 = arith.constant 0 : index
    %c0_7 = arith.constant 0 : index
    %8 = vector.load %arg7[%c0_6, %c0_7] : memref<8x256xf32, #tpu.memory_space<vmem>>, vector<8x256xf32>
    tpu.vector_store %arg7[%c0_6, %c0_7], %7 {strides = array<i32>} : memref<8x256xf32, #tpu.memory_space<vmem>>, vector<8x256xf32>,
    %c8_i32 = arith.constant 8 : i32
    %9 = arith.cmpi eq, %arg2, %c8_i32 : i32
    %10 = arith.extui %9 : i1 to i32
    %c0_i32_8 = arith.constant 0 : i32
    %11 = arith.cmpi ne, %10, %c0_i32_8 : i32
    scf.if %11 {
      %c0_9 = arith.constant 0 : index
      %c0_10 = arith.constant 0 : index
      %12 = vector.load %arg7[%c0_9, %c0_10] : memref<8x256xf32, #tpu.memory_space<vmem>>, vector<8x256xf32>
      %c0_11 = arith.constant 0 : index
      %c0_12 = arith.constant 0 : index
      %13 = vector.load %arg5[%c0_11, %c0_12] : memref<1x256xf32, #tpu.memory_space<vmem>>, vector<1x256xf32>
      %14 = vector.broadcast %13 : vector<1x256xf32> to vector<8x256xf32>
      %15 = arith.addf %12, %14 : vector<8x256xf32>
      %cst_13 = arith.constant 0.000000e+00 : f32
      %16 = vector.broadcast %cst_13 : f32 to vector<8x256xf32>
      %17 = arith.maximumf %15, %16 : vector<8x256xf32>
      %18 = arith.truncf %17 : vector<8x256xf32> to vector<8x256xbf16>
      %c0_14 = arith.constant 0 : index
      %c0_15 = arith.constant 0 : index
      %19 = vector.load %arg6[%c0_14, %c0_15] : memref<8x256xbf16, #tpu.memory_space<vmem>>, vector<8x256xbf16>
      tpu.vector_store %arg6[%c0_14, %c0_15], %18 {strides = array<i32>} : memref<8x256xbf16, #tpu.memory_space<vmem>>, vector<8x256xbf16>,
    } else {
    }
    return
  }
  func.func @transform_0(%arg0: i32, %arg1: i32, %arg2: i32) -> (i32, i32) {
    %c0_i32 = arith.constant 0 : i32
    return %arg0, %arg2 : i32, i32
  }
  func.func @transform_1(%arg0: i32, %arg1: i32, %arg2: i32) -> (i32, i32) {
    %c0_i32 = arith.constant 0 : i32
    return %arg2, %arg1 : i32, i32
  }
  func.func @transform_2(%arg0: i32, %arg1: i32, %arg2: i32) -> (i32, i32) {
    %c0_i32 = arith.constant 0 : i32
    %c0_i32_0 = arith.constant 0 : i32
    return %c0_i32, %arg1 : i32, i32
  }
  func.func @transform_3(%arg0: i32, %arg1: i32, %arg2: i32) -> (i32, i32) {
    %c0_i32 = arith.constant 0 : i32
    return %arg0, %arg1 : i32, i32
  }
}

module attributes {stable_mosaic.version = 11 : i64} {
  func.func @_mm_kernel(%arg0: i32, %arg1: i32, %arg2: i32, %arg3: memref<8x512xbf16, #tpu.memory_space<vmem>>, %arg4: memref<512x256xbf16, #tpu.memory_space<vmem>>, %arg5: memref<1x256xf32, #tpu.memory_space<vmem>>, %arg6: memref<8x256xbf16, #tpu.memory_space<vmem>>, %arg7: memref<8x256xf32, #tpu.memory_space<vmem>>) attributes {dimension_semantics = [#tpu.dimension_semantics<parallel>, #tpu.dimension_semantics<parallel>, #tpu.dimension_semantics<arbitrary>], iteration_bounds = array<i64: 1, 8, 2>, scalar_prefetch = 0 : i64, scratch_operands = 1 : i64, tpu.core_type = #tpu.core_type<tc>, window_params = [{transform_indices = @transform_0, window_bounds = array<i64: 8, 512>}, {transform_indices = @transform_1, window_bounds = array<i64: 512, 256>}, {transform_indices = @transform_2, window_bounds = array<i64: 1, 256>}, {transform_indices = @transform_3, window_bounds = array<i64: 8, 256>}]} {
    %c0_i32 = arith.constant 0 : i32
    %0 = arith.cmpi eq, %arg2, %c0_i32 : i32
    %1 = arith.extui %0 : i1 to i32
    %c0_i32_0 = arith.constant 0 : i32
    %2 = arith.cmpi ne, %1, %c0_i32_0 : i32
    scf.if %2 {
      %cst_9 = arith.constant 0.000000e+00 : f32
      %12 = vector.broadcast %cst_9 : f32 to vector<8x256xf32>
      %c0_10 = arith.constant 0 : index
      %c0_11 = arith.constant 0 : index
      %13 = vector.load %arg7[%c0_10, %c0_11] : memref<8x256xf32, #tpu.memory_space<vmem>>, vector<8x256xf32>
      tpu.vector_store %arg7[%c0_10, %c0_11], %12 {strides = array<i32>} : memref<8x256xf32, #tpu.memory_space<vmem>>, vector<8x256xf32>,
    } else {
    }
    %c0 = arith.constant 0 : index
    %c0_1 = arith.constant 0 : index
    %3 = vector.load %arg7[%c0, %c0_1] : memref<8x256xf32, #tpu.memory_space<vmem>>, vector<8x256xf32>
    %c0_2 = arith.constant 0 : index
    %c0_3 = arith.constant 0 : index
    %4 = vector.load %arg3[%c0_2, %c0_3] : memref<8x512xbf16, #tpu.memory_space<vmem>>, vector<8x512xbf16>
    %c0_4 = arith.constant 0 : index
    %c0_5 = arith.constant 0 : index
    %5 = vector.load %arg4[%c0_4, %c0_5] : memref<512x256xbf16, #tpu.memory_space<vmem>>, vector<512x256xbf16>
    %cst = arith.constant dense<0.000000e+00> : vector<8x256xf32>
    %6 = tpu.matmul %4, %5, %cst {dimension_numbers = #tpu.dot_dimension_numbers<[1], [0], [0], [1], [0, 0, 1, 1], [], []>} : vector<8x512xbf16>, vector<512x256xbf16>, vector<8x256xf32> -> vector<8x256xf32>
    %7 = arith.addf %3, %6 : vector<8x256xf32>
    %c0_6 = arith.constant 0 : index
    %c0_7 = arith.constant 0 : index
    %8 = vector.load %arg7[%c0_6, %c0_7] : memref<8x256xf32, #tpu.memory_space<vmem>>, vector<8x256xf32>
    tpu.vector_store %arg7[%c0_6, %c0_7], %7 {strides = array<i32>} : memref<8x256xf32, #tpu.memory_space<vmem>>, vector<8x256xf32>,
    %c1_i32 = arith.constant 1 : i32
    %9 = arith.cmpi eq, %arg2, %c1_i32 : i32
    %10 = arith.extui %9 : i1 to i32
    %c0_i32_8 = arith.constant 0 : i32
    %11 = arith.cmpi ne, %10, %c0_i32_8 : i32
    scf.if %11 {
      %c0_9 = arith.constant 0 : index
      %c0_10 = arith.constant 0 : index
      %12 = vector.load %arg7[%c0_9, %c0_10] : memref<8x256xf32, #tpu.memory_space<vmem>>, vector<8x256xf32>
      %c0_11 = arith.constant 0 : index
      %c0_12 = arith.constant 0 : index
      %13 = vector.load %arg5[%c0_11, %c0_12] : memref<1x256xf32, #tpu.memory_space<vmem>>, vector<1x256xf32>
      %14 = vector.broadcast %13 : vector<1x256xf32> to vector<8x256xf32>
      %15 = arith.addf %12, %14 : vector<8x256xf32>
      %16 = arith.truncf %15 : vector<8x256xf32> to vector<8x256xbf16>
      %c0_13 = arith.constant 0 : index
      %c0_14 = arith.constant 0 : index
      %17 = vector.load %arg6[%c0_13, %c0_14] : memref<8x256xbf16, #tpu.memory_space<vmem>>, vector<8x256xbf16>
      tpu.vector_store %arg6[%c0_13, %c0_14], %16 {strides = array<i32>} : memref<8x256xbf16, #tpu.memory_space<vmem>>, vector<8x256xbf16>,
    } else {
    }
    return
  }
  func.func @transform_0(%arg0: i32, %arg1: i32, %arg2: i32) -> (i32, i32) {
    %c0_i32 = arith.constant 0 : i32
    return %arg0, %arg2 : i32, i32
  }
  func.func @transform_1(%arg0: i32, %arg1: i32, %arg2: i32) -> (i32, i32) {
    %c0_i32 = arith.constant 0 : i32
    return %arg2, %arg1 : i32, i32
  }
  func.func @transform_2(%arg0: i32, %arg1: i32, %arg2: i32) -> (i32, i32) {
    %c0_i32 = arith.constant 0 : i32
    %c0_i32_0 = arith.constant 0 : i32
    return %c0_i32, %arg1 : i32, i32
  }
  func.func @transform_3(%arg0: i32, %arg1: i32, %arg2: i32) -> (i32, i32) {
    %c0_i32 = arith.constant 0 : i32
    return %arg0, %arg1 : i32, i32
  }
}

module attributes {stable_mosaic.version = 11 : i64} {
  func.func @_mm_kernel(%arg0: i32, %arg1: i32, %arg2: i32, %arg3: memref<8x512xbf16, #tpu.memory_space<vmem>>, %arg4: memref<512x256xbf16, #tpu.memory_space<vmem>>, %arg5: memref<1x256xf32, #tpu.memory_space<vmem>>, %arg6: memref<8x256xbf16, #tpu.memory_space<vmem>>, %arg7: memref<8x256xbf16, #tpu.memory_space<vmem>>, %arg8: memref<8x256xf32, #tpu.memory_space<vmem>>) attributes {dimension_semantics = [#tpu.dimension_semantics<parallel>, #tpu.dimension_semantics<parallel>, #tpu.dimension_semantics<arbitrary>], iteration_bounds = array<i64: 1, 8, 1>, scalar_prefetch = 0 : i64, scratch_operands = 1 : i64, tpu.core_type = #tpu.core_type<tc>, window_params = [{transform_indices = @transform_0, window_bounds = array<i64: 8, 512>}, {transform_indices = @transform_1, window_bounds = array<i64: 512, 256>}, {transform_indices = @transform_2, window_bounds = array<i64: 1, 256>}, {transform_indices = @transform_3, window_bounds = array<i64: 8, 256>}, {transform_indices = @transform_4, window_bounds = array<i64: 8, 256>}]} {
    %c0_i32 = arith.constant 0 : i32
    %0 = arith.cmpi eq, %arg2, %c0_i32 : i32
    %1 = arith.extui %0 : i1 to i32
    %c0_i32_0 = arith.constant 0 : i32
    %2 = arith.cmpi ne, %1, %c0_i32_0 : i32
    scf.if %2 {
      %cst_10 = arith.constant 0.000000e+00 : f32
      %12 = vector.broadcast %cst_10 : f32 to vector<8x256xf32>
      %c0_11 = arith.constant 0 : index
      %c0_12 = arith.constant 0 : index
      %13 = vector.load %arg8[%c0_11, %c0_12] : memref<8x256xf32, #tpu.memory_space<vmem>>, vector<8x256xf32>
      tpu.vector_store %arg8[%c0_11, %c0_12], %12 {strides = array<i32>} : memref<8x256xf32, #tpu.memory_space<vmem>>, vector<8x256xf32>,
    } else {
    }
    %c0 = arith.constant 0 : index
    %c0_1 = arith.constant 0 : index
    %3 = vector.load %arg8[%c0, %c0_1] : memref<8x256xf32, #tpu.memory_space<vmem>>, vector<8x256xf32>
    %c0_2 = arith.constant 0 : index
    %c0_3 = arith.constant 0 : index
    %4 = vector.load %arg3[%c0_2, %c0_3] : memref<8x512xbf16, #tpu.memory_space<vmem>>, vector<8x512xbf16>
    %c0_4 = arith.constant 0 : index
    %c0_5 = arith.constant 0 : index
    %5 = vector.load %arg4[%c0_4, %c0_5] : memref<512x256xbf16, #tpu.memory_space<vmem>>, vector<512x256xbf16>
    %cst = arith.constant dense<0.000000e+00> : vector<8x256xf32>
    %6 = tpu.matmul %4, %5, %cst {dimension_numbers = #tpu.dot_dimension_numbers<[1], [0], [0], [1], [0, 0, 1, 1], [], []>} : vector<8x512xbf16>, vector<512x256xbf16>, vector<8x256xf32> -> vector<8x256xf32>
    %7 = arith.addf %3, %6 : vector<8x256xf32>
    %c0_6 = arith.constant 0 : index
    %c0_7 = arith.constant 0 : index
    %8 = vector.load %arg8[%c0_6, %c0_7] : memref<8x256xf32, #tpu.memory_space<vmem>>, vector<8x256xf32>
    tpu.vector_store %arg8[%c0_6, %c0_7], %7 {strides = array<i32>} : memref<8x256xf32, #tpu.memory_space<vmem>>, vector<8x256xf32>,
    %c0_i32_8 = arith.constant 0 : i32
    %9 = arith.cmpi eq, %arg2, %c0_i32_8 : i32
    %10 = arith.extui %9 : i1 to i32
    %c0_i32_9 = arith.constant 0 : i32
    %11 = arith.cmpi ne, %10, %c0_i32_9 : i32
    scf.if %11 {
      %c0_10 = arith.constant 0 : index
      %c0_11 = arith.constant 0 : index
      %12 = vector.load %arg8[%c0_10, %c0_11] : memref<8x256xf32, #tpu.memory_space<vmem>>, vector<8x256xf32>
      %c0_12 = arith.constant 0 : index
      %c0_13 = arith.constant 0 : index
      %13 = vector.load %arg5[%c0_12, %c0_13] : memref<1x256xf32, #tpu.memory_space<vmem>>, vector<1x256xf32>
      %14 = vector.broadcast %13 : vector<1x256xf32> to vector<8x256xf32>
      %15 = arith.addf %12, %14 : vector<8x256xf32>
      %c0_14 = arith.constant 0 : index
      %c0_15 = arith.constant 0 : index
      %16 = vector.load %arg6[%c0_14, %c0_15] : memref<8x256xbf16, #tpu.memory_space<vmem>>, vector<8x256xbf16>
      %17 = arith.extf %16 : vector<8x256xbf16> to vector<8x256xf32>
      %18 = arith.addf %15, %17 : vector<8x256xf32>
      %cst_16 = arith.constant 0.000000e+00 : f32
      %19 = vector.broadcast %cst_16 : f32 to vector<8x256xf32>
      %20 = arith.maximumf %18, %19 : vector<8x256xf32>
      %21 = arith.truncf %20 : vector<8x256xf32> to vector<8x256xbf16>
      %c0_17 = arith.constant 0 : index
      %c0_18 = arith.constant 0 : index
      %22 = vector.load %arg7[%c0_17, %c0_18] : memref<8x256xbf16, #tpu.memory_space<vmem>>, vector<8x256xbf16>
      tpu.vector_store %arg7[%c0_17, %c0_18], %21 {strides = array<i32>} : memref<8x256xbf16, #tpu.memory_space<vmem>>, vector<8x256xbf16>,
    } else {
    }
    return
  }
  func.func @transform_0(%arg0: i32, %arg1: i32, %arg2: i32) -> (i32, i32) {
    %c0_i32 = arith.constant 0 : i32
    return %arg0, %arg2 : i32, i32
  }
  func.func @transform_1(%arg0: i32, %arg1: i32, %arg2: i32) -> (i32, i32) {
    %c0_i32 = arith.constant 0 : i32
    return %arg2, %arg1 : i32, i32
  }
  func.func @transform_2(%arg0: i32, %arg1: i32, %arg2: i32) -> (i32, i32) {
    %c0_i32 = arith.constant 0 : i32
    %c0_i32_0 = arith.constant 0 : i32
    return %c0_i32, %arg1 : i32, i32
  }
  func.func @transform_3(%arg0: i32, %arg1: i32, %arg2: i32) -> (i32, i32) {
    %c0_i32 = arith.constant 0 : i32
    return %arg0, %arg1 : i32, i32
  }
  func.func @transform_4(%arg0: i32, %arg1: i32, %arg2: i32) -> (i32, i32) {
    %c0_i32 = arith.constant 0 : i32
    return %arg0, %arg1 : i32, i32
  }
}

module attributes {stable_mosaic.version = 11 : i64} {
  func.func @kernel(%arg0: memref<2x1x2048xbf16, #tpu.memory_space<vmem>>, %arg1: memref<2048x128xbf16, #tpu.memory_space<vmem>>, %arg2: memref<1x128xf32, #tpu.memory_space<vmem>>, %arg3: memref<2x128xf32, #tpu.memory_space<vmem>>) attributes {dimension_semantics = [], scalar_prefetch = 0 : i64, scratch_operands = 0 : i64, tpu.core_type = #tpu.core_type<tc>} {
    %c0 = arith.constant 0 : index
    %c0_0 = arith.constant 0 : index
    %c0_1 = arith.constant 0 : index
    %0 = vector.load %arg0[%c0, %c0_0, %c0_1] : memref<2x1x2048xbf16, #tpu.memory_space<vmem>>, vector<2x1x2048xbf16>
    %1 = arith.extf %0 : vector<2x1x2048xbf16> to vector<2x1x2048xf32>
    %cst = arith.constant dense<0.000000e+00> : vector<2x2048xf32>
    %2 = vector.multi_reduction <add>, %1, %cst [1] : vector<2x1x2048xf32> to vector<2x2048xf32>
    %cst_2 = arith.constant 1.000000e+00 : f32
    %3 = vector.broadcast %cst_2 : f32 to vector<2x2048xf32>
    %4 = arith.mulf %2, %3 : vector<2x2048xf32>
    %5 = arith.truncf %4 : vector<2x2048xf32> to vector<2x2048xbf16>
    %c0_3 = arith.constant 0 : index
    %c0_4 = arith.constant 0 : index
    %6 = vector.load %arg1[%c0_3, %c0_4] : memref<2048x128xbf16, #tpu.memory_space<vmem>>, vector<2048x128xbf16>
    %cst_5 = arith.constant dense<0.000000e+00> : vector<2x128xf32>
    %7 = tpu.matmul %5, %6, %cst_5 {dimension_numbers = #tpu.dot_dimension_numbers<[1], [0], [0], [1], [0, 0, 1, 1], [], []>} : vector<2x2048xbf16>, vector<2048x128xbf16>, vector<2x128xf32> -> vector<2x128xf32>
    %c0_6 = arith.constant 0 : index
    %c0_7 = arith.constant 0 : index
    %8 = vector.load %arg2[%c0_6, %c0_7] : memref<1x128xf32, #tpu.memory_space<vmem>>, vector<1x128xf32>
    %9 = vector.broadcast %8 : vector<1x128xf32> to vector<2x128xf32>
    %10 = arith.addf %7, %9 : vector<2x128xf32>
    %c0_8 = arith.constant 0 : index
    %c0_9 = arith.constant 0 : index
    %11 = vector.load %arg3[%c0_8, %c0_9] : memref<2x128xf32, #tpu.memory_space<vmem>>, vector<2x128xf32>
    tpu.vector_store %arg3[%c0_8, %c0_9], %10 {strides = array<i32>} : memref<2x128xf32, #tpu.memory_space<vmem>>, vector<2x128xf32>,
    return
  }
}

</mosaic_0001>

<bundles_post_ra>
// kernel: forward.18
= control target key start
LH: loop header
LB: loop body
LE: loop exit
PB: predicated region body
PF: predicated region fallthrough
CT: control target
= control target key end

     0   :  { %s1744_s12 = smov 0   ;;  %s1746_s13 = smov 0   ;;  %s1918_s0 = inlined_call_operand.vmem [shape: bf16[512,256], index: 0, kind: input, shape index: {}]   ;;  %s1919_s1 = inlined_call_operand.vmem [shape: bf16[256,128], index: 1, kind: input, shape index: {}]   ;;  %s1920_s2 = inlined_call_operand.vmem [shape: f32[1,128], index: 2, kind: input, shape index: {}]   ;;  %s1921_s3 = inlined_call_operand.vmem [shape: bf16[512,128], index: 3, kind: output, shape index: {}]  }
   0x1   :  { %s1748_s14 = smov 0  }
   0x2 LB: > { %s32_s15 = sadd.s32 1, %s1718_s13  ;;  %p1267_p0 = scmp.ge.s32.totalorder %s1722_s14, 1  ;;  %s1722_s14 = sphi %s1748_s14, %s13_s14   ;;  %s1718_s13 = sphi %s1746_s13, %s1923_s13   ;;  %s1714_s12 = sphi %s1744_s12, %s1922_s12  }
   0x3   : > { %p34_p1 = scmp.ge.s32.totalorder %s32_s15, 2  ;;  %p191_p2 = scmp.lt.s32.totalorder %s1722_s14, 3 }
   0x5   : > { %s1925_s15 = smov (%p34_p1, %s32_s15), 0  ;;  %p192_p3 = pnand %p1267_p0, %p191_p2 }
   0x6   : > { %s1268_s18 = sshll.u32 (!%p192_p3), %s1714_s12, 5 }
   0x7   : > { %195 = sbr.rel (%p192_p3) target bundleno = 309 (0x135), region = 32  ;;  %p236_p4 = scmp.lt.s32.totalorder (!%p192_p3), %s1268_s18, 63 }
   0xc   : > { %v1636_v0 = vld [vmem:[%s1919_s1 + $0x78] sm:$0xff]   ;;  %v1638_v2 = vld [vmem:[%s1919_s1 + $0x70] sm:$0xff]   ;;  %v1640_v4 = vld [vmem:[%s1919_s1 + $0x68] sm:$0xff]   ;;  %s1927_s18 = smov (!%p236_p4, %s1268_s18), 63 }
   0xd   : > { %v1637_v1 = vld [vmem:[%s1919_s1 + $0x38] sm:$0xff]   ;;  %1484 = vmatprep.subr.bf16.mxu0 %v1636_v0  ;;  %1596 = vmatprep.subr.bf16.mxu1 %v1636_v0  ;;  %v1639_v3 = vld [vmem:[%s1919_s1 + $0x30] sm:$0xff]   ;;  %v1641_v5 = vld [vmem:[%s1919_s1 + $0x28] sm:$0xff]   ;;  %s1356_s6 = sshll.u32 %s1927_s18, 3  ;;  %s1272_s5 = sshll.u32 %s1927_s18, 2 }
   0xe   : > { %1485 = vmatpush3.bf16.msra.mxu0 %v1637_v1  ;;  %1604 = vmatpush3.bf16.msra.mxu1 %v1637_v1  ;;  %v1642_v6 = vld [vmem:[%s1919_s1 + $0x60] sm:$0xff]   ;;  %v1644_v8 = vld [vmem:[%s1919_s1 + $0x58] sm:$0xff]   ;;  %s1795_s11 = scalar_lea.vmem %s1918_s0, %s1356_s6  ;;  %v1646_v10 = vld [vmem:[%s1919_s1 + $0x50] sm:$0xff]   ;;  %s1863_s8 = scalar_lea.vmem %s1921_s3, %s1272_s5 }
   0xf   : > { %1486 = vmatprep.subr.bf16.mxu0 %v1638_v2  ;;  %1597 = vmatprep.subr.bf16.mxu1 %v1638_v2  ;;  %v1643_v7 = vld [vmem:[%s1919_s1 + $0x20] sm:$0xff]   ;;  %v1645_v9 = vld [vmem:[%s1919_s1 + $0x18] sm:$0xff]   ;;  %v1647_v13 = vld [vmem:[%s1919_s1 + $0x10] sm:$0xff]  }
  0x10   : > { %v1654_v11 = vld [vmem:[%s1795_s11 + $0x4] ss:$8 sps:$4 sm:$0xff]   ;;  %v1652_v18 = vld [vmem:[%s1795_s11] ss:$8 sps:$4 sm:$0xff]   ;;  %v1658_v20 = vld [vmem:[%s1795_s11 + $0x14] ss:$8 sps:$4 sm:$0xff]  }
  0x11   : > { %v1657_v12 = vld [vmem:[%s1795_s11 + $0x84] ss:$8 sps:$4 sm:$0xff]   ;;  %688 = vmatprep.mubr.bf16.mxu0 %v1654_v11  ;;  %v1655_v19 = vld [vmem:[%s1795_s11 + $0x80] ss:$8 sps:$4 sm:$0xff]   ;;  %v1660_v21 = vld [vmem:[%s1795_s11 + $0x94] ss:$8 sps:$4 sm:$0xff]  }
  0x12   : > { %1487 = vmatpush3.bf16.msra.mxu0 %v1639_v3  ;;  %1605 = vmatpush3.bf16.msra.mxu1 %v1639_v3  ;;  %v1648_v14 = vld [vmem:[%s1919_s1 + $0x48] sm:$0xff]   ;;  %v1650_v16 = vld [vmem:[%s1919_s1 + $0x40] sm:$0xff]   ;;  %v1662_v22 = vld [vmem:[%s1795_s11 + $0x10] ss:$8 sps:$4 sm:$0xff]  }
  0x13   : > { %1488 = vmatprep.subr.bf16.mxu0 %v1640_v4  ;;  %1598 = vmatprep.subr.bf16.mxu1 %v1640_v4  ;;  %v1649_v15 = vld [vmem:[%s1919_s1 + $0x8] sm:$0xff]   ;;  %v1651_v17 = vld [vmem:[%s1919_s1] sm:$0xff]   ;;  %v1663_v23 = vld [vmem:[%s1795_s11 + $0x90] ss:$8 sps:$4 sm:$0xff]  }
  0x14   : > { %752 = vmatprep.mubr.bf16.mxu1 %v1657_v12  ;;  %v1664_v24 = vld [vmem:[%s1795_s11 + $0x24] ss:$8 sps:$4 sm:$0xff]   ;;  %v1668_v26 = vld [vmem:[%s1795_s11 + $0x20] ss:$8 sps:$4 sm:$0xff]   ;;  %v1670_v28 = vld [vmem:[%s1795_s11 + $0x34] ss:$8 sps:$4 sm:$0xff]  }
  0x15   : > { %v1666_v25 = vld [vmem:[%s1795_s11 + $0xa4] ss:$8 sps:$4 sm:$0xff]   ;;  %v1669_v27 = vld [vmem:[%s1795_s11 + $0xa0] ss:$8 sps:$4 sm:$0xff]   ;;  %v1672_v29 = vld [vmem:[%s1795_s11 + $0xb4] ss:$8 sps:$4 sm:$0xff]  }
  0x16   : > { %1489 = vmatpush3.bf16.msra.mxu0 %v1641_v5  ;;  %1606 = vmatpush3.bf16.msra.mxu1 %v1641_v5  ;;  %v1674_v30 = vld [vmem:[%s1795_s11 + $0x30] ss:$8 sps:$4 sm:$0xff]   ;;  %v1676_v32 = vld [vmem:[%s1795_s11 + $0x44] ss:$8 sps:$4 sm:$0xff]   ;;  %v1680_v34 = vld [vmem:[%s1795_s11 + $0x40] ss:$8 sps:$4 sm:$0xff]  }
  0x17   : > { %1490 = vmatprep.subr.bf16.mxu0 %v1642_v6  ;;  %1599 = vmatprep.subr.bf16.mxu1 %v1642_v6  ;;  %v1675_v31 = vld [vmem:[%s1795_s11 + $0xb0] ss:$8 sps:$4 sm:$0xff]   ;;  %v1678_v33 = vld [vmem:[%s1795_s11 + $0xc4] ss:$8 sps:$4 sm:$0xff]   ;;  %v1681_v35 = vld [vmem:[%s1795_s11 + $0xc0] ss:$8 sps:$4 sm:$0xff]  }
  0x18   : > { %v1682_v36 = vld [vmem:[%s1795_s11 + $0x54] ss:$8 sps:$4 sm:$0xff]   ;;  %v1686_v38 = vld [vmem:[%s1795_s11 + $0x50] ss:$8 sps:$4 sm:$0xff]   ;;  %v1688_v40 = vld [vmem:[%s1795_s11 + $0x64] ss:$8 sps:$4 sm:$0xff]  }
  0x19   : > { %v1684_v37 = vld [vmem:[%s1795_s11 + $0xd4] ss:$8 sps:$4 sm:$0xff]   ;;  %v1687_v39 = vld [vmem:[%s1795_s11 + $0xd0] ss:$8 sps:$4 sm:$0xff]   ;;  %v1690_v41 = vld [vmem:[%s1795_s11 + $0xe4] ss:$8 sps:$4 sm:$0xff]  }
  0x1a   : > { %1491 = vmatpush3.bf16.msra.mxu0 %v1643_v7  ;;  %1607 = vmatpush3.bf16.msra.mxu1 %v1643_v7  ;;  %v1692_v42 = vld [vmem:[%s1795_s11 + $0x60] ss:$8 sps:$4 sm:$0xff]   ;;  %v1694_v44 = vld [vmem:[%s1795_s11 + $0x74] ss:$8 sps:$4 sm:$0xff]   ;;  %v1698_v46 = vld [vmem:[%s1795_s11 + $0x70] ss:$8 sps:$4 sm:$0xff]  }
  0x1b   : > { %1492 = vmatprep.subr.bf16.mxu0 %v1644_v8  ;;  %1600 = vmatprep.subr.bf16.mxu1 %v1644_v8  ;;  %v1693_v43 = vld [vmem:[%s1795_s11 + $0xe0] ss:$8 sps:$4 sm:$0xff]   ;;  %v1696_v45 = vld [vmem:[%s1795_s11 + $0xf4] ss:$8 sps:$4 sm:$0xff]   ;;  %v1699_v47 = vld [vmem:[%s1795_s11 + $0xf0] ss:$8 sps:$4 sm:$0xff]  }
  0x1c   : > { %v1853_v53 = vld [vmem:[%s1920_s2] ss:$0 sm:$0xff] }
  0x1e   : > { %1493 = vmatpush3.bf16.msra.mxu0 %v1645_v9  ;;  %1608 = vmatpush3.bf16.msra.mxu1 %v1645_v9 }
  0x1f   : > { %1494 = vmatprep.subr.bf16.mxu0 %v1646_v10  ;;  %1601 = vmatprep.subr.bf16.mxu1 %v1646_v10 }
  0x22   : > { %1495 = vmatpush3.bf16.msra.mxu0 %v1647_v13  ;;  %1609 = vmatpush3.bf16.msra.mxu1 %v1647_v13 }
  0x23   : > { %1496 = vmatprep.subr.bf16.mxu0 %v1648_v14  ;;  %1602 = vmatprep.subr.bf16.mxu1 %v1648_v14 }
  0x26   : > { %1497 = vmatpush3.bf16.msra.mxu0 %v1649_v15  ;;  %1610 = vmatpush3.bf16.msra.mxu1 %v1649_v15 }
  0x27   : > { %1498 = vmatprep.subr.bf16.mxu0 %v1650_v16  ;;  %1603 = vmatprep.subr.bf16.mxu1 %v1650_v16 }
  0x2a   : > { %1499 = vmatpush3.bf16.msra.mxu0 %v1651_v17  ;;  %1611 = vmatpush3.bf16.msra.mxu1 %v1651_v17 }
  0x2d   : > { %689 = vmatmul.mubr.bf16.vlgmr.msra.gmra.mxu0 %v1652_v18  ;;  %753 = vmatmul.mubr.bf16.vlgmr.msra.gmra.mxu1 %v1655_v19 }
  0x2e   : > { %696 = vmatprep.mubr.bf16.mxu0 %v1658_v20  ;;  %760 = vmatprep.mubr.bf16.mxu1 %v1660_v21 }
  0x35   : > { %697 = vmatmul.mubr.bf16.gmra.mxu0 %v1662_v22  ;;  %761 = vmatmul.mubr.bf16.gmra.mxu1 %v1663_v23 }
  0x36   : > { %704 = vmatprep.mubr.bf16.mxu0 %v1664_v24  ;;  %768 = vmatprep.mubr.bf16.mxu1 %v1666_v25 }
  0x3d   : > { %705 = vmatmul.mubr.bf16.gmra.mxu0 %v1668_v26  ;;  %769 = vmatmul.mubr.bf16.gmra.mxu1 %v1669_v27 }
  0x3e   : > { %712 = vmatprep.mubr.bf16.mxu0 %v1670_v28  ;;  %776 = vmatprep.mubr.bf16.mxu1 %v1672_v29 }
  0x45   : > { %713 = vmatmul.mubr.bf16.gmra.mxu0 %v1674_v30  ;;  %777 = vmatmul.mubr.bf16.gmra.mxu1 %v1675_v31 }
  0x46   : > { %720 = vmatprep.mubr.bf16.mxu0 %v1676_v32  ;;  %784 = vmatprep.mubr.bf16.mxu1 %v1678_v33 }
  0x4d   : > { %721 = vmatmul.mubr.bf16.gmra.mxu0 %v1680_v34  ;;  %785 = vmatmul.mubr.bf16.gmra.mxu1 %v1681_v35 }
  0x4e   : > { %728 = vmatprep.mubr.bf16.mxu0 %v1682_v36  ;;  %792 = vmatprep.mubr.bf16.mxu1 %v1684_v37 }
  0x55   : > { %729 = vmatmul.mubr.bf16.gmra.mxu0 %v1686_v38  ;;  %793 = vmatmul.mubr.bf16.gmra.mxu1 %v1687_v39 }
  0x56   : > { %736 = vmatprep.mubr.bf16.mxu0 %v1688_v40  ;;  %800 = vmatprep.mubr.bf16.mxu1 %v1690_v41 }
  0x5d   : > { %737 = vmatmul.mubr.bf16.gmra.mxu0 %v1692_v42  ;;  %801 = vmatmul.mubr.bf16.gmra.mxu1 %v1693_v43 }
  0x5e   : > { %744 = vmatprep.mubr.bf16.mxu0 %v1694_v44  ;;  %808 = vmatprep.mubr.bf16.mxu1 %v1696_v45 }
  0x65   : > { %745 = vmatmul.mubr.bf16.gmra.mxu0 %v1698_v46  ;;  %809 = vmatmul.mubr.bf16.gmra.mxu1 %v1699_v47 }
  0xed   : > { %v1500_v48 = vpop.f32.mrf.mxu0  ;;  %v1548_v49 = vpop.f32.mrf.mxu1 }
  0xef   : > { %v1501_v50 = vpop.f32.mrf.mxu0  ;;  %v1549_v51 = vpop.f32.mrf.mxu1 }
  0xf0   : > { %v1502_v52 = vadd.f32 %v1501_v50, %v1500_v48  ;;  %v1550_v54 = vadd.f32 %v1549_v51, %v1548_v49 }
  0xf1   : > { %v1503_v55 = vpop.f32.mrf.mxu0  ;;  %v1551_v56 = vpop.f32.mrf.mxu1 }
  0xf2   : > { %v923_v57 = vadd.f32 %v1502_v52, %v1853_v53  ;;  %v939_v58 = vadd.f32 %v1550_v54, %v1853_v53 }
  0xf3   : > { %v1504_v59 = vpop.f32.mrf.mxu0  ;;  %v1552_v60 = vpop.f32.mrf.mxu1 }
  0xf4   : > { %v1505_v61 = vadd.f32 %v1504_v59, %v1503_v55  ;;  %v1553_v62 = vadd.f32 %v1552_v60, %v1551_v56  ;;  %v955_v3 = vmax.f32 %v923_v57, 0.0  ;;  %v971_v4 = vmax.f32 %v939_v58, 0.0 }
  0xf5   : > { %v1506_v63 = vpop.f32.mrf.mxu0  ;;  %v1554_v0 = vpop.f32.mrf.mxu1 }
  0xf6   : > { %v924_v1 = vadd.f32 %v1505_v61, %v1853_v53  ;;  %v940_v2 = vadd.f32 %v1553_v62, %v1853_v53 }
  0xf7   : > { %v1507_v5 = vpop.f32.mrf.mxu0  ;;  %v1555_v6 = vpop.f32.mrf.mxu1 }
  0xf8   : > { %v956_v7 = vmax.f32 %v924_v1, 0.0  ;;  %v972_v8 = vmax.f32 %v940_v2, 0.0  ;;  %v1508_v9 = vadd.f32 %v1507_v5, %v1506_v63  ;;  %v1556_v10 = vadd.f32 %v1555_v6, %v1554_v0 }
  0xf9   : > { %v1509_v11 = vpop.f32.mrf.mxu0  ;;  %v1557_v12 = vpop.f32.mrf.mxu1 }
  0xfa   : > { %v1392_v13 = vpack.c.bf16 %v956_v7, %v955_v3  ;;  %v1432_v14 = vpack.c.bf16 %v972_v8, %v971_v4  ;;  %v925_v15 = vadd.f32 %v1508_v9, %v1853_v53  ;;  %v941_v16 = vadd.f32 %v1556_v10, %v1853_v53 }
  0xfb   : > { %v1510_v17 = vpop.f32.mrf.mxu0  ;;  %v1558_v18 = vpop.f32.mrf.mxu1 }
  0xfc   : > { %1393 = vst [vmem:[%s1863_s8] sm:$0xff] %v1392_v13   ;;  %1476 = vst [vmem:[%s1863_s8 + $0x40] sm:$0xff] %v1432_v14   ;;  %v1511_v19 = vadd.f32 %v1510_v17, %v1509_v11  ;;  %v1559_v20 = vadd.f32 %v1558_v18, %v1557_v12  ;;  %v957_v25 = vmax.f32 %v925_v15, 0.0  ;;  %v973_v26 = vmax.f32 %v941_v16, 0.0 }
  0xfd   : > { %v1512_v21 = vpop.f32.mrf.mxu0  ;;  %v1560_v22 = vpop.f32.mrf.mxu1 }
  0xfe   : > { %v926_v23 = vadd.f32 %v1511_v19, %v1853_v53  ;;  %v942_v24 = vadd.f32 %v1559_v20, %v1853_v53 }
  0xff   : > { %v1513_v27 = vpop.f32.mrf.mxu0  ;;  %v1561_v28 = vpop.f32.mrf.mxu1 }
 0x100   : > { %v958_v29 = vmax.f32 %v926_v23, 0.0  ;;  %v974_v30 = vmax.f32 %v942_v24, 0.0  ;;  %v1514_v31 = vadd.f32 %v1513_v27, %v1512_v21  ;;  %v1562_v32 = vadd.f32 %v1561_v28, %v1560_v22 }
 0x101   : > { %v1515_v33 = vpop.f32.mrf.mxu0  ;;  %v1563_v34 = vpop.f32.mrf.mxu1 }
 0x102   : > { %v1397_v35 = vpack.c.bf16 %v958_v29, %v957_v25  ;;  %v1437_v36 = vpack.c.bf16 %v974_v30, %v973_v26  ;;  %v927_v37 = vadd.f32 %v1514_v31, %v1853_v53  ;;  %v943_v38 = vadd.f32 %v1562_v32, %v1853_v53 }
 0x103   : > { %v1516_v39 = vpop.f32.mrf.mxu0  ;;  %v1564_v40 = vpop.f32.mrf.mxu1 }
 0x104   : > { %1469 = vst [vmem:[%s1863_s8 + $0x8] sm:$0xff] %v1397_v35   ;;  %1477 = vst [vmem:[%s1863_s8 + $0x48] sm:$0xff] %v1437_v36   ;;  %v1517_v41 = vadd.f32 %v1516_v39, %v1515_v33  ;;  %v1565_v42 = vadd.f32 %v1564_v40, %v1563_v34  ;;  %v959_v47 = vmax.f32 %v927_v37, 0.0  ;;  %v975_v48 = vmax.f32 %v943_v38, 0.0 }
 0x105   : > { %v1518_v43 = vpop.f32.mrf.mxu0  ;;  %v1566_v44 = vpop.f32.mrf.mxu1 }
 0x106   : > { %v928_v45 = vadd.f32 %v1517_v41, %v1853_v53  ;;  %v944_v46 = vadd.f32 %v1565_v42, %v1853_v53 }
 0x107   : > { %v1519_v49 = vpop.f32.mrf.mxu0  ;;  %v1567_v50 = vpop.f32.mrf.mxu1 }
 0x108   : > { %v960_v51 = vmax.f32 %v928_v45, 0.0  ;;  %v976_v52 = vmax.f32 %v944_v46, 0.0  ;;  %v1520_v54 = vadd.f32 %v1519_v49, %v1518_v43  ;;  %v1568_v55 = vadd.f32 %v1567_v50, %v1566_v44 }
 0x109   : > { %v1521_v56 = vpop.f32.mrf.mxu0  ;;  %v1569_v57 = vpop.f32.mrf.mxu1 }
 0x10a   : > { %v1402_v58 = vpack.c.bf16 %v960_v51, %v959_v47  ;;  %v1442_v59 = vpack.c.bf16 %v976_v52, %v975_v48  ;;  %v929_v60 = vadd.f32 %v1520_v54, %v1853_v53  ;;  %v945_v61 = vadd.f32 %v1568_v55, %v1853_v53 }
 0x10b   : > { %v1522_v62 = vpop.f32.mrf.mxu0  ;;  %v1570_v63 = vpop.f32.mrf.mxu1 }
 0x10c   : > { %1470 = vst [vmem:[%s1863_s8 + $0x10] sm:$0xff] %v1402_v58   ;;  %1478 = vst [vmem:[%s1863_s8 + $0x50] sm:$0xff] %v1442_v59   ;;  %v1523_v0 = vadd.f32 %v1522_v62, %v1521_v56  ;;  %v1571_v1 = vadd.f32 %v1570_v63, %v1569_v57  ;;  %v961_v6 = vmax.f32 %v929_v60, 0.0  ;;  %v977_v7 = vmax.f32 %v945_v61, 0.0 }
 0x10d   : > { %v1524_v2 = vpop.f32.mrf.mxu0  ;;  %v1572_v3 = vpop.f32.mrf.mxu1 }
 0x10e   : > { %v930_v4 = vadd.f32 %v1523_v0, %v1853_v53  ;;  %v946_v5 = vadd.f32 %v1571_v1, %v1853_v53 }
 0x10f   : > { %v1525_v8 = vpop.f32.mrf.mxu0  ;;  %v1573_v9 = vpop.f32.mrf.mxu1 }
 0x110   : > { %v962_v10 = vmax.f32 %v930_v4, 0.0  ;;  %v978_v11 = vmax.f32 %v946_v5, 0.0  ;;  %v1526_v12 = vadd.f32 %v1525_v8, %v1524_v2  ;;  %v1574_v13 = vadd.f32 %v1573_v9, %v1572_v3 }
 0x111   : > { %v1527_v14 = vpop.f32.mrf.mxu0  ;;  %v1575_v15 = vpop.f32.mrf.mxu1 }
 0x112   : > { %v1407_v16 = vpack.c.bf16 %v962_v10, %v961_v6  ;;  %v1447_v17 = vpack.c.bf16 %v978_v11, %v977_v7  ;;  %v931_v18 = vadd.f32 %v1526_v12, %v1853_v53  ;;  %v947_v19 = vadd.f32 %v1574_v13, %v1853_v53 }
 0x113   : > { %v1528_v20 = vpop.f32.mrf.mxu0  ;;  %v1576_v21 = vpop.f32.mrf.mxu1 }
 0x114   : > { %1471 = vst [vmem:[%s1863_s8 + $0x18] sm:$0xff] %v1407_v16   ;;  %1479 = vst [vmem:[%s1863_s8 + $0x58] sm:$0xff] %v1447_v17   ;;  %v1529_v22 = vadd.f32 %v1528_v20, %v1527_v14  ;;  %v1577_v23 = vadd.f32 %v1576_v21, %v1575_v15  ;;  %v963_v28 = vmax.f32 %v931_v18, 0.0  ;;  %v979_v29 = vmax.f32 %v947_v19, 0.0 }
 0x115   : > { %v1530_v24 = vpop.f32.mrf.mxu0  ;;  %v1578_v25 = vpop.f32.mrf.mxu1 }
 0x116   : > { %v932_v26 = vadd.f32 %v1529_v22, %v1853_v53  ;;  %v948_v27 = vadd.f32 %v1577_v23, %v1853_v53 }
 0x117   : > { %v1531_v30 = vpop.f32.mrf.mxu0  ;;  %v1579_v31 = vpop.f32.mrf.mxu1 }
 0x118   : > { %v964_v32 = vmax.f32 %v932_v26, 0.0  ;;  %v980_v33 = vmax.f32 %v948_v27, 0.0  ;;  %v1532_v34 = vadd.f32 %v1531_v30, %v1530_v24  ;;  %v1580_v35 = vadd.f32 %v1579_v31, %v1578_v25 }
 0x119   : > { %v1533_v36 = vpop.f32.mrf.mxu0  ;;  %v1581_v37 = vpop.f32.mrf.mxu1 }
 0x11a   : > { %v1412_v38 = vpack.c.bf16 %v964_v32, %v963_v28  ;;  %v1452_v39 = vpack.c.bf16 %v980_v33, %v979_v29  ;;  %v933_v40 = vadd.f32 %v1532_v34, %v1853_v53  ;;  %v949_v41 = vadd.f32 %v1580_v35, %v1853_v53 }
 0x11b   : > { %v1534_v42 = vpop.f32.mrf.mxu0  ;;  %v1582_v43 = vpop.f32.mrf.mxu1 }
 0x11c   : > { %1472 = vst [vmem:[%s1863_s8 + $0x20] sm:$0xff] %v1412_v38   ;;  %1480 = vst [vmem:[%s1863_s8 + $0x60] sm:$0xff] %v1452_v39   ;;  %v1535_v44 = vadd.f32 %v1534_v42, %v1533_v36  ;;  %v1583_v45 = vadd.f32 %v1582_v43, %v1581_v37  ;;  %v965_v50 = vmax.f32 %v933_v40, 0.0  ;;  %v981_v51 = vmax.f32 %v949_v41, 0.0 }
 0x11d   : > { %v1536_v46 = vpop.f32.mrf.mxu0  ;;  %v1584_v47 = vpop.f32.mrf.mxu1 }
 0x11e   : > { %v934_v48 = vadd.f32 %v1535_v44, %v1853_v53  ;;  %v950_v49 = vadd.f32 %v1583_v45, %v1853_v53 }
 0x11f   : > { %v1537_v52 = vpop.f32.mrf.mxu0  ;;  %v1585_v54 = vpop.f32.mrf.mxu1 }
 0x120   : > { %v966_v55 = vmax.f32 %v934_v48, 0.0  ;;  %v982_v56 = vmax.f32 %v950_v49, 0.0  ;;  %v1538_v57 = vadd.f32 %v1537_v52, %v1536_v46  ;;  %v1586_v58 = vadd.f32 %v1585_v54, %v1584_v47 }
 0x121   : > { %v1539_v59 = vpop.f32.mrf.mxu0  ;;  %v1587_v60 = vpop.f32.mrf.mxu1 }
 0x122   : > { %v1417_v61 = vpack.c.bf16 %v966_v55, %v965_v50  ;;  %v1457_v62 = vpack.c.bf16 %v982_v56, %v981_v51  ;;  %v935_v63 = vadd.f32 %v1538_v57, %v1853_v53  ;;  %v951_v0 = vadd.f32 %v1586_v58, %v1853_v53 }
 0x123   : > { %v1540_v1 = vpop.f32.mrf.mxu0  ;;  %v1588_v2 = vpop.f32.mrf.mxu1 }
 0x124   : > { %1473 = vst [vmem:[%s1863_s8 + $0x28] sm:$0xff] %v1417_v61   ;;  %1481 = vst [vmem:[%s1863_s8 + $0x68] sm:$0xff] %v1457_v62   ;;  %v1541_v3 = vadd.f32 %v1540_v1, %v1539_v59  ;;  %v1589_v4 = vadd.f32 %v1588_v2, %v1587_v60  ;;  %v967_v9 = vmax.f32 %v935_v63, 0.0  ;;  %v983_v10 = vmax.f32 %v951_v0, 0.0 }
 0x125   : > { %v1542_v5 = vpop.f32.mrf.mxu0  ;;  %v1590_v6 = vpop.f32.mrf.mxu1 }
 0x126   : > { %v936_v7 = vadd.f32 %v1541_v3, %v1853_v53  ;;  %v952_v8 = vadd.f32 %v1589_v4, %v1853_v53 }
 0x127   : > { %v1543_v11 = vpop.f32.mrf.mxu0  ;;  %v1591_v12 = vpop.f32.mrf.mxu1 }
 0x128   : > { %v968_v13 = vmax.f32 %v936_v7, 0.0  ;;  %v984_v14 = vmax.f32 %v952_v8, 0.0  ;;  %v1544_v15 = vadd.f32 %v1543_v11, %v1542_v5  ;;  %v1592_v16 = vadd.f32 %v1591_v12, %v1590_v6 }
 0x129   : > { %v1545_v17 = vpop.f32.mrf.mxu0  ;;  %v1593_v18 = vpop.f32.mrf.mxu1 }
 0x12a   : > { %v1422_v19 = vpack.c.bf16 %v968_v13, %v967_v9  ;;  %v1462_v20 = vpack.c.bf16 %v984_v14, %v983_v10  ;;  %v937_v23 = vadd.f32 %v1544_v15, %v1853_v53  ;;  %v953_v24 = vadd.f32 %v1592_v16, %v1853_v53 }
 0x12b   : > { %v1546_v21 = vpop.f32.mrf.mxu0  ;;  %v1594_v22 = vpop.f32.mrf.mxu1 }
 0x12c   : > { %1474 = vst [vmem:[%s1863_s8 + $0x30] sm:$0xff] %v1422_v19   ;;  %1482 = vst [vmem:[%s1863_s8 + $0x70] sm:$0xff] %v1462_v20   ;;  %v1547_v25 = vadd.f32 %v1546_v21, %v1545_v17  ;;  %v1595_v26 = vadd.f32 %v1594_v22, %v1593_v18  ;;  %v969_v29 = vmax.f32 %v937_v23, 0.0  ;;  %v985_v30 = vmax.f32 %v953_v24, 0.0 }
 0x12e   : > { %v938_v27 = vadd.f32 %v1547_v25, %v1853_v53  ;;  %v954_v28 = vadd.f32 %v1595_v26, %v1853_v53 }
 0x130   : > { %v970_v31 = vmax.f32 %v938_v27, 0.0  ;;  %v986_v32 = vmax.f32 %v954_v28, 0.0 }
 0x132   : > { %v1427_v33 = vpack.c.bf16 %v970_v31, %v969_v29  ;;  %v1467_v34 = vpack.c.bf16 %v986_v32, %v985_v30 }
 0x134   : > { %1475 = vst [vmem:[%s1863_s8 + $0x38] sm:$0xff] %v1427_v33   ;;  %1483 = vst [vmem:[%s1863_s8 + $0x78] sm:$0xff] %v1467_v34  }
 0x135 PF: > { %s13_s14 = sadd.s32 1, %s1722_s14   ;;  %s1922_s12 = smov %s1718_s13 }
 0x136   : > { %p10_p5 = scmp.ge.s32.totalorder %s13_s14, 4   ;;  %s1923_s13 = smov %s1925_s15 }
 0x138   :  { %12 = sbr.rel (!%p10_p5) target bundleno = 2 (0x2), region = 76 }

// kernel: forward.19
= control target key start
LH: loop header
LB: loop body
LE: loop exit
PB: predicated region body
PF: predicated region fallthrough
CT: control target
= control target key end

     0   :  { %s721_s1 = inlined_call_operand.vmem [shape: bf16[128,128], index: 1, kind: input, shape index: {}]   ;;  %s722_s0 = inlined_call_operand.vmem [shape: bf16[128,128], index: 0, kind: input, shape index: {}]   ;;  %s723_s2 = inlined_call_operand.vmem [shape: f32[1,128], index: 2, kind: input, shape index: {}]   ;;  %s724_s3 = inlined_call_operand.vmem [shape: bf16[128,128], index: 3, kind: output, shape index: {}]  }
   0x1   :  { %v610_v0 = vld [vmem:[%s721_s1 + $0x38] sm:$0xff]   ;;  %v611_v1 = vld [vmem:[%s721_s1 + $0x30] sm:$0xff]   ;;  %v612_v2 = vld [vmem:[%s721_s1 + $0x28] sm:$0xff]  }
   0x2   :  { %562 = vmatprep.subr.bf16.mxu0 %v610_v0  ;;  %594 = vmatprep.subr.bf16.mxu1 %v610_v0  ;;  %v613_v3 = vld [vmem:[%s721_s1 + $0x20] sm:$0xff]   ;;  %v614_v6 = vld [vmem:[%s721_s1 + $0x18] sm:$0xff]   ;;  %v615_v7 = vld [vmem:[%s721_s1 + $0x10] sm:$0xff]  }
   0x3   :  { %563 = vmatpush3.bf16.msra.mxu0 %v610_v0  ;;  %602 = vmatpush3.bf16.msra.mxu1 %v610_v0  ;;  %v618_v4 = vld [vmem:[%s722_s0] sm:$0xff]   ;;  %v616_v8 = vld [vmem:[%s721_s1 + $0x8] sm:$0xff]   ;;  %v622_v12 = vld [vmem:[%s722_s0 + $0x10] sm:$0xff]  }
   0x4   :  { %564 = vmatprep.subr.bf16.mxu0 %v611_v1  ;;  %595 = vmatprep.subr.bf16.mxu1 %v611_v1  ;;  %v619_v5 = vld [vmem:[%s722_s0 + $0x20] sm:$0xff]   ;;  %v620_v10 = vld [vmem:[%s722_s0 + $0x8] sm:$0xff]   ;;  %v623_v13 = vld [vmem:[%s722_s0 + $0x30] sm:$0xff]  }
   0x5   :  { %578 = vmatprep.mubr.bf16.mxu0 %v618_v4  ;;  %586 = vmatprep.mubr.bf16.mxu1 %v619_v5  ;;  %v617_v9 = vld [vmem:[%s721_s1] sm:$0xff]   ;;  %v621_v11 = vld [vmem:[%s722_s0 + $0x28] sm:$0xff]   ;;  %v624_v14 = vld [vmem:[%s722_s0 + $0x18] sm:$0xff]  }
   0x6   :  { %v625_v15 = vld [vmem:[%s722_s0 + $0x38] sm:$0xff]   ;;  %v466_v16 = vld [vmem:[%s723_s2] ss:$0 sm:$0xff] }
   0x7   :  { %565 = vmatpush3.bf16.msra.mxu0 %v611_v1  ;;  %603 = vmatpush3.bf16.msra.mxu1 %v611_v1 }
   0x8   :  { %566 = vmatprep.subr.bf16.mxu0 %v612_v2  ;;  %596 = vmatprep.subr.bf16.mxu1 %v612_v2 }
   0xb   :  { %567 = vmatpush3.bf16.msra.mxu0 %v612_v2  ;;  %604 = vmatpush3.bf16.msra.mxu1 %v612_v2 }
   0xc   :  { %568 = vmatprep.subr.bf16.mxu0 %v613_v3  ;;  %597 = vmatprep.subr.bf16.mxu1 %v613_v3 }
   0xf   :  { %569 = vmatpush3.bf16.msra.mxu0 %v613_v3  ;;  %605 = vmatpush3.bf16.msra.mxu1 %v613_v3 }
  0x10   :  { %570 = vmatprep.subr.bf16.mxu0 %v614_v6  ;;  %598 = vmatprep.subr.bf16.mxu1 %v614_v6 }
  0x13   :  { %571 = vmatpush3.bf16.msra.mxu0 %v614_v6  ;;  %606 = vmatpush3.bf16.msra.mxu1 %v614_v6 }
  0x14   :  { %572 = vmatprep.subr.bf16.mxu0 %v615_v7  ;;  %599 = vmatprep.subr.bf16.mxu1 %v615_v7 }
  0x17   :  { %573 = vmatpush3.bf16.msra.mxu0 %v615_v7  ;;  %607 = vmatpush3.bf16.msra.mxu1 %v615_v7 }
  0x18   :  { %574 = vmatprep.subr.bf16.mxu0 %v616_v8  ;;  %600 = vmatprep.subr.bf16.mxu1 %v616_v8 }
  0x1b   :  { %575 = vmatpush3.bf16.msra.mxu0 %v616_v8  ;;  %608 = vmatpush3.bf16.msra.mxu1 %v616_v8 }
  0x1c   :  { %576 = vmatprep.subr.bf16.mxu0 %v617_v9  ;;  %601 = vmatprep.subr.bf16.mxu1 %v617_v9 }
  0x1f   :  { %577 = vmatpush3.bf16.msra.mxu0 %v617_v9  ;;  %609 = vmatpush3.bf16.msra.mxu1 %v617_v9 }
  0x22   :  { %579 = vmatmul.mubr.bf16.vlgmr.msra.gmra.mxu0 %v620_v10  ;;  %587 = vmatmul.mubr.bf16.vlgmr.msra.gmra.mxu1 %v621_v11 }
  0x23   :  { %582 = vmatprep.mubr.bf16.mxu0 %v622_v12  ;;  %590 = vmatprep.mubr.bf16.mxu1 %v623_v13 }
  0x2a   :  { %583 = vmatmul.mubr.bf16.gmra.mxu0 %v624_v14  ;;  %591 = vmatmul.mubr.bf16.gmra.mxu1 %v625_v15 }
  0xe2   :  { %v580_v17 = vpop.f32.mrf.mxu0  ;;  %v588_v18 = vpop.f32.mrf.mxu1 }
  0xe3   :  { %v336_v19 = vadd.f32 %v580_v17, %v466_v16  ;;  %v344_v20 = vadd.f32 %v588_v18, %v466_v16 }
  0xe4   :  { %v213_v21 = vpop.f32.mrf.mxu0  ;;  %v245_v22 = vpop.f32.mrf.mxu1 }
  0xe5   :  { %v334_v23 = vadd.f32 %v466_v16, %v213_v21  ;;  %v342_v24 = vadd.f32 %v466_v16, %v245_v22  ;;  %v352_v29 = vmax.f32 %v336_v19, 0.0  ;;  %v360_v30 = vmax.f32 %v344_v20, 0.0 }
  0xe6   :  { %v581_v25 = vpop.f32.mrf.mxu0  ;;  %v589_v26 = vpop.f32.mrf.mxu1 }
  0xe7   :  { %v337_v27 = vadd.f32 %v581_v25, %v466_v16  ;;  %v345_v28 = vadd.f32 %v589_v26, %v466_v16  ;;  %v350_v37 = vmax.f32 %v334_v23, 0.0  ;;  %v358_v38 = vmax.f32 %v342_v24, 0.0 }
  0xe8   :  { %v216_v31 = vpop.f32.mrf.mxu0  ;;  %v248_v32 = vpop.f32.mrf.mxu1 }
  0xe9   :  { %v353_v33 = vmax.f32 %v337_v27, 0.0  ;;  %v361_v34 = vmax.f32 %v345_v28, 0.0  ;;  %v335_v35 = vadd.f32 %v466_v16, %v216_v31  ;;  %v343_v36 = vadd.f32 %v466_v16, %v248_v32 }
  0xea   :  { %v584_v39 = vpop.f32.mrf.mxu0  ;;  %v592_v40 = vpop.f32.mrf.mxu1 }
  0xeb   :  { %v507_v41 = vpack.c.bf16 %v353_v33, %v352_v29  ;;  %v527_v42 = vpack.c.bf16 %v361_v34, %v360_v30  ;;  %v351_v43 = vmax.f32 %v335_v35, 0.0  ;;  %v359_v44 = vmax.f32 %v343_v36, 0.0 }
  0xec   :  { %v340_v45 = vadd.f32 %v584_v39, %v466_v16  ;;  %v348_v46 = vadd.f32 %v592_v40, %v466_v16  ;;  %v229_v47 = vpop.f32.mrf.mxu0  ;;  %v261_v48 = vpop.f32.mrf.mxu1 }
  0xed   :  { %539 = vst [vmem:[%s724_s3 + $0x8] sm:$0xff] %v507_v41   ;;  %543 = vst [vmem:[%s724_s3 + $0x28] sm:$0xff] %v527_v42   ;;  %v502_v49 = vpack.c.bf16 %v351_v43, %v350_v37  ;;  %v522_v50 = vpack.c.bf16 %v359_v44, %v358_v38  ;;  %v338_v51 = vadd.f32 %v466_v16, %v229_v47 }
  0xee   :  { %v346_v52 = vadd.f32 %v466_v16, %v261_v48  ;;  %v585_v53 = vpop.f32.mrf.mxu0  ;;  %v593_v54 = vpop.f32.mrf.mxu1  ;;  %v356_v57 = vmax.f32 %v340_v45, 0.0  ;;  %v364_v58 = vmax.f32 %v348_v46, 0.0 }
  0xef   :  { %503 = vst [vmem:[%s724_s3] sm:$0xff] %v502_v49   ;;  %542 = vst [vmem:[%s724_s3 + $0x20] sm:$0xff] %v522_v50   ;;  %v341_v55 = vadd.f32 %v585_v53, %v466_v16  ;;  %v349_v56 = vadd.f32 %v593_v54, %v466_v16  ;;  %v354_v1 = vmax.f32 %v338_v51, 0.0 }
  0xf0   :  { %v232_v59 = vpop.f32.mrf.mxu0  ;;  %v264_v60 = vpop.f32.mrf.mxu1  ;;  %v362_v2 = vmax.f32 %v346_v52, 0.0 }
  0xf1   :  { %v357_v61 = vmax.f32 %v341_v55, 0.0  ;;  %v365_v62 = vmax.f32 %v349_v56, 0.0  ;;  %v339_v63 = vadd.f32 %v466_v16, %v232_v59  ;;  %v347_v0 = vadd.f32 %v466_v16, %v264_v60 }
  0xf3   :  { %v517_v3 = vpack.c.bf16 %v357_v61, %v356_v57  ;;  %v537_v4 = vpack.c.bf16 %v365_v62, %v364_v58  ;;  %v355_v5 = vmax.f32 %v339_v63, 0.0  ;;  %v363_v6 = vmax.f32 %v347_v0, 0.0 }
  0xf5   :  { %541 = vst [vmem:[%s724_s3 + $0x18] sm:$0xff] %v517_v3   ;;  %545 = vst [vmem:[%s724_s3 + $0x38] sm:$0xff] %v537_v4   ;;  %v512_v7 = vpack.c.bf16 %v355_v5, %v354_v1  ;;  %v532_v8 = vpack.c.bf16 %v363_v6, %v362_v2 }
  0xf7   :  { %540 = vst [vmem:[%s724_s3 + $0x10] sm:$0xff] %v512_v7   ;;  %544 = vst [vmem:[%s724_s3 + $0x30] sm:$0xff] %v532_v8  }

// kernel: forward.20
= control target key start
LH: loop header
LB: loop body
LE: loop exit
PB: predicated region body
PF: predicated region fallthrough
CT: control target
= control target key end

     0   :  { %s798_s12 = smov 0   ;;  %s800_s13 = smov 0   ;;  %s891_s0 = inlined_call_operand.vmem [shape: bf16[32,640], index: 0, kind: input, shape index: {}]   ;;  %s892_s1 = inlined_call_operand.vmem [shape: bf16[640,128], index: 1, kind: input, shape index: {}]   ;;  %s893_s2 = inlined_call_operand.vmem [shape: f32[1,128], index: 2, kind: input, shape index: {}]   ;;  %s894_s3 = inlined_call_operand.vmem [shape: bf16[32,128], index: 3, kind: output, shape index: {}]  }
   0x1   :  { %s802_s14 = smov 0   ;;  %s804_s15 = smov 0  }
   0x2   :  { %s806_s16 = smov 0  }
   0x3 LB: > { %s25_s17 = sadd.s32 1, %s771_s15  ;;  %p48_p1 = scmp.ne.s32.totalorder %s763_s13, %s759_s12  ;;  %s775_s16 = sphi %s806_s16, %s13_s16   ;;  %s771_s15 = sphi %s804_s15, %s898_s15   ;;  %s767_s14 = sphi %s802_s14, %s897_s14   ;;  %s763_s13 = sphi %s800_s13, %s896_s13   ;;  %s759_s12 = sphi %s798_s12, %s895_s12  }
   0x4   : > { %p26_p0 = scmp.ge.s32.totalorder %s25_s17, 5  ;;  %p49_p2 = scmp.eq.s32.totalorder %s775_s16, 0 }
   0x5   : > { %s41_s19 = sadd.s32 1, %s763_s13  ;;  %p613_p5 = scmp.ge.s32.totalorder %s775_s16, 5 }
   0x6   : > { %s900_s17 = smov (%p26_p0, %s25_s17), 0  ;;  %p50_p3 = por %p49_p2, %p48_p1 }
   0x7   : > { %s37_s18 = ssub.s32 %s771_s15, %s900_s17  ;;  %162 = sbr.rel (%p613_p5) target bundleno = 18 (0x12), region = 20 }
   0x8   : > { %p39_p4 = scmp.eq.s32.totalorder %s37_s18, 0 }
   0xa   : > { %s833_s20 = scalar_select %p39_p4, %s763_s13, %s41_s19  }
   0xc   : > { %165 = sbr.rel (!%p50_p3) target bundleno = 18 (0x12), region = 24  ;;  %s167_s21 = sand.u32 (%p50_p3), 1, %s763_s13  }
   0xd   : > { %s615_s22 = sshll.u32 (%p50_p3), %s771_s15, 2  ;;  %s614_s23 = sshll.u32 (%p50_p3), %s167_s21, 4 }
   0xe   : > { %s174_s26 = scalar_lea.vmem (%p50_p3), %s891_s0, %s615_s22  ;;  %s169_s27 = scalar_lea.vmem (%p50_p3), [#allocation3], %s614_s23 }
   0xf   : > { %v191_v0 = vld [vmem:[%s174_s26] sm:$0xf] (%p50_p3)  ;;  %v193_v1 = vld [vmem:[%s174_s26 + $0x14] sm:$0xf] (%p50_p3)  ;;  %v195_v2 = vld [vmem:[%s174_s26 + $0x28] sm:$0xf] (%p50_p3) }
  0x10   : > { %192 = vst [vmem:[%s169_s27] sm:$0xf] (%p50_p3), %v191_v0  ;;  %194 = vst [vmem:[%s169_s27 + $0x4] sm:$0xf] (%p50_p3), %v193_v1  ;;  %v197_v3 = vld [vmem:[%s174_s26 + $0x3c] sm:$0xf] (%p50_p3) }
  0x11   : > { %196 = vst [vmem:[%s169_s27 + $0x8] sm:$0xf] %v195_v2  ;;  %198 = vst [vmem:[%s169_s27 + $0xc] sm:$0xf] %v197_v3 }
  0x12 PF: > { %p616_p6 = scmp.ge.s32.totalorder %s775_s16, 1  ;;  %p241_p7 = scmp.lt.s32.totalorder %s775_s16, 6 }
  0x14   : > { %p242_p8 = pnand %p616_p6, %p241_p7 }
  0x15   : > { %s248_s28 = sand.u32 (!%p242_p8), 1, %s759_s12   ;;  %s618_s29 = sshll.u32 (!%p242_p8), %s767_s14, 4 }
  0x16   : > { %245 = sbr.rel (%p242_p8) target bundleno = 284 (0x11c), region = 69  ;;  %s845_s30 = sshll.u32 (!%p242_p8), %s248_s28, 4 }
  0x17   : > { %p287_p9 = scmp.lt.s32.totalorder (!%p242_p8), %s618_s29, 79  ;;  %s250_s8 = scalar_lea.vmem (!%p242_p8), [#allocation3], %s845_s30 }
  0x18   : > { %p620_p10 = scmp.ne.s32.totalorder (!%p242_p8), %s767_s14, 0 }
  0x1b   : > { %s902_s29 = smov (!%p287_p9, %s618_s29), 79  ;;  %311 = sbr.rel (%p620_p10) target bundleno = 35 (0x23), region = 77 }
  0x1c   : > { %s619_s4 = sshll.u32 %s902_s29, 2 }
  0x1d   : > { %s850_s7 = scalar_lea.vmem %s892_s1, %s619_s4 }
  0x20   : > { %v777_v4 = vmov 0.0  }
  0x21   : > { %312 = vst [vmem:[#allocation2 + $0x10] sm:$0xff] %v777_v4  ;;  %313 = vst [vmem:[#allocation2] sm:$0xff] %v777_v4 }
  0x22   : > { %314 = vst [vmem:[#allocation2 + $0x18] sm:$0xff] %v777_v4  ;;  %315 = vst [vmem:[#allocation2 + $0x8] sm:$0xff] %v777_v4 }
  0x23 PF: > { %v727_v5 = vld [vmem:[%s850_s7 + $0x38] sm:$0xff]   ;;  %v728_v6 = vld [vmem:[%s850_s7 + $0x30] sm:$0xff]   ;;  %v729_v7 = vld [vmem:[%s850_s7 + $0x28] sm:$0xff]   ;;  %p631_p11 = scmp.ne.s32.totalorder %s767_s14, 4 }
  0x24   : > { %666 = vmatprep.subr.bf16.mxu0 %v727_v5  ;;  %v730_v8 = vld [vmem:[%s850_s7 + $0x20] sm:$0xff]   ;;  %v731_v10 = vld [vmem:[%s850_s7 + $0x18] sm:$0xff]   ;;  %v732_v11 = vld [vmem:[%s850_s7 + $0x10] sm:$0xff]  }
  0x25   : > { %667 = vmatpush3.bf16.msra.mxu0 %v727_v5  ;;  %v735_v9 = vld [vmem:[%s250_s8] sm:$0xff]   ;;  %v733_v12 = vld [vmem:[%s850_s7 + $0x8] sm:$0xff]  }
  0x26   : > { %668 = vmatprep.subr.bf16.mxu0 %v728_v6  ;;  %682 = vmatprep.mubr.bf16.mxu0 %v735_v9  ;;  %v734_v13 = vld [vmem:[%s850_s7] sm:$0xff]   ;;  %v736_v14 = vld [vmem:[%s250_s8 + $0x8] sm:$0xff]  }
  0x28   : > { %v316_v17 = vld [vmem:[#allocation2 + $0x10] sm:$0xff]  ;;  %v317_v23 = vld [vmem:[#allocation2] sm:$0xff] }
  0x29   : > { %669 = vmatpush3.bf16.msra.mxu0 %v728_v6  ;;  %v318_v15 = vld [vmem:[#allocation2 + $0x18] sm:$0xff]  ;;  %v319_v20 = vld [vmem:[#allocation2 + $0x8] sm:$0xff] }
  0x2a   : > { %670 = vmatprep.subr.bf16.mxu0 %v729_v7 }
  0x2d   : > { %671 = vmatpush3.bf16.msra.mxu0 %v729_v7 }
  0x2e   : > { %672 = vmatprep.subr.bf16.mxu0 %v730_v8 }
  0x31   : > { %673 = vmatpush3.bf16.msra.mxu0 %v730_v8 }
  0x32   : > { %674 = vmatprep.subr.bf16.mxu0 %v731_v10 }
  0x35   : > { %675 = vmatpush3.bf16.msra.mxu0 %v731_v10 }
  0x36   : > { %676 = vmatprep.subr.bf16.mxu0 %v732_v11 }
  0x39   : > { %677 = vmatpush3.bf16.msra.mxu0 %v732_v11 }
  0x3a   : > { %678 = vmatprep.subr.bf16.mxu0 %v733_v12 }
  0x3d   : > { %679 = vmatpush3.bf16.msra.mxu0 %v733_v12 }
  0x3e   : > { %680 = vmatprep.subr.bf16.mxu0 %v734_v13 }
  0x41   : > { %681 = vmatpush3.bf16.msra.mxu0 %v734_v13 }
  0x44   : > { %683 = vmatmul.mubr.bf16.vlgmr.msra.gmra.mxu0 %v736_v14 }
 0x104   : > { %v684_v16 = vpop.f32.mrf.mxu0 }
 0x105   : > { %v451_v18 = vadd.f32 %v684_v16, %v318_v15 }
 0x106   : > { %v434_v19 = vpop.f32.mrf.mxu0 }
 0x107   : > { %455 = vst [vmem:[#allocation2 + $0x18] sm:$0xff] %v451_v18  ;;  %v449_v21 = vadd.f32 %v434_v19, %v316_v17 }
 0x108   : > { %v685_v22 = vpop.f32.mrf.mxu0 }
 0x109   : > { %453 = vst [vmem:[#allocation2 + $0x10] sm:$0xff] %v449_v21  ;;  %v452_v24 = vadd.f32 %v685_v22, %v319_v20  ;;  %460 = sbr.rel (%p631_p11) target bundleno = 284 (0x11c), region = 81 }
 0x10a   : > { %v437_v25 = vpop.f32.mrf.mxu0 }
 0x10b   : > { %456 = vst [vmem:[#allocation2 + $0x8] sm:$0xff] %v452_v24  ;;  %v450_v26 = vadd.f32 %v437_v25, %v317_v23 }
 0x10d   : > { %454 = vst [vmem:[#allocation2] sm:$0xff] %v450_v26 }
 0x10e   : > { %v632_v29 = vld [vmem:[%s893_s2] ss:$0 sm:$0xff]  ;;  %v463_v32 = vld [vmem:[#allocation2 + $0x18] sm:$0xff] }
 0x10f   : > { %v474_v34 = vadd.f32 %v632_v29, %v463_v32 }
 0x110   : > { %v461_v27 = vld [vmem:[#allocation2 + $0x10] sm:$0xff] }
 0x111   : > { %v472_v30 = vadd.f32 %v632_v29, %v461_v27  ;;  %v478_v38 = vmax.f32 %v474_v34, 0.0 }
 0x112   : > { %v464_v33 = vld [vmem:[#allocation2 + $0x8] sm:$0xff] }
 0x113   : > { %v475_v35 = vadd.f32 %v632_v29, %v464_v33  ;;  %v476_v36 = vmax.f32 %v472_v30, 0.0 }
 0x114   : > { %v462_v28 = vld [vmem:[#allocation2] sm:$0xff] }
 0x115   : > { %v473_v31 = vadd.f32 %v632_v29, %v462_v28  ;;  %v479_v39 = vmax.f32 %v475_v35, 0.0 }
 0x117   : > { %v477_v37 = vmax.f32 %v473_v31, 0.0  ;;  %v653_v41 = vpack.c.bf16 %v479_v39, %v478_v38 }
 0x119   : > { %v648_v40 = vpack.c.bf16 %v477_v37, %v476_v36  ;;  %655 = vst [vmem:[%s894_s3 + $0x8] sm:$0xff] %v653_v41  }
 0x11b   : > { %649 = vst [vmem:[%s894_s3] sm:$0xff] %v648_v40  }
 0x11c PF: > { %s13_s16 = sadd.s32 1, %s775_s16   ;;  %s895_s12 = smov %s763_s13 }
 0x11d   : > { %p10_p12 = scmp.ge.s32.totalorder %s13_s16, 7   ;;  %s896_s13 = smov %s833_s20 }
 0x11e   : > { %s897_s14 = smov %s771_s15  ;;  %s898_s15 = smov %s900_s17 }
 0x11f   :  { %12 = sbr.rel (!%p10_p12) target bundleno = 3 (0x3), region = 122 }

// kernel: forward.22
= control target key start
LH: loop header
LB: loop body
LE: loop exit
PB: predicated region body
PF: predicated region fallthrough
CT: control target
= control target key end

     0   :  { %v379_v1 = vmov 0   ;;  %v232_v19 = vlaneseq  ;;  %s486_s1 = inlined_call_operand.vmem [shape: bf16[128,256], index: 1, kind: input, shape index: {}]   ;;  %s487_s0 = inlined_call_operand.vmem [shape: bf16[32,128], index: 0, kind: input, shape index: {}]   ;;  %s488_s2 = inlined_call_operand.vmem [shape: f32[1,256], index: 2, kind: input, shape index: {}]   ;;  %s489_s3 = inlined_call_operand.vmem [shape: bf16[32,256], index: 3, kind: input, shape index: {}]   ;;  %s490_s4 = inlined_call_operand.vmem [shape: bf16[32,256], index: 4, kind: output, shape index: {}]  }
   0x1   :  { %v353_v0 = vld [vmem:[%s486_s1 + $0x74] ss:$8 sps:$4 sm:$0xff]   ;;  %182 = vmatprep.mubr.bf16.mxu0 %v379_v1  ;;  %192 = vmatprep.mubr.bf16.mxu1 %v379_v1  ;;  %v355_v2 = vld [vmem:[%s486_s1 + $0x70] ss:$8 sps:$4 sm:$0xff]   ;;  %v356_v3 = vld [vmem:[%s486_s1 + $0x64] ss:$8 sps:$4 sm:$0xff]  }
   0x2   :  { %150 = vmatprep.subr.bf16.mxu0 %v353_v0  ;;  %336 = vmatprep.subr.bf16.mxu1 %v353_v0  ;;  %v358_v4 = vld [vmem:[%s486_s1 + $0x60] ss:$8 sps:$4 sm:$0xff]   ;;  %v359_v5 = vld [vmem:[%s486_s1 + $0x54] ss:$8 sps:$4 sm:$0xff]   ;;  %v361_v6 = vld [vmem:[%s486_s1 + $0x50] ss:$8 sps:$4 sm:$0xff]  }
   0x3   :  { %151 = vmatpush1.bf16.msra.mxu0 %v355_v2  ;;  %344 = vmatpush1.bf16.msra.mxu1 %v355_v2  ;;  %v362_v7 = vld [vmem:[%s486_s1 + $0x44] ss:$8 sps:$4 sm:$0xff]   ;;  %v364_v8 = vld [vmem:[%s486_s1 + $0x40] ss:$8 sps:$4 sm:$0xff]   ;;  %v365_v9 = vld [vmem:[%s486_s1 + $0x34] ss:$8 sps:$4 sm:$0xff]  }
   0x4   :  { %152 = vmatprep.subr.bf16.mxu0 %v356_v3  ;;  %337 = vmatprep.subr.bf16.mxu1 %v356_v3  ;;  %v367_v10 = vld [vmem:[%s486_s1 + $0x30] ss:$8 sps:$4 sm:$0xff]   ;;  %v368_v11 = vld [vmem:[%s486_s1 + $0x24] ss:$8 sps:$4 sm:$0xff]   ;;  %v370_v12 = vld [vmem:[%s486_s1 + $0x20] ss:$8 sps:$4 sm:$0xff]  }
   0x5   :  { %v371_v13 = vld [vmem:[%s486_s1 + $0x14] ss:$8 sps:$4 sm:$0xff]   ;;  %v373_v14 = vld [vmem:[%s486_s1 + $0x10] ss:$8 sps:$4 sm:$0xff]   ;;  %v374_v15 = vld [vmem:[%s486_s1 + $0x4] ss:$8 sps:$4 sm:$0xff]  }
   0x6   :  { %v376_v16 = vld [vmem:[%s486_s1] ss:$8 sps:$4 sm:$0xff]   ;;  %v233_v20 = vshrl.u32 %v232_v19, 7  ;;  %v252_v25 = vld [vmem:[%s489_s3 + $0x10] sm:$0xff]  ;;  %v253_v37 = vld [vmem:[%s489_s3 + $0x18] sm:$0xff] }
   0x7   :  { %153 = vmatpush1.bf16.msra.mxu0 %v358_v4  ;;  %345 = vmatpush1.bf16.msra.mxu1 %v358_v4  ;;  %v377_v17 = vld [vmem:[%s487_s0] sm:$0xff]   ;;  %v378_v18 = vld [vmem:[%s487_s0 + $0x8] sm:$0xff]   ;;  %v258_v28 = vunpack.c.l.bf16 %v252_v25  ;;  %v259_v35 = vunpack.c.h.bf16 %v252_v25  ;;  %v260_v47 = vunpack.c.l.bf16 %v253_v37  ;;  %v261_v51 = vunpack.c.h.bf16 %v253_v37 }
   0x8   :  { %154 = vmatprep.subr.bf16.mxu0 %v359_v5  ;;  %338 = vmatprep.subr.bf16.mxu1 %v359_v5  ;;  %v234_v21 = vsub.s32 0, %v233_v20  ;;  %v230_v22 = vld [vmem:[%s488_s2] sm:$0x3]  ;;  %v238_v23 = vsub.s32 1, %v233_v20  ;;  %v251_v36 = vld [vmem:[%s489_s3 + $0x8] sm:$0xff] }
   0x9   :  { %v250_v24 = vld [vmem:[%s489_s3] sm:$0xff]  ;;  %v256_v45 = vunpack.c.l.bf16 %v251_v36  ;;  %v257_v50 = vunpack.c.h.bf16 %v251_v36 }
   0xa   :  { %v235_v26 = vrot.slane %v230_v22, %v234_v21  ;;  %v254_v27 = vunpack.c.l.bf16 %v250_v24  ;;  %v239_v29 = vrot.slane %v230_v22, %v238_v23  ;;  %v255_v34 = vunpack.c.h.bf16 %v250_v24 }
   0xb   :  { %155 = vmatpush1.bf16.msra.mxu0 %v361_v6  ;;  %346 = vmatpush1.bf16.msra.mxu1 %v361_v6 }
   0xc   :  { %156 = vmatprep.subr.bf16.mxu0 %v362_v7  ;;  %339 = vmatprep.subr.bf16.mxu1 %v362_v7 }
   0xf   :  { %157 = vmatpush1.bf16.msra.mxu0 %v364_v8  ;;  %347 = vmatpush1.bf16.msra.mxu1 %v364_v8 }
  0x10   :  { %158 = vmatprep.subr.bf16.mxu0 %v365_v9  ;;  %340 = vmatprep.subr.bf16.mxu1 %v365_v9 }
  0x13   :  { %159 = vmatpush1.bf16.msra.mxu0 %v367_v10  ;;  %348 = vmatpush1.bf16.msra.mxu1 %v367_v10 }
  0x14   :  { %160 = vmatprep.subr.bf16.mxu0 %v368_v11  ;;  %341 = vmatprep.subr.bf16.mxu1 %v368_v11 }
  0x17   :  { %161 = vmatpush1.bf16.msra.mxu0 %v370_v12  ;;  %349 = vmatpush1.bf16.msra.mxu1 %v370_v12 }
  0x18   :  { %162 = vmatprep.subr.bf16.mxu0 %v371_v13  ;;  %342 = vmatprep.subr.bf16.mxu1 %v371_v13 }
  0x1b   :  { %163 = vmatpush1.bf16.msra.mxu0 %v373_v14  ;;  %350 = vmatpush1.bf16.msra.mxu1 %v373_v14 }
  0x1c   :  { %164 = vmatprep.subr.bf16.mxu0 %v374_v15  ;;  %343 = vmatprep.subr.bf16.mxu1 %v374_v15 }
  0x1f   :  { %165 = vmatpush1.bf16.msra.mxu0 %v376_v16  ;;  %351 = vmatpush1.bf16.msra.mxu1 %v376_v16 }
  0x22   :  { %183 = vmatmul.mubr.bf16.vlgmr.msra.gmra.mxu0 %v377_v17  ;;  %193 = vmatmul.mubr.bf16.vlgmr.msra.gmra.mxu1 %v378_v18 }
  0xe2   :  { %v184_v30 = vpop.f32.mrf.mxu0  ;;  %v194_v31 = vpop.f32.mrf.mxu1 }
  0xe3   :  { %v242_v32 = vadd.f32 %v235_v26, %v184_v30  ;;  %v246_v33 = vadd.f32 %v235_v26, %v194_v31 }
  0xe4   :  { %v186_v38 = vpop.f32.mrf.mxu0  ;;  %v196_v39 = vpop.f32.mrf.mxu1 }
  0xe5   :  { %v262_v40 = vadd.f32 %v254_v27, %v242_v32  ;;  %v266_v41 = vadd.f32 %v258_v28, %v246_v33  ;;  %v243_v42 = vadd.f32 %v239_v29, %v186_v38  ;;  %v247_v43 = vadd.f32 %v239_v29, %v196_v39 }
  0xe6   :  { %v188_v44 = vpop.f32.mrf.mxu0  ;;  %v198_v46 = vpop.f32.mrf.mxu1 }
  0xe7   :  { %v263_v48 = vadd.f32 %v255_v34, %v243_v42  ;;  %v267_v49 = vadd.f32 %v259_v35, %v247_v43  ;;  %v270_v52 = vmax.f32 %v262_v40, 0.0  ;;  %v274_v53 = vmax.f32 %v266_v41, 0.0 }
  0xe8   :  { %v244_v54 = vadd.f32 %v235_v26, %v188_v44  ;;  %v248_v55 = vadd.f32 %v235_v26, %v198_v46  ;;  %v190_v56 = vpop.f32.mrf.mxu0  ;;  %v200_v57 = vpop.f32.mrf.mxu1 }
  0xe9   :  { %v271_v58 = vmax.f32 %v263_v48, 0.0  ;;  %v275_v59 = vmax.f32 %v267_v49, 0.0  ;;  %v245_v60 = vadd.f32 %v239_v29, %v190_v56  ;;  %v249_v61 = vadd.f32 %v239_v29, %v200_v57 }
  0xea   :  { %v264_v62 = vadd.f32 %v256_v45, %v244_v54  ;;  %v268_v63 = vadd.f32 %v260_v47, %v248_v55 }
  0xeb   :  { %v332_v0 = vpack.c.bf16 %v271_v58, %v270_v52  ;;  %v334_v1 = vpack.c.bf16 %v275_v59, %v274_v53  ;;  %v265_v2 = vadd.f32 %v257_v50, %v245_v60  ;;  %v269_v3 = vadd.f32 %v261_v51, %v249_v61 }
  0xec   :  { %v272_v4 = vmax.f32 %v264_v62, 0.0  ;;  %v276_v5 = vmax.f32 %v268_v63, 0.0 }
  0xed   :  { %302 = vst [vmem:[%s490_s4] sm:$0xff] %v332_v0  ;;  %304 = vst [vmem:[%s490_s4 + $0x10] sm:$0xff] %v334_v1  ;;  %v273_v6 = vmax.f32 %v265_v2, 0.0  ;;  %v277_v7 = vmax.f32 %v269_v3, 0.0 }
  0xef   :  { %v333_v8 = vpack.c.bf16 %v273_v6, %v272_v4  ;;  %v335_v9 = vpack.c.bf16 %v277_v7, %v276_v5 }
  0xf1   :  { %303 = vst [vmem:[%s490_s4 + $0x8] sm:$0xff] %v333_v8  ;;  %305 = vst [vmem:[%s490_s4 + $0x18] sm:$0xff] %v335_v9 }

// kernel: forward.21
= control target key start
LH: loop header
LB: loop body
LE: loop exit
PB: predicated region body
PF: predicated region fallthrough
CT: control target
= control target key end

     0   :  { %v348_v1 = vmov 0   ;;  %v229_v19 = vlaneseq  ;;  %s438_s1 = inlined_call_operand.vmem [shape: bf16[128,256], index: 1, kind: input, shape index: {}]   ;;  %s439_s0 = inlined_call_operand.vmem [shape: bf16[32,128], index: 0, kind: input, shape index: {}]   ;;  %s440_s2 = inlined_call_operand.vmem [shape: f32[1,256], index: 2, kind: input, shape index: {}]   ;;  %s441_s3 = inlined_call_operand.vmem [shape: bf16[32,256], index: 3, kind: output, shape index: {}]  }
   0x1   :  { %v322_v0 = vld [vmem:[%s438_s1 + $0x74] ss:$8 sps:$4 sm:$0xff]   ;;  %179 = vmatprep.mubr.bf16.mxu0 %v348_v1  ;;  %189 = vmatprep.mubr.bf16.mxu1 %v348_v1  ;;  %v324_v2 = vld [vmem:[%s438_s1 + $0x70] ss:$8 sps:$4 sm:$0xff]   ;;  %v325_v3 = vld [vmem:[%s438_s1 + $0x64] ss:$8 sps:$4 sm:$0xff]  }
   0x2   :  { %147 = vmatprep.subr.bf16.mxu0 %v322_v0  ;;  %305 = vmatprep.subr.bf16.mxu1 %v322_v0  ;;  %v327_v4 = vld [vmem:[%s438_s1 + $0x60] ss:$8 sps:$4 sm:$0xff]   ;;  %v328_v5 = vld [vmem:[%s438_s1 + $0x54] ss:$8 sps:$4 sm:$0xff]   ;;  %v330_v6 = vld [vmem:[%s438_s1 + $0x50] ss:$8 sps:$4 sm:$0xff]  }
   0x3   :  { %148 = vmatpush1.bf16.msra.mxu0 %v324_v2  ;;  %313 = vmatpush1.bf16.msra.mxu1 %v324_v2  ;;  %v331_v7 = vld [vmem:[%s438_s1 + $0x44] ss:$8 sps:$4 sm:$0xff]   ;;  %v333_v8 = vld [vmem:[%s438_s1 + $0x40] ss:$8 sps:$4 sm:$0xff]   ;;  %v334_v9 = vld [vmem:[%s438_s1 + $0x34] ss:$8 sps:$4 sm:$0xff]  }
   0x4   :  { %149 = vmatprep.subr.bf16.mxu0 %v325_v3  ;;  %306 = vmatprep.subr.bf16.mxu1 %v325_v3  ;;  %v336_v10 = vld [vmem:[%s438_s1 + $0x30] ss:$8 sps:$4 sm:$0xff]   ;;  %v337_v11 = vld [vmem:[%s438_s1 + $0x24] ss:$8 sps:$4 sm:$0xff]   ;;  %v339_v12 = vld [vmem:[%s438_s1 + $0x20] ss:$8 sps:$4 sm:$0xff]  }
   0x5   :  { %v340_v13 = vld [vmem:[%s438_s1 + $0x14] ss:$8 sps:$4 sm:$0xff]   ;;  %v342_v14 = vld [vmem:[%s438_s1 + $0x10] ss:$8 sps:$4 sm:$0xff]   ;;  %v343_v15 = vld [vmem:[%s438_s1 + $0x4] ss:$8 sps:$4 sm:$0xff]  }
   0x6   :  { %v345_v16 = vld [vmem:[%s438_s1] ss:$8 sps:$4 sm:$0xff]   ;;  %v230_v20 = vshrl.u32 %v229_v19, 7 }
   0x7   :  { %150 = vmatpush1.bf16.msra.mxu0 %v327_v4  ;;  %314 = vmatpush1.bf16.msra.mxu1 %v327_v4  ;;  %v346_v17 = vld [vmem:[%s439_s0] sm:$0xff]   ;;  %v347_v18 = vld [vmem:[%s439_s0 + $0x8] sm:$0xff]  }
   0x8   :  { %151 = vmatprep.subr.bf16.mxu0 %v328_v5  ;;  %307 = vmatprep.subr.bf16.mxu1 %v328_v5  ;;  %v231_v21 = vsub.s32 0, %v230_v20  ;;  %v235_v22 = vsub.s32 1, %v230_v20  ;;  %v227_v23 = vld [vmem:[%s440_s2] sm:$0x3] }
   0xa   :  { %v232_v24 = vrot.slane %v227_v23, %v231_v21  ;;  %v236_v25 = vrot.slane %v227_v23, %v235_v22 }
   0xb   :  { %152 = vmatpush1.bf16.msra.mxu0 %v330_v6  ;;  %315 = vmatpush1.bf16.msra.mxu1 %v330_v6 }
   0xc   :  { %153 = vmatprep.subr.bf16.mxu0 %v331_v7  ;;  %308 = vmatprep.subr.bf16.mxu1 %v331_v7 }
   0xf   :  { %154 = vmatpush1.bf16.msra.mxu0 %v333_v8  ;;  %316 = vmatpush1.bf16.msra.mxu1 %v333_v8 }
  0x10   :  { %155 = vmatprep.subr.bf16.mxu0 %v334_v9  ;;  %309 = vmatprep.subr.bf16.mxu1 %v334_v9 }
  0x13   :  { %156 = vmatpush1.bf16.msra.mxu0 %v336_v10  ;;  %317 = vmatpush1.bf16.msra.mxu1 %v336_v10 }
  0x14   :  { %157 = vmatprep.subr.bf16.mxu0 %v337_v11  ;;  %310 = vmatprep.subr.bf16.mxu1 %v337_v11 }
  0x17   :  { %158 = vmatpush1.bf16.msra.mxu0 %v339_v12  ;;  %318 = vmatpush1.bf16.msra.mxu1 %v339_v12 }
  0x18   :  { %159 = vmatprep.subr.bf16.mxu0 %v340_v13  ;;  %311 = vmatprep.subr.bf16.mxu1 %v340_v13 }
  0x1b   :  { %160 = vmatpush1.bf16.msra.mxu0 %v342_v14  ;;  %319 = vmatpush1.bf16.msra.mxu1 %v342_v14 }
  0x1c   :  { %161 = vmatprep.subr.bf16.mxu0 %v343_v15  ;;  %312 = vmatprep.subr.bf16.mxu1 %v343_v15 }
  0x1f   :  { %162 = vmatpush1.bf16.msra.mxu0 %v345_v16  ;;  %320 = vmatpush1.bf16.msra.mxu1 %v345_v16 }
  0x22   :  { %180 = vmatmul.mubr.bf16.vlgmr.msra.gmra.mxu0 %v346_v17  ;;  %190 = vmatmul.mubr.bf16.vlgmr.msra.gmra.mxu1 %v347_v18 }
  0xe2   :  { %v181_v26 = vpop.f32.mrf.mxu0  ;;  %v191_v27 = vpop.f32.mrf.mxu1 }
  0xe3   :  { %v239_v30 = vadd.f32 %v232_v24, %v181_v26  ;;  %v243_v31 = vadd.f32 %v232_v24, %v191_v27 }
  0xe4   :  { %v183_v28 = vpop.f32.mrf.mxu0  ;;  %v193_v29 = vpop.f32.mrf.mxu1 }
  0xe5   :  { %v240_v32 = vadd.f32 %v236_v25, %v183_v28  ;;  %v244_v33 = vadd.f32 %v236_v25, %v193_v29 }
  0xe6   :  { %v185_v34 = vpop.f32.mrf.mxu0  ;;  %v195_v35 = vpop.f32.mrf.mxu1 }
  0xe7   :  { %v301_v36 = vpack.c.bf16 %v240_v32, %v239_v30  ;;  %v303_v37 = vpack.c.bf16 %v244_v33, %v243_v31  ;;  %v241_v40 = vadd.f32 %v232_v24, %v185_v34  ;;  %v245_v41 = vadd.f32 %v232_v24, %v195_v35 }
  0xe8   :  { %v187_v38 = vpop.f32.mrf.mxu0  ;;  %v197_v39 = vpop.f32.mrf.mxu1 }
  0xe9   :  { %271 = vst [vmem:[%s441_s3] sm:$0xff] %v301_v36  ;;  %273 = vst [vmem:[%s441_s3 + $0x10] sm:$0xff] %v303_v37  ;;  %v242_v42 = vadd.f32 %v236_v25, %v187_v38  ;;  %v246_v43 = vadd.f32 %v236_v25, %v197_v39 }
  0xeb   :  { %v302_v44 = vpack.c.bf16 %v242_v42, %v241_v40  ;;  %v304_v45 = vpack.c.bf16 %v246_v43, %v245_v41 }
  0xed   :  { %272 = vst [vmem:[%s441_s3 + $0x8] sm:$0xff] %v302_v44  ;;  %274 = vst [vmem:[%s441_s3 + $0x18] sm:$0xff] %v304_v45 }

// kernel: forward.23
= control target key start
LH: loop header
LB: loop body
LE: loop exit
PB: predicated region body
PF: predicated region fallthrough
CT: control target
= control target key end

     0   :  { %s477_s1 = inlined_call_operand.vmem [shape: bf16[256,128], index: 1, kind: input, shape index: {}]   ;;  %s478_s0 = inlined_call_operand.vmem [shape: bf16[32,256], index: 0, kind: input, shape index: {}]   ;;  %s479_s2 = inlined_call_operand.vmem [shape: f32[1,128], index: 2, kind: input, shape index: {}]   ;;  %s480_s3 = inlined_call_operand.vmem [shape: bf16[32,128], index: 3, kind: output, shape index: {}]  }
   0x1   :  { %v366_v0 = vld [vmem:[%s477_s1 + $0x78] sm:$0xff]   ;;  %v368_v2 = vld [vmem:[%s477_s1 + $0x70] sm:$0xff]   ;;  %v370_v4 = vld [vmem:[%s477_s1 + $0x68] sm:$0xff]  }
   0x2   :  { %v367_v1 = vld [vmem:[%s477_s1 + $0x38] sm:$0xff]   ;;  %322 = vmatprep.subr.bf16.mxu0 %v366_v0  ;;  %350 = vmatprep.subr.bf16.mxu1 %v366_v0  ;;  %v369_v3 = vld [vmem:[%s477_s1 + $0x30] sm:$0xff]   ;;  %v371_v5 = vld [vmem:[%s477_s1 + $0x28] sm:$0xff]  }
   0x3   :  { %323 = vmatpush3.bf16.msra.mxu0 %v367_v1  ;;  %358 = vmatpush3.bf16.msra.mxu1 %v367_v1  ;;  %v372_v6 = vld [vmem:[%s477_s1 + $0x60] sm:$0xff]   ;;  %v374_v8 = vld [vmem:[%s477_s1 + $0x58] sm:$0xff]   ;;  %v376_v10 = vld [vmem:[%s477_s1 + $0x50] sm:$0xff]  }
   0x4   :  { %324 = vmatprep.subr.bf16.mxu0 %v368_v2  ;;  %351 = vmatprep.subr.bf16.mxu1 %v368_v2  ;;  %v373_v7 = vld [vmem:[%s477_s1 + $0x20] sm:$0xff]   ;;  %v375_v9 = vld [vmem:[%s477_s1 + $0x18] sm:$0xff]   ;;  %v377_v13 = vld [vmem:[%s477_s1 + $0x10] sm:$0xff]  }
   0x5   :  { %v384_v11 = vld [vmem:[%s478_s0 + $0x4] ss:$8 sps:$4 sm:$0xff]   ;;  %v387_v12 = vld [vmem:[%s478_s0 + $0x14] ss:$8 sps:$4 sm:$0xff]   ;;  %v382_v18 = vld [vmem:[%s478_s0] ss:$8 sps:$4 sm:$0xff]  }
   0x6   :  { %v378_v14 = vld [vmem:[%s477_s1 + $0x48] sm:$0xff]   ;;  %211 = vmatprep.mubr.bf16.mxu0 %v384_v11  ;;  %219 = vmatprep.mubr.bf16.mxu1 %v387_v12  ;;  %v380_v16 = vld [vmem:[%s477_s1 + $0x40] sm:$0xff]   ;;  %v385_v19 = vld [vmem:[%s478_s0 + $0x10] ss:$8 sps:$4 sm:$0xff]  }
   0x7   :  { %325 = vmatpush3.bf16.msra.mxu0 %v369_v3  ;;  %359 = vmatpush3.bf16.msra.mxu1 %v369_v3  ;;  %v379_v15 = vld [vmem:[%s477_s1 + $0x8] sm:$0xff]   ;;  %v381_v17 = vld [vmem:[%s477_s1] sm:$0xff]  }
   0x8   :  { %326 = vmatprep.subr.bf16.mxu0 %v370_v4  ;;  %352 = vmatprep.subr.bf16.mxu1 %v370_v4  ;;  %v302_v26 = vld [vmem:[%s479_s2] ss:$0 sm:$0xff] }
   0xb   :  { %327 = vmatpush3.bf16.msra.mxu0 %v371_v5  ;;  %360 = vmatpush3.bf16.msra.mxu1 %v371_v5 }
   0xc   :  { %328 = vmatprep.subr.bf16.mxu0 %v372_v6  ;;  %353 = vmatprep.subr.bf16.mxu1 %v372_v6 }
   0xf   :  { %329 = vmatpush3.bf16.msra.mxu0 %v373_v7  ;;  %361 = vmatpush3.bf16.msra.mxu1 %v373_v7 }
  0x10   :  { %330 = vmatprep.subr.bf16.mxu0 %v374_v8  ;;  %354 = vmatprep.subr.bf16.mxu1 %v374_v8 }
  0x13   :  { %331 = vmatpush3.bf16.msra.mxu0 %v375_v9  ;;  %362 = vmatpush3.bf16.msra.mxu1 %v375_v9 }
  0x14   :  { %332 = vmatprep.subr.bf16.mxu0 %v376_v10  ;;  %355 = vmatprep.subr.bf16.mxu1 %v376_v10 }
  0x17   :  { %333 = vmatpush3.bf16.msra.mxu0 %v377_v13  ;;  %363 = vmatpush3.bf16.msra.mxu1 %v377_v13 }
  0x18   :  { %334 = vmatprep.subr.bf16.mxu0 %v378_v14  ;;  %356 = vmatprep.subr.bf16.mxu1 %v378_v14 }
  0x1b   :  { %335 = vmatpush3.bf16.msra.mxu0 %v379_v15  ;;  %364 = vmatpush3.bf16.msra.mxu1 %v379_v15 }
  0x1c   :  { %336 = vmatprep.subr.bf16.mxu0 %v380_v16  ;;  %357 = vmatprep.subr.bf16.mxu1 %v380_v16 }
  0x1f   :  { %337 = vmatpush3.bf16.msra.mxu0 %v381_v17  ;;  %365 = vmatpush3.bf16.msra.mxu1 %v381_v17 }
  0x22   :  { %212 = vmatmul.mubr.bf16.vlgmr.msra.gmra.mxu0 %v382_v18  ;;  %220 = vmatmul.mubr.bf16.vlgmr.msra.gmra.mxu1 %v385_v19 }
  0xe2   :  { %v338_v20 = vpop.f32.mrf.mxu0  ;;  %v344_v21 = vpop.f32.mrf.mxu1 }
  0xe4   :  { %v339_v22 = vpop.f32.mrf.mxu0  ;;  %v345_v23 = vpop.f32.mrf.mxu1 }
  0xe5   :  { %v340_v24 = vadd.f32 %v339_v22, %v338_v20  ;;  %v346_v25 = vadd.f32 %v345_v23, %v344_v21 }
  0xe6   :  { %v341_v27 = vpop.f32.mrf.mxu0  ;;  %v347_v28 = vpop.f32.mrf.mxu1 }
  0xe7   :  { %v250_v31 = vadd.f32 %v340_v24, %v302_v26  ;;  %v252_v32 = vadd.f32 %v346_v25, %v302_v26 }
  0xe8   :  { %v342_v29 = vpop.f32.mrf.mxu0  ;;  %v348_v30 = vpop.f32.mrf.mxu1 }
  0xe9   :  { %v343_v33 = vadd.f32 %v342_v29, %v341_v27  ;;  %v349_v34 = vadd.f32 %v348_v30, %v347_v28  ;;  %v254_v37 = vmax.f32 %v250_v31, 0.0  ;;  %v256_v38 = vmax.f32 %v252_v32, 0.0 }
  0xeb   :  { %v251_v35 = vadd.f32 %v343_v33, %v302_v26  ;;  %v253_v36 = vadd.f32 %v349_v34, %v302_v26 }
  0xed   :  { %v255_v39 = vmax.f32 %v251_v35, 0.0  ;;  %v257_v40 = vmax.f32 %v253_v36, 0.0 }
  0xef   :  { %v314_v41 = vpack.c.bf16 %v255_v39, %v254_v37  ;;  %v319_v42 = vpack.c.bf16 %v257_v40, %v256_v38 }
  0xf1   :  { %315 = vst [vmem:[%s480_s3] sm:$0xff] %v314_v41   ;;  %321 = vst [vmem:[%s480_s3 + $0x8] sm:$0xff] %v319_v42  }

// kernel: forward.26
= control target key start
LH: loop header
LB: loop body
LE: loop exit
PB: predicated region body
PF: predicated region fallthrough
CT: control target
= control target key end

     0   :  { %s905_s15 = smov 0   ;;  %s907_s16 = smov 0   ;;  %s997_s0 = inlined_call_operand.vmem [shape: bf16[8,128], index: 0, kind: input, shape index: {}]   ;;  %s998_s1 = inlined_call_operand.vmem [shape: bf16[128,512], index: 1, kind: input, shape index: {}]   ;;  %s999_s2 = inlined_call_operand.vmem [shape: f32[1,512], index: 2, kind: input, shape index: {}]   ;;  %s1000_s3 = inlined_call_operand.vmem [shape: bf16[8,512], index: 3, kind: input, shape index: {}]   ;;  %s1001_s4 = inlined_call_operand.vmem [shape: bf16[8,512], index: 4, kind: output, shape index: {}]  }
   0x1   :  { %s909_s17 = smov 0   ;;  %s911_s18 = smov 0  }
   0x2   :  { %s913_s19 = smov 0  }
   0x3 LB: > { %s29_s20 = sadd.s32 1, %s873_s18  ;;  %p77_p1 = scmp.ne.s32.totalorder %s865_s16, %s861_s15  ;;  %s877_s19 = sphi %s913_s19, %s14_s19   ;;  %s873_s18 = sphi %s911_s18, %s1005_s18   ;;  %s869_s17 = sphi %s909_s17, %s1004_s17   ;;  %s865_s16 = sphi %s907_s16, %s1003_s16   ;;  %s861_s15 = sphi %s905_s15, %s1002_s15  }
   0x4   : > { %p31_p0 = scmp.ge.s32.totalorder %s29_s20, 2  ;;  %p78_p2 = scmp.eq.s32.totalorder %s877_s19, 0 }
   0x5   : > { %s70_s22 = sadd.s32 1, %s865_s16  ;;  %p742_p5 = scmp.ge.s32.totalorder %s877_s19, 2 }
   0x6   : > { %s1007_s20 = smov (%p31_p0, %s29_s20), 0  ;;  %p79_p3 = por %p78_p2, %p77_p1 }
   0x7   : > { %s66_s21 = ssub.s32 %s873_s18, %s1007_s20  ;;  %195 = sbr.rel (%p742_p5) target bundleno = 24 (0x18), region = 20 }
   0x8   : > { %p68_p4 = scmp.eq.s32.totalorder %s66_s21, 0 }
   0xa   : > { %s940_s23 = scalar_select %p68_p4, %s865_s16, %s70_s22  }
   0xc   : > { %198 = sbr.rel (!%p79_p3) target bundleno = 24 (0x18), region = 24  ;;  %s200_s24 = sand.u32 (%p79_p3), 1, %s865_s16  }
   0xd   : > { %s772_s25 = sshll.u32 (%p79_p3), %s873_s18, 3  ;;  %s743_s26 = sshll.u32 (%p79_p3), %s200_s24, 7 }
   0xe   : > { %s948_s29 = scalar_lea.vmem (%p79_p3), %s998_s1, %s772_s25  ;;  %s202_s30 = scalar_lea.vmem (%p79_p3), [#allocation3], %s743_s26 }
   0xf   : > { %v267_v0 = vld [vmem:[%s948_s29] sm:$0xff] (%p79_p3)  ;;  %v269_v1 = vld [vmem:[%s948_s29 + $0x10] sm:$0xff] (%p79_p3) }
  0x10   : > { %v271_v2 = vld [vmem:[%s948_s29 + $0x20] sm:$0xff] (%p79_p3)  ;;  %268 = vst [vmem:[%s202_s30] sm:$0xff] (%p79_p3), %v267_v0  ;;  %270 = vst [vmem:[%s202_s30 + $0x8] sm:$0xff] (%p79_p3), %v269_v1  ;;  %v273_v3 = vld [vmem:[%s948_s29 + $0x30] sm:$0xff] (%p79_p3) }
  0x11   : > { %272 = vst [vmem:[%s202_s30 + $0x10] sm:$0xff] %v271_v2  ;;  %v275_v4 = vld [vmem:[%s948_s29 + $0x40] sm:$0xff]  ;;  %v277_v5 = vld [vmem:[%s948_s29 + $0x50] sm:$0xff]  ;;  %274 = vst [vmem:[%s202_s30 + $0x18] sm:$0xff] %v273_v3 }
  0x12   : > { %276 = vst [vmem:[%s202_s30 + $0x20] sm:$0xff] %v275_v4  ;;  %278 = vst [vmem:[%s202_s30 + $0x28] sm:$0xff] %v277_v5  ;;  %v279_v6 = vld [vmem:[%s948_s29 + $0x60] sm:$0xff]  ;;  %v281_v7 = vld [vmem:[%s948_s29 + $0x70] sm:$0xff] }
  0x13   : > { %v283_v8 = vld [vmem:[%s948_s29 + $0x80] sm:$0xff]  ;;  %280 = vst [vmem:[%s202_s30 + $0x30] sm:$0xff] %v279_v6  ;;  %282 = vst [vmem:[%s202_s30 + $0x38] sm:$0xff] %v281_v7  ;;  %v285_v9 = vld [vmem:[%s948_s29 + $0x90] sm:$0xff] }
  0x14   : > { %284 = vst [vmem:[%s202_s30 + $0x40] sm:$0xff] %v283_v8  ;;  %v287_v10 = vld [vmem:[%s948_s29 + $0xa0] sm:$0xff]  ;;  %v289_v11 = vld [vmem:[%s948_s29 + $0xb0] sm:$0xff]  ;;  %286 = vst [vmem:[%s202_s30 + $0x48] sm:$0xff] %v285_v9 }
  0x15   : > { %288 = vst [vmem:[%s202_s30 + $0x50] sm:$0xff] %v287_v10  ;;  %290 = vst [vmem:[%s202_s30 + $0x58] sm:$0xff] %v289_v11  ;;  %v291_v12 = vld [vmem:[%s948_s29 + $0xc0] sm:$0xff]  ;;  %v293_v13 = vld [vmem:[%s948_s29 + $0xd0] sm:$0xff] }
  0x16   : > { %v295_v14 = vld [vmem:[%s948_s29 + $0xe0] sm:$0xff]  ;;  %292 = vst [vmem:[%s202_s30 + $0x60] sm:$0xff] %v291_v12  ;;  %294 = vst [vmem:[%s202_s30 + $0x68] sm:$0xff] %v293_v13  ;;  %v297_v15 = vld [vmem:[%s948_s29 + $0xf0] sm:$0xff] }
  0x17   : > { %296 = vst [vmem:[%s202_s30 + $0x70] sm:$0xff] %v295_v14  ;;  %298 = vst [vmem:[%s202_s30 + $0x78] sm:$0xff] %v297_v15 }
  0x18 PF: > { %p746_p6 = scmp.ge.s32.totalorder %s877_s19, 1  ;;  %p324_p7 = scmp.lt.s32.totalorder %s877_s19, 3 }
  0x1a   : > { %p325_p8 = pnand %p746_p6, %p324_p7 }
  0x1b   : > { %s331_s5 = sand.u32 (!%p325_p8), 1, %s861_s15   ;;  %s748_s10 = sshll.u32 (!%p325_p8), %s869_s17, 1 }
  0x1c   : > { %328 = sbr.rel (%p325_p8) target bundleno = 270 (0x10e), region = 70  ;;  %s747_s6 = sshll.u32 (!%p325_p8), %s331_s5, 7 }
  0x1d   : > { %s333_s7 = scalar_lea.vmem (!%p325_p8), [#allocation3], %s747_s6  ;;  %p390_p9 = scmp.lt.s32.totalorder (!%p325_p8), %s748_s10, 3 }
  0x21   : > { %v879_v16 = vmov 0   ;;  %v815_v17 = vld [vmem:[%s333_s7 + $0x74] ss:$8 sps:$4 sm:$0xff]   ;;  %v817_v18 = vld [vmem:[%s333_s7 + $0x70] ss:$8 sps:$4 sm:$0xff]   ;;  %v572_v34 = vlaneseq  ;;  %s1009_s10 = smov (!%p390_p9, %s748_s10), 3 }
  0x22   : > { %552 = vmatprep.mubr.bf16.mxu0 %v879_v16  ;;  %520 = vmatprep.subr.bf16.mxu0 %v815_v17  ;;  %v818_v19 = vld [vmem:[%s333_s7 + $0x64] ss:$8 sps:$4 sm:$0xff]   ;;  %v820_v20 = vld [vmem:[%s333_s7 + $0x60] ss:$8 sps:$4 sm:$0xff]   ;;  %v821_v21 = vld [vmem:[%s333_s7 + $0x54] ss:$8 sps:$4 sm:$0xff]   ;;  %s392_s14 = scalar_lea.vmem %s999_s2, %s1009_s10 }
  0x23   : > { %521 = vmatpush1.bf16.msra.mxu0 %v817_v18  ;;  %v823_v22 = vld [vmem:[%s333_s7 + $0x50] ss:$8 sps:$4 sm:$0xff]   ;;  %v824_v23 = vld [vmem:[%s333_s7 + $0x44] ss:$8 sps:$4 sm:$0xff]   ;;  %v826_v24 = vld [vmem:[%s333_s7 + $0x40] ss:$8 sps:$4 sm:$0xff]  }
  0x24   : > { %522 = vmatprep.subr.bf16.mxu0 %v818_v19  ;;  %v827_v25 = vld [vmem:[%s333_s7 + $0x34] ss:$8 sps:$4 sm:$0xff]   ;;  %v829_v26 = vld [vmem:[%s333_s7 + $0x30] ss:$8 sps:$4 sm:$0xff]   ;;  %v830_v27 = vld [vmem:[%s333_s7 + $0x24] ss:$8 sps:$4 sm:$0xff]  }
  0x25   : > { %v832_v28 = vld [vmem:[%s333_s7 + $0x20] ss:$8 sps:$4 sm:$0xff]   ;;  %v833_v29 = vld [vmem:[%s333_s7 + $0x14] ss:$8 sps:$4 sm:$0xff]   ;;  %v835_v30 = vld [vmem:[%s333_s7 + $0x10] ss:$8 sps:$4 sm:$0xff]  }
  0x26   : > { %v836_v31 = vld [vmem:[%s333_s7 + $0x4] ss:$8 sps:$4 sm:$0xff]   ;;  %v838_v32 = vld [vmem:[%s333_s7] ss:$8 sps:$4 sm:$0xff]   ;;  %v573_v35 = vshrl.u32 %v572_v34, 7  ;;  %s750_s11 = sshll.u32 %s1009_s10, 2 }
  0x27   : > { %523 = vmatpush1.bf16.msra.mxu0 %v820_v20  ;;  %v423_v33 = vld [vmem:[%s997_s0] sm:$0xf]  ;;  %s402_s22 = scalar_lea.vmem %s1000_s3, %s750_s11  ;;  %s412_s25 = scalar_lea.vmem %s1001_s4, %s750_s11 }
  0x28   : > { %524 = vmatprep.subr.bf16.mxu0 %v821_v21  ;;  %v574_v36 = vsub.s32 0, %v573_v35  ;;  %v570_v37 = vld [vmem:[%s392_s14] sm:$0x3]  ;;  %v578_v38 = vsub.s32 1, %v573_v35 }
  0x29   : > { %v584_v39 = vld [vmem:[%s402_s22] sm:$0xff] }
  0x2a   : > { %v575_v40 = vrot.slane %v570_v37, %v574_v36  ;;  %v585_v41 = vunpack.c.l.bf16 %v584_v39  ;;  %v579_v42 = vrot.slane %v570_v37, %v578_v38  ;;  %v586_v45 = vunpack.c.h.bf16 %v584_v39 }
  0x2b   : > { %525 = vmatpush1.bf16.msra.mxu0 %v823_v22 }
  0x2c   : > { %526 = vmatprep.subr.bf16.mxu0 %v824_v23 }
  0x2f   : > { %527 = vmatpush1.bf16.msra.mxu0 %v826_v24 }
  0x30   : > { %528 = vmatprep.subr.bf16.mxu0 %v827_v25 }
  0x33   : > { %529 = vmatpush1.bf16.msra.mxu0 %v829_v26 }
  0x34   : > { %530 = vmatprep.subr.bf16.mxu0 %v830_v27 }
  0x37   : > { %531 = vmatpush1.bf16.msra.mxu0 %v832_v28 }
  0x38   : > { %532 = vmatprep.subr.bf16.mxu0 %v833_v29 }
  0x3b   : > { %533 = vmatpush1.bf16.msra.mxu0 %v835_v30 }
  0x3c   : > { %534 = vmatprep.subr.bf16.mxu0 %v836_v31 }
  0x3f   : > { %535 = vmatpush1.bf16.msra.mxu0 %v838_v32 }
  0x42   : > { %553 = vmatmul.mubr.bf16.vlgmr.msra.gmra.mxu0 %v423_v33 }
 0x102   : > { %v554_v43 = vpop.f32.mrf.mxu0 }
 0x103   : > { %v582_v44 = vadd.f32 %v575_v40, %v554_v43 }
 0x104   : > { %v556_v46 = vpop.f32.mrf.mxu0 }
 0x105   : > { %v587_v47 = vadd.f32 %v585_v41, %v582_v44  ;;  %v583_v48 = vadd.f32 %v579_v42, %v556_v46 }
 0x106   : > { %v558_v49 = vpop.f32.mrf.mxu0 }
 0x107   : > { %v588_v50 = vadd.f32 %v586_v45, %v583_v48  ;;  %v589_v52 = vmax.f32 %v587_v47, 0.0 }
 0x108   : > { %v559_v51 = vpop.f32.mrf.mxu0 }
 0x109   : > { %v590_v53 = vmax.f32 %v588_v50, 0.0 }
 0x10b   : > { %v773_v54 = vpack.c.bf16 %v590_v53, %v589_v52 }
 0x10d   : > { %599 = vst [vmem:[%s412_s25] sm:$0xff] %v773_v54 }
 0x10e PF: > { %s14_s19 = sadd.s32 1, %s877_s19   ;;  %s1002_s15 = smov %s865_s16 }
 0x10f   : > { %p11_p10 = scmp.ge.s32.totalorder %s14_s19, 4   ;;  %s1003_s16 = smov %s940_s23 }
 0x110   : > { %s1004_s17 = smov %s873_s18  ;;  %s1005_s18 = smov %s1007_s20 }
 0x111   :  { %13 = sbr.rel (!%p11_p10) target bundleno = 3 (0x3), region = 126 }

// kernel: forward.24
= control target key start
LH: loop header
LB: loop body
LE: loop exit
PB: predicated region body
PF: predicated region fallthrough
CT: control target
= control target key end

     0   :  { %s622_s12 = smov 0   ;;  %s624_s13 = smov 0   ;;  %s671_s0 = inlined_call_operand.vmem [shape: bf16[8,1152], index: 0, kind: input, shape index: {}]   ;;  %s672_s1 = inlined_call_operand.vmem [shape: bf16[1152,128], index: 1, kind: input, shape index: {}]   ;;  %s673_s2 = inlined_call_operand.vmem [shape: f32[1,128], index: 2, kind: input, shape index: {}]   ;;  %s674_s3 = inlined_call_operand.vmem [shape: bf16[8,128], index: 3, kind: output, shape index: {}]  }
   0x1   :  { %s626_s14 = smov 0  }
   0x2 LB: > { %s25_s15 = sadd.s32 1, %s593_s13  ;;  %p493_p0 = scmp.ge.s32.totalorder %s597_s14, 1  ;;  %s597_s14 = sphi %s626_s14, %s13_s14   ;;  %s593_s13 = sphi %s624_s13, %s676_s13   ;;  %s589_s12 = sphi %s622_s12, %s675_s12  }
   0x3   : > { %p26_p1 = scmp.ge.s32.totalorder %s25_s15, 9  ;;  %p187_p2 = scmp.lt.s32.totalorder %s597_s14, 10 }
   0x5   : > { %s678_s15 = smov (%p26_p1, %s25_s15), 0  ;;  %p188_p3 = pnand %p493_p0, %p187_p2 }
   0x6   : > { %p229_p4 = scmp.lt.s32.totalorder (!%p188_p3), %s589_s12, 8  ;;  %s495_s16 = sshll.u32 (!%p188_p3), %s589_s12, 4 }
   0x7   : > { %191 = sbr.rel (%p188_p3) target bundleno = 263 (0x107), region = 32  ;;  %p236_p5 = scmp.lt.s32.totalorder (!%p188_p3), %s495_s16, 143 }
   0x8   : > { %p497_p6 = scmp.ne.s32.totalorder (!%p188_p3), %s589_s12, 0 }
   0xc   : > { %s230_s17 = scalar_select %p229_p4, %s589_s12, 8 }
   0xd   : > { %s680_s16 = smov (!%p236_p5, %s495_s16), 143  ;;  %258 = sbr.rel (%p497_p6) target bundleno = 20 (0x14), region = 36 }
   0xe   : > { %s494_s18 = sshll.u32 %s230_s17, 2  ;;  %s496_s22 = sshll.u32 %s680_s16, 2 }
   0xf   : > { %s648_s21 = scalar_lea.vmem %s671_s0, %s494_s18  ;;  %s242_s25 = scalar_lea.vmem %s672_s1, %s496_s22 }
  0x12   : > { %v599_v0 = vmov 0.0  }
  0x13   : > { %259 = vst [vmem:[#allocation2] sm:$0xff] %v599_v0 }
  0x14 PF: > { %v567_v1 = vld [vmem:[%s242_s25 + $0x38] sm:$0xff]   ;;  %v600_v2 = vmov 0.0   ;;  %v568_v3 = vld [vmem:[%s242_s25 + $0x30] sm:$0xff]   ;;  %vm601_vm0 = vmmov 0   ;;  %v569_v4 = vld [vmem:[%s242_s25 + $0x28] sm:$0xff]   ;;  %p506_p7 = scmp.ne.s32.totalorder %s589_s12, 8 }
  0x15   : > { %520 = vmatprep.subr.bf16.mxu0 %v600_v2  ;;  %536 = vmatprep.mubr.msk.bf16.mxu0 %vm601_vm0, %v600_v2  ;;  %v570_v5 = vld [vmem:[%s242_s25 + $0x20] sm:$0xff]   ;;  %v571_v6 = vld [vmem:[%s242_s25 + $0x18] sm:$0xff]   ;;  %v572_v7 = vld [vmem:[%s242_s25 + $0x10] sm:$0xff]  }
  0x16   : > { %521 = vmatpush3.bf16.msra.mxu0 %v567_v1  ;;  %v573_v8 = vld [vmem:[%s242_s25 + $0x8] sm:$0xff]   ;;  %v574_v9 = vld [vmem:[%s242_s25] sm:$0xff]  }
  0x17   : > { %522 = vmatprep.subr.bf16.mxu0 %v600_v2  ;;  %v261_v10 = vld [vmem:[%s648_s21] sm:$0xf] }
  0x1a   : > { %523 = vmatpush3.bf16.msra.mxu0 %v568_v3  ;;  %v260_v11 = vld [vmem:[#allocation2] sm:$0xff] }
  0x1b   : > { %524 = vmatprep.subr.bf16.mxu0 %v600_v2 }
  0x1e   : > { %525 = vmatpush3.bf16.msra.mxu0 %v569_v4 }
  0x1f   : > { %526 = vmatprep.subr.bf16.mxu0 %v600_v2 }
  0x22   : > { %527 = vmatpush3.bf16.msra.mxu0 %v570_v5 }
  0x23   : > { %528 = vmatprep.subr.bf16.mxu0 %v600_v2 }
  0x26   : > { %529 = vmatpush3.bf16.msra.mxu0 %v571_v6 }
  0x27   : > { %530 = vmatprep.subr.bf16.mxu0 %v600_v2 }
  0x2a   : > { %531 = vmatpush3.bf16.msra.mxu0 %v572_v7 }
  0x2b   : > { %532 = vmatprep.subr.bf16.mxu0 %v600_v2 }
  0x2e   : > { %533 = vmatpush3.bf16.msra.mxu0 %v573_v8 }
  0x2f   : > { %534 = vmatprep.subr.bf16.mxu0 %v600_v2 }
  0x32   : > { %535 = vmatpush3.bf16.msra.mxu0 %v574_v9 }
  0x35   : > { %537 = vmatmul.mubr.bf16.vlgmr.msra.gmra.mxu0 %v261_v10 }
  0xf5   : > { %v360_v12 = vpop.f32.mrf.mxu0 }
  0xf6   : > { %v366_v13 = vadd.f32 %v360_v12, %v260_v11 }
  0xf7   : > { %v538_v14 = vpop.f32.mrf.mxu0  ;;  %371 = sbr.rel (%p506_p7) target bundleno = 263 (0x107), region = 40 }
  0xf8   : > { %367 = vst [vmem:[#allocation2] sm:$0xff] %v366_v13 }
  0xf9   : > { %v363_v15 = vpop.f32.mrf.mxu0 }
  0xfb   : > { %v539_v16 = vpop.f32.mrf.mxu0 }
  0xfc   : > { %v507_v18 = vld [vmem:[%s673_s2] ss:$0 sm:$0xff] }
  0xff   : > { %v372_v17 = vld [vmem:[#allocation2] sm:$0xff] }
 0x100   : > { %v380_v19 = vadd.f32 %v507_v18, %v372_v17 }
 0x102   : > { %v381_v20 = vmax.f32 %v380_v19, 0.0 }
 0x104   : > { %v382_v21 = vpack.c.bf16 %v381_v20, %v381_v20 }
 0x106   : > { %383 = vst [vmem:[%s674_s3] sm:$0xf] %v382_v21 }
 0x107 PF: > { %s13_s14 = sadd.s32 1, %s597_s14   ;;  %s675_s12 = smov %s593_s13 }
 0x108   : > { %p10_p8 = scmp.ge.s32.totalorder %s13_s14, 11   ;;  %s676_s13 = smov %s678_s15 }
 0x10a   :  { %12 = sbr.rel (!%p10_p8) target bundleno = 2 (0x2), region = 76 }

// kernel: forward.25
= control target key start
LH: loop header
LB: loop body
LE: loop exit
PB: predicated region body
PF: predicated region fallthrough
CT: control target
= control target key end

     0   :  { %s1029_s12 = smov 0   ;;  %s1031_s13 = smov 0   ;;  %s1208_s0 = inlined_call_operand.vmem [shape: bf16[8,256], index: 0, kind: input, shape index: {}]   ;;  %s1209_s1 = inlined_call_operand.vmem [shape: bf16[256,512], index: 1, kind: input, shape index: {}]   ;;  %s1210_s2 = inlined_call_operand.vmem [shape: f32[1,512], index: 2, kind: input, shape index: {}]   ;;  %s1211_s3 = inlined_call_operand.vmem [shape: bf16[8,512], index: 3, kind: output, shape index: {}]  }
   0x1   :  { %s1033_s14 = smov 0   ;;  %s1035_s15 = smov 0  }
   0x2   :  { %s1037_s16 = smov 0  }
   0x3 LB: > { %s28_s17 = sadd.s32 1, %s1003_s15  ;;  %p76_p1 = scmp.ne.s32.totalorder %s995_s13, %s991_s12  ;;  %s1007_s16 = sphi %s1037_s16, %s13_s16   ;;  %s1003_s15 = sphi %s1035_s15, %s1215_s15   ;;  %s999_s14 = sphi %s1033_s14, %s1214_s14   ;;  %s995_s13 = sphi %s1031_s13, %s1213_s13   ;;  %s991_s12 = sphi %s1029_s12, %s1212_s12  }
   0x4   : > { %p30_p0 = scmp.ge.s32.totalorder %s28_s17, 2  ;;  %p77_p2 = scmp.eq.s32.totalorder %s1007_s16, 0 }
   0x5   : > { %s69_s19 = sadd.s32 1, %s995_s13  ;;  %p831_p5 = scmp.ge.s32.totalorder %s1007_s16, 2 }
   0x6   : > { %s1217_s17 = smov (%p30_p0, %s28_s17), 0  ;;  %p78_p3 = por %p77_p2, %p76_p1 }
   0x7   : > { %s65_s18 = ssub.s32 %s1003_s15, %s1217_s17  ;;  %169 = sbr.rel (%p831_p5) target bundleno = 32 (0x20), region = 20 }
   0x8   : > { %p67_p4 = scmp.eq.s32.totalorder %s65_s18, 0 }
   0xa   : > { %s1064_s20 = scalar_select %p67_p4, %s995_s13, %s69_s19  }
   0xc   : > { %172 = sbr.rel (!%p78_p3) target bundleno = 32 (0x20), region = 24  ;;  %s174_s21 = sand.u32 (%p78_p3), 1, %s995_s13  }
   0xd   : > { %s877_s22 = sshll.u32 (%p78_p3), %s1003_s15, 3  ;;  %s832_s23 = sshll.u32 (%p78_p3), %s174_s21, 8 }
   0xe   : > { %s1072_s26 = scalar_lea.vmem (%p78_p3), %s1209_s1, %s877_s22  ;;  %s1077_s27 = scalar_lea.vmem (%p78_p3), [#allocation3], %s832_s23 }
   0xf   : > { %v273_v0 = vld [vmem:[%s1072_s26] sm:$0xff] (%p78_p3)  ;;  %v275_v1 = vld [vmem:[%s1072_s26 + $0x10] sm:$0xff] (%p78_p3) }
  0x10   : > { %v277_v2 = vld [vmem:[%s1072_s26 + $0x20] sm:$0xff] (%p78_p3)  ;;  %274 = vst [vmem:[%s1077_s27] sm:$0xff] (%p78_p3), %v273_v0  ;;  %276 = vst [vmem:[%s1077_s27 + $0x8] sm:$0xff] (%p78_p3), %v275_v1  ;;  %v279_v3 = vld [vmem:[%s1072_s26 + $0x30] sm:$0xff] (%p78_p3) }
  0x11   : > { %278 = vst [vmem:[%s1077_s27 + $0x10] sm:$0xff] %v277_v2  ;;  %v281_v4 = vld [vmem:[%s1072_s26 + $0x40] sm:$0xff]  ;;  %v283_v5 = vld [vmem:[%s1072_s26 + $0x50] sm:$0xff]  ;;  %280 = vst [vmem:[%s1077_s27 + $0x18] sm:$0xff] %v279_v3 }
  0x12   : > { %282 = vst [vmem:[%s1077_s27 + $0x20] sm:$0xff] %v281_v4  ;;  %284 = vst [vmem:[%s1077_s27 + $0x28] sm:$0xff] %v283_v5  ;;  %v285_v6 = vld [vmem:[%s1072_s26 + $0x60] sm:$0xff]  ;;  %v287_v7 = vld [vmem:[%s1072_s26 + $0x70] sm:$0xff] }
  0x13   : > { %v289_v8 = vld [vmem:[%s1072_s26 + $0x80] sm:$0xff]  ;;  %286 = vst [vmem:[%s1077_s27 + $0x30] sm:$0xff] %v285_v6  ;;  %288 = vst [vmem:[%s1077_s27 + $0x38] sm:$0xff] %v287_v7  ;;  %v291_v9 = vld [vmem:[%s1072_s26 + $0x90] sm:$0xff] }
  0x14   : > { %290 = vst [vmem:[%s1077_s27 + $0x40] sm:$0xff] %v289_v8  ;;  %v293_v10 = vld [vmem:[%s1072_s26 + $0xa0] sm:$0xff]  ;;  %v295_v11 = vld [vmem:[%s1072_s26 + $0xb0] sm:$0xff]  ;;  %292 = vst [vmem:[%s1077_s27 + $0x48] sm:$0xff] %v291_v9 }
  0x15   : > { %294 = vst [vmem:[%s1077_s27 + $0x50] sm:$0xff] %v293_v10  ;;  %296 = vst [vmem:[%s1077_s27 + $0x58] sm:$0xff] %v295_v11  ;;  %v297_v12 = vld [vmem:[%s1072_s26 + $0xc0] sm:$0xff]  ;;  %v299_v13 = vld [vmem:[%s1072_s26 + $0xd0] sm:$0xff] }
  0x16   : > { %v301_v14 = vld [vmem:[%s1072_s26 + $0xe0] sm:$0xff]  ;;  %298 = vst [vmem:[%s1077_s27 + $0x60] sm:$0xff] %v297_v12  ;;  %300 = vst [vmem:[%s1077_s27 + $0x68] sm:$0xff] %v299_v13  ;;  %v303_v15 = vld [vmem:[%s1072_s26 + $0xf0] sm:$0xff] }
  0x17   : > { %302 = vst [vmem:[%s1077_s27 + $0x70] sm:$0xff] %v301_v14  ;;  %v305_v16 = vld [vmem:[%s1072_s26 + $0x100] sm:$0xff]  ;;  %v307_v17 = vld [vmem:[%s1072_s26 + $0x110] sm:$0xff]  ;;  %304 = vst [vmem:[%s1077_s27 + $0x78] sm:$0xff] %v303_v15 }
  0x18   : > { %306 = vst [vmem:[%s1077_s27 + $0x80] sm:$0xff] %v305_v16  ;;  %308 = vst [vmem:[%s1077_s27 + $0x88] sm:$0xff] %v307_v17  ;;  %v309_v18 = vld [vmem:[%s1072_s26 + $0x120] sm:$0xff]  ;;  %v311_v19 = vld [vmem:[%s1072_s26 + $0x130] sm:$0xff] }
  0x19   : > { %v313_v20 = vld [vmem:[%s1072_s26 + $0x140] sm:$0xff]  ;;  %310 = vst [vmem:[%s1077_s27 + $0x90] sm:$0xff] %v309_v18  ;;  %312 = vst [vmem:[%s1077_s27 + $0x98] sm:$0xff] %v311_v19  ;;  %v315_v21 = vld [vmem:[%s1072_s26 + $0x150] sm:$0xff] }
  0x1a   : > { %314 = vst [vmem:[%s1077_s27 + $0xa0] sm:$0xff] %v313_v20  ;;  %v317_v22 = vld [vmem:[%s1072_s26 + $0x160] sm:$0xff]  ;;  %v319_v23 = vld [vmem:[%s1072_s26 + $0x170] sm:$0xff]  ;;  %316 = vst [vmem:[%s1077_s27 + $0xa8] sm:$0xff] %v315_v21 }
  0x1b   : > { %318 = vst [vmem:[%s1077_s27 + $0xb0] sm:$0xff] %v317_v22  ;;  %320 = vst [vmem:[%s1077_s27 + $0xb8] sm:$0xff] %v319_v23  ;;  %v321_v24 = vld [vmem:[%s1072_s26 + $0x180] sm:$0xff]  ;;  %v323_v25 = vld [vmem:[%s1072_s26 + $0x190] sm:$0xff] }
  0x1c   : > { %v325_v26 = vld [vmem:[%s1072_s26 + $0x1a0] sm:$0xff]  ;;  %322 = vst [vmem:[%s1077_s27 + $0xc0] sm:$0xff] %v321_v24  ;;  %324 = vst [vmem:[%s1077_s27 + $0xc8] sm:$0xff] %v323_v25  ;;  %v327_v27 = vld [vmem:[%s1072_s26 + $0x1b0] sm:$0xff] }
  0x1d   : > { %326 = vst [vmem:[%s1077_s27 + $0xd0] sm:$0xff] %v325_v26  ;;  %v329_v28 = vld [vmem:[%s1072_s26 + $0x1c0] sm:$0xff]  ;;  %v331_v29 = vld [vmem:[%s1072_s26 + $0x1d0] sm:$0xff]  ;;  %328 = vst [vmem:[%s1077_s27 + $0xd8] sm:$0xff] %v327_v27 }
  0x1e   : > { %330 = vst [vmem:[%s1077_s27 + $0xe0] sm:$0xff] %v329_v28  ;;  %332 = vst [vmem:[%s1077_s27 + $0xe8] sm:$0xff] %v331_v29  ;;  %v333_v30 = vld [vmem:[%s1072_s26 + $0x1e0] sm:$0xff]  ;;  %v335_v31 = vld [vmem:[%s1072_s26 + $0x1f0] sm:$0xff] }
  0x1f   : > { %334 = vst [vmem:[%s1077_s27 + $0xf0] sm:$0xff] %v333_v30  ;;  %336 = vst [vmem:[%s1077_s27 + $0xf8] sm:$0xff] %v335_v31 }
  0x20 PF: > { %p835_p6 = scmp.ge.s32.totalorder %s1007_s16, 1  ;;  %p349_p7 = scmp.lt.s32.totalorder %s1007_s16, 3 }
  0x22   : > { %p350_p8 = pnand %p835_p6, %p349_p7 }
  0x23   : > { %s356_s28 = sand.u32 (!%p350_p8), 1, %s991_s12   ;;  %s837_s6 = sshll.u32 (!%p350_p8), %s999_s14, 1 }
  0x24   : > { %353 = sbr.rel (%p350_p8) target bundleno = 306 (0x132), region = 66  ;;  %s836_s4 = sshll.u32 (!%p350_p8), %s356_s28, 8 }
  0x25   : > { %s1150_s5 = scalar_lea.vmem (!%p350_p8), [#allocation3], %s836_s4  ;;  %p409_p9 = scmp.lt.s32.totalorder (!%p350_p8), %s837_s6, 3 }
  0x29   : > { %v1146_v32 = vld [vmem:[%s1208_s0] sm:$0xff]  ;;  %v919_v34 = vld [vmem:[%s1150_s5 + $0x74] ss:$8 sps:$4 sm:$0xff]   ;;  %v921_v35 = vld [vmem:[%s1150_s5 + $0x70] ss:$8 sps:$4 sm:$0xff]   ;;  %v683_v3 = vlaneseq  ;;  %s1219_s6 = smov (!%p409_p9, %s837_s6), 3 }
  0x2a   : > { %v841_v33 = vcombine.high %v1146_v32, %v1146_v32  ;;  %631 = vmatprep.subr.bf16.mxu0 %v919_v34  ;;  %v922_v36 = vld [vmem:[%s1150_s5 + $0x64] ss:$8 sps:$4 sm:$0xff]   ;;  %v924_v37 = vld [vmem:[%s1150_s5 + $0x60] ss:$8 sps:$4 sm:$0xff]   ;;  %v925_v38 = vld [vmem:[%s1150_s5 + $0x54] ss:$8 sps:$4 sm:$0xff]   ;;  %v840_v2 = vcombine.low %v1146_v32, %v1146_v32  ;;  %s411_s9 = scalar_lea.vmem %s1210_s2, %s1219_s6 }
  0x2b   : > { %632 = vmatpush1.bf16.msra.mxu0 %v921_v35  ;;  %v927_v39 = vld [vmem:[%s1150_s5 + $0x50] ss:$8 sps:$4 sm:$0xff]   ;;  %v928_v40 = vld [vmem:[%s1150_s5 + $0x44] ss:$8 sps:$4 sm:$0xff]   ;;  %v930_v41 = vld [vmem:[%s1150_s5 + $0x40] ss:$8 sps:$4 sm:$0xff]  }
  0x2c   : > { %663 = vmatprep.mubr.bf16.mxu0 %v841_v33  ;;  %633 = vmatprep.subr.bf16.mxu0 %v922_v36  ;;  %v931_v42 = vld [vmem:[%s1150_s5 + $0x34] ss:$8 sps:$4 sm:$0xff]   ;;  %v933_v43 = vld [vmem:[%s1150_s5 + $0x30] ss:$8 sps:$4 sm:$0xff]   ;;  %v934_v44 = vld [vmem:[%s1150_s5 + $0x24] ss:$8 sps:$4 sm:$0xff]  }
  0x2d   : > { %v936_v45 = vld [vmem:[%s1150_s5 + $0x20] ss:$8 sps:$4 sm:$0xff]   ;;  %v937_v46 = vld [vmem:[%s1150_s5 + $0x14] ss:$8 sps:$4 sm:$0xff]   ;;  %v939_v47 = vld [vmem:[%s1150_s5 + $0x10] ss:$8 sps:$4 sm:$0xff]  }
  0x2e   : > { %v940_v48 = vld [vmem:[%s1150_s5 + $0x4] ss:$8 sps:$4 sm:$0xff]   ;;  %v942_v49 = vld [vmem:[%s1150_s5] ss:$8 sps:$4 sm:$0xff]   ;;  %v943_v50 = vld [vmem:[%s1150_s5 + $0xf4] ss:$8 sps:$4 sm:$0xff]  }
  0x2f   : > { %634 = vmatpush1.bf16.msra.mxu0 %v924_v37  ;;  %v945_v51 = vld [vmem:[%s1150_s5 + $0xf0] ss:$8 sps:$4 sm:$0xff]   ;;  %v946_v52 = vld [vmem:[%s1150_s5 + $0xe4] ss:$8 sps:$4 sm:$0xff]   ;;  %v948_v53 = vld [vmem:[%s1150_s5 + $0xe0] ss:$8 sps:$4 sm:$0xff]  }
  0x30   : > { %635 = vmatprep.subr.bf16.mxu0 %v925_v38  ;;  %v949_v54 = vld [vmem:[%s1150_s5 + $0xd4] ss:$8 sps:$4 sm:$0xff]   ;;  %v951_v55 = vld [vmem:[%s1150_s5 + $0xd0] ss:$8 sps:$4 sm:$0xff]   ;;  %v952_v56 = vld [vmem:[%s1150_s5 + $0xc4] ss:$8 sps:$4 sm:$0xff]  }
  0x31   : > { %v954_v57 = vld [vmem:[%s1150_s5 + $0xc0] ss:$8 sps:$4 sm:$0xff]   ;;  %v955_v58 = vld [vmem:[%s1150_s5 + $0xb4] ss:$8 sps:$4 sm:$0xff]   ;;  %v957_v59 = vld [vmem:[%s1150_s5 + $0xb0] ss:$8 sps:$4 sm:$0xff]  }
  0x32   : > { %v958_v60 = vld [vmem:[%s1150_s5 + $0xa4] ss:$8 sps:$4 sm:$0xff]   ;;  %v960_v61 = vld [vmem:[%s1150_s5 + $0xa0] ss:$8 sps:$4 sm:$0xff]   ;;  %v961_v62 = vld [vmem:[%s1150_s5 + $0x94] ss:$8 sps:$4 sm:$0xff]  }
  0x33   : > { %636 = vmatpush1.bf16.msra.mxu0 %v927_v39  ;;  %v963_v63 = vld [vmem:[%s1150_s5 + $0x90] ss:$8 sps:$4 sm:$0xff]   ;;  %v964_v0 = vld [vmem:[%s1150_s5 + $0x84] ss:$8 sps:$4 sm:$0xff]   ;;  %v966_v1 = vld [vmem:[%s1150_s5 + $0x80] ss:$8 sps:$4 sm:$0xff]  }
  0x34   : > { %637 = vmatprep.subr.bf16.mxu0 %v928_v40  ;;  %v684_v4 = vshrl.u32 %v683_v3, 7  ;;  %v681_v7 = vld [vmem:[%s411_s9] sm:$0x3]  ;;  %s839_s10 = sshll.u32 %s1219_s6, 2 }
  0x35   : > { %s421_s14 = scalar_lea.vmem %s1211_s3, %s839_s10 }
  0x36   : > { %v685_v5 = vsub.s32 0, %v684_v4  ;;  %v689_v6 = vsub.s32 1, %v684_v4 }
  0x37   : > { %638 = vmatpush1.bf16.msra.mxu0 %v930_v41 }
  0x38   : > { %639 = vmatprep.subr.bf16.mxu0 %v931_v42  ;;  %v686_v8 = vrot.slane %v681_v7, %v685_v5  ;;  %v690_v9 = vrot.slane %v681_v7, %v689_v6 }
  0x3b   : > { %640 = vmatpush1.bf16.msra.mxu0 %v933_v43 }
  0x3c   : > { %641 = vmatprep.subr.bf16.mxu0 %v934_v44 }
  0x3f   : > { %642 = vmatpush1.bf16.msra.mxu0 %v936_v45 }
  0x40   : > { %643 = vmatprep.subr.bf16.mxu0 %v937_v46 }
  0x43   : > { %644 = vmatpush1.bf16.msra.mxu0 %v939_v47 }
  0x44   : > { %645 = vmatprep.subr.bf16.mxu0 %v940_v48 }
  0x47   : > { %646 = vmatpush1.bf16.msra.mxu0 %v942_v49 }
  0x48   : > { %647 = vmatprep.subr.bf16.mxu0 %v943_v50 }
  0x4b   : > { %648 = vmatpush2.bf16.msra.mxu0 %v945_v51 }
  0x4c   : > { %649 = vmatprep.subr.bf16.mxu0 %v946_v52 }
  0x4f   : > { %650 = vmatpush2.bf16.msra.mxu0 %v948_v53 }
  0x50   : > { %651 = vmatprep.subr.bf16.mxu0 %v949_v54 }
  0x53   : > { %652 = vmatpush2.bf16.msra.mxu0 %v951_v55 }
  0x54   : > { %653 = vmatprep.subr.bf16.mxu0 %v952_v56 }
  0x57   : > { %654 = vmatpush2.bf16.msra.mxu0 %v954_v57 }
  0x58   : > { %655 = vmatprep.subr.bf16.mxu0 %v955_v58 }
  0x5b   : > { %656 = vmatpush2.bf16.msra.mxu0 %v957_v59 }
  0x5c   : > { %657 = vmatprep.subr.bf16.mxu0 %v958_v60 }
  0x5f   : > { %658 = vmatpush2.bf16.msra.mxu0 %v960_v61 }
  0x60   : > { %659 = vmatprep.subr.bf16.mxu0 %v961_v62 }
  0x63   : > { %660 = vmatpush2.bf16.msra.mxu0 %v963_v63 }
  0x64   : > { %661 = vmatprep.subr.bf16.mxu0 %v964_v0 }
  0x67   : > { %662 = vmatpush2.bf16.msra.mxu0 %v966_v1 }
  0x6a   : > { %664 = vmatmul.mubr.bf16.vlgmr.msra.gmra.mxu0 %v840_v2 }
 0x12a   : > { %v665_v10 = vpop.f32.mrf.mxu0 }
 0x12b   : > { %v693_v12 = vadd.f32 %v686_v8, %v665_v10 }
 0x12c   : > { %v667_v11 = vpop.f32.mrf.mxu0 }
 0x12d   : > { %v694_v13 = vadd.f32 %v690_v9, %v667_v11 }
 0x12e   : > { %v669_v14 = vpop.f32.mrf.mxu0 }
 0x12f   : > { %v878_v15 = vpack.c.bf16 %v694_v13, %v693_v12 }
 0x130   : > { %v670_v16 = vpop.f32.mrf.mxu0 }
 0x131   : > { %703 = vst [vmem:[%s421_s14] sm:$0xff] %v878_v15 }
 0x132 PF: > { %s13_s16 = sadd.s32 1, %s1007_s16   ;;  %s1212_s12 = smov %s995_s13 }
 0x133   : > { %p10_p10 = scmp.ge.s32.totalorder %s13_s16, 4   ;;  %s1213_s13 = smov %s1064_s20 }
 0x134   : > { %s1214_s14 = smov %s1003_s15  ;;  %s1215_s15 = smov %s1217_s17 }
 0x135   :  { %12 = sbr.rel (!%p10_p10) target bundleno = 3 (0x3), region = 119 }

// kernel: forward.27
= control target key start
LH: loop header
LB: loop body
LE: loop exit
PB: predicated region body
PF: predicated region fallthrough
CT: control target
= control target key end

     0   :  { %s936_s1 = inlined_call_operand.vmem [shape: bf16[512,256], index: 1, kind: input, shape index: {}]   ;;  %s937_s0 = inlined_call_operand.vmem [shape: bf16[8,512], index: 0, kind: input, shape index: {}]   ;;  %s938_s2 = inlined_call_operand.vmem [shape: f32[1,256], index: 2, kind: input, shape index: {}]   ;;  %s939_s3 = inlined_call_operand.vmem [shape: bf16[8,256], index: 3, kind: output, shape index: {}]  }
   0x1   :  { %v612_v0 = vld [vmem:[%s936_s1 + $0x74] ss:$8 sps:$4 sm:$0xff]   ;;  %v616_v2 = vld [vmem:[%s936_s1 + $0x70] ss:$8 sps:$4 sm:$0xff]   ;;  %v618_v4 = vld [vmem:[%s936_s1 + $0x64] ss:$8 sps:$4 sm:$0xff]  }
   0x2   :  { %v614_v1 = vld [vmem:[%s936_s1 + $0x174] ss:$8 sps:$4 sm:$0xff]   ;;  %422 = vmatprep.subr.bf16.mxu0 %v612_v0  ;;  %v617_v3 = vld [vmem:[%s936_s1 + $0x170] ss:$8 sps:$4 sm:$0xff]   ;;  %v620_v5 = vld [vmem:[%s936_s1 + $0x164] ss:$8 sps:$4 sm:$0xff]  }
   0x3   :  { %463 = vmatprep.subr.bf16.mxu1 %v614_v1  ;;  %423 = vmatpush1.bf16.msra.mxu0 %v616_v2  ;;  %v622_v6 = vld [vmem:[%s936_s1 + $0x60] ss:$8 sps:$4 sm:$0xff]   ;;  %v624_v8 = vld [vmem:[%s936_s1 + $0x54] ss:$8 sps:$4 sm:$0xff]   ;;  %v628_v10 = vld [vmem:[%s936_s1 + $0x50] ss:$8 sps:$4 sm:$0xff]  }
   0x4   :  { %464 = vmatpush1.bf16.msra.mxu1 %v617_v3  ;;  %424 = vmatprep.subr.bf16.mxu0 %v618_v4  ;;  %v623_v7 = vld [vmem:[%s936_s1 + $0x160] ss:$8 sps:$4 sm:$0xff]   ;;  %v626_v9 = vld [vmem:[%s936_s1 + $0x154] ss:$8 sps:$4 sm:$0xff]   ;;  %v629_v11 = vld [vmem:[%s936_s1 + $0x150] ss:$8 sps:$4 sm:$0xff]  }
   0x5   :  { %465 = vmatprep.subr.bf16.mxu1 %v620_v5  ;;  %v630_v12 = vld [vmem:[%s936_s1 + $0x44] ss:$8 sps:$4 sm:$0xff]   ;;  %v634_v14 = vld [vmem:[%s936_s1 + $0x40] ss:$8 sps:$4 sm:$0xff]   ;;  %v636_v16 = vld [vmem:[%s936_s1 + $0x34] ss:$8 sps:$4 sm:$0xff]  }
   0x6   :  { %v632_v13 = vld [vmem:[%s936_s1 + $0x144] ss:$8 sps:$4 sm:$0xff]   ;;  %v635_v15 = vld [vmem:[%s936_s1 + $0x140] ss:$8 sps:$4 sm:$0xff]   ;;  %v638_v17 = vld [vmem:[%s936_s1 + $0x134] ss:$8 sps:$4 sm:$0xff]  }
   0x7   :  { %425 = vmatpush1.bf16.msra.mxu0 %v622_v6  ;;  %v640_v18 = vld [vmem:[%s936_s1 + $0x30] ss:$8 sps:$4 sm:$0xff]   ;;  %v642_v20 = vld [vmem:[%s936_s1 + $0x24] ss:$8 sps:$4 sm:$0xff]   ;;  %v646_v22 = vld [vmem:[%s936_s1 + $0x20] ss:$8 sps:$4 sm:$0xff]   ;;  %v515_v6 = vlaneseq }
   0x8   :  { %466 = vmatpush1.bf16.msra.mxu1 %v623_v7  ;;  %426 = vmatprep.subr.bf16.mxu0 %v624_v8  ;;  %v641_v19 = vld [vmem:[%s936_s1 + $0x130] ss:$8 sps:$4 sm:$0xff]   ;;  %v644_v21 = vld [vmem:[%s936_s1 + $0x124] ss:$8 sps:$4 sm:$0xff]   ;;  %v647_v23 = vld [vmem:[%s936_s1 + $0x120] ss:$8 sps:$4 sm:$0xff]  }
   0x9   :  { %467 = vmatprep.subr.bf16.mxu1 %v626_v9  ;;  %v648_v24 = vld [vmem:[%s936_s1 + $0x14] ss:$8 sps:$4 sm:$0xff]   ;;  %v652_v26 = vld [vmem:[%s936_s1 + $0x10] ss:$8 sps:$4 sm:$0xff]   ;;  %v654_v28 = vld [vmem:[%s936_s1 + $0x4] ss:$8 sps:$4 sm:$0xff]  }
   0xa   :  { %v650_v25 = vld [vmem:[%s936_s1 + $0x114] ss:$8 sps:$4 sm:$0xff]   ;;  %v653_v27 = vld [vmem:[%s936_s1 + $0x110] ss:$8 sps:$4 sm:$0xff]   ;;  %v656_v29 = vld [vmem:[%s936_s1 + $0x104] ss:$8 sps:$4 sm:$0xff]  }
   0xb   :  { %427 = vmatpush1.bf16.msra.mxu0 %v628_v10  ;;  %v658_v30 = vld [vmem:[%s936_s1] ss:$8 sps:$4 sm:$0xff]   ;;  %v660_v32 = vld [vmem:[%s936_s1 + $0xf4] ss:$8 sps:$4 sm:$0xff]   ;;  %v664_v34 = vld [vmem:[%s936_s1 + $0xf0] ss:$8 sps:$4 sm:$0xff]  }
   0xc   :  { %468 = vmatpush1.bf16.msra.mxu1 %v629_v11  ;;  %428 = vmatprep.subr.bf16.mxu0 %v630_v12  ;;  %v659_v31 = vld [vmem:[%s936_s1 + $0x100] ss:$8 sps:$4 sm:$0xff]   ;;  %v662_v33 = vld [vmem:[%s936_s1 + $0x1f4] ss:$8 sps:$4 sm:$0xff]   ;;  %v665_v35 = vld [vmem:[%s936_s1 + $0x1f0] ss:$8 sps:$4 sm:$0xff]  }
   0xd   :  { %469 = vmatprep.subr.bf16.mxu1 %v632_v13  ;;  %v666_v36 = vld [vmem:[%s936_s1 + $0xe4] ss:$8 sps:$4 sm:$0xff]   ;;  %v670_v38 = vld [vmem:[%s936_s1 + $0xe0] ss:$8 sps:$4 sm:$0xff]   ;;  %v672_v40 = vld [vmem:[%s936_s1 + $0xd4] ss:$8 sps:$4 sm:$0xff]  }
   0xe   :  { %v668_v37 = vld [vmem:[%s936_s1 + $0x1e4] ss:$8 sps:$4 sm:$0xff]   ;;  %v671_v39 = vld [vmem:[%s936_s1 + $0x1e0] ss:$8 sps:$4 sm:$0xff]   ;;  %v674_v41 = vld [vmem:[%s936_s1 + $0x1d4] ss:$8 sps:$4 sm:$0xff]  }
   0xf   :  { %429 = vmatpush1.bf16.msra.mxu0 %v634_v14  ;;  %v676_v42 = vld [vmem:[%s936_s1 + $0xd0] ss:$8 sps:$4 sm:$0xff]   ;;  %v678_v44 = vld [vmem:[%s936_s1 + $0xc4] ss:$8 sps:$4 sm:$0xff]   ;;  %v682_v49 = vld [vmem:[%s936_s1 + $0xc0] ss:$8 sps:$4 sm:$0xff]  }
  0x10   :  { %470 = vmatpush1.bf16.msra.mxu1 %v635_v15  ;;  %430 = vmatprep.subr.bf16.mxu0 %v636_v16  ;;  %v677_v43 = vld [vmem:[%s936_s1 + $0x1d0] ss:$8 sps:$4 sm:$0xff]   ;;  %v680_v45 = vld [vmem:[%s936_s1 + $0x1c4] ss:$8 sps:$4 sm:$0xff]   ;;  %v683_v50 = vld [vmem:[%s936_s1 + $0x1c0] ss:$8 sps:$4 sm:$0xff]  }
  0x11   :  { %471 = vmatprep.subr.bf16.mxu1 %v638_v17  ;;  %v22_v46 = vld [vmem:[%s937_s0] sm:$0xff]  ;;  %v23_v48 = vld [vmem:[%s937_s0 + $0x8] sm:$0xff]  ;;  %v684_v52 = vld [vmem:[%s936_s1 + $0xb4] ss:$8 sps:$4 sm:$0xff]   ;;  %v516_v7 = vshrl.u32 %v515_v6, 7 }
  0x12   :  { %v543_v47 = vcombine.high %v22_v46, %v22_v46  ;;  %v545_v51 = vcombine.high %v23_v48, %v23_v48  ;;  %v686_v53 = vld [vmem:[%s936_s1 + $0x1b4] ss:$8 sps:$4 sm:$0xff]   ;;  %v688_v54 = vld [vmem:[%s936_s1 + $0xb0] ss:$8 sps:$4 sm:$0xff]   ;;  %v690_v56 = vld [vmem:[%s936_s1 + $0xa4] ss:$8 sps:$4 sm:$0xff]   ;;  %v542_v4 = vcombine.low %v22_v46, %v22_v46  ;;  %v544_v5 = vcombine.low %v23_v48, %v23_v48 }
  0x13   :  { %431 = vmatpush1.bf16.msra.mxu0 %v640_v18  ;;  %v689_v55 = vld [vmem:[%s936_s1 + $0x1b0] ss:$8 sps:$4 sm:$0xff]   ;;  %v692_v57 = vld [vmem:[%s936_s1 + $0x1a4] ss:$8 sps:$4 sm:$0xff]   ;;  %v694_v58 = vld [vmem:[%s936_s1 + $0xa0] ss:$8 sps:$4 sm:$0xff]  }
  0x14   :  { %472 = vmatpush1.bf16.msra.mxu1 %v641_v19  ;;  %432 = vmatprep.subr.bf16.mxu0 %v642_v20  ;;  %v695_v59 = vld [vmem:[%s936_s1 + $0x1a0] ss:$8 sps:$4 sm:$0xff]   ;;  %v696_v60 = vld [vmem:[%s936_s1 + $0x94] ss:$8 sps:$4 sm:$0xff]   ;;  %v700_v62 = vld [vmem:[%s936_s1 + $0x90] ss:$8 sps:$4 sm:$0xff]  }
  0x15   :  { %473 = vmatprep.subr.bf16.mxu1 %v644_v21  ;;  %454 = vmatprep.mubr.bf16.mxu0 %v543_v47  ;;  %v698_v61 = vld [vmem:[%s936_s1 + $0x194] ss:$8 sps:$4 sm:$0xff]   ;;  %v701_v63 = vld [vmem:[%s936_s1 + $0x190] ss:$8 sps:$4 sm:$0xff]   ;;  %v702_v0 = vld [vmem:[%s936_s1 + $0x84] ss:$8 sps:$4 sm:$0xff]  }
  0x16   :  { %495 = vmatprep.mubr.bf16.mxu1 %v545_v51  ;;  %v704_v1 = vld [vmem:[%s936_s1 + $0x184] ss:$8 sps:$4 sm:$0xff]   ;;  %v706_v2 = vld [vmem:[%s936_s1 + $0x80] ss:$8 sps:$4 sm:$0xff]   ;;  %v517_v8 = vsub.s32 0, %v516_v7  ;;  %v521_v10 = vsub.s32 1, %v516_v7 }
  0x17   :  { %433 = vmatpush1.bf16.msra.mxu0 %v646_v22  ;;  %v707_v3 = vld [vmem:[%s936_s1 + $0x180] ss:$8 sps:$4 sm:$0xff]  }
  0x18   :  { %474 = vmatpush1.bf16.msra.mxu1 %v647_v23  ;;  %434 = vmatprep.subr.bf16.mxu0 %v648_v24  ;;  %v513_v9 = vld [vmem:[%s938_s2] sm:$0x3] }
  0x19   :  { %475 = vmatprep.subr.bf16.mxu1 %v650_v25  ;;  %v518_v11 = vrot.slane %v513_v9, %v517_v8  ;;  %v522_v15 = vrot.slane %v513_v9, %v521_v10 }
  0x1b   :  { %435 = vmatpush1.bf16.msra.mxu0 %v652_v26 }
  0x1c   :  { %476 = vmatpush1.bf16.msra.mxu1 %v653_v27  ;;  %436 = vmatprep.subr.bf16.mxu0 %v654_v28 }
  0x1d   :  { %477 = vmatprep.subr.bf16.mxu1 %v656_v29 }
  0x1f   :  { %437 = vmatpush1.bf16.msra.mxu0 %v658_v30 }
  0x20   :  { %478 = vmatpush1.bf16.msra.mxu1 %v659_v31  ;;  %438 = vmatprep.subr.bf16.mxu0 %v660_v32 }
  0x21   :  { %479 = vmatprep.subr.bf16.mxu1 %v662_v33 }
  0x23   :  { %439 = vmatpush2.bf16.msra.mxu0 %v664_v34 }
  0x24   :  { %480 = vmatpush2.bf16.msra.mxu1 %v665_v35  ;;  %440 = vmatprep.subr.bf16.mxu0 %v666_v36 }
  0x25   :  { %481 = vmatprep.subr.bf16.mxu1 %v668_v37 }
  0x27   :  { %441 = vmatpush2.bf16.msra.mxu0 %v670_v38 }
  0x28   :  { %482 = vmatpush2.bf16.msra.mxu1 %v671_v39  ;;  %442 = vmatprep.subr.bf16.mxu0 %v672_v40 }
  0x29   :  { %483 = vmatprep.subr.bf16.mxu1 %v674_v41 }
  0x2b   :  { %443 = vmatpush2.bf16.msra.mxu0 %v676_v42 }
  0x2c   :  { %484 = vmatpush2.bf16.msra.mxu1 %v677_v43  ;;  %444 = vmatprep.subr.bf16.mxu0 %v678_v44 }
  0x2d   :  { %485 = vmatprep.subr.bf16.mxu1 %v680_v45 }
  0x2f   :  { %445 = vmatpush2.bf16.msra.mxu0 %v682_v49 }
  0x30   :  { %486 = vmatpush2.bf16.msra.mxu1 %v683_v50  ;;  %446 = vmatprep.subr.bf16.mxu0 %v684_v52 }
  0x31   :  { %487 = vmatprep.subr.bf16.mxu1 %v686_v53 }
  0x33   :  { %447 = vmatpush2.bf16.msra.mxu0 %v688_v54 }
  0x34   :  { %488 = vmatpush2.bf16.msra.mxu1 %v689_v55  ;;  %448 = vmatprep.subr.bf16.mxu0 %v690_v56 }
  0x35   :  { %489 = vmatprep.subr.bf16.mxu1 %v692_v57 }
  0x37   :  { %449 = vmatpush2.bf16.msra.mxu0 %v694_v58 }
  0x38   :  { %490 = vmatpush2.bf16.msra.mxu1 %v695_v59  ;;  %450 = vmatprep.subr.bf16.mxu0 %v696_v60 }
  0x39   :  { %491 = vmatprep.subr.bf16.mxu1 %v698_v61 }
  0x3b   :  { %451 = vmatpush2.bf16.msra.mxu0 %v700_v62 }
  0x3c   :  { %492 = vmatpush2.bf16.msra.mxu1 %v701_v63  ;;  %452 = vmatprep.subr.bf16.mxu0 %v702_v0 }
  0x3d   :  { %493 = vmatprep.subr.bf16.mxu1 %v704_v1 }
  0x3f   :  { %453 = vmatpush2.bf16.msra.mxu0 %v706_v2 }
  0x40   :  { %494 = vmatpush2.bf16.msra.mxu1 %v707_v3 }
  0x42   :  { %455 = vmatmul.mubr.bf16.vlgmr.msra.gmra.mxu0 %v542_v4 }
  0x43   :  { %496 = vmatmul.mubr.bf16.vlgmr.msra.gmra.mxu1 %v544_v5 }
 0x102   :  { %v456_v12 = vpop.f32.mrf.mxu0 }
 0x103   :  { %v497_v13 = vpop.f32.mrf.mxu1 }
 0x104   :  { %v498_v14 = vadd.f32 %v497_v13, %v456_v12  ;;  %v458_v16 = vpop.f32.mrf.mxu0 }
 0x105   :  { %v499_v17 = vpop.f32.mrf.mxu1 }
 0x106   :  { %v525_v18 = vadd.f32 %v518_v11, %v498_v14  ;;  %v500_v19 = vadd.f32 %v499_v17, %v458_v16  ;;  %v460_v20 = vpop.f32.mrf.mxu0 }
 0x107   :  { %v501_v21 = vpop.f32.mrf.mxu1 }
 0x108   :  { %v526_v22 = vadd.f32 %v522_v15, %v500_v19  ;;  %v461_v23 = vpop.f32.mrf.mxu0  ;;  %v527_v25 = vmax.f32 %v525_v18, 0.0 }
 0x109   :  { %v502_v24 = vpop.f32.mrf.mxu1 }
 0x10a   :  { %v528_v26 = vmax.f32 %v526_v22, 0.0 }
 0x10c   :  { %v611_v27 = vpack.c.bf16 %v528_v26, %v527_v25 }
 0x10e   :  { %537 = vst [vmem:[%s939_s3] sm:$0xff] %v611_v27 }

// kernel: forward.28
= control target key start
LH: loop header
LB: loop body
LE: loop exit
PB: predicated region body
PF: predicated region fallthrough
CT: control target
= control target key end

     0   :  { %s851_s12 = smov 0   ;;  %s853_s13 = smov 0   ;;  %s933_s0 = inlined_call_operand.vmem [shape: bf16[8,2304], index: 0, kind: input, shape index: {}]   ;;  %s934_s1 = inlined_call_operand.vmem [shape: bf16[2304,256], index: 1, kind: input, shape index: {}]   ;;  %s935_s2 = inlined_call_operand.vmem [shape: f32[1,256], index: 2, kind: input, shape index: {}]   ;;  %s936_s3 = inlined_call_operand.vmem [shape: bf16[8,256], index: 3, kind: output, shape index: {}]  }
   0x1   :  { %s855_s14 = smov 0  }
   0x2 LB: > { %s25_s15 = sadd.s32 1, %s824_s13  ;;  %p682_p0 = scmp.ge.s32.totalorder %s828_s14, 1  ;;  %s828_s14 = sphi %s855_s14, %s13_s14   ;;  %s824_s13 = sphi %s853_s13, %s938_s13   ;;  %s820_s12 = sphi %s851_s12, %s937_s12  }
   0x3   : > { %p26_p1 = scmp.ge.s32.totalorder %s25_s15, 9  ;;  %p194_p2 = scmp.lt.s32.totalorder %s828_s14, 10 }
   0x5   : > { %s940_s15 = smov (%p26_p1, %s25_s15), 0  ;;  %p195_p3 = pnand %p682_p0, %p194_p2 }
   0x6   : > { %s683_s16 = sshll.u32 (!%p195_p3), %s820_s12, 1  ;;  %s685_s17 = sshll.u32 (!%p195_p3), %s820_s12, 5 }
   0x7   : > { %198 = sbr.rel (%p195_p3) target bundleno = 301 (0x12d), region = 32  ;;  %p243_p4 = scmp.lt.s32.totalorder (!%p195_p3), %s683_s16, 17 }
   0x8   : > { %p252_p5 = scmp.lt.s32.totalorder (!%p195_p3), %s685_s17, 287  ;;  %p688_p6 = scmp.ne.s32.totalorder (!%p195_p3), %s820_s12, 0 }
   0xc   : > { %s942_s16 = smov (!%p243_p4, %s683_s16), 17  ;;  %s944_s17 = smov (!%p252_p5, %s685_s17), 287 }
   0xd   : > { %s684_s18 = sshll.u32 %s942_s16, 2  ;;  %s729_s22 = sshll.u32 %s944_s17, 3 }
   0xe   : > { %s876_s21 = scalar_lea.vmem %s933_s0, %s684_s18  ;;  %s881_s25 = scalar_lea.vmem %s934_s1, %s729_s22 }
   0xf   : > { %280 = sbr.rel (%p688_p6) target bundleno = 22 (0x16), region = 36 }
  0x14   : > { %v830_v0 = vmov 0.0  }
  0x15   : > { %281 = vst [vmem:[#allocation2] sm:$0xff] %v830_v0  ;;  %282 = vst [vmem:[#allocation2 + $0x8] sm:$0xff] %v830_v0 }
  0x16 PF: > { %v756_v1 = vld [vmem:[%s881_s25 + $0x74] ss:$8 sps:$4 sm:$0xff]   ;;  %v758_v2 = vld [vmem:[%s881_s25 + $0x70] ss:$8 sps:$4 sm:$0xff]   ;;  %v759_v3 = vld [vmem:[%s881_s25 + $0x64] ss:$8 sps:$4 sm:$0xff]  }
  0x17   : > { %485 = vmatprep.subr.bf16.mxu0 %v756_v1  ;;  %v761_v4 = vld [vmem:[%s881_s25 + $0x60] ss:$8 sps:$4 sm:$0xff]   ;;  %v762_v5 = vld [vmem:[%s881_s25 + $0x54] ss:$8 sps:$4 sm:$0xff]   ;;  %v764_v6 = vld [vmem:[%s881_s25 + $0x50] ss:$8 sps:$4 sm:$0xff]  }
  0x18   : > { %486 = vmatpush1.bf16.msra.mxu0 %v758_v2  ;;  %v765_v7 = vld [vmem:[%s881_s25 + $0x44] ss:$8 sps:$4 sm:$0xff]   ;;  %v767_v8 = vld [vmem:[%s881_s25 + $0x40] ss:$8 sps:$4 sm:$0xff]   ;;  %v768_v9 = vld [vmem:[%s881_s25 + $0x34] ss:$8 sps:$4 sm:$0xff]  }
  0x19   : > { %487 = vmatprep.subr.bf16.mxu0 %v759_v3  ;;  %v770_v10 = vld [vmem:[%s881_s25 + $0x30] ss:$8 sps:$4 sm:$0xff]   ;;  %v771_v11 = vld [vmem:[%s881_s25 + $0x24] ss:$8 sps:$4 sm:$0xff]   ;;  %v773_v12 = vld [vmem:[%s881_s25 + $0x20] ss:$8 sps:$4 sm:$0xff]  }
  0x1a   : > { %v774_v13 = vld [vmem:[%s881_s25 + $0x14] ss:$8 sps:$4 sm:$0xff]   ;;  %v285_v14 = vld [vmem:[%s876_s21] sm:$0xff]  ;;  %v776_v16 = vld [vmem:[%s881_s25 + $0x10] ss:$8 sps:$4 sm:$0xff]   ;;  %p723_p7 = scmp.ne.s32.totalorder %s820_s12, 8 }
  0x1b   : > { %v690_v15 = vcombine.high %v285_v14, %v285_v14  ;;  %v777_v17 = vld [vmem:[%s881_s25 + $0x4] ss:$8 sps:$4 sm:$0xff]   ;;  %v779_v18 = vld [vmem:[%s881_s25] ss:$8 sps:$4 sm:$0xff]   ;;  %v780_v19 = vld [vmem:[%s881_s25 + $0xf4] ss:$8 sps:$4 sm:$0xff]   ;;  %v689_v35 = vcombine.low %v285_v14, %v285_v14 }
  0x1c   : > { %488 = vmatpush1.bf16.msra.mxu0 %v761_v4  ;;  %v782_v20 = vld [vmem:[%s881_s25 + $0xf0] ss:$8 sps:$4 sm:$0xff]   ;;  %v783_v21 = vld [vmem:[%s881_s25 + $0xe4] ss:$8 sps:$4 sm:$0xff]   ;;  %v785_v22 = vld [vmem:[%s881_s25 + $0xe0] ss:$8 sps:$4 sm:$0xff]  }
  0x1d   : > { %489 = vmatprep.subr.bf16.mxu0 %v762_v5  ;;  %517 = vmatprep.mubr.bf16.mxu0 %v690_v15  ;;  %v786_v23 = vld [vmem:[%s881_s25 + $0xd4] ss:$8 sps:$4 sm:$0xff]   ;;  %v788_v24 = vld [vmem:[%s881_s25 + $0xd0] ss:$8 sps:$4 sm:$0xff]   ;;  %v789_v25 = vld [vmem:[%s881_s25 + $0xc4] ss:$8 sps:$4 sm:$0xff]  }
  0x1e   : > { %v791_v26 = vld [vmem:[%s881_s25 + $0xc0] ss:$8 sps:$4 sm:$0xff]   ;;  %v792_v27 = vld [vmem:[%s881_s25 + $0xb4] ss:$8 sps:$4 sm:$0xff]   ;;  %v794_v28 = vld [vmem:[%s881_s25 + $0xb0] ss:$8 sps:$4 sm:$0xff]  }
  0x1f   : > { %v795_v29 = vld [vmem:[%s881_s25 + $0xa4] ss:$8 sps:$4 sm:$0xff]   ;;  %v797_v30 = vld [vmem:[%s881_s25 + $0xa0] ss:$8 sps:$4 sm:$0xff]   ;;  %v798_v31 = vld [vmem:[%s881_s25 + $0x94] ss:$8 sps:$4 sm:$0xff]  }
  0x20   : > { %490 = vmatpush1.bf16.msra.mxu0 %v764_v6  ;;  %v800_v32 = vld [vmem:[%s881_s25 + $0x90] ss:$8 sps:$4 sm:$0xff]   ;;  %v801_v33 = vld [vmem:[%s881_s25 + $0x84] ss:$8 sps:$4 sm:$0xff]   ;;  %v803_v34 = vld [vmem:[%s881_s25 + $0x80] ss:$8 sps:$4 sm:$0xff]  }
  0x21   : > { %491 = vmatprep.subr.bf16.mxu0 %v765_v7  ;;  %v283_v36 = vld [vmem:[#allocation2] sm:$0xff]  ;;  %v284_v38 = vld [vmem:[#allocation2 + $0x8] sm:$0xff] }
  0x24   : > { %492 = vmatpush1.bf16.msra.mxu0 %v767_v8 }
  0x25   : > { %493 = vmatprep.subr.bf16.mxu0 %v768_v9 }
  0x28   : > { %494 = vmatpush1.bf16.msra.mxu0 %v770_v10 }
  0x29   : > { %495 = vmatprep.subr.bf16.mxu0 %v771_v11 }
  0x2c   : > { %496 = vmatpush1.bf16.msra.mxu0 %v773_v12 }
  0x2d   : > { %497 = vmatprep.subr.bf16.mxu0 %v774_v13 }
  0x30   : > { %498 = vmatpush1.bf16.msra.mxu0 %v776_v16 }
  0x31   : > { %499 = vmatprep.subr.bf16.mxu0 %v777_v17 }
  0x34   : > { %500 = vmatpush1.bf16.msra.mxu0 %v779_v18 }
  0x35   : > { %501 = vmatprep.subr.bf16.mxu0 %v780_v19 }
  0x38   : > { %502 = vmatpush2.bf16.msra.mxu0 %v782_v20 }
  0x39   : > { %503 = vmatprep.subr.bf16.mxu0 %v783_v21 }
  0x3c   : > { %504 = vmatpush2.bf16.msra.mxu0 %v785_v22 }
  0x3d   : > { %505 = vmatprep.subr.bf16.mxu0 %v786_v23 }
  0x40   : > { %506 = vmatpush2.bf16.msra.mxu0 %v788_v24 }
  0x41   : > { %507 = vmatprep.subr.bf16.mxu0 %v789_v25 }
  0x44   : > { %508 = vmatpush2.bf16.msra.mxu0 %v791_v26 }
  0x45   : > { %509 = vmatprep.subr.bf16.mxu0 %v792_v27 }
  0x48   : > { %510 = vmatpush2.bf16.msra.mxu0 %v794_v28 }
  0x49   : > { %511 = vmatprep.subr.bf16.mxu0 %v795_v29 }
  0x4c   : > { %512 = vmatpush2.bf16.msra.mxu0 %v797_v30 }
  0x4d   : > { %513 = vmatprep.subr.bf16.mxu0 %v798_v31 }
  0x50   : > { %514 = vmatpush2.bf16.msra.mxu0 %v800_v32 }
  0x51   : > { %515 = vmatprep.subr.bf16.mxu0 %v801_v33 }
  0x54   : > { %516 = vmatpush2.bf16.msra.mxu0 %v803_v34 }
  0x57   : > { %518 = vmatmul.mubr.bf16.vlgmr.msra.gmra.mxu0 %v689_v35 }
 0x117   : > { %v519_v37 = vpop.f32.mrf.mxu0 }
 0x118   : > { %v526_v39 = vadd.f32 %v519_v37, %v283_v36 }
 0x119   : > { %v521_v40 = vpop.f32.mrf.mxu0  ;;  %533 = sbr.rel (%p723_p7) target bundleno = 301 (0x12d), region = 40 }
 0x11a   : > { %528 = vst [vmem:[#allocation2] sm:$0xff] %v526_v39  ;;  %v527_v41 = vadd.f32 %v521_v40, %v284_v38 }
 0x11b   : > { %v523_v42 = vpop.f32.mrf.mxu0 }
 0x11c   : > { %529 = vst [vmem:[#allocation2 + $0x8] sm:$0xff] %v527_v41 }
 0x11d   : > { %v524_v43 = vpop.f32.mrf.mxu0 }
 0x11e   : > { %v538_v44 = vlaneseq  ;;  %v536_v46 = vld [vmem:[%s935_s2] sm:$0x3] }
 0x120   : > { %v539_v45 = vshrl.u32 %v538_v44, 7 }
 0x121   : > { %v534_v49 = vld [vmem:[#allocation2] sm:$0xff] }
 0x122   : > { %v540_v47 = vsub.s32 0, %v539_v45  ;;  %v544_v48 = vsub.s32 1, %v539_v45 }
 0x123   : > { %v535_v50 = vld [vmem:[#allocation2 + $0x8] sm:$0xff] }
 0x124   : > { %v541_v51 = vrot.slane %v536_v46, %v540_v47  ;;  %v545_v52 = vrot.slane %v536_v46, %v544_v48 }
 0x126   : > { %v548_v53 = vadd.f32 %v541_v51, %v534_v49  ;;  %v549_v54 = vadd.f32 %v545_v52, %v535_v50 }
 0x128   : > { %v550_v55 = vmax.f32 %v548_v53, 0.0  ;;  %v551_v56 = vmax.f32 %v549_v54, 0.0 }
 0x12a   : > { %v730_v57 = vpack.c.bf16 %v551_v56, %v550_v55 }
 0x12c   : > { %560 = vst [vmem:[%s936_s3] sm:$0xff] %v730_v57 }
 0x12d PF: > { %s13_s14 = sadd.s32 1, %s828_s14   ;;  %s937_s12 = smov %s824_s13 }
 0x12e   : > { %p10_p8 = scmp.ge.s32.totalorder %s13_s14, 11   ;;  %s938_s13 = smov %s940_s15 }
 0x130   :  { %12 = sbr.rel (!%p10_p8) target bundleno = 2 (0x2), region = 76 }

// kernel: forward.29
= control target key start
LH: loop header
LB: loop body
LE: loop exit
PB: predicated region body
PF: predicated region fallthrough
CT: control target
= control target key end

     0   :  { %s1482_s12 = smov 0   ;;  %s1484_s13 = smov 0   ;;  %s1766_s0 = inlined_call_operand.vmem [shape: bf16[8,512], index: 0, kind: input, shape index: {}]   ;;  %s1767_s1 = inlined_call_operand.vmem [shape: bf16[512,1024], index: 1, kind: input, shape index: {}]   ;;  %s1768_s2 = inlined_call_operand.vmem [shape: f32[1,1024], index: 2, kind: input, shape index: {}]   ;;  %s1769_s3 = inlined_call_operand.vmem [shape: bf16[8,1024], index: 3, kind: output, shape index: {}]  }
   0x1   :  { %s1486_s14 = smov 0   ;;  %s1488_s15 = smov 0  }
   0x2   :  { %s1490_s16 = smov 0  }
   0x3 LB: > { %s28_s17 = sadd.s32 1, %s1456_s15  ;;  %p76_p1 = scmp.ne.s32.totalorder %s1448_s13, %s1444_s12  ;;  %s1460_s16 = sphi %s1490_s16, %s13_s16   ;;  %s1456_s15 = sphi %s1488_s15, %s1773_s15   ;;  %s1452_s14 = sphi %s1486_s14, %s1772_s14   ;;  %s1448_s13 = sphi %s1484_s13, %s1771_s13   ;;  %s1444_s12 = sphi %s1482_s12, %s1770_s12  }
   0x4   : > { %p30_p0 = scmp.ge.s32.totalorder %s28_s17, 4  ;;  %p77_p2 = scmp.eq.s32.totalorder %s1460_s16, 0 }
   0x5   : > { %s69_s19 = sadd.s32 1, %s1448_s13  ;;  %p1200_p5 = scmp.ge.s32.totalorder %s1460_s16, 4 }
   0x6   : > { %s1775_s17 = smov (%p30_p0, %s28_s17), 0  ;;  %p78_p3 = por %p77_p2, %p76_p1 }
   0x7   : > { %s65_s18 = ssub.s32 %s1456_s15, %s1775_s17  ;;  %169 = sbr.rel (%p1200_p5) target bundleno = 80 (0x50), region = 20 }
   0x8   : > { %p67_p4 = scmp.eq.s32.totalorder %s65_s18, 0 }
   0xa   : > { %s1517_s20 = scalar_select %p67_p4, %s1448_s13, %s69_s19  }
   0xc   : > { %172 = sbr.rel (!%p78_p3) target bundleno = 80 (0x50), region = 24  ;;  %s174_s21 = sand.u32 (%p78_p3), 1, %s1448_s13  }
   0xd   : > { %s1280_s22 = sshll.u32 (%p78_p3), %s1456_s15, 3  ;;  %s1201_s23 = sshll.u32 (%p78_p3), %s174_s21, 9 }
   0xe   : > { %s1525_s26 = scalar_lea.vmem (%p78_p3), %s1767_s1, %s1280_s22  ;;  %s1530_s27 = scalar_lea.vmem (%p78_p3), [#allocation3], %s1201_s23 }
   0xf   : > { %v337_v0 = vld [vmem:[%s1525_s26] sm:$0xff] (%p78_p3) }
  0x10   : > { %v339_v1 = vld [vmem:[%s1525_s26 + $0x20] sm:$0xff] (%p78_p3)  ;;  %338 = vst [vmem:[%s1530_s27] sm:$0xff] (%p78_p3), %v337_v0 }
  0x11   : > { %v341_v2 = vld [vmem:[%s1525_s26 + $0x40] sm:$0xff]  ;;  %340 = vst [vmem:[%s1530_s27 + $0x8] sm:$0xff] %v339_v1 }
  0x12   : > { %342 = vst [vmem:[%s1530_s27 + $0x10] sm:$0xff] %v341_v2  ;;  %v343_v3 = vld [vmem:[%s1525_s26 + $0x60] sm:$0xff] }
  0x13   : > { %v345_v4 = vld [vmem:[%s1525_s26 + $0x80] sm:$0xff]  ;;  %344 = vst [vmem:[%s1530_s27 + $0x18] sm:$0xff] %v343_v3 }
  0x14   : > { %v347_v5 = vld [vmem:[%s1525_s26 + $0xa0] sm:$0xff]  ;;  %346 = vst [vmem:[%s1530_s27 + $0x20] sm:$0xff] %v345_v4 }
  0x15   : > { %348 = vst [vmem:[%s1530_s27 + $0x28] sm:$0xff] %v347_v5  ;;  %v349_v6 = vld [vmem:[%s1525_s26 + $0xc0] sm:$0xff] }
  0x16   : > { %v351_v7 = vld [vmem:[%s1525_s26 + $0xe0] sm:$0xff]  ;;  %350 = vst [vmem:[%s1530_s27 + $0x30] sm:$0xff] %v349_v6 }
  0x17   : > { %v353_v8 = vld [vmem:[%s1525_s26 + $0x100] sm:$0xff]  ;;  %352 = vst [vmem:[%s1530_s27 + $0x38] sm:$0xff] %v351_v7 }
  0x18   : > { %354 = vst [vmem:[%s1530_s27 + $0x40] sm:$0xff] %v353_v8  ;;  %v355_v9 = vld [vmem:[%s1525_s26 + $0x120] sm:$0xff] }
  0x19   : > { %v357_v10 = vld [vmem:[%s1525_s26 + $0x140] sm:$0xff]  ;;  %356 = vst [vmem:[%s1530_s27 + $0x48] sm:$0xff] %v355_v9 }
  0x1a   : > { %v359_v11 = vld [vmem:[%s1525_s26 + $0x160] sm:$0xff]  ;;  %358 = vst [vmem:[%s1530_s27 + $0x50] sm:$0xff] %v357_v10 }
  0x1b   : > { %360 = vst [vmem:[%s1530_s27 + $0x58] sm:$0xff] %v359_v11  ;;  %v361_v12 = vld [vmem:[%s1525_s26 + $0x180] sm:$0xff] }
  0x1c   : > { %v363_v13 = vld [vmem:[%s1525_s26 + $0x1a0] sm:$0xff]  ;;  %362 = vst [vmem:[%s1530_s27 + $0x60] sm:$0xff] %v361_v12 }
  0x1d   : > { %v365_v14 = vld [vmem:[%s1525_s26 + $0x1c0] sm:$0xff]  ;;  %364 = vst [vmem:[%s1530_s27 + $0x68] sm:$0xff] %v363_v13 }
  0x1e   : > { %366 = vst [vmem:[%s1530_s27 + $0x70] sm:$0xff] %v365_v14  ;;  %v367_v15 = vld [vmem:[%s1525_s26 + $0x1e0] sm:$0xff] }
  0x1f   : > { %v369_v16 = vld [vmem:[%s1525_s26 + $0x200] sm:$0xff]  ;;  %368 = vst [vmem:[%s1530_s27 + $0x78] sm:$0xff] %v367_v15 }
  0x20   : > { %v371_v17 = vld [vmem:[%s1525_s26 + $0x220] sm:$0xff]  ;;  %370 = vst [vmem:[%s1530_s27 + $0x80] sm:$0xff] %v369_v16 }
  0x21   : > { %372 = vst [vmem:[%s1530_s27 + $0x88] sm:$0xff] %v371_v17  ;;  %v373_v18 = vld [vmem:[%s1525_s26 + $0x240] sm:$0xff] }
  0x22   : > { %v375_v19 = vld [vmem:[%s1525_s26 + $0x260] sm:$0xff]  ;;  %374 = vst [vmem:[%s1530_s27 + $0x90] sm:$0xff] %v373_v18 }
  0x23   : > { %v377_v20 = vld [vmem:[%s1525_s26 + $0x280] sm:$0xff]  ;;  %376 = vst [vmem:[%s1530_s27 + $0x98] sm:$0xff] %v375_v19 }
  0x24   : > { %378 = vst [vmem:[%s1530_s27 + $0xa0] sm:$0xff] %v377_v20  ;;  %v379_v21 = vld [vmem:[%s1525_s26 + $0x2a0] sm:$0xff] }
  0x25   : > { %v381_v22 = vld [vmem:[%s1525_s26 + $0x2c0] sm:$0xff]  ;;  %380 = vst [vmem:[%s1530_s27 + $0xa8] sm:$0xff] %v379_v21 }
  0x26   : > { %v383_v23 = vld [vmem:[%s1525_s26 + $0x2e0] sm:$0xff]  ;;  %382 = vst [vmem:[%s1530_s27 + $0xb0] sm:$0xff] %v381_v22 }
  0x27   : > { %384 = vst [vmem:[%s1530_s27 + $0xb8] sm:$0xff] %v383_v23  ;;  %v385_v24 = vld [vmem:[%s1525_s26 + $0x300] sm:$0xff] }
  0x28   : > { %v387_v25 = vld [vmem:[%s1525_s26 + $0x320] sm:$0xff]  ;;  %386 = vst [vmem:[%s1530_s27 + $0xc0] sm:$0xff] %v385_v24 }
  0x29   : > { %v389_v26 = vld [vmem:[%s1525_s26 + $0x340] sm:$0xff]  ;;  %388 = vst [vmem:[%s1530_s27 + $0xc8] sm:$0xff] %v387_v25 }
  0x2a   : > { %390 = vst [vmem:[%s1530_s27 + $0xd0] sm:$0xff] %v389_v26  ;;  %v391_v27 = vld [vmem:[%s1525_s26 + $0x360] sm:$0xff] }
  0x2b   : > { %v393_v28 = vld [vmem:[%s1525_s26 + $0x380] sm:$0xff]  ;;  %392 = vst [vmem:[%s1530_s27 + $0xd8] sm:$0xff] %v391_v27 }
  0x2c   : > { %v395_v29 = vld [vmem:[%s1525_s26 + $0x3a0] sm:$0xff]  ;;  %394 = vst [vmem:[%s1530_s27 + $0xe0] sm:$0xff] %v393_v28 }
  0x2d   : > { %396 = vst [vmem:[%s1530_s27 + $0xe8] sm:$0xff] %v395_v29  ;;  %v397_v30 = vld [vmem:[%s1525_s26 + $0x3c0] sm:$0xff] }
  0x2e   : > { %v399_v31 = vld [vmem:[%s1525_s26 + $0x3e0] sm:$0xff]  ;;  %398 = vst [vmem:[%s1530_s27 + $0xf0] sm:$0xff] %v397_v30 }
  0x2f   : > { %v401_v32 = vld [vmem:[%s1525_s26 + $0x400] sm:$0xff]  ;;  %400 = vst [vmem:[%s1530_s27 + $0xf8] sm:$0xff] %v399_v31 }
  0x30   : > { %402 = vst [vmem:[%s1530_s27 + $0x100] sm:$0xff] %v401_v32  ;;  %v403_v33 = vld [vmem:[%s1525_s26 + $0x420] sm:$0xff] }
  0x31   : > { %v405_v34 = vld [vmem:[%s1525_s26 + $0x440] sm:$0xff]  ;;  %404 = vst [vmem:[%s1530_s27 + $0x108] sm:$0xff] %v403_v33 }
  0x32   : > { %v407_v35 = vld [vmem:[%s1525_s26 + $0x460] sm:$0xff]  ;;  %406 = vst [vmem:[%s1530_s27 + $0x110] sm:$0xff] %v405_v34 }
  0x33   : > { %408 = vst [vmem:[%s1530_s27 + $0x118] sm:$0xff] %v407_v35  ;;  %v409_v36 = vld [vmem:[%s1525_s26 + $0x480] sm:$0xff] }
  0x34   : > { %v411_v37 = vld [vmem:[%s1525_s26 + $0x4a0] sm:$0xff]  ;;  %410 = vst [vmem:[%s1530_s27 + $0x120] sm:$0xff] %v409_v36 }
  0x35   : > { %v413_v38 = vld [vmem:[%s1525_s26 + $0x4c0] sm:$0xff]  ;;  %412 = vst [vmem:[%s1530_s27 + $0x128] sm:$0xff] %v411_v37 }
  0x36   : > { %414 = vst [vmem:[%s1530_s27 + $0x130] sm:$0xff] %v413_v38  ;;  %v415_v39 = vld [vmem:[%s1525_s26 + $0x4e0] sm:$0xff] }
  0x37   : > { %v417_v40 = vld [vmem:[%s1525_s26 + $0x500] sm:$0xff]  ;;  %416 = vst [vmem:[%s1530_s27 + $0x138] sm:$0xff] %v415_v39 }
  0x38   : > { %v419_v41 = vld [vmem:[%s1525_s26 + $0x520] sm:$0xff]  ;;  %418 = vst [vmem:[%s1530_s27 + $0x140] sm:$0xff] %v417_v40 }
  0x39   : > { %420 = vst [vmem:[%s1530_s27 + $0x148] sm:$0xff] %v419_v41  ;;  %v421_v42 = vld [vmem:[%s1525_s26 + $0x540] sm:$0xff] }
  0x3a   : > { %v423_v43 = vld [vmem:[%s1525_s26 + $0x560] sm:$0xff]  ;;  %422 = vst [vmem:[%s1530_s27 + $0x150] sm:$0xff] %v421_v42 }
  0x3b   : > { %v425_v44 = vld [vmem:[%s1525_s26 + $0x580] sm:$0xff]  ;;  %424 = vst [vmem:[%s1530_s27 + $0x158] sm:$0xff] %v423_v43 }
  0x3c   : > { %426 = vst [vmem:[%s1530_s27 + $0x160] sm:$0xff] %v425_v44  ;;  %v427_v45 = vld [vmem:[%s1525_s26 + $0x5a0] sm:$0xff] }
  0x3d   : > { %v429_v46 = vld [vmem:[%s1525_s26 + $0x5c0] sm:$0xff]  ;;  %428 = vst [vmem:[%s1530_s27 + $0x168] sm:$0xff] %v427_v45 }
  0x3e   : > { %v431_v47 = vld [vmem:[%s1525_s26 + $0x5e0] sm:$0xff]  ;;  %430 = vst [vmem:[%s1530_s27 + $0x170] sm:$0xff] %v429_v46 }
  0x3f   : > { %432 = vst [vmem:[%s1530_s27 + $0x178] sm:$0xff] %v431_v47  ;;  %v433_v48 = vld [vmem:[%s1525_s26 + $0x600] sm:$0xff] }
  0x40   : > { %v435_v49 = vld [vmem:[%s1525_s26 + $0x620] sm:$0xff]  ;;  %434 = vst [vmem:[%s1530_s27 + $0x180] sm:$0xff] %v433_v48 }
  0x41   : > { %v437_v50 = vld [vmem:[%s1525_s26 + $0x640] sm:$0xff]  ;;  %436 = vst [vmem:[%s1530_s27 + $0x188] sm:$0xff] %v435_v49 }
  0x42   : > { %438 = vst [vmem:[%s1530_s27 + $0x190] sm:$0xff] %v437_v50  ;;  %v439_v51 = vld [vmem:[%s1525_s26 + $0x660] sm:$0xff] }
  0x43   : > { %v441_v52 = vld [vmem:[%s1525_s26 + $0x680] sm:$0xff]  ;;  %440 = vst [vmem:[%s1530_s27 + $0x198] sm:$0xff] %v439_v51 }
  0x44   : > { %v443_v53 = vld [vmem:[%s1525_s26 + $0x6a0] sm:$0xff]  ;;  %442 = vst [vmem:[%s1530_s27 + $0x1a0] sm:$0xff] %v441_v52 }
  0x45   : > { %444 = vst [vmem:[%s1530_s27 + $0x1a8] sm:$0xff] %v443_v53  ;;  %v445_v54 = vld [vmem:[%s1525_s26 + $0x6c0] sm:$0xff] }
  0x46   : > { %v447_v55 = vld [vmem:[%s1525_s26 + $0x6e0] sm:$0xff]  ;;  %446 = vst [vmem:[%s1530_s27 + $0x1b0] sm:$0xff] %v445_v54 }
  0x47   : > { %v449_v56 = vld [vmem:[%s1525_s26 + $0x700] sm:$0xff]  ;;  %448 = vst [vmem:[%s1530_s27 + $0x1b8] sm:$0xff] %v447_v55 }
  0x48   : > { %450 = vst [vmem:[%s1530_s27 + $0x1c0] sm:$0xff] %v449_v56  ;;  %v451_v57 = vld [vmem:[%s1525_s26 + $0x720] sm:$0xff] }
  0x49   : > { %v453_v58 = vld [vmem:[%s1525_s26 + $0x740] sm:$0xff]  ;;  %452 = vst [vmem:[%s1530_s27 + $0x1c8] sm:$0xff] %v451_v57 }
  0x4a   : > { %v455_v59 = vld [vmem:[%s1525_s26 + $0x760] sm:$0xff]  ;;  %454 = vst [vmem:[%s1530_s27 + $0x1d0] sm:$0xff] %v453_v58 }
  0x4b   : > { %456 = vst [vmem:[%s1530_s27 + $0x1d8] sm:$0xff] %v455_v59  ;;  %v457_v60 = vld [vmem:[%s1525_s26 + $0x780] sm:$0xff] }
  0x4c   : > { %v459_v61 = vld [vmem:[%s1525_s26 + $0x7a0] sm:$0xff]  ;;  %458 = vst [vmem:[%s1530_s27 + $0x1e0] sm:$0xff] %v457_v60 }
  0x4d   : > { %v461_v62 = vld [vmem:[%s1525_s26 + $0x7c0] sm:$0xff]  ;;  %460 = vst [vmem:[%s1530_s27 + $0x1e8] sm:$0xff] %v459_v61 }
  0x4e   : > { %462 = vst [vmem:[%s1530_s27 + $0x1f0] sm:$0xff] %v461_v62  ;;  %v463_v63 = vld [vmem:[%s1525_s26 + $0x7e0] sm:$0xff] }
  0x4f   : > { %464 = vst [vmem:[%s1530_s27 + $0x1f8] sm:$0xff] %v463_v63 }
  0x50 PF: > { %p1204_p6 = scmp.ge.s32.totalorder %s1460_s16, 1  ;;  %p477_p7 = scmp.lt.s32.totalorder %s1460_s16, 5 }
  0x52   : > { %p478_p8 = pnand %p1204_p6, %p477_p7 }
  0x53   : > { %s484_s28 = sand.u32 (!%p478_p8), 1, %s1444_s12   ;;  %s1206_s8 = sshll.u32 (!%p478_p8), %s1452_s14, 1 }
  0x54   : > { %481 = sbr.rel (%p478_p8) target bundleno = 358 (0x166), region = 66  ;;  %s1205_s6 = sshll.u32 (!%p478_p8), %s484_s28, 9 }
  0x55   : > { %s1674_s7 = scalar_lea.vmem (!%p478_p8), [#allocation3], %s1205_s6  ;;  %p537_p9 = scmp.lt.s32.totalorder (!%p478_p8), %s1206_s8, 7 }
  0x59   : > { %v1663_v0 = vld [vmem:[%s1766_s0] sm:$0xff]  ;;  %v1668_v1 = vld [vmem:[%s1766_s0 + $0x8] sm:$0xff]  ;;  %v1322_v4 = vld [vmem:[%s1674_s7 + $0x74] ss:$8 sps:$4 sm:$0xff]   ;;  %s1777_s8 = smov (!%p537_p9, %s1206_s8), 7 }
  0x5a   : > { %v1210_v2 = vcombine.high %v1663_v0, %v1663_v0  ;;  %v1212_v3 = vcombine.high %v1668_v1, %v1668_v1  ;;  %v1324_v5 = vld [vmem:[%s1674_s7 + $0x174] ss:$8 sps:$4 sm:$0xff]   ;;  %959 = vmatprep.subr.bf16.mxu0 %v1322_v4  ;;  %v1326_v6 = vld [vmem:[%s1674_s7 + $0x70] ss:$8 sps:$4 sm:$0xff]   ;;  %v1328_v8 = vld [vmem:[%s1674_s7 + $0x64] ss:$8 sps:$4 sm:$0xff]   ;;  %s539_s11 = scalar_lea.vmem %s1768_s2, %s1777_s8 }
  0x5b   : > { %v1327_v7 = vld [vmem:[%s1674_s7 + $0x170] ss:$8 sps:$4 sm:$0xff]   ;;  %1000 = vmatprep.subr.bf16.mxu1 %v1324_v5  ;;  %960 = vmatpush1.bf16.msra.mxu0 %v1326_v6  ;;  %v1330_v9 = vld [vmem:[%s1674_s7 + $0x164] ss:$8 sps:$4 sm:$0xff]   ;;  %v1332_v10 = vld [vmem:[%s1674_s7 + $0x60] ss:$8 sps:$4 sm:$0xff]   ;;  %v1209_v6 = vcombine.low %v1663_v0, %v1663_v0 }
  0x5c   : > { %991 = vmatprep.mubr.bf16.mxu0 %v1210_v2  ;;  %1032 = vmatprep.mubr.bf16.mxu1 %v1212_v3  ;;  %v1333_v11 = vld [vmem:[%s1674_s7 + $0x160] ss:$8 sps:$4 sm:$0xff]   ;;  %v1334_v12 = vld [vmem:[%s1674_s7 + $0x54] ss:$8 sps:$4 sm:$0xff]   ;;  %v1338_v14 = vld [vmem:[%s1674_s7 + $0x50] ss:$8 sps:$4 sm:$0xff]  }
  0x5d   : > { %1001 = vmatpush1.bf16.msra.mxu1 %v1327_v7  ;;  %961 = vmatprep.subr.bf16.mxu0 %v1328_v8  ;;  %v1336_v13 = vld [vmem:[%s1674_s7 + $0x154] ss:$8 sps:$4 sm:$0xff]   ;;  %v1339_v15 = vld [vmem:[%s1674_s7 + $0x150] ss:$8 sps:$4 sm:$0xff]   ;;  %v1340_v16 = vld [vmem:[%s1674_s7 + $0x44] ss:$8 sps:$4 sm:$0xff]   ;;  %v1211_v7 = vcombine.low %v1668_v1, %v1668_v1  ;;  %v1052_v8 = vlaneseq }
  0x5e   : > { %1002 = vmatprep.subr.bf16.mxu1 %v1330_v9  ;;  %v1342_v17 = vld [vmem:[%s1674_s7 + $0x144] ss:$8 sps:$4 sm:$0xff]   ;;  %v1344_v18 = vld [vmem:[%s1674_s7 + $0x40] ss:$8 sps:$4 sm:$0xff]   ;;  %v1346_v20 = vld [vmem:[%s1674_s7 + $0x34] ss:$8 sps:$4 sm:$0xff]  }
  0x5f   : > { %962 = vmatpush1.bf16.msra.mxu0 %v1332_v10  ;;  %v1345_v19 = vld [vmem:[%s1674_s7 + $0x140] ss:$8 sps:$4 sm:$0xff]   ;;  %v1348_v21 = vld [vmem:[%s1674_s7 + $0x134] ss:$8 sps:$4 sm:$0xff]   ;;  %v1350_v22 = vld [vmem:[%s1674_s7 + $0x30] ss:$8 sps:$4 sm:$0xff]  }
  0x60   : > { %963 = vmatprep.subr.bf16.mxu0 %v1334_v12  ;;  %v1351_v23 = vld [vmem:[%s1674_s7 + $0x130] ss:$8 sps:$4 sm:$0xff]   ;;  %v1352_v24 = vld [vmem:[%s1674_s7 + $0x24] ss:$8 sps:$4 sm:$0xff]   ;;  %v1356_v26 = vld [vmem:[%s1674_s7 + $0x20] ss:$8 sps:$4 sm:$0xff]  }
  0x61   : > { %1003 = vmatpush1.bf16.msra.mxu1 %v1333_v11  ;;  %v1354_v25 = vld [vmem:[%s1674_s7 + $0x124] ss:$8 sps:$4 sm:$0xff]   ;;  %v1357_v27 = vld [vmem:[%s1674_s7 + $0x120] ss:$8 sps:$4 sm:$0xff]   ;;  %v1358_v28 = vld [vmem:[%s1674_s7 + $0x14] ss:$8 sps:$4 sm:$0xff]  }
  0x62   : > { %1004 = vmatprep.subr.bf16.mxu1 %v1336_v13  ;;  %v1360_v29 = vld [vmem:[%s1674_s7 + $0x114] ss:$8 sps:$4 sm:$0xff]   ;;  %v1362_v30 = vld [vmem:[%s1674_s7 + $0x10] ss:$8 sps:$4 sm:$0xff]   ;;  %v1364_v32 = vld [vmem:[%s1674_s7 + $0x4] ss:$8 sps:$4 sm:$0xff]  }
  0x63   : > { %964 = vmatpush1.bf16.msra.mxu0 %v1338_v14  ;;  %v1363_v31 = vld [vmem:[%s1674_s7 + $0x110] ss:$8 sps:$4 sm:$0xff]   ;;  %v1366_v33 = vld [vmem:[%s1674_s7 + $0x104] ss:$8 sps:$4 sm:$0xff]   ;;  %v1368_v34 = vld [vmem:[%s1674_s7] ss:$8 sps:$4 sm:$0xff]  }
  0x64   : > { %965 = vmatprep.subr.bf16.mxu0 %v1340_v16  ;;  %v1369_v35 = vld [vmem:[%s1674_s7 + $0x100] ss:$8 sps:$4 sm:$0xff]   ;;  %v1370_v36 = vld [vmem:[%s1674_s7 + $0xf4] ss:$8 sps:$4 sm:$0xff]   ;;  %v1374_v38 = vld [vmem:[%s1674_s7 + $0xf0] ss:$8 sps:$4 sm:$0xff]  }
  0x65   : > { %1005 = vmatpush1.bf16.msra.mxu1 %v1339_v15  ;;  %v1372_v37 = vld [vmem:[%s1674_s7 + $0x1f4] ss:$8 sps:$4 sm:$0xff]   ;;  %v1375_v39 = vld [vmem:[%s1674_s7 + $0x1f0] ss:$8 sps:$4 sm:$0xff]   ;;  %v1376_v40 = vld [vmem:[%s1674_s7 + $0xe4] ss:$8 sps:$4 sm:$0xff]  }
  0x66   : > { %1006 = vmatprep.subr.bf16.mxu1 %v1342_v17  ;;  %v1378_v41 = vld [vmem:[%s1674_s7 + $0x1e4] ss:$8 sps:$4 sm:$0xff]   ;;  %v1380_v42 = vld [vmem:[%s1674_s7 + $0xe0] ss:$8 sps:$4 sm:$0xff]   ;;  %v1382_v44 = vld [vmem:[%s1674_s7 + $0xd4] ss:$8 sps:$4 sm:$0xff]  }
  0x67   : > { %966 = vmatpush1.bf16.msra.mxu0 %v1344_v18  ;;  %v1381_v43 = vld [vmem:[%s1674_s7 + $0x1e0] ss:$8 sps:$4 sm:$0xff]   ;;  %v1384_v45 = vld [vmem:[%s1674_s7 + $0x1d4] ss:$8 sps:$4 sm:$0xff]   ;;  %v1386_v46 = vld [vmem:[%s1674_s7 + $0xd0] ss:$8 sps:$4 sm:$0xff]  }
  0x68   : > { %967 = vmatprep.subr.bf16.mxu0 %v1346_v20  ;;  %v1387_v47 = vld [vmem:[%s1674_s7 + $0x1d0] ss:$8 sps:$4 sm:$0xff]   ;;  %v1388_v48 = vld [vmem:[%s1674_s7 + $0xc4] ss:$8 sps:$4 sm:$0xff]   ;;  %v1392_v50 = vld [vmem:[%s1674_s7 + $0xc0] ss:$8 sps:$4 sm:$0xff]  }
  0x69   : > { %1007 = vmatpush1.bf16.msra.mxu1 %v1345_v19  ;;  %v1390_v49 = vld [vmem:[%s1674_s7 + $0x1c4] ss:$8 sps:$4 sm:$0xff]   ;;  %v1393_v51 = vld [vmem:[%s1674_s7 + $0x1c0] ss:$8 sps:$4 sm:$0xff]   ;;  %v1394_v52 = vld [vmem:[%s1674_s7 + $0xb4] ss:$8 sps:$4 sm:$0xff]  }
  0x6a   : > { %1008 = vmatprep.subr.bf16.mxu1 %v1348_v21  ;;  %v1396_v53 = vld [vmem:[%s1674_s7 + $0x1b4] ss:$8 sps:$4 sm:$0xff]   ;;  %v1398_v54 = vld [vmem:[%s1674_s7 + $0xb0] ss:$8 sps:$4 sm:$0xff]   ;;  %v1400_v56 = vld [vmem:[%s1674_s7 + $0xa4] ss:$8 sps:$4 sm:$0xff]  }
  0x6b   : > { %968 = vmatpush1.bf16.msra.mxu0 %v1350_v22  ;;  %v1399_v55 = vld [vmem:[%s1674_s7 + $0x1b0] ss:$8 sps:$4 sm:$0xff]   ;;  %v1402_v57 = vld [vmem:[%s1674_s7 + $0x1a4] ss:$8 sps:$4 sm:$0xff]   ;;  %v1404_v58 = vld [vmem:[%s1674_s7 + $0xa0] ss:$8 sps:$4 sm:$0xff]  }
  0x6c   : > { %969 = vmatprep.subr.bf16.mxu0 %v1352_v24  ;;  %v1405_v59 = vld [vmem:[%s1674_s7 + $0x1a0] ss:$8 sps:$4 sm:$0xff]   ;;  %v1406_v60 = vld [vmem:[%s1674_s7 + $0x94] ss:$8 sps:$4 sm:$0xff]   ;;  %v1410_v62 = vld [vmem:[%s1674_s7 + $0x90] ss:$8 sps:$4 sm:$0xff]  }
  0x6d   : > { %1009 = vmatpush1.bf16.msra.mxu1 %v1351_v23  ;;  %v1408_v61 = vld [vmem:[%s1674_s7 + $0x194] ss:$8 sps:$4 sm:$0xff]   ;;  %v1411_v63 = vld [vmem:[%s1674_s7 + $0x190] ss:$8 sps:$4 sm:$0xff]   ;;  %v1412_v2 = vld [vmem:[%s1674_s7 + $0x84] ss:$8 sps:$4 sm:$0xff]  }
  0x6e   : > { %1010 = vmatprep.subr.bf16.mxu1 %v1354_v25  ;;  %v1414_v3 = vld [vmem:[%s1674_s7 + $0x184] ss:$8 sps:$4 sm:$0xff]   ;;  %v1416_v4 = vld [vmem:[%s1674_s7 + $0x80] ss:$8 sps:$4 sm:$0xff]   ;;  %v1053_v9 = vshrl.u32 %v1052_v8, 7  ;;  %s1208_s12 = sshll.u32 %s1777_s8, 2 }
  0x6f   : > { %970 = vmatpush1.bf16.msra.mxu0 %v1356_v26  ;;  %v1417_v5 = vld [vmem:[%s1674_s7 + $0x180] ss:$8 sps:$4 sm:$0xff]   ;;  %s549_s19 = scalar_lea.vmem %s1769_s3, %s1208_s12 }
  0x70   : > { %971 = vmatprep.subr.bf16.mxu0 %v1358_v28  ;;  %v1054_v10 = vsub.s32 0, %v1053_v9  ;;  %v1058_v11 = vsub.s32 1, %v1053_v9  ;;  %v1050_v12 = vld [vmem:[%s539_s11] sm:$0x3] }
  0x71   : > { %1011 = vmatpush1.bf16.msra.mxu1 %v1357_v27 }
  0x72   : > { %1012 = vmatprep.subr.bf16.mxu1 %v1360_v29  ;;  %v1055_v1 = vrot.slane %v1050_v12, %v1054_v10  ;;  %v1059_v15 = vrot.slane %v1050_v12, %v1058_v11 }
  0x73   : > { %972 = vmatpush1.bf16.msra.mxu0 %v1362_v30 }
  0x74   : > { %973 = vmatprep.subr.bf16.mxu0 %v1364_v32 }
  0x75   : > { %1013 = vmatpush1.bf16.msra.mxu1 %v1363_v31 }
  0x76   : > { %1014 = vmatprep.subr.bf16.mxu1 %v1366_v33 }
  0x77   : > { %974 = vmatpush1.bf16.msra.mxu0 %v1368_v34 }
  0x78   : > { %975 = vmatprep.subr.bf16.mxu0 %v1370_v36 }
  0x79   : > { %1015 = vmatpush1.bf16.msra.mxu1 %v1369_v35 }
  0x7a   : > { %1016 = vmatprep.subr.bf16.mxu1 %v1372_v37 }
  0x7b   : > { %976 = vmatpush2.bf16.msra.mxu0 %v1374_v38 }
  0x7c   : > { %977 = vmatprep.subr.bf16.mxu0 %v1376_v40 }
  0x7d   : > { %1017 = vmatpush2.bf16.msra.mxu1 %v1375_v39 }
  0x7e   : > { %1018 = vmatprep.subr.bf16.mxu1 %v1378_v41 }
  0x7f   : > { %978 = vmatpush2.bf16.msra.mxu0 %v1380_v42 }
  0x80   : > { %979 = vmatprep.subr.bf16.mxu0 %v1382_v44 }
  0x81   : > { %1019 = vmatpush2.bf16.msra.mxu1 %v1381_v43 }
  0x82   : > { %1020 = vmatprep.subr.bf16.mxu1 %v1384_v45 }
  0x83   : > { %980 = vmatpush2.bf16.msra.mxu0 %v1386_v46 }
  0x84   : > { %981 = vmatprep.subr.bf16.mxu0 %v1388_v48 }
  0x85   : > { %1021 = vmatpush2.bf16.msra.mxu1 %v1387_v47 }
  0x86   : > { %1022 = vmatprep.subr.bf16.mxu1 %v1390_v49 }
  0x87   : > { %982 = vmatpush2.bf16.msra.mxu0 %v1392_v50 }
  0x88   : > { %983 = vmatprep.subr.bf16.mxu0 %v1394_v52 }
  0x89   : > { %1023 = vmatpush2.bf16.msra.mxu1 %v1393_v51 }
  0x8a   : > { %1024 = vmatprep.subr.bf16.mxu1 %v1396_v53 }
  0x8b   : > { %984 = vmatpush2.bf16.msra.mxu0 %v1398_v54 }
  0x8c   : > { %985 = vmatprep.subr.bf16.mxu0 %v1400_v56 }
  0x8d   : > { %1025 = vmatpush2.bf16.msra.mxu1 %v1399_v55 }
  0x8e   : > { %1026 = vmatprep.subr.bf16.mxu1 %v1402_v57 }
  0x8f   : > { %986 = vmatpush2.bf16.msra.mxu0 %v1404_v58 }
  0x90   : > { %987 = vmatprep.subr.bf16.mxu0 %v1406_v60 }
  0x91   : > { %1027 = vmatpush2.bf16.msra.mxu1 %v1405_v59 }
  0x92   : > { %1028 = vmatprep.subr.bf16.mxu1 %v1408_v61 }
  0x93   : > { %988 = vmatpush2.bf16.msra.mxu0 %v1410_v62 }
  0x94   : > { %989 = vmatprep.subr.bf16.mxu0 %v1412_v2 }
  0x95   : > { %1029 = vmatpush2.bf16.msra.mxu1 %v1411_v63 }
  0x96   : > { %1030 = vmatprep.subr.bf16.mxu1 %v1414_v3 }
  0x97   : > { %990 = vmatpush2.bf16.msra.mxu0 %v1416_v4 }
  0x99   : > { %1031 = vmatpush2.bf16.msra.mxu1 %v1417_v5 }
  0x9a   : > { %992 = vmatmul.mubr.bf16.vlgmr.msra.gmra.mxu0 %v1209_v6 }
  0x9c   : > { %1033 = vmatmul.mubr.bf16.vlgmr.msra.gmra.mxu1 %v1211_v7 }
 0x15a   : > { %v993_v0 = vpop.f32.mrf.mxu0 }
 0x15c   : > { %v1034_v13 = vpop.f32.mrf.mxu1  ;;  %v995_v16 = vpop.f32.mrf.mxu0 }
 0x15d   : > { %v1035_v14 = vadd.f32 %v1034_v13, %v993_v0 }
 0x15e   : > { %v1036_v17 = vpop.f32.mrf.mxu1  ;;  %v997_v19 = vpop.f32.mrf.mxu0 }
 0x15f   : > { %v1037_v18 = vadd.f32 %v1036_v17, %v995_v16  ;;  %v1062_v21 = vadd.f32 %v1055_v1, %v1035_v14 }
 0x160   : > { %v1038_v20 = vpop.f32.mrf.mxu1  ;;  %v998_v23 = vpop.f32.mrf.mxu0 }
 0x161   : > { %v1063_v22 = vadd.f32 %v1059_v15, %v1037_v18 }
 0x162   : > { %v1039_v24 = vpop.f32.mrf.mxu1 }
 0x163   : > { %v1281_v25 = vpack.c.bf16 %v1063_v22, %v1062_v21 }
 0x165   : > { %1072 = vst [vmem:[%s549_s19] sm:$0xff] %v1281_v25 }
 0x166 PF: > { %s13_s16 = sadd.s32 1, %s1460_s16   ;;  %s1770_s12 = smov %s1448_s13 }
 0x167   : > { %p10_p10 = scmp.ge.s32.totalorder %s13_s16, 6   ;;  %s1771_s13 = smov %s1517_s20 }
 0x168   : > { %s1772_s14 = smov %s1456_s15  ;;  %s1773_s15 = smov %s1775_s17 }
 0x169   :  { %12 = sbr.rel (!%p10_p10) target bundleno = 3 (0x3), region = 119 }

// kernel: forward.30
= control target key start
LH: loop header
LB: loop body
LE: loop exit
PB: predicated region body
PF: predicated region fallthrough
CT: control target
= control target key end

     0   :  { %s1124_s15 = smov 0   ;;  %s1126_s16 = smov 0   ;;  %s1306_s0 = inlined_call_operand.vmem [shape: bf16[8,256], index: 0, kind: input, shape index: {}]   ;;  %s1307_s1 = inlined_call_operand.vmem [shape: bf16[256,1024], index: 1, kind: input, shape index: {}]   ;;  %s1308_s2 = inlined_call_operand.vmem [shape: f32[1,1024], index: 2, kind: input, shape index: {}]   ;;  %s1309_s3 = inlined_call_operand.vmem [shape: bf16[8,1024], index: 3, kind: input, shape index: {}]   ;;  %s1310_s4 = inlined_call_operand.vmem [shape: bf16[8,1024], index: 4, kind: output, shape index: {}]  }
   0x1   :  { %s1128_s17 = smov 0   ;;  %s1130_s18 = smov 0  }
   0x2   :  { %s1132_s19 = smov 0  }
   0x3 LB: > { %s29_s20 = sadd.s32 1, %s1093_s18  ;;  %p77_p1 = scmp.ne.s32.totalorder %s1085_s16, %s1081_s15  ;;  %s1097_s19 = sphi %s1132_s19, %s14_s19   ;;  %s1093_s18 = sphi %s1130_s18, %s1314_s18   ;;  %s1089_s17 = sphi %s1128_s17, %s1313_s17   ;;  %s1085_s16 = sphi %s1126_s16, %s1312_s16   ;;  %s1081_s15 = sphi %s1124_s15, %s1311_s15  }
   0x4   : > { %p31_p0 = scmp.ge.s32.totalorder %s29_s20, 4  ;;  %p78_p2 = scmp.eq.s32.totalorder %s1097_s19, 0 }
   0x5   : > { %s70_s22 = sadd.s32 1, %s1085_s16  ;;  %p919_p5 = scmp.ge.s32.totalorder %s1097_s19, 4 }
   0x6   : > { %s1316_s20 = smov (%p31_p0, %s29_s20), 0  ;;  %p79_p3 = por %p78_p2, %p77_p1 }
   0x7   : > { %s66_s21 = ssub.s32 %s1093_s18, %s1316_s20  ;;  %198 = sbr.rel (%p919_p5) target bundleno = 48 (0x30), region = 20 }
   0x8   : > { %p68_p4 = scmp.eq.s32.totalorder %s66_s21, 0 }
   0xa   : > { %s1159_s23 = scalar_select %p68_p4, %s1085_s16, %s70_s22  }
   0xc   : > { %201 = sbr.rel (!%p79_p3) target bundleno = 48 (0x30), region = 24  ;;  %s203_s24 = sand.u32 (%p79_p3), 1, %s1085_s16  }
   0xd   : > { %s967_s25 = sshll.u32 (%p79_p3), %s1093_s18, 3  ;;  %s920_s26 = sshll.u32 (%p79_p3), %s203_s24, 8 }
   0xe   : > { %s1167_s29 = scalar_lea.vmem (%p79_p3), %s1307_s1, %s967_s25  ;;  %s1172_s30 = scalar_lea.vmem (%p79_p3), [#allocation3], %s920_s26 }
   0xf   : > { %v302_v0 = vld [vmem:[%s1167_s29] sm:$0xff] (%p79_p3) }
  0x10   : > { %v304_v1 = vld [vmem:[%s1167_s29 + $0x20] sm:$0xff] (%p79_p3)  ;;  %303 = vst [vmem:[%s1172_s30] sm:$0xff] (%p79_p3), %v302_v0 }
  0x11   : > { %v306_v2 = vld [vmem:[%s1167_s29 + $0x40] sm:$0xff]  ;;  %305 = vst [vmem:[%s1172_s30 + $0x8] sm:$0xff] %v304_v1 }
  0x12   : > { %307 = vst [vmem:[%s1172_s30 + $0x10] sm:$0xff] %v306_v2  ;;  %v308_v3 = vld [vmem:[%s1167_s29 + $0x60] sm:$0xff] }
  0x13   : > { %v310_v4 = vld [vmem:[%s1167_s29 + $0x80] sm:$0xff]  ;;  %309 = vst [vmem:[%s1172_s30 + $0x18] sm:$0xff] %v308_v3 }
  0x14   : > { %v312_v5 = vld [vmem:[%s1167_s29 + $0xa0] sm:$0xff]  ;;  %311 = vst [vmem:[%s1172_s30 + $0x20] sm:$0xff] %v310_v4 }
  0x15   : > { %313 = vst [vmem:[%s1172_s30 + $0x28] sm:$0xff] %v312_v5  ;;  %v314_v6 = vld [vmem:[%s1167_s29 + $0xc0] sm:$0xff] }
  0x16   : > { %v316_v7 = vld [vmem:[%s1167_s29 + $0xe0] sm:$0xff]  ;;  %315 = vst [vmem:[%s1172_s30 + $0x30] sm:$0xff] %v314_v6 }
  0x17   : > { %v318_v8 = vld [vmem:[%s1167_s29 + $0x100] sm:$0xff]  ;;  %317 = vst [vmem:[%s1172_s30 + $0x38] sm:$0xff] %v316_v7 }
  0x18   : > { %319 = vst [vmem:[%s1172_s30 + $0x40] sm:$0xff] %v318_v8  ;;  %v320_v9 = vld [vmem:[%s1167_s29 + $0x120] sm:$0xff] }
  0x19   : > { %v322_v10 = vld [vmem:[%s1167_s29 + $0x140] sm:$0xff]  ;;  %321 = vst [vmem:[%s1172_s30 + $0x48] sm:$0xff] %v320_v9 }
  0x1a   : > { %v324_v11 = vld [vmem:[%s1167_s29 + $0x160] sm:$0xff]  ;;  %323 = vst [vmem:[%s1172_s30 + $0x50] sm:$0xff] %v322_v10 }
  0x1b   : > { %325 = vst [vmem:[%s1172_s30 + $0x58] sm:$0xff] %v324_v11  ;;  %v326_v12 = vld [vmem:[%s1167_s29 + $0x180] sm:$0xff] }
  0x1c   : > { %v328_v13 = vld [vmem:[%s1167_s29 + $0x1a0] sm:$0xff]  ;;  %327 = vst [vmem:[%s1172_s30 + $0x60] sm:$0xff] %v326_v12 }
  0x1d   : > { %v330_v14 = vld [vmem:[%s1167_s29 + $0x1c0] sm:$0xff]  ;;  %329 = vst [vmem:[%s1172_s30 + $0x68] sm:$0xff] %v328_v13 }
  0x1e   : > { %331 = vst [vmem:[%s1172_s30 + $0x70] sm:$0xff] %v330_v14  ;;  %v332_v15 = vld [vmem:[%s1167_s29 + $0x1e0] sm:$0xff] }
  0x1f   : > { %v334_v16 = vld [vmem:[%s1167_s29 + $0x200] sm:$0xff]  ;;  %333 = vst [vmem:[%s1172_s30 + $0x78] sm:$0xff] %v332_v15 }
  0x20   : > { %v336_v17 = vld [vmem:[%s1167_s29 + $0x220] sm:$0xff]  ;;  %335 = vst [vmem:[%s1172_s30 + $0x80] sm:$0xff] %v334_v16 }
  0x21   : > { %337 = vst [vmem:[%s1172_s30 + $0x88] sm:$0xff] %v336_v17  ;;  %v338_v18 = vld [vmem:[%s1167_s29 + $0x240] sm:$0xff] }
  0x22   : > { %v340_v19 = vld [vmem:[%s1167_s29 + $0x260] sm:$0xff]  ;;  %339 = vst [vmem:[%s1172_s30 + $0x90] sm:$0xff] %v338_v18 }
  0x23   : > { %v342_v20 = vld [vmem:[%s1167_s29 + $0x280] sm:$0xff]  ;;  %341 = vst [vmem:[%s1172_s30 + $0x98] sm:$0xff] %v340_v19 }
  0x24   : > { %343 = vst [vmem:[%s1172_s30 + $0xa0] sm:$0xff] %v342_v20  ;;  %v344_v21 = vld [vmem:[%s1167_s29 + $0x2a0] sm:$0xff] }
  0x25   : > { %v346_v22 = vld [vmem:[%s1167_s29 + $0x2c0] sm:$0xff]  ;;  %345 = vst [vmem:[%s1172_s30 + $0xa8] sm:$0xff] %v344_v21 }
  0x26   : > { %v348_v23 = vld [vmem:[%s1167_s29 + $0x2e0] sm:$0xff]  ;;  %347 = vst [vmem:[%s1172_s30 + $0xb0] sm:$0xff] %v346_v22 }
  0x27   : > { %349 = vst [vmem:[%s1172_s30 + $0xb8] sm:$0xff] %v348_v23  ;;  %v350_v24 = vld [vmem:[%s1167_s29 + $0x300] sm:$0xff] }
  0x28   : > { %v352_v25 = vld [vmem:[%s1167_s29 + $0x320] sm:$0xff]  ;;  %351 = vst [vmem:[%s1172_s30 + $0xc0] sm:$0xff] %v350_v24 }
  0x29   : > { %v354_v26 = vld [vmem:[%s1167_s29 + $0x340] sm:$0xff]  ;;  %353 = vst [vmem:[%s1172_s30 + $0xc8] sm:$0xff] %v352_v25 }
  0x2a   : > { %355 = vst [vmem:[%s1172_s30 + $0xd0] sm:$0xff] %v354_v26  ;;  %v356_v27 = vld [vmem:[%s1167_s29 + $0x360] sm:$0xff] }
  0x2b   : > { %v358_v28 = vld [vmem:[%s1167_s29 + $0x380] sm:$0xff]  ;;  %357 = vst [vmem:[%s1172_s30 + $0xd8] sm:$0xff] %v356_v27 }
  0x2c   : > { %v360_v29 = vld [vmem:[%s1167_s29 + $0x3a0] sm:$0xff]  ;;  %359 = vst [vmem:[%s1172_s30 + $0xe0] sm:$0xff] %v358_v28 }
  0x2d   : > { %361 = vst [vmem:[%s1172_s30 + $0xe8] sm:$0xff] %v360_v29  ;;  %v362_v30 = vld [vmem:[%s1167_s29 + $0x3c0] sm:$0xff] }
  0x2e   : > { %v364_v31 = vld [vmem:[%s1167_s29 + $0x3e0] sm:$0xff]  ;;  %363 = vst [vmem:[%s1172_s30 + $0xf0] sm:$0xff] %v362_v30 }
  0x2f   : > { %365 = vst [vmem:[%s1172_s30 + $0xf8] sm:$0xff] %v364_v31 }
  0x30 PF: > { %p923_p6 = scmp.ge.s32.totalorder %s1097_s19, 1  ;;  %p391_p7 = scmp.lt.s32.totalorder %s1097_s19, 5 }
  0x32   : > { %p392_p8 = pnand %p923_p6, %p391_p7 }
  0x33   : > { %s398_s5 = sand.u32 (!%p392_p8), 1, %s1081_s15   ;;  %s925_s10 = sshll.u32 (!%p392_p8), %s1089_s17, 1 }
  0x34   : > { %395 = sbr.rel (%p392_p8) target bundleno = 326 (0x146), region = 70  ;;  %s924_s8 = sshll.u32 (!%p392_p8), %s398_s5, 8 }
  0x35   : > { %s1245_s9 = scalar_lea.vmem (!%p392_p8), [#allocation3], %s924_s8  ;;  %p462_p9 = scmp.lt.s32.totalorder (!%p392_p8), %s925_s10, 7 }
  0x39   : > { %v1241_v32 = vld [vmem:[%s1306_s0] sm:$0xff]  ;;  %v1009_v34 = vld [vmem:[%s1245_s9 + $0x74] ss:$8 sps:$4 sm:$0xff]   ;;  %v1011_v35 = vld [vmem:[%s1245_s9 + $0x70] ss:$8 sps:$4 sm:$0xff]   ;;  %v746_v3 = vlaneseq  ;;  %s1318_s10 = smov (!%p462_p9, %s925_s10), 7 }
  0x3a   : > { %v931_v33 = vcombine.high %v1241_v32, %v1241_v32  ;;  %694 = vmatprep.subr.bf16.mxu0 %v1009_v34  ;;  %v1012_v36 = vld [vmem:[%s1245_s9 + $0x64] ss:$8 sps:$4 sm:$0xff]   ;;  %v1014_v37 = vld [vmem:[%s1245_s9 + $0x60] ss:$8 sps:$4 sm:$0xff]   ;;  %v1015_v38 = vld [vmem:[%s1245_s9 + $0x54] ss:$8 sps:$4 sm:$0xff]   ;;  %v930_v2 = vcombine.low %v1241_v32, %v1241_v32  ;;  %s464_s14 = scalar_lea.vmem %s1308_s2, %s1318_s10 }
  0x3b   : > { %695 = vmatpush1.bf16.msra.mxu0 %v1011_v35  ;;  %v1017_v39 = vld [vmem:[%s1245_s9 + $0x50] ss:$8 sps:$4 sm:$0xff]   ;;  %v1018_v40 = vld [vmem:[%s1245_s9 + $0x44] ss:$8 sps:$4 sm:$0xff]   ;;  %v1020_v41 = vld [vmem:[%s1245_s9 + $0x40] ss:$8 sps:$4 sm:$0xff]  }
  0x3c   : > { %726 = vmatprep.mubr.bf16.mxu0 %v931_v33  ;;  %696 = vmatprep.subr.bf16.mxu0 %v1012_v36  ;;  %v1021_v42 = vld [vmem:[%s1245_s9 + $0x34] ss:$8 sps:$4 sm:$0xff]   ;;  %v1023_v43 = vld [vmem:[%s1245_s9 + $0x30] ss:$8 sps:$4 sm:$0xff]   ;;  %v1024_v44 = vld [vmem:[%s1245_s9 + $0x24] ss:$8 sps:$4 sm:$0xff]  }
  0x3d   : > { %v1026_v45 = vld [vmem:[%s1245_s9 + $0x20] ss:$8 sps:$4 sm:$0xff]   ;;  %v1027_v46 = vld [vmem:[%s1245_s9 + $0x14] ss:$8 sps:$4 sm:$0xff]   ;;  %v1029_v47 = vld [vmem:[%s1245_s9 + $0x10] ss:$8 sps:$4 sm:$0xff]  }
  0x3e   : > { %v1030_v48 = vld [vmem:[%s1245_s9 + $0x4] ss:$8 sps:$4 sm:$0xff]   ;;  %v1032_v49 = vld [vmem:[%s1245_s9] ss:$8 sps:$4 sm:$0xff]   ;;  %v1033_v50 = vld [vmem:[%s1245_s9 + $0xf4] ss:$8 sps:$4 sm:$0xff]  }
  0x3f   : > { %697 = vmatpush1.bf16.msra.mxu0 %v1014_v37  ;;  %v1035_v51 = vld [vmem:[%s1245_s9 + $0xf0] ss:$8 sps:$4 sm:$0xff]   ;;  %v1036_v52 = vld [vmem:[%s1245_s9 + $0xe4] ss:$8 sps:$4 sm:$0xff]   ;;  %v1038_v53 = vld [vmem:[%s1245_s9 + $0xe0] ss:$8 sps:$4 sm:$0xff]  }
  0x40   : > { %698 = vmatprep.subr.bf16.mxu0 %v1015_v38  ;;  %v1039_v54 = vld [vmem:[%s1245_s9 + $0xd4] ss:$8 sps:$4 sm:$0xff]   ;;  %v1041_v55 = vld [vmem:[%s1245_s9 + $0xd0] ss:$8 sps:$4 sm:$0xff]   ;;  %v1042_v56 = vld [vmem:[%s1245_s9 + $0xc4] ss:$8 sps:$4 sm:$0xff]  }
  0x41   : > { %v1044_v57 = vld [vmem:[%s1245_s9 + $0xc0] ss:$8 sps:$4 sm:$0xff]   ;;  %v1045_v58 = vld [vmem:[%s1245_s9 + $0xb4] ss:$8 sps:$4 sm:$0xff]   ;;  %v1047_v59 = vld [vmem:[%s1245_s9 + $0xb0] ss:$8 sps:$4 sm:$0xff]  }
  0x42   : > { %v1048_v60 = vld [vmem:[%s1245_s9 + $0xa4] ss:$8 sps:$4 sm:$0xff]   ;;  %v1050_v61 = vld [vmem:[%s1245_s9 + $0xa0] ss:$8 sps:$4 sm:$0xff]   ;;  %v1051_v62 = vld [vmem:[%s1245_s9 + $0x94] ss:$8 sps:$4 sm:$0xff]  }
  0x43   : > { %699 = vmatpush1.bf16.msra.mxu0 %v1017_v39  ;;  %v1053_v63 = vld [vmem:[%s1245_s9 + $0x90] ss:$8 sps:$4 sm:$0xff]   ;;  %v1054_v0 = vld [vmem:[%s1245_s9 + $0x84] ss:$8 sps:$4 sm:$0xff]   ;;  %v1056_v1 = vld [vmem:[%s1245_s9 + $0x80] ss:$8 sps:$4 sm:$0xff]  }
  0x44   : > { %700 = vmatprep.subr.bf16.mxu0 %v1018_v40  ;;  %v747_v4 = vshrl.u32 %v746_v3, 7  ;;  %s927_s11 = sshll.u32 %s1318_s10, 2  ;;  %v744_v6 = vld [vmem:[%s464_s14] sm:$0x3] }
  0x45   : > { %s474_s22 = scalar_lea.vmem %s1309_s3, %s927_s11  ;;  %s484_s25 = scalar_lea.vmem %s1310_s4, %s927_s11 }
  0x46   : > { %v748_v5 = vsub.s32 0, %v747_v4  ;;  %v752_v7 = vsub.s32 1, %v747_v4  ;;  %v758_v8 = vld [vmem:[%s474_s22] sm:$0xff] }
  0x47   : > { %701 = vmatpush1.bf16.msra.mxu0 %v1020_v41  ;;  %v759_v10 = vunpack.c.l.bf16 %v758_v8  ;;  %v760_v14 = vunpack.c.h.bf16 %v758_v8 }
  0x48   : > { %702 = vmatprep.subr.bf16.mxu0 %v1021_v42  ;;  %v749_v9 = vrot.slane %v744_v6, %v748_v5  ;;  %v753_v11 = vrot.slane %v744_v6, %v752_v7 }
  0x4b   : > { %703 = vmatpush1.bf16.msra.mxu0 %v1023_v43 }
  0x4c   : > { %704 = vmatprep.subr.bf16.mxu0 %v1024_v44 }
  0x4f   : > { %705 = vmatpush1.bf16.msra.mxu0 %v1026_v45 }
  0x50   : > { %706 = vmatprep.subr.bf16.mxu0 %v1027_v46 }
  0x53   : > { %707 = vmatpush1.bf16.msra.mxu0 %v1029_v47 }
  0x54   : > { %708 = vmatprep.subr.bf16.mxu0 %v1030_v48 }
  0x57   : > { %709 = vmatpush1.bf16.msra.mxu0 %v1032_v49 }
  0x58   : > { %710 = vmatprep.subr.bf16.mxu0 %v1033_v50 }
  0x5b   : > { %711 = vmatpush2.bf16.msra.mxu0 %v1035_v51 }
  0x5c   : > { %712 = vmatprep.subr.bf16.mxu0 %v1036_v52 }
  0x5f   : > { %713 = vmatpush2.bf16.msra.mxu0 %v1038_v53 }
  0x60   : > { %714 = vmatprep.subr.bf16.mxu0 %v1039_v54 }
  0x63   : > { %715 = vmatpush2.bf16.msra.mxu0 %v1041_v55 }
  0x64   : > { %716 = vmatprep.subr.bf16.mxu0 %v1042_v56 }
  0x67   : > { %717 = vmatpush2.bf16.msra.mxu0 %v1044_v57 }
  0x68   : > { %718 = vmatprep.subr.bf16.mxu0 %v1045_v58 }
  0x6b   : > { %719 = vmatpush2.bf16.msra.mxu0 %v1047_v59 }
  0x6c   : > { %720 = vmatprep.subr.bf16.mxu0 %v1048_v60 }
  0x6f   : > { %721 = vmatpush2.bf16.msra.mxu0 %v1050_v61 }
  0x70   : > { %722 = vmatprep.subr.bf16.mxu0 %v1051_v62 }
  0x73   : > { %723 = vmatpush2.bf16.msra.mxu0 %v1053_v63 }
  0x74   : > { %724 = vmatprep.subr.bf16.mxu0 %v1054_v0 }
  0x77   : > { %725 = vmatpush2.bf16.msra.mxu0 %v1056_v1 }
  0x7a   : > { %727 = vmatmul.mubr.bf16.vlgmr.msra.gmra.mxu0 %v930_v2 }
 0x13a   : > { %v728_v12 = vpop.f32.mrf.mxu0 }
 0x13b   : > { %v756_v13 = vadd.f32 %v749_v9, %v728_v12 }
 0x13c   : > { %v730_v15 = vpop.f32.mrf.mxu0 }
 0x13d   : > { %v761_v16 = vadd.f32 %v759_v10, %v756_v13  ;;  %v757_v17 = vadd.f32 %v753_v11, %v730_v15 }
 0x13e   : > { %v732_v18 = vpop.f32.mrf.mxu0 }
 0x13f   : > { %v762_v19 = vadd.f32 %v760_v14, %v757_v17  ;;  %v763_v21 = vmax.f32 %v761_v16, 0.0 }
 0x140   : > { %v733_v20 = vpop.f32.mrf.mxu0 }
 0x141   : > { %v764_v22 = vmax.f32 %v762_v19, 0.0 }
 0x143   : > { %v968_v23 = vpack.c.bf16 %v764_v22, %v763_v21 }
 0x145   : > { %773 = vst [vmem:[%s484_s25] sm:$0xff] %v968_v23 }
 0x146 PF: > { %s14_s19 = sadd.s32 1, %s1097_s19   ;;  %s1311_s15 = smov %s1085_s16 }
 0x147   : > { %p11_p10 = scmp.ge.s32.totalorder %s14_s19, 6   ;;  %s1312_s16 = smov %s1159_s23 }
 0x148   : > { %s1313_s17 = smov %s1093_s18  ;;  %s1314_s18 = smov %s1316_s20 }
 0x149   :  { %13 = sbr.rel (!%p11_p10) target bundleno = 3 (0x3), region = 126 }

// kernel: forward.31
= control target key start
LH: loop header
LB: loop body
LE: loop exit
PB: predicated region body
PF: predicated region fallthrough
CT: control target
= control target key end

     0   :  { %s1524_s12 = smov 0   ;;  %s1526_s13 = smov 0   ;;  %s1835_s0 = inlined_call_operand.vmem [shape: bf16[8,1024], index: 0, kind: input, shape index: {}]   ;;  %s1836_s1 = inlined_call_operand.vmem [shape: bf16[1024,512], index: 1, kind: input, shape index: {}]   ;;  %s1837_s2 = inlined_call_operand.vmem [shape: f32[1,512], index: 2, kind: input, shape index: {}]   ;;  %s1838_s3 = inlined_call_operand.vmem [shape: bf16[8,512], index: 3, kind: output, shape index: {}]  }
   0x1   :  { %s1528_s14 = smov 0   ;;  %s1530_s15 = smov 0  }
   0x2   :  { %s1532_s16 = smov 0   ;;  %s1534_s17 = smov 0  }
   0x3   :  { %s1536_s18 = smov 0  }
   0x4 LB: > { %s25_s19 = sadd.s32 1, %s1493_s16  ;;  %s28_s20 = sadd.s32 1, %s1497_s17  ;;  %s1501_s18 = sphi %s1536_s18, %s13_s18   ;;  %s1497_s17 = sphi %s1534_s17, %s1844_s17   ;;  %s1493_s16 = sphi %s1532_s16, %s1843_s16   ;;  %s1489_s15 = sphi %s1530_s15, %s1842_s15   ;;  %s1485_s14 = sphi %s1528_s14, %s1841_s14   ;;  %s1481_s13 = sphi %s1526_s13, %s1840_s13   ;;  %s1477_s12 = sphi %s1524_s12, %s1839_s12  }
   0x5   : > { %p26_p0 = scmp.ge.s32.totalorder %s25_s19, 2  ;;  %p76_p1 = scmp.ne.s32.totalorder %s1481_s13, %s1477_s12 }
   0x6   : > { %p77_p2 = scmp.eq.s32.totalorder %s1501_s18, 0  ;;  %s69_s24 = sadd.s32 1, %s1481_s13 }
   0x7   : > { %s1846_s19 = smov (%p26_p0, %s25_s19), 0  ;;  %s1848_s20 = smov (!%p26_p0, %s28_s20), %s1497_s17 }
   0x8   : > { %p78_p3 = por %p77_p2, %p76_p1  ;;  %p30_p4 = scmp.ge.s32.totalorder %s1848_s20, 2 }
   0x9   : > { %s64_s21 = ssub.s32 %s1493_s16, %s1846_s19  ;;  %p1202_p6 = scmp.ge.s32.totalorder %s1501_s18, 4 }
   0xa   : > { %s1850_s20 = smov (%p30_p4, %s1848_s20), 0 }
   0xb   : > { %s65_s22 = ssub.s32 %s1497_s17, %s1850_s20  ;;  %156 = sbr.rel (%p1202_p6) target bundleno = 55 (0x37), region = 16 }
   0xc   : > { %s66_s23 = sor.u32 %s65_s22, %s64_s21 }
   0xd   : > { %p67_p5 = scmp.eq.s32.totalorder %s66_s23, 0 }
   0xf   : > { %s1575_s25 = scalar_select %p67_p5, %s1481_s13, %s69_s24  }
  0x10   : > { %172 = sbr.rel (!%p78_p3) target bundleno = 55 (0x37), region = 24  ;;  %s174_s26 = sand.u32 (%p78_p3), 1, %s1481_s13  }
  0x11   : > { %s1205_s27 = sshll.u32 (%p78_p3), %s1497_s17, 1  ;;  %s1203_s28 = sshll.u32 (%p78_p3), %s174_s26, 9 }
  0x12   : > { %s1288_s29 = sshll.u32 (%p78_p3), %s1493_s16, 8  ;;  %s1589_s8 = scalar_lea.vmem (%p78_p3), [#allocation3], %s1203_s28 }
  0x13   : > { %s180_s30 = sadd.s32 (%p78_p3), %s1288_s29, %s1205_s27 }
  0x14   : > { %s1207_s4 = sshll.u32 (%p78_p3), %s180_s30, 2 }
  0x15   : > { %s1584_s7 = scalar_lea.vmem %s1836_s1, %s1207_s4 }
  0x16   : > { %v337_v0 = vld [vmem:[%s1584_s7] sm:$0xff]  ;;  %v339_v1 = vld [vmem:[%s1584_s7 + $0x10] sm:$0xff] }
  0x17   : > { %v341_v2 = vld [vmem:[%s1584_s7 + $0x20] sm:$0xff]  ;;  %338 = vst [vmem:[%s1589_s8] sm:$0xff] %v337_v0  ;;  %340 = vst [vmem:[%s1589_s8 + $0x8] sm:$0xff] %v339_v1  ;;  %v343_v3 = vld [vmem:[%s1584_s7 + $0x30] sm:$0xff] }
  0x18   : > { %342 = vst [vmem:[%s1589_s8 + $0x10] sm:$0xff] %v341_v2  ;;  %v345_v4 = vld [vmem:[%s1584_s7 + $0x40] sm:$0xff]  ;;  %v347_v5 = vld [vmem:[%s1584_s7 + $0x50] sm:$0xff]  ;;  %344 = vst [vmem:[%s1589_s8 + $0x18] sm:$0xff] %v343_v3 }
  0x19   : > { %346 = vst [vmem:[%s1589_s8 + $0x20] sm:$0xff] %v345_v4  ;;  %348 = vst [vmem:[%s1589_s8 + $0x28] sm:$0xff] %v347_v5  ;;  %v349_v6 = vld [vmem:[%s1584_s7 + $0x60] sm:$0xff]  ;;  %v351_v7 = vld [vmem:[%s1584_s7 + $0x70] sm:$0xff] }
  0x1a   : > { %v353_v8 = vld [vmem:[%s1584_s7 + $0x80] sm:$0xff]  ;;  %350 = vst [vmem:[%s1589_s8 + $0x30] sm:$0xff] %v349_v6  ;;  %352 = vst [vmem:[%s1589_s8 + $0x38] sm:$0xff] %v351_v7  ;;  %v355_v9 = vld [vmem:[%s1584_s7 + $0x90] sm:$0xff] }
  0x1b   : > { %354 = vst [vmem:[%s1589_s8 + $0x40] sm:$0xff] %v353_v8  ;;  %v357_v10 = vld [vmem:[%s1584_s7 + $0xa0] sm:$0xff]  ;;  %v359_v11 = vld [vmem:[%s1584_s7 + $0xb0] sm:$0xff]  ;;  %356 = vst [vmem:[%s1589_s8 + $0x48] sm:$0xff] %v355_v9 }
  0x1c   : > { %358 = vst [vmem:[%s1589_s8 + $0x50] sm:$0xff] %v357_v10  ;;  %360 = vst [vmem:[%s1589_s8 + $0x58] sm:$0xff] %v359_v11  ;;  %v361_v12 = vld [vmem:[%s1584_s7 + $0xc0] sm:$0xff]  ;;  %v363_v13 = vld [vmem:[%s1584_s7 + $0xd0] sm:$0xff] }
  0x1d   : > { %v365_v14 = vld [vmem:[%s1584_s7 + $0xe0] sm:$0xff]  ;;  %362 = vst [vmem:[%s1589_s8 + $0x60] sm:$0xff] %v361_v12  ;;  %364 = vst [vmem:[%s1589_s8 + $0x68] sm:$0xff] %v363_v13  ;;  %v367_v15 = vld [vmem:[%s1584_s7 + $0xf0] sm:$0xff] }
  0x1e   : > { %366 = vst [vmem:[%s1589_s8 + $0x70] sm:$0xff] %v365_v14  ;;  %v369_v16 = vld [vmem:[%s1584_s7 + $0x100] sm:$0xff]  ;;  %v371_v17 = vld [vmem:[%s1584_s7 + $0x110] sm:$0xff]  ;;  %368 = vst [vmem:[%s1589_s8 + $0x78] sm:$0xff] %v367_v15 }
  0x1f   : > { %370 = vst [vmem:[%s1589_s8 + $0x80] sm:$0xff] %v369_v16  ;;  %372 = vst [vmem:[%s1589_s8 + $0x88] sm:$0xff] %v371_v17  ;;  %v373_v18 = vld [vmem:[%s1584_s7 + $0x120] sm:$0xff]  ;;  %v375_v19 = vld [vmem:[%s1584_s7 + $0x130] sm:$0xff] }
  0x20   : > { %v377_v20 = vld [vmem:[%s1584_s7 + $0x140] sm:$0xff]  ;;  %374 = vst [vmem:[%s1589_s8 + $0x90] sm:$0xff] %v373_v18  ;;  %376 = vst [vmem:[%s1589_s8 + $0x98] sm:$0xff] %v375_v19  ;;  %v379_v21 = vld [vmem:[%s1584_s7 + $0x150] sm:$0xff] }
  0x21   : > { %378 = vst [vmem:[%s1589_s8 + $0xa0] sm:$0xff] %v377_v20  ;;  %v381_v22 = vld [vmem:[%s1584_s7 + $0x160] sm:$0xff]  ;;  %v383_v23 = vld [vmem:[%s1584_s7 + $0x170] sm:$0xff]  ;;  %380 = vst [vmem:[%s1589_s8 + $0xa8] sm:$0xff] %v379_v21 }
  0x22   : > { %382 = vst [vmem:[%s1589_s8 + $0xb0] sm:$0xff] %v381_v22  ;;  %384 = vst [vmem:[%s1589_s8 + $0xb8] sm:$0xff] %v383_v23  ;;  %v385_v24 = vld [vmem:[%s1584_s7 + $0x180] sm:$0xff]  ;;  %v387_v25 = vld [vmem:[%s1584_s7 + $0x190] sm:$0xff] }
  0x23   : > { %v389_v26 = vld [vmem:[%s1584_s7 + $0x1a0] sm:$0xff]  ;;  %386 = vst [vmem:[%s1589_s8 + $0xc0] sm:$0xff] %v385_v24  ;;  %388 = vst [vmem:[%s1589_s8 + $0xc8] sm:$0xff] %v387_v25  ;;  %v391_v27 = vld [vmem:[%s1584_s7 + $0x1b0] sm:$0xff] }
  0x24   : > { %390 = vst [vmem:[%s1589_s8 + $0xd0] sm:$0xff] %v389_v26  ;;  %v393_v28 = vld [vmem:[%s1584_s7 + $0x1c0] sm:$0xff]  ;;  %v395_v29 = vld [vmem:[%s1584_s7 + $0x1d0] sm:$0xff]  ;;  %392 = vst [vmem:[%s1589_s8 + $0xd8] sm:$0xff] %v391_v27 }
  0x25   : > { %394 = vst [vmem:[%s1589_s8 + $0xe0] sm:$0xff] %v393_v28  ;;  %396 = vst [vmem:[%s1589_s8 + $0xe8] sm:$0xff] %v395_v29  ;;  %v397_v30 = vld [vmem:[%s1584_s7 + $0x1e0] sm:$0xff]  ;;  %v399_v31 = vld [vmem:[%s1584_s7 + $0x1f0] sm:$0xff] }
  0x26   : > { %v401_v32 = vld [vmem:[%s1584_s7 + $0x200] sm:$0xff]  ;;  %398 = vst [vmem:[%s1589_s8 + $0xf0] sm:$0xff] %v397_v30  ;;  %400 = vst [vmem:[%s1589_s8 + $0xf8] sm:$0xff] %v399_v31  ;;  %v403_v33 = vld [vmem:[%s1584_s7 + $0x210] sm:$0xff] }
  0x27   : > { %402 = vst [vmem:[%s1589_s8 + $0x100] sm:$0xff] %v401_v32  ;;  %v405_v34 = vld [vmem:[%s1584_s7 + $0x220] sm:$0xff]  ;;  %v407_v35 = vld [vmem:[%s1584_s7 + $0x230] sm:$0xff]  ;;  %404 = vst [vmem:[%s1589_s8 + $0x108] sm:$0xff] %v403_v33 }
  0x28   : > { %406 = vst [vmem:[%s1589_s8 + $0x110] sm:$0xff] %v405_v34  ;;  %408 = vst [vmem:[%s1589_s8 + $0x118] sm:$0xff] %v407_v35  ;;  %v409_v36 = vld [vmem:[%s1584_s7 + $0x240] sm:$0xff]  ;;  %v411_v37 = vld [vmem:[%s1584_s7 + $0x250] sm:$0xff] }
  0x29   : > { %v413_v38 = vld [vmem:[%s1584_s7 + $0x260] sm:$0xff]  ;;  %410 = vst [vmem:[%s1589_s8 + $0x120] sm:$0xff] %v409_v36  ;;  %412 = vst [vmem:[%s1589_s8 + $0x128] sm:$0xff] %v411_v37  ;;  %v415_v39 = vld [vmem:[%s1584_s7 + $0x270] sm:$0xff] }
  0x2a   : > { %414 = vst [vmem:[%s1589_s8 + $0x130] sm:$0xff] %v413_v38  ;;  %v417_v40 = vld [vmem:[%s1584_s7 + $0x280] sm:$0xff]  ;;  %v419_v41 = vld [vmem:[%s1584_s7 + $0x290] sm:$0xff]  ;;  %416 = vst [vmem:[%s1589_s8 + $0x138] sm:$0xff] %v415_v39 }
  0x2b   : > { %418 = vst [vmem:[%s1589_s8 + $0x140] sm:$0xff] %v417_v40  ;;  %420 = vst [vmem:[%s1589_s8 + $0x148] sm:$0xff] %v419_v41  ;;  %v421_v42 = vld [vmem:[%s1584_s7 + $0x2a0] sm:$0xff]  ;;  %v423_v43 = vld [vmem:[%s1584_s7 + $0x2b0] sm:$0xff] }
  0x2c   : > { %v425_v44 = vld [vmem:[%s1584_s7 + $0x2c0] sm:$0xff]  ;;  %422 = vst [vmem:[%s1589_s8 + $0x150] sm:$0xff] %v421_v42  ;;  %424 = vst [vmem:[%s1589_s8 + $0x158] sm:$0xff] %v423_v43  ;;  %v427_v45 = vld [vmem:[%s1584_s7 + $0x2d0] sm:$0xff] }
  0x2d   : > { %426 = vst [vmem:[%s1589_s8 + $0x160] sm:$0xff] %v425_v44  ;;  %v429_v46 = vld [vmem:[%s1584_s7 + $0x2e0] sm:$0xff]  ;;  %v431_v47 = vld [vmem:[%s1584_s7 + $0x2f0] sm:$0xff]  ;;  %428 = vst [vmem:[%s1589_s8 + $0x168] sm:$0xff] %v427_v45 }
  0x2e   : > { %430 = vst [vmem:[%s1589_s8 + $0x170] sm:$0xff] %v429_v46  ;;  %432 = vst [vmem:[%s1589_s8 + $0x178] sm:$0xff] %v431_v47  ;;  %v433_v48 = vld [vmem:[%s1584_s7 + $0x300] sm:$0xff]  ;;  %v435_v49 = vld [vmem:[%s1584_s7 + $0x310] sm:$0xff] }
  0x2f   : > { %v437_v50 = vld [vmem:[%s1584_s7 + $0x320] sm:$0xff]  ;;  %434 = vst [vmem:[%s1589_s8 + $0x180] sm:$0xff] %v433_v48  ;;  %436 = vst [vmem:[%s1589_s8 + $0x188] sm:$0xff] %v435_v49  ;;  %v439_v51 = vld [vmem:[%s1584_s7 + $0x330] sm:$0xff] }
  0x30   : > { %438 = vst [vmem:[%s1589_s8 + $0x190] sm:$0xff] %v437_v50  ;;  %v441_v52 = vld [vmem:[%s1584_s7 + $0x340] sm:$0xff]  ;;  %v443_v53 = vld [vmem:[%s1584_s7 + $0x350] sm:$0xff]  ;;  %440 = vst [vmem:[%s1589_s8 + $0x198] sm:$0xff] %v439_v51 }
  0x31   : > { %442 = vst [vmem:[%s1589_s8 + $0x1a0] sm:$0xff] %v441_v52  ;;  %444 = vst [vmem:[%s1589_s8 + $0x1a8] sm:$0xff] %v443_v53  ;;  %v445_v54 = vld [vmem:[%s1584_s7 + $0x360] sm:$0xff]  ;;  %v447_v55 = vld [vmem:[%s1584_s7 + $0x370] sm:$0xff] }
  0x32   : > { %v449_v56 = vld [vmem:[%s1584_s7 + $0x380] sm:$0xff]  ;;  %446 = vst [vmem:[%s1589_s8 + $0x1b0] sm:$0xff] %v445_v54  ;;  %448 = vst [vmem:[%s1589_s8 + $0x1b8] sm:$0xff] %v447_v55  ;;  %v451_v57 = vld [vmem:[%s1584_s7 + $0x390] sm:$0xff] }
  0x33   : > { %450 = vst [vmem:[%s1589_s8 + $0x1c0] sm:$0xff] %v449_v56  ;;  %v453_v58 = vld [vmem:[%s1584_s7 + $0x3a0] sm:$0xff]  ;;  %v455_v59 = vld [vmem:[%s1584_s7 + $0x3b0] sm:$0xff]  ;;  %452 = vst [vmem:[%s1589_s8 + $0x1c8] sm:$0xff] %v451_v57 }
  0x34   : > { %454 = vst [vmem:[%s1589_s8 + $0x1d0] sm:$0xff] %v453_v58  ;;  %456 = vst [vmem:[%s1589_s8 + $0x1d8] sm:$0xff] %v455_v59  ;;  %v457_v60 = vld [vmem:[%s1584_s7 + $0x3c0] sm:$0xff]  ;;  %v459_v61 = vld [vmem:[%s1584_s7 + $0x3d0] sm:$0xff] }
  0x35   : > { %v461_v62 = vld [vmem:[%s1584_s7 + $0x3e0] sm:$0xff]  ;;  %458 = vst [vmem:[%s1589_s8 + $0x1e0] sm:$0xff] %v457_v60  ;;  %460 = vst [vmem:[%s1589_s8 + $0x1e8] sm:$0xff] %v459_v61  ;;  %v463_v63 = vld [vmem:[%s1584_s7 + $0x3f0] sm:$0xff] }
  0x36   : > { %462 = vst [vmem:[%s1589_s8 + $0x1f0] sm:$0xff] %v461_v62  ;;  %464 = vst [vmem:[%s1589_s8 + $0x1f8] sm:$0xff] %v463_v63 }
  0x37 PF: > { %p1208_p7 = scmp.ge.s32.totalorder %s1501_s18, 1  ;;  %p477_p8 = scmp.lt.s32.totalorder %s1501_s18, 5 }
  0x39   : > { %p478_p9 = pnand %p1208_p7, %p477_p8 }
  0x3a   : > { %s484_s9 = sand.u32 (!%p478_p9), 1, %s1477_s12   ;;  %s1210_s10 = sshll.u32 (!%p478_p9), %s1485_s14, 2 }
  0x3b   : > { %481 = sbr.rel (%p478_p9) target bundleno = 355 (0x163), region = 66  ;;  %s1209_s11 = sshll.u32 (!%p478_p9), %s484_s9, 9 }
  0x3c   : > { %p527_p10 = scmp.lt.s32.totalorder (!%p478_p9), %s1210_s10, 7  ;;  %s1212_s21 = sshll.u32 (!%p478_p9), %s1489_s15, 1 }
  0x3d   : > { %p537_p11 = scmp.lt.s32.totalorder (!%p478_p9), %s1212_s21, 3  ;;  %s1738_s5 = scalar_lea.vmem (!%p478_p9), [#allocation3], %s1209_s11 }
  0x3e   : > { %p1215_p12 = scmp.ne.s32.totalorder (!%p478_p9), %s1485_s14, 0 }
  0x40   : > { %s1852_s10 = smov (!%p527_p10, %s1210_s10), 7  ;;  %s1854_s21 = smov (!%p537_p11, %s1212_s21), 3 }
  0x41   : > { %s1211_s22 = sshll.u32 %s1852_s10, 2  ;;  %s539_s12 = scalar_lea.vmem %s1837_s2, %s1854_s21 }
  0x42   : > { %s1724_s26 = scalar_lea.vmem %s1835_s0, %s1211_s22  ;;  %s1214_s29 = sshll.u32 %s1854_s21, 2 }
  0x43   : > { %s1736_s15 = scalar_lea.vmem %s1838_s3, %s1214_s29  ;;  %554 = sbr.rel (%p1215_p12) target bundleno = 74 (0x4a), region = 74 }
  0x48   : > { %v1503_v0 = vmov 0.0  }
  0x49   : > { %555 = vst [vmem:[#allocation2] sm:$0xff] %v1503_v0  ;;  %556 = vst [vmem:[#allocation2 + $0x8] sm:$0xff] %v1503_v0 }
  0x4a PF: > { %v1347_v1 = vld [vmem:[%s1738_s5 + $0x74] ss:$8 sps:$4 sm:$0xff]   ;;  %v1351_v3 = vld [vmem:[%s1738_s5 + $0x70] ss:$8 sps:$4 sm:$0xff]   ;;  %v1353_v5 = vld [vmem:[%s1738_s5 + $0x64] ss:$8 sps:$4 sm:$0xff]  }
  0x4b   : > { %v1349_v2 = vld [vmem:[%s1738_s5 + $0x174] ss:$8 sps:$4 sm:$0xff]   ;;  %959 = vmatprep.subr.bf16.mxu0 %v1347_v1  ;;  %v1352_v4 = vld [vmem:[%s1738_s5 + $0x170] ss:$8 sps:$4 sm:$0xff]   ;;  %v1355_v6 = vld [vmem:[%s1738_s5 + $0x164] ss:$8 sps:$4 sm:$0xff]  }
  0x4c   : > { %1000 = vmatprep.subr.bf16.mxu1 %v1349_v2  ;;  %960 = vmatpush1.bf16.msra.mxu0 %v1351_v3  ;;  %v1357_v7 = vld [vmem:[%s1738_s5 + $0x60] ss:$8 sps:$4 sm:$0xff]   ;;  %v1359_v9 = vld [vmem:[%s1738_s5 + $0x54] ss:$8 sps:$4 sm:$0xff]   ;;  %v1363_v11 = vld [vmem:[%s1738_s5 + $0x50] ss:$8 sps:$4 sm:$0xff]  }
  0x4d   : > { %1001 = vmatpush1.bf16.msra.mxu1 %v1352_v4  ;;  %961 = vmatprep.subr.bf16.mxu0 %v1353_v5  ;;  %v1358_v8 = vld [vmem:[%s1738_s5 + $0x160] ss:$8 sps:$4 sm:$0xff]   ;;  %v1361_v10 = vld [vmem:[%s1738_s5 + $0x154] ss:$8 sps:$4 sm:$0xff]   ;;  %v1364_v12 = vld [vmem:[%s1738_s5 + $0x150] ss:$8 sps:$4 sm:$0xff]  }
  0x4e   : > { %1002 = vmatprep.subr.bf16.mxu1 %v1355_v6  ;;  %v1365_v13 = vld [vmem:[%s1738_s5 + $0x44] ss:$8 sps:$4 sm:$0xff]   ;;  %v1369_v15 = vld [vmem:[%s1738_s5 + $0x40] ss:$8 sps:$4 sm:$0xff]   ;;  %v1371_v17 = vld [vmem:[%s1738_s5 + $0x34] ss:$8 sps:$4 sm:$0xff]  }
  0x4f   : > { %v1367_v14 = vld [vmem:[%s1738_s5 + $0x144] ss:$8 sps:$4 sm:$0xff]   ;;  %v1370_v16 = vld [vmem:[%s1738_s5 + $0x140] ss:$8 sps:$4 sm:$0xff]   ;;  %v1373_v18 = vld [vmem:[%s1738_s5 + $0x134] ss:$8 sps:$4 sm:$0xff]  }
  0x50   : > { %962 = vmatpush1.bf16.msra.mxu0 %v1357_v7  ;;  %v1375_v19 = vld [vmem:[%s1738_s5 + $0x30] ss:$8 sps:$4 sm:$0xff]   ;;  %v1377_v21 = vld [vmem:[%s1738_s5 + $0x24] ss:$8 sps:$4 sm:$0xff]   ;;  %v1381_v23 = vld [vmem:[%s1738_s5 + $0x20] ss:$8 sps:$4 sm:$0xff]  }
  0x51   : > { %1003 = vmatpush1.bf16.msra.mxu1 %v1358_v8  ;;  %963 = vmatprep.subr.bf16.mxu0 %v1359_v9  ;;  %v1376_v20 = vld [vmem:[%s1738_s5 + $0x130] ss:$8 sps:$4 sm:$0xff]   ;;  %v1379_v22 = vld [vmem:[%s1738_s5 + $0x124] ss:$8 sps:$4 sm:$0xff]   ;;  %v1382_v24 = vld [vmem:[%s1738_s5 + $0x120] ss:$8 sps:$4 sm:$0xff]  }
  0x52   : > { %1004 = vmatprep.subr.bf16.mxu1 %v1361_v10  ;;  %v1383_v25 = vld [vmem:[%s1738_s5 + $0x14] ss:$8 sps:$4 sm:$0xff]   ;;  %v1387_v27 = vld [vmem:[%s1738_s5 + $0x10] ss:$8 sps:$4 sm:$0xff]   ;;  %v1389_v29 = vld [vmem:[%s1738_s5 + $0x4] ss:$8 sps:$4 sm:$0xff]  }
  0x53   : > { %v1385_v26 = vld [vmem:[%s1738_s5 + $0x114] ss:$8 sps:$4 sm:$0xff]   ;;  %v1388_v28 = vld [vmem:[%s1738_s5 + $0x110] ss:$8 sps:$4 sm:$0xff]   ;;  %v1391_v30 = vld [vmem:[%s1738_s5 + $0x104] ss:$8 sps:$4 sm:$0xff]  }
  0x54   : > { %964 = vmatpush1.bf16.msra.mxu0 %v1363_v11  ;;  %v1393_v31 = vld [vmem:[%s1738_s5] ss:$8 sps:$4 sm:$0xff]   ;;  %v1395_v33 = vld [vmem:[%s1738_s5 + $0xf4] ss:$8 sps:$4 sm:$0xff]   ;;  %v1399_v35 = vld [vmem:[%s1738_s5 + $0xf0] ss:$8 sps:$4 sm:$0xff]  }
  0x55   : > { %1005 = vmatpush1.bf16.msra.mxu1 %v1364_v12  ;;  %965 = vmatprep.subr.bf16.mxu0 %v1365_v13  ;;  %v1394_v32 = vld [vmem:[%s1738_s5 + $0x100] ss:$8 sps:$4 sm:$0xff]   ;;  %v1397_v34 = vld [vmem:[%s1738_s5 + $0x1f4] ss:$8 sps:$4 sm:$0xff]   ;;  %v1400_v36 = vld [vmem:[%s1738_s5 + $0x1f0] ss:$8 sps:$4 sm:$0xff]  }
  0x56   : > { %1006 = vmatprep.subr.bf16.mxu1 %v1367_v14  ;;  %v1401_v37 = vld [vmem:[%s1738_s5 + $0xe4] ss:$8 sps:$4 sm:$0xff]   ;;  %v1405_v39 = vld [vmem:[%s1738_s5 + $0xe0] ss:$8 sps:$4 sm:$0xff]   ;;  %v1407_v41 = vld [vmem:[%s1738_s5 + $0xd4] ss:$8 sps:$4 sm:$0xff]  }
  0x57   : > { %v1403_v38 = vld [vmem:[%s1738_s5 + $0x1e4] ss:$8 sps:$4 sm:$0xff]   ;;  %v1406_v40 = vld [vmem:[%s1738_s5 + $0x1e0] ss:$8 sps:$4 sm:$0xff]   ;;  %v1409_v42 = vld [vmem:[%s1738_s5 + $0x1d4] ss:$8 sps:$4 sm:$0xff]  }
  0x58   : > { %966 = vmatpush1.bf16.msra.mxu0 %v1369_v15  ;;  %v1411_v43 = vld [vmem:[%s1738_s5 + $0xd0] ss:$8 sps:$4 sm:$0xff]   ;;  %v1413_v45 = vld [vmem:[%s1738_s5 + $0xc4] ss:$8 sps:$4 sm:$0xff]   ;;  %v1417_v50 = vld [vmem:[%s1738_s5 + $0xc0] ss:$8 sps:$4 sm:$0xff]  }
  0x59   : > { %1007 = vmatpush1.bf16.msra.mxu1 %v1370_v16  ;;  %967 = vmatprep.subr.bf16.mxu0 %v1371_v17  ;;  %v1412_v44 = vld [vmem:[%s1738_s5 + $0x1d0] ss:$8 sps:$4 sm:$0xff]   ;;  %v1415_v46 = vld [vmem:[%s1738_s5 + $0x1c4] ss:$8 sps:$4 sm:$0xff]   ;;  %v1418_v51 = vld [vmem:[%s1738_s5 + $0x1c0] ss:$8 sps:$4 sm:$0xff]  }
  0x5a   : > { %1008 = vmatprep.subr.bf16.mxu1 %v1373_v18  ;;  %v559_v47 = vld [vmem:[%s1724_s26] sm:$0xff]  ;;  %v560_v49 = vld [vmem:[%s1724_s26 + $0x8] sm:$0xff]  ;;  %v1425_v57 = vld [vmem:[%s1738_s5 + $0xa4] ss:$8 sps:$4 sm:$0xff]   ;;  %p1284_p13 = scmp.ne.s32.totalorder %s1485_s14, 1 }
  0x5b   : > { %v1217_v48 = vcombine.high %v559_v47, %v559_v47  ;;  %v1219_v52 = vcombine.high %v560_v49, %v560_v49  ;;  %v1419_v53 = vld [vmem:[%s1738_s5 + $0xb4] ss:$8 sps:$4 sm:$0xff]   ;;  %v1423_v55 = vld [vmem:[%s1738_s5 + $0xb0] ss:$8 sps:$4 sm:$0xff]   ;;  %v1427_v58 = vld [vmem:[%s1738_s5 + $0x1a4] ss:$8 sps:$4 sm:$0xff]   ;;  %v1216_v5 = vcombine.low %v559_v47, %v559_v47  ;;  %v1218_v6 = vcombine.low %v560_v49, %v560_v49 }
  0x5c   : > { %968 = vmatpush1.bf16.msra.mxu0 %v1375_v19  ;;  %v1421_v54 = vld [vmem:[%s1738_s5 + $0x1b4] ss:$8 sps:$4 sm:$0xff]   ;;  %v1424_v56 = vld [vmem:[%s1738_s5 + $0x1b0] ss:$8 sps:$4 sm:$0xff]   ;;  %v1429_v59 = vld [vmem:[%s1738_s5 + $0xa0] ss:$8 sps:$4 sm:$0xff]  }
  0x5d   : > { %1009 = vmatpush1.bf16.msra.mxu1 %v1376_v20  ;;  %969 = vmatprep.subr.bf16.mxu0 %v1377_v21  ;;  %v1430_v60 = vld [vmem:[%s1738_s5 + $0x1a0] ss:$8 sps:$4 sm:$0xff]   ;;  %v1431_v61 = vld [vmem:[%s1738_s5 + $0x94] ss:$8 sps:$4 sm:$0xff]   ;;  %v1435_v63 = vld [vmem:[%s1738_s5 + $0x90] ss:$8 sps:$4 sm:$0xff]  }
  0x5e   : > { %1010 = vmatprep.subr.bf16.mxu1 %v1379_v22  ;;  %991 = vmatprep.mubr.bf16.mxu0 %v1217_v48  ;;  %v1433_v62 = vld [vmem:[%s1738_s5 + $0x194] ss:$8 sps:$4 sm:$0xff]   ;;  %v1436_v0 = vld [vmem:[%s1738_s5 + $0x190] ss:$8 sps:$4 sm:$0xff]   ;;  %v1437_v1 = vld [vmem:[%s1738_s5 + $0x84] ss:$8 sps:$4 sm:$0xff]  }
  0x5f   : > { %1032 = vmatprep.mubr.bf16.mxu1 %v1219_v52  ;;  %v1439_v2 = vld [vmem:[%s1738_s5 + $0x184] ss:$8 sps:$4 sm:$0xff]   ;;  %v1441_v3 = vld [vmem:[%s1738_s5 + $0x80] ss:$8 sps:$4 sm:$0xff]   ;;  %v557_v8 = vld [vmem:[#allocation2] sm:$0xff] }
  0x60   : > { %970 = vmatpush1.bf16.msra.mxu0 %v1381_v23  ;;  %v1442_v4 = vld [vmem:[%s1738_s5 + $0x180] ss:$8 sps:$4 sm:$0xff]   ;;  %v558_v12 = vld [vmem:[#allocation2 + $0x8] sm:$0xff] }
  0x61   : > { %1011 = vmatpush1.bf16.msra.mxu1 %v1382_v24  ;;  %971 = vmatprep.subr.bf16.mxu0 %v1383_v25 }
  0x62   : > { %1012 = vmatprep.subr.bf16.mxu1 %v1385_v26 }
  0x64   : > { %972 = vmatpush1.bf16.msra.mxu0 %v1387_v27 }
  0x65   : > { %1013 = vmatpush1.bf16.msra.mxu1 %v1388_v28  ;;  %973 = vmatprep.subr.bf16.mxu0 %v1389_v29 }
  0x66   : > { %1014 = vmatprep.subr.bf16.mxu1 %v1391_v30 }
  0x68   : > { %974 = vmatpush1.bf16.msra.mxu0 %v1393_v31 }
  0x69   : > { %1015 = vmatpush1.bf16.msra.mxu1 %v1394_v32  ;;  %975 = vmatprep.subr.bf16.mxu0 %v1395_v33 }
  0x6a   : > { %1016 = vmatprep.subr.bf16.mxu1 %v1397_v34 }
  0x6c   : > { %976 = vmatpush2.bf16.msra.mxu0 %v1399_v35 }
  0x6d   : > { %1017 = vmatpush2.bf16.msra.mxu1 %v1400_v36  ;;  %977 = vmatprep.subr.bf16.mxu0 %v1401_v37 }
  0x6e   : > { %1018 = vmatprep.subr.bf16.mxu1 %v1403_v38 }
  0x70   : > { %978 = vmatpush2.bf16.msra.mxu0 %v1405_v39 }
  0x71   : > { %1019 = vmatpush2.bf16.msra.mxu1 %v1406_v40  ;;  %979 = vmatprep.subr.bf16.mxu0 %v1407_v41 }
  0x72   : > { %1020 = vmatprep.subr.bf16.mxu1 %v1409_v42 }
  0x74   : > { %980 = vmatpush2.bf16.msra.mxu0 %v1411_v43 }
  0x75   : > { %1021 = vmatpush2.bf16.msra.mxu1 %v1412_v44  ;;  %981 = vmatprep.subr.bf16.mxu0 %v1413_v45 }
  0x76   : > { %1022 = vmatprep.subr.bf16.mxu1 %v1415_v46 }
  0x78   : > { %982 = vmatpush2.bf16.msra.mxu0 %v1417_v50 }
  0x79   : > { %1023 = vmatpush2.bf16.msra.mxu1 %v1418_v51  ;;  %983 = vmatprep.subr.bf16.mxu0 %v1419_v53 }
  0x7a   : > { %1024 = vmatprep.subr.bf16.mxu1 %v1421_v54 }
  0x7c   : > { %984 = vmatpush2.bf16.msra.mxu0 %v1423_v55 }
  0x7d   : > { %1025 = vmatpush2.bf16.msra.mxu1 %v1424_v56  ;;  %985 = vmatprep.subr.bf16.mxu0 %v1425_v57 }
  0x7e   : > { %1026 = vmatprep.subr.bf16.mxu1 %v1427_v58 }
  0x80   : > { %986 = vmatpush2.bf16.msra.mxu0 %v1429_v59 }
  0x81   : > { %1027 = vmatpush2.bf16.msra.mxu1 %v1430_v60  ;;  %987 = vmatprep.subr.bf16.mxu0 %v1431_v61 }
  0x82   : > { %1028 = vmatprep.subr.bf16.mxu1 %v1433_v62 }
  0x84   : > { %988 = vmatpush2.bf16.msra.mxu0 %v1435_v63 }
  0x85   : > { %1029 = vmatpush2.bf16.msra.mxu1 %v1436_v0  ;;  %989 = vmatprep.subr.bf16.mxu0 %v1437_v1 }
  0x86   : > { %1030 = vmatprep.subr.bf16.mxu1 %v1439_v2 }
  0x88   : > { %990 = vmatpush2.bf16.msra.mxu0 %v1441_v3 }
  0x89   : > { %1031 = vmatpush2.bf16.msra.mxu1 %v1442_v4 }
  0x8b   : > { %992 = vmatmul.mubr.bf16.vlgmr.msra.gmra.mxu0 %v1216_v5 }
  0x8c   : > { %1033 = vmatmul.mubr.bf16.vlgmr.msra.gmra.mxu1 %v1218_v6 }
 0x14b   : > { %v993_v7 = vpop.f32.mrf.mxu0 }
 0x14c   : > { %v1034_v9 = vpop.f32.mrf.mxu1 }
 0x14d   : > { %v1035_v10 = vadd.f32 %v1034_v9, %v993_v7  ;;  %v995_v11 = vpop.f32.mrf.mxu0 }
 0x14e   : > { %v1036_v13 = vpop.f32.mrf.mxu1 }
 0x14f   : > { %v1041_v14 = vadd.f32 %v1035_v10, %v557_v8  ;;  %v1037_v15 = vadd.f32 %v1036_v13, %v995_v11  ;;  %v997_v16 = vpop.f32.mrf.mxu0  ;;  %1048 = sbr.rel (%p1284_p13) target bundleno = 355 (0x163), region = 78 }
 0x150   : > { %v1038_v17 = vpop.f32.mrf.mxu1 }
 0x151   : > { %1043 = vst [vmem:[#allocation2] sm:$0xff] %v1041_v14  ;;  %v1042_v18 = vadd.f32 %v1037_v15, %v558_v12  ;;  %v998_v19 = vpop.f32.mrf.mxu0 }
 0x152   : > { %v1039_v20 = vpop.f32.mrf.mxu1 }
 0x153   : > { %1044 = vst [vmem:[#allocation2 + $0x8] sm:$0xff] %v1042_v18 }
 0x154   : > { %v1053_v21 = vlaneseq  ;;  %v1051_v23 = vld [vmem:[%s539_s12] sm:$0x3] }
 0x156   : > { %v1054_v22 = vshrl.u32 %v1053_v21, 7 }
 0x158   : > { %v1055_v24 = vsub.s32 0, %v1054_v22  ;;  %v1059_v25 = vsub.s32 1, %v1054_v22  ;;  %v1049_v26 = vld [vmem:[#allocation2] sm:$0xff] }
 0x15a   : > { %v1050_v27 = vld [vmem:[#allocation2 + $0x8] sm:$0xff]  ;;  %v1056_v28 = vrot.slane %v1051_v23, %v1055_v24  ;;  %v1060_v29 = vrot.slane %v1051_v23, %v1059_v25 }
 0x15c   : > { %v1063_v30 = vadd.f32 %v1056_v28, %v1049_v26  ;;  %v1064_v31 = vadd.f32 %v1060_v29, %v1050_v27 }
 0x15e   : > { %v1065_v32 = vmax.f32 %v1063_v30, 0.0  ;;  %v1066_v33 = vmax.f32 %v1064_v31, 0.0 }
 0x160   : > { %v1289_v34 = vpack.c.bf16 %v1066_v33, %v1065_v32 }
 0x162   : > { %1075 = vst [vmem:[%s1736_s15] sm:$0xff] %v1289_v34 }
 0x163 PF: > { %s13_s18 = sadd.s32 1, %s1501_s18   ;;  %s1839_s12 = smov %s1481_s13 }
 0x164   : > { %p10_p0 = scmp.ge.s32.totalorder %s13_s18, 6   ;;  %s1840_s13 = smov %s1575_s25 }
 0x165   : > { %s1841_s14 = smov %s1493_s16  ;;  %s1842_s15 = smov %s1497_s17 }
 0x166   : > { %s1843_s16 = smov %s1846_s19  ;;  %s1844_s17 = smov %s1850_s20 }
 0x167   :  { %12 = sbr.rel (!%p10_p0) target bundleno = 4 (0x4), region = 119 }

// kernel: forward.32
= control target key start
LH: loop header
LB: loop body
LE: loop exit
PB: predicated region body
PF: predicated region fallthrough
CT: control target
= control target key end

     0   :  { %s1524_s12 = smov 0   ;;  %s1526_s13 = smov 0   ;;  %s1835_s0 = inlined_call_operand.vmem [shape: bf16[8,4608], index: 0, kind: input, shape index: {}]   ;;  %s1836_s1 = inlined_call_operand.vmem [shape: bf16[4608,512], index: 1, kind: input, shape index: {}]   ;;  %s1837_s2 = inlined_call_operand.vmem [shape: f32[1,512], index: 2, kind: input, shape index: {}]   ;;  %s1838_s3 = inlined_call_operand.vmem [shape: bf16[8,512], index: 3, kind: output, shape index: {}]  }
   0x1   :  { %s1528_s14 = smov 0   ;;  %s1530_s15 = smov 0  }
   0x2   :  { %s1532_s16 = smov 0   ;;  %s1534_s17 = smov 0  }
   0x3   :  { %s1536_s18 = smov 0  }
   0x4 LB: > { %s25_s19 = sadd.s32 1, %s1493_s16  ;;  %s28_s20 = sadd.s32 1, %s1497_s17  ;;  %s1501_s18 = sphi %s1536_s18, %s13_s18   ;;  %s1497_s17 = sphi %s1534_s17, %s1844_s17   ;;  %s1493_s16 = sphi %s1532_s16, %s1843_s16   ;;  %s1489_s15 = sphi %s1530_s15, %s1842_s15   ;;  %s1485_s14 = sphi %s1528_s14, %s1841_s14   ;;  %s1481_s13 = sphi %s1526_s13, %s1840_s13   ;;  %s1477_s12 = sphi %s1524_s12, %s1839_s12  }
   0x5   : > { %p26_p0 = scmp.ge.s32.totalorder %s25_s19, 9  ;;  %p76_p1 = scmp.ne.s32.totalorder %s1481_s13, %s1477_s12 }
   0x6   : > { %p77_p2 = scmp.eq.s32.totalorder %s1501_s18, 0  ;;  %s69_s24 = sadd.s32 1, %s1481_s13 }
   0x7   : > { %s1846_s19 = smov (%p26_p0, %s25_s19), 0  ;;  %s1848_s20 = smov (!%p26_p0, %s28_s20), %s1497_s17 }
   0x8   : > { %p78_p3 = por %p77_p2, %p76_p1  ;;  %p30_p4 = scmp.ge.s32.totalorder %s1848_s20, 2 }
   0x9   : > { %s64_s21 = ssub.s32 %s1493_s16, %s1846_s19  ;;  %p1202_p6 = scmp.ge.s32.totalorder %s1501_s18, 18 }
   0xa   : > { %s1850_s20 = smov (%p30_p4, %s1848_s20), 0 }
   0xb   : > { %s65_s22 = ssub.s32 %s1497_s17, %s1850_s20  ;;  %156 = sbr.rel (%p1202_p6) target bundleno = 55 (0x37), region = 16 }
   0xc   : > { %s66_s23 = sor.u32 %s65_s22, %s64_s21 }
   0xd   : > { %p67_p5 = scmp.eq.s32.totalorder %s66_s23, 0 }
   0xf   : > { %s1575_s25 = scalar_select %p67_p5, %s1481_s13, %s69_s24  }
  0x10   : > { %172 = sbr.rel (!%p78_p3) target bundleno = 55 (0x37), region = 24  ;;  %s174_s26 = sand.u32 (%p78_p3), 1, %s1481_s13  }
  0x11   : > { %s1205_s27 = sshll.u32 (%p78_p3), %s1497_s17, 1  ;;  %s1203_s28 = sshll.u32 (%p78_p3), %s174_s26, 9 }
  0x12   : > { %s1288_s29 = sshll.u32 (%p78_p3), %s1493_s16, 8  ;;  %s1589_s8 = scalar_lea.vmem (%p78_p3), [#allocation3], %s1203_s28 }
  0x13   : > { %s180_s30 = sadd.s32 (%p78_p3), %s1288_s29, %s1205_s27 }
  0x14   : > { %s1207_s4 = sshll.u32 (%p78_p3), %s180_s30, 2 }
  0x15   : > { %s1584_s7 = scalar_lea.vmem %s1836_s1, %s1207_s4 }
  0x16   : > { %v337_v0 = vld [vmem:[%s1584_s7] sm:$0xff]  ;;  %v339_v1 = vld [vmem:[%s1584_s7 + $0x10] sm:$0xff] }
  0x17   : > { %v341_v2 = vld [vmem:[%s1584_s7 + $0x20] sm:$0xff]  ;;  %338 = vst [vmem:[%s1589_s8] sm:$0xff] %v337_v0  ;;  %340 = vst [vmem:[%s1589_s8 + $0x8] sm:$0xff] %v339_v1  ;;  %v343_v3 = vld [vmem:[%s1584_s7 + $0x30] sm:$0xff] }
  0x18   : > { %342 = vst [vmem:[%s1589_s8 + $0x10] sm:$0xff] %v341_v2  ;;  %v345_v4 = vld [vmem:[%s1584_s7 + $0x40] sm:$0xff]  ;;  %v347_v5 = vld [vmem:[%s1584_s7 + $0x50] sm:$0xff]  ;;  %344 = vst [vmem:[%s1589_s8 + $0x18] sm:$0xff] %v343_v3 }
  0x19   : > { %346 = vst [vmem:[%s1589_s8 + $0x20] sm:$0xff] %v345_v4  ;;  %348 = vst [vmem:[%s1589_s8 + $0x28] sm:$0xff] %v347_v5  ;;  %v349_v6 = vld [vmem:[%s1584_s7 + $0x60] sm:$0xff]  ;;  %v351_v7 = vld [vmem:[%s1584_s7 + $0x70] sm:$0xff] }
  0x1a   : > { %v353_v8 = vld [vmem:[%s1584_s7 + $0x80] sm:$0xff]  ;;  %350 = vst [vmem:[%s1589_s8 + $0x30] sm:$0xff] %v349_v6  ;;  %352 = vst [vmem:[%s1589_s8 + $0x38] sm:$0xff] %v351_v7  ;;  %v355_v9 = vld [vmem:[%s1584_s7 + $0x90] sm:$0xff] }
  0x1b   : > { %354 = vst [vmem:[%s1589_s8 + $0x40] sm:$0xff] %v353_v8  ;;  %v357_v10 = vld [vmem:[%s1584_s7 + $0xa0] sm:$0xff]  ;;  %v359_v11 = vld [vmem:[%s1584_s7 + $0xb0] sm:$0xff]  ;;  %356 = vst [vmem:[%s1589_s8 + $0x48] sm:$0xff] %v355_v9 }
  0x1c   : > { %358 = vst [vmem:[%s1589_s8 + $0x50] sm:$0xff] %v357_v10  ;;  %360 = vst [vmem:[%s1589_s8 + $0x58] sm:$0xff] %v359_v11  ;;  %v361_v12 = vld [vmem:[%s1584_s7 + $0xc0] sm:$0xff]  ;;  %v363_v13 = vld [vmem:[%s1584_s7 + $0xd0] sm:$0xff] }
  0x1d   : > { %v365_v14 = vld [vmem:[%s1584_s7 + $0xe0] sm:$0xff]  ;;  %362 = vst [vmem:[%s1589_s8 + $0x60] sm:$0xff] %v361_v12  ;;  %364 = vst [vmem:[%s1589_s8 + $0x68] sm:$0xff] %v363_v13  ;;  %v367_v15 = vld [vmem:[%s1584_s7 + $0xf0] sm:$0xff] }
  0x1e   : > { %366 = vst [vmem:[%s1589_s8 + $0x70] sm:$0xff] %v365_v14  ;;  %v369_v16 = vld [vmem:[%s1584_s7 + $0x100] sm:$0xff]  ;;  %v371_v17 = vld [vmem:[%s1584_s7 + $0x110] sm:$0xff]  ;;  %368 = vst [vmem:[%s1589_s8 + $0x78] sm:$0xff] %v367_v15 }
  0x1f   : > { %370 = vst [vmem:[%s1589_s8 + $0x80] sm:$0xff] %v369_v16  ;;  %372 = vst [vmem:[%s1589_s8 + $0x88] sm:$0xff] %v371_v17  ;;  %v373_v18 = vld [vmem:[%s1584_s7 + $0x120] sm:$0xff]  ;;  %v375_v19 = vld [vmem:[%s1584_s7 + $0x130] sm:$0xff] }
  0x20   : > { %v377_v20 = vld [vmem:[%s1584_s7 + $0x140] sm:$0xff]  ;;  %374 = vst [vmem:[%s1589_s8 + $0x90] sm:$0xff] %v373_v18  ;;  %376 = vst [vmem:[%s1589_s8 + $0x98] sm:$0xff] %v375_v19  ;;  %v379_v21 = vld [vmem:[%s1584_s7 + $0x150] sm:$0xff] }
  0x21   : > { %378 = vst [vmem:[%s1589_s8 + $0xa0] sm:$0xff] %v377_v20  ;;  %v381_v22 = vld [vmem:[%s1584_s7 + $0x160] sm:$0xff]  ;;  %v383_v23 = vld [vmem:[%s1584_s7 + $0x170] sm:$0xff]  ;;  %380 = vst [vmem:[%s1589_s8 + $0xa8] sm:$0xff] %v379_v21 }
  0x22   : > { %382 = vst [vmem:[%s1589_s8 + $0xb0] sm:$0xff] %v381_v22  ;;  %384 = vst [vmem:[%s1589_s8 + $0xb8] sm:$0xff] %v383_v23  ;;  %v385_v24 = vld [vmem:[%s1584_s7 + $0x180] sm:$0xff]  ;;  %v387_v25 = vld [vmem:[%s1584_s7 + $0x190] sm:$0xff] }
  0x23   : > { %v389_v26 = vld [vmem:[%s1584_s7 + $0x1a0] sm:$0xff]  ;;  %386 = vst [vmem:[%s1589_s8 + $0xc0] sm:$0xff] %v385_v24  ;;  %388 = vst [vmem:[%s1589_s8 + $0xc8] sm:$0xff] %v387_v25  ;;  %v391_v27 = vld [vmem:[%s1584_s7 + $0x1b0] sm:$0xff] }
  0x24   : > { %390 = vst [vmem:[%s1589_s8 + $0xd0] sm:$0xff] %v389_v26  ;;  %v393_v28 = vld [vmem:[%s1584_s7 + $0x1c0] sm:$0xff]  ;;  %v395_v29 = vld [vmem:[%s1584_s7 + $0x1d0] sm:$0xff]  ;;  %392 = vst [vmem:[%s1589_s8 + $0xd8] sm:$0xff] %v391_v27 }
  0x25   : > { %394 = vst [vmem:[%s1589_s8 + $0xe0] sm:$0xff] %v393_v28  ;;  %396 = vst [vmem:[%s1589_s8 + $0xe8] sm:$0xff] %v395_v29  ;;  %v397_v30 = vld [vmem:[%s1584_s7 + $0x1e0] sm:$0xff]  ;;  %v399_v31 = vld [vmem:[%s1584_s7 + $0x1f0] sm:$0xff] }
  0x26   : > { %v401_v32 = vld [vmem:[%s1584_s7 + $0x200] sm:$0xff]  ;;  %398 = vst [vmem:[%s1589_s8 + $0xf0] sm:$0xff] %v397_v30  ;;  %400 = vst [vmem:[%s1589_s8 + $0xf8] sm:$0xff] %v399_v31  ;;  %v403_v33 = vld [vmem:[%s1584_s7 + $0x210] sm:$0xff] }
  0x27   : > { %402 = vst [vmem:[%s1589_s8 + $0x100] sm:$0xff] %v401_v32  ;;  %v405_v34 = vld [vmem:[%s1584_s7 + $0x220] sm:$0xff]  ;;  %v407_v35 = vld [vmem:[%s1584_s7 + $0x230] sm:$0xff]  ;;  %404 = vst [vmem:[%s1589_s8 + $0x108] sm:$0xff] %v403_v33 }
  0x28   : > { %406 = vst [vmem:[%s1589_s8 + $0x110] sm:$0xff] %v405_v34  ;;  %408 = vst [vmem:[%s1589_s8 + $0x118] sm:$0xff] %v407_v35  ;;  %v409_v36 = vld [vmem:[%s1584_s7 + $0x240] sm:$0xff]  ;;  %v411_v37 = vld [vmem:[%s1584_s7 + $0x250] sm:$0xff] }
  0x29   : > { %v413_v38 = vld [vmem:[%s1584_s7 + $0x260] sm:$0xff]  ;;  %410 = vst [vmem:[%s1589_s8 + $0x120] sm:$0xff] %v409_v36  ;;  %412 = vst [vmem:[%s1589_s8 + $0x128] sm:$0xff] %v411_v37  ;;  %v415_v39 = vld [vmem:[%s1584_s7 + $0x270] sm:$0xff] }
  0x2a   : > { %414 = vst [vmem:[%s1589_s8 + $0x130] sm:$0xff] %v413_v38  ;;  %v417_v40 = vld [vmem:[%s1584_s7 + $0x280] sm:$0xff]  ;;  %v419_v41 = vld [vmem:[%s1584_s7 + $0x290] sm:$0xff]  ;;  %416 = vst [vmem:[%s1589_s8 + $0x138] sm:$0xff] %v415_v39 }
  0x2b   : > { %418 = vst [vmem:[%s1589_s8 + $0x140] sm:$0xff] %v417_v40  ;;  %420 = vst [vmem:[%s1589_s8 + $0x148] sm:$0xff] %v419_v41  ;;  %v421_v42 = vld [vmem:[%s1584_s7 + $0x2a0] sm:$0xff]  ;;  %v423_v43 = vld [vmem:[%s1584_s7 + $0x2b0] sm:$0xff] }
  0x2c   : > { %v425_v44 = vld [vmem:[%s1584_s7 + $0x2c0] sm:$0xff]  ;;  %422 = vst [vmem:[%s1589_s8 + $0x150] sm:$0xff] %v421_v42  ;;  %424 = vst [vmem:[%s1589_s8 + $0x158] sm:$0xff] %v423_v43  ;;  %v427_v45 = vld [vmem:[%s1584_s7 + $0x2d0] sm:$0xff] }
  0x2d   : > { %426 = vst [vmem:[%s1589_s8 + $0x160] sm:$0xff] %v425_v44  ;;  %v429_v46 = vld [vmem:[%s1584_s7 + $0x2e0] sm:$0xff]  ;;  %v431_v47 = vld [vmem:[%s1584_s7 + $0x2f0] sm:$0xff]  ;;  %428 = vst [vmem:[%s1589_s8 + $0x168] sm:$0xff] %v427_v45 }
  0x2e   : > { %430 = vst [vmem:[%s1589_s8 + $0x170] sm:$0xff] %v429_v46  ;;  %432 = vst [vmem:[%s1589_s8 + $0x178] sm:$0xff] %v431_v47  ;;  %v433_v48 = vld [vmem:[%s1584_s7 + $0x300] sm:$0xff]  ;;  %v435_v49 = vld [vmem:[%s1584_s7 + $0x310] sm:$0xff] }
  0x2f   : > { %v437_v50 = vld [vmem:[%s1584_s7 + $0x320] sm:$0xff]  ;;  %434 = vst [vmem:[%s1589_s8 + $0x180] sm:$0xff] %v433_v48  ;;  %436 = vst [vmem:[%s1589_s8 + $0x188] sm:$0xff] %v435_v49  ;;  %v439_v51 = vld [vmem:[%s1584_s7 + $0x330] sm:$0xff] }
  0x30   : > { %438 = vst [vmem:[%s1589_s8 + $0x190] sm:$0xff] %v437_v50  ;;  %v441_v52 = vld [vmem:[%s1584_s7 + $0x340] sm:$0xff]  ;;  %v443_v53 = vld [vmem:[%s1584_s7 + $0x350] sm:$0xff]  ;;  %440 = vst [vmem:[%s1589_s8 + $0x198] sm:$0xff] %v439_v51 }
  0x31   : > { %442 = vst [vmem:[%s1589_s8 + $0x1a0] sm:$0xff] %v441_v52  ;;  %444 = vst [vmem:[%s1589_s8 + $0x1a8] sm:$0xff] %v443_v53  ;;  %v445_v54 = vld [vmem:[%s1584_s7 + $0x360] sm:$0xff]  ;;  %v447_v55 = vld [vmem:[%s1584_s7 + $0x370] sm:$0xff] }
  0x32   : > { %v449_v56 = vld [vmem:[%s1584_s7 + $0x380] sm:$0xff]  ;;  %446 = vst [vmem:[%s1589_s8 + $0x1b0] sm:$0xff] %v445_v54  ;;  %448 = vst [vmem:[%s1589_s8 + $0x1b8] sm:$0xff] %v447_v55  ;;  %v451_v57 = vld [vmem:[%s1584_s7 + $0x390] sm:$0xff] }
  0x33   : > { %450 = vst [vmem:[%s1589_s8 + $0x1c0] sm:$0xff] %v449_v56  ;;  %v453_v58 = vld [vmem:[%s1584_s7 + $0x3a0] sm:$0xff]  ;;  %v455_v59 = vld [vmem:[%s1584_s7 + $0x3b0] sm:$0xff]  ;;  %452 = vst [vmem:[%s1589_s8 + $0x1c8] sm:$0xff] %v451_v57 }
  0x34   : > { %454 = vst [vmem:[%s1589_s8 + $0x1d0] sm:$0xff] %v453_v58  ;;  %456 = vst [vmem:[%s1589_s8 + $0x1d8] sm:$0xff] %v455_v59  ;;  %v457_v60 = vld [vmem:[%s1584_s7 + $0x3c0] sm:$0xff]  ;;  %v459_v61 = vld [vmem:[%s1584_s7 + $0x3d0] sm:$0xff] }
  0x35   : > { %v461_v62 = vld [vmem:[%s1584_s7 + $0x3e0] sm:$0xff]  ;;  %458 = vst [vmem:[%s1589_s8 + $0x1e0] sm:$0xff] %v457_v60  ;;  %460 = vst [vmem:[%s1589_s8 + $0x1e8] sm:$0xff] %v459_v61  ;;  %v463_v63 = vld [vmem:[%s1584_s7 + $0x3f0] sm:$0xff] }
  0x36   : > { %462 = vst [vmem:[%s1589_s8 + $0x1f0] sm:$0xff] %v461_v62  ;;  %464 = vst [vmem:[%s1589_s8 + $0x1f8] sm:$0xff] %v463_v63 }
  0x37 PF: > { %p1208_p7 = scmp.ge.s32.totalorder %s1501_s18, 1  ;;  %p477_p8 = scmp.lt.s32.totalorder %s1501_s18, 19 }
  0x39   : > { %p478_p9 = pnand %p1208_p7, %p477_p8 }
  0x3a   : > { %s484_s9 = sand.u32 (!%p478_p9), 1, %s1477_s12   ;;  %s1210_s10 = sshll.u32 (!%p478_p9), %s1485_s14, 2 }
  0x3b   : > { %481 = sbr.rel (%p478_p9) target bundleno = 355 (0x163), region = 66  ;;  %s1209_s11 = sshll.u32 (!%p478_p9), %s484_s9, 9 }
  0x3c   : > { %p527_p10 = scmp.lt.s32.totalorder (!%p478_p9), %s1210_s10, 35  ;;  %s1212_s21 = sshll.u32 (!%p478_p9), %s1489_s15, 1 }
  0x3d   : > { %p537_p11 = scmp.lt.s32.totalorder (!%p478_p9), %s1212_s21, 3  ;;  %s1738_s5 = scalar_lea.vmem (!%p478_p9), [#allocation3], %s1209_s11 }
  0x3e   : > { %p1215_p12 = scmp.ne.s32.totalorder (!%p478_p9), %s1485_s14, 0 }
  0x40   : > { %s1852_s10 = smov (!%p527_p10, %s1210_s10), 35  ;;  %s1854_s21 = smov (!%p537_p11, %s1212_s21), 3 }
  0x41   : > { %s1211_s22 = sshll.u32 %s1852_s10, 2  ;;  %s539_s12 = scalar_lea.vmem %s1837_s2, %s1854_s21 }
  0x42   : > { %s1724_s26 = scalar_lea.vmem %s1835_s0, %s1211_s22  ;;  %s1214_s29 = sshll.u32 %s1854_s21, 2 }
  0x43   : > { %s1736_s15 = scalar_lea.vmem %s1838_s3, %s1214_s29  ;;  %554 = sbr.rel (%p1215_p12) target bundleno = 74 (0x4a), region = 74 }
  0x48   : > { %v1503_v0 = vmov 0.0  }
  0x49   : > { %555 = vst [vmem:[#allocation2] sm:$0xff] %v1503_v0  ;;  %556 = vst [vmem:[#allocation2 + $0x8] sm:$0xff] %v1503_v0 }
  0x4a PF: > { %v1347_v1 = vld [vmem:[%s1738_s5 + $0x74] ss:$8 sps:$4 sm:$0xff]   ;;  %v1351_v3 = vld [vmem:[%s1738_s5 + $0x70] ss:$8 sps:$4 sm:$0xff]   ;;  %v1353_v5 = vld [vmem:[%s1738_s5 + $0x64] ss:$8 sps:$4 sm:$0xff]  }
  0x4b   : > { %v1349_v2 = vld [vmem:[%s1738_s5 + $0x174] ss:$8 sps:$4 sm:$0xff]   ;;  %959 = vmatprep.subr.bf16.mxu0 %v1347_v1  ;;  %v1352_v4 = vld [vmem:[%s1738_s5 + $0x170] ss:$8 sps:$4 sm:$0xff]   ;;  %v1355_v6 = vld [vmem:[%s1738_s5 + $0x164] ss:$8 sps:$4 sm:$0xff]  }
  0x4c   : > { %1000 = vmatprep.subr.bf16.mxu1 %v1349_v2  ;;  %960 = vmatpush1.bf16.msra.mxu0 %v1351_v3  ;;  %v1357_v7 = vld [vmem:[%s1738_s5 + $0x60] ss:$8 sps:$4 sm:$0xff]   ;;  %v1359_v9 = vld [vmem:[%s1738_s5 + $0x54] ss:$8 sps:$4 sm:$0xff]   ;;  %v1363_v11 = vld [vmem:[%s1738_s5 + $0x50] ss:$8 sps:$4 sm:$0xff]  }
  0x4d   : > { %1001 = vmatpush1.bf16.msra.mxu1 %v1352_v4  ;;  %961 = vmatprep.subr.bf16.mxu0 %v1353_v5  ;;  %v1358_v8 = vld [vmem:[%s1738_s5 + $0x160] ss:$8 sps:$4 sm:$0xff]   ;;  %v1361_v10 = vld [vmem:[%s1738_s5 + $0x154] ss:$8 sps:$4 sm:$0xff]   ;;  %v1364_v12 = vld [vmem:[%s1738_s5 + $0x150] ss:$8 sps:$4 sm:$0xff]  }
  0x4e   : > { %1002 = vmatprep.subr.bf16.mxu1 %v1355_v6  ;;  %v1365_v13 = vld [vmem:[%s1738_s5 + $0x44] ss:$8 sps:$4 sm:$0xff]   ;;  %v1369_v15 = vld [vmem:[%s1738_s5 + $0x40] ss:$8 sps:$4 sm:$0xff]   ;;  %v1371_v17 = vld [vmem:[%s1738_s5 + $0x34] ss:$8 sps:$4 sm:$0xff]  }
  0x4f   : > { %v1367_v14 = vld [vmem:[%s1738_s5 + $0x144] ss:$8 sps:$4 sm:$0xff]   ;;  %v1370_v16 = vld [vmem:[%s1738_s5 + $0x140] ss:$8 sps:$4 sm:$0xff]   ;;  %v1373_v18 = vld [vmem:[%s1738_s5 + $0x134] ss:$8 sps:$4 sm:$0xff]  }
  0x50   : > { %962 = vmatpush1.bf16.msra.mxu0 %v1357_v7  ;;  %v1375_v19 = vld [vmem:[%s1738_s5 + $0x30] ss:$8 sps:$4 sm:$0xff]   ;;  %v1377_v21 = vld [vmem:[%s1738_s5 + $0x24] ss:$8 sps:$4 sm:$0xff]   ;;  %v1381_v23 = vld [vmem:[%s1738_s5 + $0x20] ss:$8 sps:$4 sm:$0xff]  }
  0x51   : > { %1003 = vmatpush1.bf16.msra.mxu1 %v1358_v8  ;;  %963 = vmatprep.subr.bf16.mxu0 %v1359_v9  ;;  %v1376_v20 = vld [vmem:[%s1738_s5 + $0x130] ss:$8 sps:$4 sm:$0xff]   ;;  %v1379_v22 = vld [vmem:[%s1738_s5 + $0x124] ss:$8 sps:$4 sm:$0xff]   ;;  %v1382_v24 = vld [vmem:[%s1738_s5 + $0x120] ss:$8 sps:$4 sm:$0xff]  }
  0x52   : > { %1004 = vmatprep.subr.bf16.mxu1 %v1361_v10  ;;  %v1383_v25 = vld [vmem:[%s1738_s5 + $0x14] ss:$8 sps:$4 sm:$0xff]   ;;  %v1387_v27 = vld [vmem:[%s1738_s5 + $0x10] ss:$8 sps:$4 sm:$0xff]   ;;  %v1389_v29 = vld [vmem:[%s1738_s5 + $0x4] ss:$8 sps:$4 sm:$0xff]  }
  0x53   : > { %v1385_v26 = vld [vmem:[%s1738_s5 + $0x114] ss:$8 sps:$4 sm:$0xff]   ;;  %v1388_v28 = vld [vmem:[%s1738_s5 + $0x110] ss:$8 sps:$4 sm:$0xff]   ;;  %v1391_v30 = vld [vmem:[%s1738_s5 + $0x104] ss:$8 sps:$4 sm:$0xff]  }
  0x54   : > { %964 = vmatpush1.bf16.msra.mxu0 %v1363_v11  ;;  %v1393_v31 = vld [vmem:[%s1738_s5] ss:$8 sps:$4 sm:$0xff]   ;;  %v1395_v33 = vld [vmem:[%s1738_s5 + $0xf4] ss:$8 sps:$4 sm:$0xff]   ;;  %v1399_v35 = vld [vmem:[%s1738_s5 + $0xf0] ss:$8 sps:$4 sm:$0xff]  }
  0x55   : > { %1005 = vmatpush1.bf16.msra.mxu1 %v1364_v12  ;;  %965 = vmatprep.subr.bf16.mxu0 %v1365_v13  ;;  %v1394_v32 = vld [vmem:[%s1738_s5 + $0x100] ss:$8 sps:$4 sm:$0xff]   ;;  %v1397_v34 = vld [vmem:[%s1738_s5 + $0x1f4] ss:$8 sps:$4 sm:$0xff]   ;;  %v1400_v36 = vld [vmem:[%s1738_s5 + $0x1f0] ss:$8 sps:$4 sm:$0xff]  }
  0x56   : > { %1006 = vmatprep.subr.bf16.mxu1 %v1367_v14  ;;  %v1401_v37 = vld [vmem:[%s1738_s5 + $0xe4] ss:$8 sps:$4 sm:$0xff]   ;;  %v1405_v39 = vld [vmem:[%s1738_s5 + $0xe0] ss:$8 sps:$4 sm:$0xff]   ;;  %v1407_v41 = vld [vmem:[%s1738_s5 + $0xd4] ss:$8 sps:$4 sm:$0xff]  }
  0x57   : > { %v1403_v38 = vld [vmem:[%s1738_s5 + $0x1e4] ss:$8 sps:$4 sm:$0xff]   ;;  %v1406_v40 = vld [vmem:[%s1738_s5 + $0x1e0] ss:$8 sps:$4 sm:$0xff]   ;;  %v1409_v42 = vld [vmem:[%s1738_s5 + $0x1d4] ss:$8 sps:$4 sm:$0xff]  }
  0x58   : > { %966 = vmatpush1.bf16.msra.mxu0 %v1369_v15  ;;  %v1411_v43 = vld [vmem:[%s1738_s5 + $0xd0] ss:$8 sps:$4 sm:$0xff]   ;;  %v1413_v45 = vld [vmem:[%s1738_s5 + $0xc4] ss:$8 sps:$4 sm:$0xff]   ;;  %v1417_v50 = vld [vmem:[%s1738_s5 + $0xc0] ss:$8 sps:$4 sm:$0xff]  }
  0x59   : > { %1007 = vmatpush1.bf16.msra.mxu1 %v1370_v16  ;;  %967 = vmatprep.subr.bf16.mxu0 %v1371_v17  ;;  %v1412_v44 = vld [vmem:[%s1738_s5 + $0x1d0] ss:$8 sps:$4 sm:$0xff]   ;;  %v1415_v46 = vld [vmem:[%s1738_s5 + $0x1c4] ss:$8 sps:$4 sm:$0xff]   ;;  %v1418_v51 = vld [vmem:[%s1738_s5 + $0x1c0] ss:$8 sps:$4 sm:$0xff]  }
  0x5a   : > { %1008 = vmatprep.subr.bf16.mxu1 %v1373_v18  ;;  %v559_v47 = vld [vmem:[%s1724_s26] sm:$0xff]  ;;  %v560_v49 = vld [vmem:[%s1724_s26 + $0x8] sm:$0xff]  ;;  %v1425_v57 = vld [vmem:[%s1738_s5 + $0xa4] ss:$8 sps:$4 sm:$0xff]   ;;  %p1284_p13 = scmp.ne.s32.totalorder %s1485_s14, 8 }
  0x5b   : > { %v1217_v48 = vcombine.high %v559_v47, %v559_v47  ;;  %v1219_v52 = vcombine.high %v560_v49, %v560_v49  ;;  %v1419_v53 = vld [vmem:[%s1738_s5 + $0xb4] ss:$8 sps:$4 sm:$0xff]   ;;  %v1423_v55 = vld [vmem:[%s1738_s5 + $0xb0] ss:$8 sps:$4 sm:$0xff]   ;;  %v1427_v58 = vld [vmem:[%s1738_s5 + $0x1a4] ss:$8 sps:$4 sm:$0xff]   ;;  %v1216_v5 = vcombine.low %v559_v47, %v559_v47  ;;  %v1218_v6 = vcombine.low %v560_v49, %v560_v49 }
  0x5c   : > { %968 = vmatpush1.bf16.msra.mxu0 %v1375_v19  ;;  %v1421_v54 = vld [vmem:[%s1738_s5 + $0x1b4] ss:$8 sps:$4 sm:$0xff]   ;;  %v1424_v56 = vld [vmem:[%s1738_s5 + $0x1b0] ss:$8 sps:$4 sm:$0xff]   ;;  %v1429_v59 = vld [vmem:[%s1738_s5 + $0xa0] ss:$8 sps:$4 sm:$0xff]  }
  0x5d   : > { %1009 = vmatpush1.bf16.msra.mxu1 %v1376_v20  ;;  %969 = vmatprep.subr.bf16.mxu0 %v1377_v21  ;;  %v1430_v60 = vld [vmem:[%s1738_s5 + $0x1a0] ss:$8 sps:$4 sm:$0xff]   ;;  %v1431_v61 = vld [vmem:[%s1738_s5 + $0x94] ss:$8 sps:$4 sm:$0xff]   ;;  %v1435_v63 = vld [vmem:[%s1738_s5 + $0x90] ss:$8 sps:$4 sm:$0xff]  }
  0x5e   : > { %1010 = vmatprep.subr.bf16.mxu1 %v1379_v22  ;;  %991 = vmatprep.mubr.bf16.mxu0 %v1217_v48  ;;  %v1433_v62 = vld [vmem:[%s1738_s5 + $0x194] ss:$8 sps:$4 sm:$0xff]   ;;  %v1436_v0 = vld [vmem:[%s1738_s5 + $0x190] ss:$8 sps:$4 sm:$0xff]   ;;  %v1437_v1 = vld [vmem:[%s1738_s5 + $0x84] ss:$8 sps:$4 sm:$0xff]  }
  0x5f   : > { %1032 = vmatprep.mubr.bf16.mxu1 %v1219_v52  ;;  %v1439_v2 = vld [vmem:[%s1738_s5 + $0x184] ss:$8 sps:$4 sm:$0xff]   ;;  %v1441_v3 = vld [vmem:[%s1738_s5 + $0x80] ss:$8 sps:$4 sm:$0xff]   ;;  %v557_v8 = vld [vmem:[#allocation2] sm:$0xff] }
  0x60   : > { %970 = vmatpush1.bf16.msra.mxu0 %v1381_v23  ;;  %v1442_v4 = vld [vmem:[%s1738_s5 + $0x180] ss:$8 sps:$4 sm:$0xff]   ;;  %v558_v12 = vld [vmem:[#allocation2 + $0x8] sm:$0xff] }
  0x61   : > { %1011 = vmatpush1.bf16.msra.mxu1 %v1382_v24  ;;  %971 = vmatprep.subr.bf16.mxu0 %v1383_v25 }
  0x62   : > { %1012 = vmatprep.subr.bf16.mxu1 %v1385_v26 }
  0x64   : > { %972 = vmatpush1.bf16.msra.mxu0 %v1387_v27 }
  0x65   : > { %1013 = vmatpush1.bf16.msra.mxu1 %v1388_v28  ;;  %973 = vmatprep.subr.bf16.mxu0 %v1389_v29 }
  0x66   : > { %1014 = vmatprep.subr.bf16.mxu1 %v1391_v30 }
  0x68   : > { %974 = vmatpush1.bf16.msra.mxu0 %v1393_v31 }
  0x69   : > { %1015 = vmatpush1.bf16.msra.mxu1 %v1394_v32  ;;  %975 = vmatprep.subr.bf16.mxu0 %v1395_v33 }
  0x6a   : > { %1016 = vmatprep.subr.bf16.mxu1 %v1397_v34 }
  0x6c   : > { %976 = vmatpush2.bf16.msra.mxu0 %v1399_v35 }
  0x6d   : > { %1017 = vmatpush2.bf16.msra.mxu1 %v1400_v36  ;;  %977 = vmatprep.subr.bf16.mxu0 %v1401_v37 }
  0x6e   : > { %1018 = vmatprep.subr.bf16.mxu1 %v1403_v38 }
  0x70   : > { %978 = vmatpush2.bf16.msra.mxu0 %v1405_v39 }
  0x71   : > { %1019 = vmatpush2.bf16.msra.mxu1 %v1406_v40  ;;  %979 = vmatprep.subr.bf16.mxu0 %v1407_v41 }
  0x72   : > { %1020 = vmatprep.subr.bf16.mxu1 %v1409_v42 }
  0x74   : > { %980 = vmatpush2.bf16.msra.mxu0 %v1411_v43 }
  0x75   : > { %1021 = vmatpush2.bf16.msra.mxu1 %v1412_v44  ;;  %981 = vmatprep.subr.bf16.mxu0 %v1413_v45 }
  0x76   : > { %1022 = vmatprep.subr.bf16.mxu1 %v1415_v46 }
  0x78   : > { %982 = vmatpush2.bf16.msra.mxu0 %v1417_v50 }
  0x79   : > { %1023 = vmatpush2.bf16.msra.mxu1 %v1418_v51  ;;  %983 = vmatprep.subr.bf16.mxu0 %v1419_v53 }
  0x7a   : > { %1024 = vmatprep.subr.bf16.mxu1 %v1421_v54 }
  0x7c   : > { %984 = vmatpush2.bf16.msra.mxu0 %v1423_v55 }
  0x7d   : > { %1025 = vmatpush2.bf16.msra.mxu1 %v1424_v56  ;;  %985 = vmatprep.subr.bf16.mxu0 %v1425_v57 }
  0x7e   : > { %1026 = vmatprep.subr.bf16.mxu1 %v1427_v58 }
  0x80   : > { %986 = vmatpush2.bf16.msra.mxu0 %v1429_v59 }
  0x81   : > { %1027 = vmatpush2.bf16.msra.mxu1 %v1430_v60  ;;  %987 = vmatprep.subr.bf16.mxu0 %v1431_v61 }
  0x82   : > { %1028 = vmatprep.subr.bf16.mxu1 %v1433_v62 }
  0x84   : > { %988 = vmatpush2.bf16.msra.mxu0 %v1435_v63 }
  0x85   : > { %1029 = vmatpush2.bf16.msra.mxu1 %v1436_v0  ;;  %989 = vmatprep.subr.bf16.mxu0 %v1437_v1 }
  0x86   : > { %1030 = vmatprep.subr.bf16.mxu1 %v1439_v2 }
  0x88   : > { %990 = vmatpush2.bf16.msra.mxu0 %v1441_v3 }
  0x89   : > { %1031 = vmatpush2.bf16.msra.mxu1 %v1442_v4 }
  0x8b   : > { %992 = vmatmul.mubr.bf16.vlgmr.msra.gmra.mxu0 %v1216_v5 }
  0x8c   : > { %1033 = vmatmul.mubr.bf16.vlgmr.msra.gmra.mxu1 %v1218_v6 }
 0x14b   : > { %v993_v7 = vpop.f32.mrf.mxu0 }
 0x14c   : > { %v1034_v9 = vpop.f32.mrf.mxu1 }
 0x14d   : > { %v1035_v10 = vadd.f32 %v1034_v9, %v993_v7  ;;  %v995_v11 = vpop.f32.mrf.mxu0 }
 0x14e   : > { %v1036_v13 = vpop.f32.mrf.mxu1 }
 0x14f   : > { %v1041_v14 = vadd.f32 %v1035_v10, %v557_v8  ;;  %v1037_v15 = vadd.f32 %v1036_v13, %v995_v11  ;;  %v997_v16 = vpop.f32.mrf.mxu0  ;;  %1048 = sbr.rel (%p1284_p13) target bundleno = 355 (0x163), region = 78 }
 0x150   : > { %v1038_v17 = vpop.f32.mrf.mxu1 }
 0x151   : > { %1043 = vst [vmem:[#allocation2] sm:$0xff] %v1041_v14  ;;  %v1042_v18 = vadd.f32 %v1037_v15, %v558_v12  ;;  %v998_v19 = vpop.f32.mrf.mxu0 }
 0x152   : > { %v1039_v20 = vpop.f32.mrf.mxu1 }
 0x153   : > { %1044 = vst [vmem:[#allocation2 + $0x8] sm:$0xff] %v1042_v18 }
 0x154   : > { %v1053_v21 = vlaneseq  ;;  %v1051_v23 = vld [vmem:[%s539_s12] sm:$0x3] }
 0x156   : > { %v1054_v22 = vshrl.u32 %v1053_v21, 7 }
 0x158   : > { %v1055_v24 = vsub.s32 0, %v1054_v22  ;;  %v1059_v25 = vsub.s32 1, %v1054_v22  ;;  %v1049_v26 = vld [vmem:[#allocation2] sm:$0xff] }
 0x15a   : > { %v1050_v27 = vld [vmem:[#allocation2 + $0x8] sm:$0xff]  ;;  %v1056_v28 = vrot.slane %v1051_v23, %v1055_v24  ;;  %v1060_v29 = vrot.slane %v1051_v23, %v1059_v25 }
 0x15c   : > { %v1063_v30 = vadd.f32 %v1056_v28, %v1049_v26  ;;  %v1064_v31 = vadd.f32 %v1060_v29, %v1050_v27 }
 0x15e   : > { %v1065_v32 = vmax.f32 %v1063_v30, 0.0  ;;  %v1066_v33 = vmax.f32 %v1064_v31, 0.0 }
 0x160   : > { %v1289_v34 = vpack.c.bf16 %v1066_v33, %v1065_v32 }
 0x162   : > { %1075 = vst [vmem:[%s1736_s15] sm:$0xff] %v1289_v34 }
 0x163 PF: > { %s13_s18 = sadd.s32 1, %s1501_s18   ;;  %s1839_s12 = smov %s1481_s13 }
 0x164   : > { %p10_p0 = scmp.ge.s32.totalorder %s13_s18, 20   ;;  %s1840_s13 = smov %s1575_s25 }
 0x165   : > { %s1841_s14 = smov %s1493_s16  ;;  %s1842_s15 = smov %s1497_s17 }
 0x166   : > { %s1843_s16 = smov %s1846_s19  ;;  %s1844_s17 = smov %s1850_s20 }
 0x167   :  { %12 = sbr.rel (!%p10_p0) target bundleno = 4 (0x4), region = 119 }

// kernel: forward.33
= control target key start
LH: loop header
LB: loop body
LE: loop exit
PB: predicated region body
PF: predicated region fallthrough
CT: control target
= control target key end

     0   :  { %s1522_s12 = smov 0   ;;  %s1524_s13 = smov 0   ;;  %s1833_s0 = inlined_call_operand.vmem [shape: bf16[8,1024], index: 0, kind: input, shape index: {}]   ;;  %s1834_s1 = inlined_call_operand.vmem [shape: bf16[1024,2048], index: 1, kind: input, shape index: {}]   ;;  %s1835_s2 = inlined_call_operand.vmem [shape: f32[1,2048], index: 2, kind: input, shape index: {}]   ;;  %s1836_s3 = inlined_call_operand.vmem [shape: bf16[8,2048], index: 3, kind: output, shape index: {}]  }
   0x1   :  { %s1526_s14 = smov 0   ;;  %s1528_s15 = smov 0  }
   0x2   :  { %s1530_s16 = smov 0   ;;  %s1532_s17 = smov 0  }
   0x3   :  { %s1534_s18 = smov 0  }
   0x4 LB: > { %s25_s19 = sadd.s32 1, %s1491_s16  ;;  %s28_s20 = sadd.s32 1, %s1495_s17  ;;  %s1499_s18 = sphi %s1534_s18, %s13_s18   ;;  %s1495_s17 = sphi %s1532_s17, %s1842_s17   ;;  %s1491_s16 = sphi %s1530_s16, %s1841_s16   ;;  %s1487_s15 = sphi %s1528_s15, %s1840_s15   ;;  %s1483_s14 = sphi %s1526_s14, %s1839_s14   ;;  %s1479_s13 = sphi %s1524_s13, %s1838_s13   ;;  %s1475_s12 = sphi %s1522_s12, %s1837_s12  }
   0x5   : > { %p26_p0 = scmp.ge.s32.totalorder %s25_s19, 2  ;;  %p76_p1 = scmp.ne.s32.totalorder %s1479_s13, %s1475_s12 }
   0x6   : > { %p77_p2 = scmp.eq.s32.totalorder %s1499_s18, 0  ;;  %s69_s24 = sadd.s32 1, %s1479_s13 }
   0x7   : > { %s1844_s19 = smov (%p26_p0, %s25_s19), 0  ;;  %s1846_s20 = smov (!%p26_p0, %s28_s20), %s1495_s17 }
   0x8   : > { %p78_p3 = por %p77_p2, %p76_p1  ;;  %p30_p4 = scmp.ge.s32.totalorder %s1846_s20, 8 }
   0x9   : > { %s64_s21 = ssub.s32 %s1491_s16, %s1844_s19  ;;  %p1200_p6 = scmp.ge.s32.totalorder %s1499_s18, 16 }
   0xa   : > { %s1848_s20 = smov (%p30_p4, %s1846_s20), 0 }
   0xb   : > { %s65_s22 = ssub.s32 %s1495_s17, %s1848_s20  ;;  %156 = sbr.rel (%p1200_p6) target bundleno = 87 (0x57), region = 16 }
   0xc   : > { %s66_s23 = sor.u32 %s65_s22, %s64_s21 }
   0xd   : > { %p67_p5 = scmp.eq.s32.totalorder %s66_s23, 0 }
   0xf   : > { %s1573_s25 = scalar_select %p67_p5, %s1479_s13, %s69_s24  }
  0x10   : > { %172 = sbr.rel (!%p78_p3) target bundleno = 87 (0x57), region = 24  ;;  %s174_s26 = sand.u32 (%p78_p3), 1, %s1479_s13  }
  0x11   : > { %s1203_s27 = sshll.u32 (%p78_p3), %s1495_s17, 1  ;;  %s1201_s28 = sshll.u32 (%p78_p3), %s174_s26, 9 }
  0x12   : > { %s1286_s29 = sshll.u32 (%p78_p3), %s1491_s16, 10  ;;  %s1587_s8 = scalar_lea.vmem (%p78_p3), [#allocation3], %s1201_s28 }
  0x13   : > { %s180_s30 = sadd.s32 (%p78_p3), %s1286_s29, %s1203_s27 }
  0x14   : > { %s1205_s4 = sshll.u32 (%p78_p3), %s180_s30, 2 }
  0x15   : > { %s1582_s7 = scalar_lea.vmem %s1834_s1, %s1205_s4 }
  0x16   : > { %v337_v0 = vld [vmem:[%s1582_s7] sm:$0xff] }
  0x17   : > { %v339_v1 = vld [vmem:[%s1582_s7 + $0x40] sm:$0xff]  ;;  %338 = vst [vmem:[%s1587_s8] sm:$0xff] %v337_v0 }
  0x18   : > { %v341_v2 = vld [vmem:[%s1582_s7 + $0x80] sm:$0xff]  ;;  %340 = vst [vmem:[%s1587_s8 + $0x8] sm:$0xff] %v339_v1 }
  0x19   : > { %342 = vst [vmem:[%s1587_s8 + $0x10] sm:$0xff] %v341_v2  ;;  %v343_v3 = vld [vmem:[%s1582_s7 + $0xc0] sm:$0xff] }
  0x1a   : > { %v345_v4 = vld [vmem:[%s1582_s7 + $0x100] sm:$0xff]  ;;  %344 = vst [vmem:[%s1587_s8 + $0x18] sm:$0xff] %v343_v3 }
  0x1b   : > { %v347_v5 = vld [vmem:[%s1582_s7 + $0x140] sm:$0xff]  ;;  %346 = vst [vmem:[%s1587_s8 + $0x20] sm:$0xff] %v345_v4 }
  0x1c   : > { %348 = vst [vmem:[%s1587_s8 + $0x28] sm:$0xff] %v347_v5  ;;  %v349_v6 = vld [vmem:[%s1582_s7 + $0x180] sm:$0xff] }
  0x1d   : > { %v351_v7 = vld [vmem:[%s1582_s7 + $0x1c0] sm:$0xff]  ;;  %350 = vst [vmem:[%s1587_s8 + $0x30] sm:$0xff] %v349_v6 }
  0x1e   : > { %v353_v8 = vld [vmem:[%s1582_s7 + $0x200] sm:$0xff]  ;;  %352 = vst [vmem:[%s1587_s8 + $0x38] sm:$0xff] %v351_v7 }
  0x1f   : > { %354 = vst [vmem:[%s1587_s8 + $0x40] sm:$0xff] %v353_v8  ;;  %v355_v9 = vld [vmem:[%s1582_s7 + $0x240] sm:$0xff] }
  0x20   : > { %v357_v10 = vld [vmem:[%s1582_s7 + $0x280] sm:$0xff]  ;;  %356 = vst [vmem:[%s1587_s8 + $0x48] sm:$0xff] %v355_v9 }
  0x21   : > { %v359_v11 = vld [vmem:[%s1582_s7 + $0x2c0] sm:$0xff]  ;;  %358 = vst [vmem:[%s1587_s8 + $0x50] sm:$0xff] %v357_v10 }
  0x22   : > { %360 = vst [vmem:[%s1587_s8 + $0x58] sm:$0xff] %v359_v11  ;;  %v361_v12 = vld [vmem:[%s1582_s7 + $0x300] sm:$0xff] }
  0x23   : > { %v363_v13 = vld [vmem:[%s1582_s7 + $0x340] sm:$0xff]  ;;  %362 = vst [vmem:[%s1587_s8 + $0x60] sm:$0xff] %v361_v12 }
  0x24   : > { %v365_v14 = vld [vmem:[%s1582_s7 + $0x380] sm:$0xff]  ;;  %364 = vst [vmem:[%s1587_s8 + $0x68] sm:$0xff] %v363_v13 }
  0x25   : > { %366 = vst [vmem:[%s1587_s8 + $0x70] sm:$0xff] %v365_v14  ;;  %v367_v15 = vld [vmem:[%s1582_s7 + $0x3c0] sm:$0xff] }
  0x26   : > { %v369_v16 = vld [vmem:[%s1582_s7 + $0x400] sm:$0xff]  ;;  %368 = vst [vmem:[%s1587_s8 + $0x78] sm:$0xff] %v367_v15 }
  0x27   : > { %v371_v17 = vld [vmem:[%s1582_s7 + $0x440] sm:$0xff]  ;;  %370 = vst [vmem:[%s1587_s8 + $0x80] sm:$0xff] %v369_v16 }
  0x28   : > { %372 = vst [vmem:[%s1587_s8 + $0x88] sm:$0xff] %v371_v17  ;;  %v373_v18 = vld [vmem:[%s1582_s7 + $0x480] sm:$0xff] }
  0x29   : > { %v375_v19 = vld [vmem:[%s1582_s7 + $0x4c0] sm:$0xff]  ;;  %374 = vst [vmem:[%s1587_s8 + $0x90] sm:$0xff] %v373_v18 }
  0x2a   : > { %v377_v20 = vld [vmem:[%s1582_s7 + $0x500] sm:$0xff]  ;;  %376 = vst [vmem:[%s1587_s8 + $0x98] sm:$0xff] %v375_v19 }
  0x2b   : > { %378 = vst [vmem:[%s1587_s8 + $0xa0] sm:$0xff] %v377_v20  ;;  %v379_v21 = vld [vmem:[%s1582_s7 + $0x540] sm:$0xff] }
  0x2c   : > { %v381_v22 = vld [vmem:[%s1582_s7 + $0x580] sm:$0xff]  ;;  %380 = vst [vmem:[%s1587_s8 + $0xa8] sm:$0xff] %v379_v21 }
  0x2d   : > { %v383_v23 = vld [vmem:[%s1582_s7 + $0x5c0] sm:$0xff]  ;;  %382 = vst [vmem:[%s1587_s8 + $0xb0] sm:$0xff] %v381_v22 }
  0x2e   : > { %384 = vst [vmem:[%s1587_s8 + $0xb8] sm:$0xff] %v383_v23  ;;  %v385_v24 = vld [vmem:[%s1582_s7 + $0x600] sm:$0xff] }
  0x2f   : > { %v387_v25 = vld [vmem:[%s1582_s7 + $0x640] sm:$0xff]  ;;  %386 = vst [vmem:[%s1587_s8 + $0xc0] sm:$0xff] %v385_v24 }
  0x30   : > { %v389_v26 = vld [vmem:[%s1582_s7 + $0x680] sm:$0xff]  ;;  %388 = vst [vmem:[%s1587_s8 + $0xc8] sm:$0xff] %v387_v25 }
  0x31   : > { %390 = vst [vmem:[%s1587_s8 + $0xd0] sm:$0xff] %v389_v26  ;;  %v391_v27 = vld [vmem:[%s1582_s7 + $0x6c0] sm:$0xff] }
  0x32   : > { %v393_v28 = vld [vmem:[%s1582_s7 + $0x700] sm:$0xff]  ;;  %392 = vst [vmem:[%s1587_s8 + $0xd8] sm:$0xff] %v391_v27 }
  0x33   : > { %v395_v29 = vld [vmem:[%s1582_s7 + $0x740] sm:$0xff]  ;;  %394 = vst [vmem:[%s1587_s8 + $0xe0] sm:$0xff] %v393_v28 }
  0x34   : > { %396 = vst [vmem:[%s1587_s8 + $0xe8] sm:$0xff] %v395_v29  ;;  %v397_v30 = vld [vmem:[%s1582_s7 + $0x780] sm:$0xff] }
  0x35   : > { %v399_v31 = vld [vmem:[%s1582_s7 + $0x7c0] sm:$0xff]  ;;  %398 = vst [vmem:[%s1587_s8 + $0xf0] sm:$0xff] %v397_v30 }
  0x36   : > { %v401_v32 = vld [vmem:[%s1582_s7 + $0x800] sm:$0xff]  ;;  %400 = vst [vmem:[%s1587_s8 + $0xf8] sm:$0xff] %v399_v31 }
  0x37   : > { %402 = vst [vmem:[%s1587_s8 + $0x100] sm:$0xff] %v401_v32  ;;  %v403_v33 = vld [vmem:[%s1582_s7 + $0x840] sm:$0xff] }
  0x38   : > { %v405_v34 = vld [vmem:[%s1582_s7 + $0x880] sm:$0xff]  ;;  %404 = vst [vmem:[%s1587_s8 + $0x108] sm:$0xff] %v403_v33 }
  0x39   : > { %v407_v35 = vld [vmem:[%s1582_s7 + $0x8c0] sm:$0xff]  ;;  %406 = vst [vmem:[%s1587_s8 + $0x110] sm:$0xff] %v405_v34 }
  0x3a   : > { %408 = vst [vmem:[%s1587_s8 + $0x118] sm:$0xff] %v407_v35  ;;  %v409_v36 = vld [vmem:[%s1582_s7 + $0x900] sm:$0xff] }
  0x3b   : > { %v411_v37 = vld [vmem:[%s1582_s7 + $0x940] sm:$0xff]  ;;  %410 = vst [vmem:[%s1587_s8 + $0x120] sm:$0xff] %v409_v36 }
  0x3c   : > { %v413_v38 = vld [vmem:[%s1582_s7 + $0x980] sm:$0xff]  ;;  %412 = vst [vmem:[%s1587_s8 + $0x128] sm:$0xff] %v411_v37 }
  0x3d   : > { %414 = vst [vmem:[%s1587_s8 + $0x130] sm:$0xff] %v413_v38  ;;  %v415_v39 = vld [vmem:[%s1582_s7 + $0x9c0] sm:$0xff] }
  0x3e   : > { %v417_v40 = vld [vmem:[%s1582_s7 + $0xa00] sm:$0xff]  ;;  %416 = vst [vmem:[%s1587_s8 + $0x138] sm:$0xff] %v415_v39 }
  0x3f   : > { %v419_v41 = vld [vmem:[%s1582_s7 + $0xa40] sm:$0xff]  ;;  %418 = vst [vmem:[%s1587_s8 + $0x140] sm:$0xff] %v417_v40 }
  0x40   : > { %420 = vst [vmem:[%s1587_s8 + $0x148] sm:$0xff] %v419_v41  ;;  %v421_v42 = vld [vmem:[%s1582_s7 + $0xa80] sm:$0xff] }
  0x41   : > { %v423_v43 = vld [vmem:[%s1582_s7 + $0xac0] sm:$0xff]  ;;  %422 = vst [vmem:[%s1587_s8 + $0x150] sm:$0xff] %v421_v42 }
  0x42   : > { %v425_v44 = vld [vmem:[%s1582_s7 + $0xb00] sm:$0xff]  ;;  %424 = vst [vmem:[%s1587_s8 + $0x158] sm:$0xff] %v423_v43 }
  0x43   : > { %426 = vst [vmem:[%s1587_s8 + $0x160] sm:$0xff] %v425_v44  ;;  %v427_v45 = vld [vmem:[%s1582_s7 + $0xb40] sm:$0xff] }
  0x44   : > { %v429_v46 = vld [vmem:[%s1582_s7 + $0xb80] sm:$0xff]  ;;  %428 = vst [vmem:[%s1587_s8 + $0x168] sm:$0xff] %v427_v45 }
  0x45   : > { %v431_v47 = vld [vmem:[%s1582_s7 + $0xbc0] sm:$0xff]  ;;  %430 = vst [vmem:[%s1587_s8 + $0x170] sm:$0xff] %v429_v46 }
  0x46   : > { %432 = vst [vmem:[%s1587_s8 + $0x178] sm:$0xff] %v431_v47  ;;  %v433_v48 = vld [vmem:[%s1582_s7 + $0xc00] sm:$0xff] }
  0x47   : > { %v435_v49 = vld [vmem:[%s1582_s7 + $0xc40] sm:$0xff]  ;;  %434 = vst [vmem:[%s1587_s8 + $0x180] sm:$0xff] %v433_v48 }
  0x48   : > { %v437_v50 = vld [vmem:[%s1582_s7 + $0xc80] sm:$0xff]  ;;  %436 = vst [vmem:[%s1587_s8 + $0x188] sm:$0xff] %v435_v49 }
  0x49   : > { %438 = vst [vmem:[%s1587_s8 + $0x190] sm:$0xff] %v437_v50  ;;  %v439_v51 = vld [vmem:[%s1582_s7 + $0xcc0] sm:$0xff] }
  0x4a   : > { %v441_v52 = vld [vmem:[%s1582_s7 + $0xd00] sm:$0xff]  ;;  %440 = vst [vmem:[%s1587_s8 + $0x198] sm:$0xff] %v439_v51 }
  0x4b   : > { %v443_v53 = vld [vmem:[%s1582_s7 + $0xd40] sm:$0xff]  ;;  %442 = vst [vmem:[%s1587_s8 + $0x1a0] sm:$0xff] %v441_v52 }
  0x4c   : > { %444 = vst [vmem:[%s1587_s8 + $0x1a8] sm:$0xff] %v443_v53  ;;  %v445_v54 = vld [vmem:[%s1582_s7 + $0xd80] sm:$0xff] }
  0x4d   : > { %v447_v55 = vld [vmem:[%s1582_s7 + $0xdc0] sm:$0xff]  ;;  %446 = vst [vmem:[%s1587_s8 + $0x1b0] sm:$0xff] %v445_v54 }
  0x4e   : > { %v449_v56 = vld [vmem:[%s1582_s7 + $0xe00] sm:$0xff]  ;;  %448 = vst [vmem:[%s1587_s8 + $0x1b8] sm:$0xff] %v447_v55 }
  0x4f   : > { %450 = vst [vmem:[%s1587_s8 + $0x1c0] sm:$0xff] %v449_v56  ;;  %v451_v57 = vld [vmem:[%s1582_s7 + $0xe40] sm:$0xff] }
  0x50   : > { %v453_v58 = vld [vmem:[%s1582_s7 + $0xe80] sm:$0xff]  ;;  %452 = vst [vmem:[%s1587_s8 + $0x1c8] sm:$0xff] %v451_v57 }
  0x51   : > { %v455_v59 = vld [vmem:[%s1582_s7 + $0xec0] sm:$0xff]  ;;  %454 = vst [vmem:[%s1587_s8 + $0x1d0] sm:$0xff] %v453_v58 }
  0x52   : > { %456 = vst [vmem:[%s1587_s8 + $0x1d8] sm:$0xff] %v455_v59  ;;  %v457_v60 = vld [vmem:[%s1582_s7 + $0xf00] sm:$0xff] }
  0x53   : > { %v459_v61 = vld [vmem:[%s1582_s7 + $0xf40] sm:$0xff]  ;;  %458 = vst [vmem:[%s1587_s8 + $0x1e0] sm:$0xff] %v457_v60 }
  0x54   : > { %v461_v62 = vld [vmem:[%s1582_s7 + $0xf80] sm:$0xff]  ;;  %460 = vst [vmem:[%s1587_s8 + $0x1e8] sm:$0xff] %v459_v61 }
  0x55   : > { %462 = vst [vmem:[%s1587_s8 + $0x1f0] sm:$0xff] %v461_v62  ;;  %v463_v63 = vld [vmem:[%s1582_s7 + $0xfc0] sm:$0xff] }
  0x56   : > { %464 = vst [vmem:[%s1587_s8 + $0x1f8] sm:$0xff] %v463_v63 }
  0x57 PF: > { %p1206_p7 = scmp.ge.s32.totalorder %s1499_s18, 1  ;;  %p477_p8 = scmp.lt.s32.totalorder %s1499_s18, 17 }
  0x59   : > { %p478_p9 = pnand %p1206_p7, %p477_p8 }
  0x5a   : > { %s484_s9 = sand.u32 (!%p478_p9), 1, %s1475_s12   ;;  %s1208_s10 = sshll.u32 (!%p478_p9), %s1483_s14, 2 }
  0x5b   : > { %481 = sbr.rel (%p478_p9) target bundleno = 385 (0x181), region = 66  ;;  %s1207_s11 = sshll.u32 (!%p478_p9), %s484_s9, 9 }
  0x5c   : > { %p527_p10 = scmp.lt.s32.totalorder (!%p478_p9), %s1208_s10, 7  ;;  %s1210_s21 = sshll.u32 (!%p478_p9), %s1487_s15, 1 }
  0x5d   : > { %p537_p11 = scmp.lt.s32.totalorder (!%p478_p9), %s1210_s21, 15  ;;  %s1736_s5 = scalar_lea.vmem (!%p478_p9), [#allocation3], %s1207_s11 }
  0x5e   : > { %p1213_p12 = scmp.ne.s32.totalorder (!%p478_p9), %s1483_s14, 0 }
  0x60   : > { %s1850_s10 = smov (!%p527_p10, %s1208_s10), 7  ;;  %s1852_s21 = smov (!%p537_p11, %s1210_s21), 15 }
  0x61   : > { %s1209_s22 = sshll.u32 %s1850_s10, 2  ;;  %s539_s12 = scalar_lea.vmem %s1835_s2, %s1852_s21 }
  0x62   : > { %s1722_s26 = scalar_lea.vmem %s1833_s0, %s1209_s22  ;;  %s1212_s29 = sshll.u32 %s1852_s21, 2 }
  0x63   : > { %s1734_s15 = scalar_lea.vmem %s1836_s3, %s1212_s29  ;;  %554 = sbr.rel (%p1213_p12) target bundleno = 106 (0x6a), region = 74 }
  0x68   : > { %v1501_v0 = vmov 0.0  }
  0x69   : > { %555 = vst [vmem:[#allocation2] sm:$0xff] %v1501_v0  ;;  %556 = vst [vmem:[#allocation2 + $0x8] sm:$0xff] %v1501_v0 }
  0x6a PF: > { %v1345_v1 = vld [vmem:[%s1736_s5 + $0x74] ss:$8 sps:$4 sm:$0xff]   ;;  %v1349_v3 = vld [vmem:[%s1736_s5 + $0x70] ss:$8 sps:$4 sm:$0xff]   ;;  %v1351_v5 = vld [vmem:[%s1736_s5 + $0x64] ss:$8 sps:$4 sm:$0xff]  }
  0x6b   : > { %v1347_v2 = vld [vmem:[%s1736_s5 + $0x174] ss:$8 sps:$4 sm:$0xff]   ;;  %959 = vmatprep.subr.bf16.mxu0 %v1345_v1  ;;  %v1350_v4 = vld [vmem:[%s1736_s5 + $0x170] ss:$8 sps:$4 sm:$0xff]   ;;  %v1353_v6 = vld [vmem:[%s1736_s5 + $0x164] ss:$8 sps:$4 sm:$0xff]  }
  0x6c   : > { %1000 = vmatprep.subr.bf16.mxu1 %v1347_v2  ;;  %960 = vmatpush1.bf16.msra.mxu0 %v1349_v3  ;;  %v1355_v7 = vld [vmem:[%s1736_s5 + $0x60] ss:$8 sps:$4 sm:$0xff]   ;;  %v1357_v9 = vld [vmem:[%s1736_s5 + $0x54] ss:$8 sps:$4 sm:$0xff]   ;;  %v1361_v11 = vld [vmem:[%s1736_s5 + $0x50] ss:$8 sps:$4 sm:$0xff]  }
  0x6d   : > { %1001 = vmatpush1.bf16.msra.mxu1 %v1350_v4  ;;  %961 = vmatprep.subr.bf16.mxu0 %v1351_v5  ;;  %v1356_v8 = vld [vmem:[%s1736_s5 + $0x160] ss:$8 sps:$4 sm:$0xff]   ;;  %v1359_v10 = vld [vmem:[%s1736_s5 + $0x154] ss:$8 sps:$4 sm:$0xff]   ;;  %v1362_v12 = vld [vmem:[%s1736_s5 + $0x150] ss:$8 sps:$4 sm:$0xff]  }
  0x6e   : > { %1002 = vmatprep.subr.bf16.mxu1 %v1353_v6  ;;  %v1363_v13 = vld [vmem:[%s1736_s5 + $0x44] ss:$8 sps:$4 sm:$0xff]   ;;  %v1367_v15 = vld [vmem:[%s1736_s5 + $0x40] ss:$8 sps:$4 sm:$0xff]   ;;  %v1369_v17 = vld [vmem:[%s1736_s5 + $0x34] ss:$8 sps:$4 sm:$0xff]  }
  0x6f   : > { %v1365_v14 = vld [vmem:[%s1736_s5 + $0x144] ss:$8 sps:$4 sm:$0xff]   ;;  %v1368_v16 = vld [vmem:[%s1736_s5 + $0x140] ss:$8 sps:$4 sm:$0xff]   ;;  %v1371_v18 = vld [vmem:[%s1736_s5 + $0x134] ss:$8 sps:$4 sm:$0xff]  }
  0x70   : > { %962 = vmatpush1.bf16.msra.mxu0 %v1355_v7  ;;  %v1373_v19 = vld [vmem:[%s1736_s5 + $0x30] ss:$8 sps:$4 sm:$0xff]   ;;  %v1375_v21 = vld [vmem:[%s1736_s5 + $0x24] ss:$8 sps:$4 sm:$0xff]   ;;  %v1379_v23 = vld [vmem:[%s1736_s5 + $0x20] ss:$8 sps:$4 sm:$0xff]  }
  0x71   : > { %1003 = vmatpush1.bf16.msra.mxu1 %v1356_v8  ;;  %963 = vmatprep.subr.bf16.mxu0 %v1357_v9  ;;  %v1374_v20 = vld [vmem:[%s1736_s5 + $0x130] ss:$8 sps:$4 sm:$0xff]   ;;  %v1377_v22 = vld [vmem:[%s1736_s5 + $0x124] ss:$8 sps:$4 sm:$0xff]   ;;  %v1380_v24 = vld [vmem:[%s1736_s5 + $0x120] ss:$8 sps:$4 sm:$0xff]  }
  0x72   : > { %1004 = vmatprep.subr.bf16.mxu1 %v1359_v10  ;;  %v1381_v25 = vld [vmem:[%s1736_s5 + $0x14] ss:$8 sps:$4 sm:$0xff]   ;;  %v1385_v27 = vld [vmem:[%s1736_s5 + $0x10] ss:$8 sps:$4 sm:$0xff]   ;;  %v1387_v29 = vld [vmem:[%s1736_s5 + $0x4] ss:$8 sps:$4 sm:$0xff]  }
  0x73   : > { %v1383_v26 = vld [vmem:[%s1736_s5 + $0x114] ss:$8 sps:$4 sm:$0xff]   ;;  %v1386_v28 = vld [vmem:[%s1736_s5 + $0x110] ss:$8 sps:$4 sm:$0xff]   ;;  %v1389_v30 = vld [vmem:[%s1736_s5 + $0x104] ss:$8 sps:$4 sm:$0xff]  }
  0x74   : > { %964 = vmatpush1.bf16.msra.mxu0 %v1361_v11  ;;  %v1391_v31 = vld [vmem:[%s1736_s5] ss:$8 sps:$4 sm:$0xff]   ;;  %v1393_v33 = vld [vmem:[%s1736_s5 + $0xf4] ss:$8 sps:$4 sm:$0xff]   ;;  %v1397_v35 = vld [vmem:[%s1736_s5 + $0xf0] ss:$8 sps:$4 sm:$0xff]  }
  0x75   : > { %1005 = vmatpush1.bf16.msra.mxu1 %v1362_v12  ;;  %965 = vmatprep.subr.bf16.mxu0 %v1363_v13  ;;  %v1392_v32 = vld [vmem:[%s1736_s5 + $0x100] ss:$8 sps:$4 sm:$0xff]   ;;  %v1395_v34 = vld [vmem:[%s1736_s5 + $0x1f4] ss:$8 sps:$4 sm:$0xff]   ;;  %v1398_v36 = vld [vmem:[%s1736_s5 + $0x1f0] ss:$8 sps:$4 sm:$0xff]  }
  0x76   : > { %1006 = vmatprep.subr.bf16.mxu1 %v1365_v14  ;;  %v1399_v37 = vld [vmem:[%s1736_s5 + $0xe4] ss:$8 sps:$4 sm:$0xff]   ;;  %v1403_v39 = vld [vmem:[%s1736_s5 + $0xe0] ss:$8 sps:$4 sm:$0xff]   ;;  %v1405_v41 = vld [vmem:[%s1736_s5 + $0xd4] ss:$8 sps:$4 sm:$0xff]  }
  0x77   : > { %v1401_v38 = vld [vmem:[%s1736_s5 + $0x1e4] ss:$8 sps:$4 sm:$0xff]   ;;  %v1404_v40 = vld [vmem:[%s1736_s5 + $0x1e0] ss:$8 sps:$4 sm:$0xff]   ;;  %v1407_v42 = vld [vmem:[%s1736_s5 + $0x1d4] ss:$8 sps:$4 sm:$0xff]  }
  0x78   : > { %966 = vmatpush1.bf16.msra.mxu0 %v1367_v15  ;;  %v1409_v43 = vld [vmem:[%s1736_s5 + $0xd0] ss:$8 sps:$4 sm:$0xff]   ;;  %v1411_v45 = vld [vmem:[%s1736_s5 + $0xc4] ss:$8 sps:$4 sm:$0xff]   ;;  %v1415_v50 = vld [vmem:[%s1736_s5 + $0xc0] ss:$8 sps:$4 sm:$0xff]  }
  0x79   : > { %1007 = vmatpush1.bf16.msra.mxu1 %v1368_v16  ;;  %967 = vmatprep.subr.bf16.mxu0 %v1369_v17  ;;  %v1410_v44 = vld [vmem:[%s1736_s5 + $0x1d0] ss:$8 sps:$4 sm:$0xff]   ;;  %v1413_v46 = vld [vmem:[%s1736_s5 + $0x1c4] ss:$8 sps:$4 sm:$0xff]   ;;  %v1416_v51 = vld [vmem:[%s1736_s5 + $0x1c0] ss:$8 sps:$4 sm:$0xff]  }
  0x7a   : > { %1008 = vmatprep.subr.bf16.mxu1 %v1371_v18  ;;  %v559_v47 = vld [vmem:[%s1722_s26] sm:$0xff]  ;;  %v560_v49 = vld [vmem:[%s1722_s26 + $0x8] sm:$0xff]  ;;  %v1423_v57 = vld [vmem:[%s1736_s5 + $0xa4] ss:$8 sps:$4 sm:$0xff]   ;;  %p1282_p13 = scmp.ne.s32.totalorder %s1483_s14, 1 }
  0x7b   : > { %v1215_v48 = vcombine.high %v559_v47, %v559_v47  ;;  %v1217_v52 = vcombine.high %v560_v49, %v560_v49  ;;  %v1417_v53 = vld [vmem:[%s1736_s5 + $0xb4] ss:$8 sps:$4 sm:$0xff]   ;;  %v1421_v55 = vld [vmem:[%s1736_s5 + $0xb0] ss:$8 sps:$4 sm:$0xff]   ;;  %v1425_v58 = vld [vmem:[%s1736_s5 + $0x1a4] ss:$8 sps:$4 sm:$0xff]   ;;  %v1214_v5 = vcombine.low %v559_v47, %v559_v47  ;;  %v1216_v6 = vcombine.low %v560_v49, %v560_v49 }
  0x7c   : > { %968 = vmatpush1.bf16.msra.mxu0 %v1373_v19  ;;  %v1419_v54 = vld [vmem:[%s1736_s5 + $0x1b4] ss:$8 sps:$4 sm:$0xff]   ;;  %v1422_v56 = vld [vmem:[%s1736_s5 + $0x1b0] ss:$8 sps:$4 sm:$0xff]   ;;  %v1427_v59 = vld [vmem:[%s1736_s5 + $0xa0] ss:$8 sps:$4 sm:$0xff]  }
  0x7d   : > { %1009 = vmatpush1.bf16.msra.mxu1 %v1374_v20  ;;  %969 = vmatprep.subr.bf16.mxu0 %v1375_v21  ;;  %v1428_v60 = vld [vmem:[%s1736_s5 + $0x1a0] ss:$8 sps:$4 sm:$0xff]   ;;  %v1429_v61 = vld [vmem:[%s1736_s5 + $0x94] ss:$8 sps:$4 sm:$0xff]   ;;  %v1433_v63 = vld [vmem:[%s1736_s5 + $0x90] ss:$8 sps:$4 sm:$0xff]  }
  0x7e   : > { %1010 = vmatprep.subr.bf16.mxu1 %v1377_v22  ;;  %991 = vmatprep.mubr.bf16.mxu0 %v1215_v48  ;;  %v1431_v62 = vld [vmem:[%s1736_s5 + $0x194] ss:$8 sps:$4 sm:$0xff]   ;;  %v1434_v0 = vld [vmem:[%s1736_s5 + $0x190] ss:$8 sps:$4 sm:$0xff]   ;;  %v1435_v1 = vld [vmem:[%s1736_s5 + $0x84] ss:$8 sps:$4 sm:$0xff]  }
  0x7f   : > { %1032 = vmatprep.mubr.bf16.mxu1 %v1217_v52  ;;  %v1437_v2 = vld [vmem:[%s1736_s5 + $0x184] ss:$8 sps:$4 sm:$0xff]   ;;  %v1439_v3 = vld [vmem:[%s1736_s5 + $0x80] ss:$8 sps:$4 sm:$0xff]   ;;  %v557_v8 = vld [vmem:[#allocation2] sm:$0xff] }
  0x80   : > { %970 = vmatpush1.bf16.msra.mxu0 %v1379_v23  ;;  %v1440_v4 = vld [vmem:[%s1736_s5 + $0x180] ss:$8 sps:$4 sm:$0xff]   ;;  %v558_v12 = vld [vmem:[#allocation2 + $0x8] sm:$0xff] }
  0x81   : > { %1011 = vmatpush1.bf16.msra.mxu1 %v1380_v24  ;;  %971 = vmatprep.subr.bf16.mxu0 %v1381_v25 }
  0x82   : > { %1012 = vmatprep.subr.bf16.mxu1 %v1383_v26 }
  0x84   : > { %972 = vmatpush1.bf16.msra.mxu0 %v1385_v27 }
  0x85   : > { %1013 = vmatpush1.bf16.msra.mxu1 %v1386_v28  ;;  %973 = vmatprep.subr.bf16.mxu0 %v1387_v29 }
  0x86   : > { %1014 = vmatprep.subr.bf16.mxu1 %v1389_v30 }
  0x88   : > { %974 = vmatpush1.bf16.msra.mxu0 %v1391_v31 }
  0x89   : > { %1015 = vmatpush1.bf16.msra.mxu1 %v1392_v32  ;;  %975 = vmatprep.subr.bf16.mxu0 %v1393_v33 }
  0x8a   : > { %1016 = vmatprep.subr.bf16.mxu1 %v1395_v34 }
  0x8c   : > { %976 = vmatpush2.bf16.msra.mxu0 %v1397_v35 }
  0x8d   : > { %1017 = vmatpush2.bf16.msra.mxu1 %v1398_v36  ;;  %977 = vmatprep.subr.bf16.mxu0 %v1399_v37 }
  0x8e   : > { %1018 = vmatprep.subr.bf16.mxu1 %v1401_v38 }
  0x90   : > { %978 = vmatpush2.bf16.msra.mxu0 %v1403_v39 }
  0x91   : > { %1019 = vmatpush2.bf16.msra.mxu1 %v1404_v40  ;;  %979 = vmatprep.subr.bf16.mxu0 %v1405_v41 }
  0x92   : > { %1020 = vmatprep.subr.bf16.mxu1 %v1407_v42 }
  0x94   : > { %980 = vmatpush2.bf16.msra.mxu0 %v1409_v43 }
  0x95   : > { %1021 = vmatpush2.bf16.msra.mxu1 %v1410_v44  ;;  %981 = vmatprep.subr.bf16.mxu0 %v1411_v45 }
  0x96   : > { %1022 = vmatprep.subr.bf16.mxu1 %v1413_v46 }
  0x98   : > { %982 = vmatpush2.bf16.msra.mxu0 %v1415_v50 }
  0x99   : > { %1023 = vmatpush2.bf16.msra.mxu1 %v1416_v51  ;;  %983 = vmatprep.subr.bf16.mxu0 %v1417_v53 }
  0x9a   : > { %1024 = vmatprep.subr.bf16.mxu1 %v1419_v54 }
  0x9c   : > { %984 = vmatpush2.bf16.msra.mxu0 %v1421_v55 }
  0x9d   : > { %1025 = vmatpush2.bf16.msra.mxu1 %v1422_v56  ;;  %985 = vmatprep.subr.bf16.mxu0 %v1423_v57 }
  0x9e   : > { %1026 = vmatprep.subr.bf16.mxu1 %v1425_v58 }
  0xa0   : > { %986 = vmatpush2.bf16.msra.mxu0 %v1427_v59 }
  0xa1   : > { %1027 = vmatpush2.bf16.msra.mxu1 %v1428_v60  ;;  %987 = vmatprep.subr.bf16.mxu0 %v1429_v61 }
  0xa2   : > { %1028 = vmatprep.subr.bf16.mxu1 %v1431_v62 }
  0xa4   : > { %988 = vmatpush2.bf16.msra.mxu0 %v1433_v63 }
  0xa5   : > { %1029 = vmatpush2.bf16.msra.mxu1 %v1434_v0  ;;  %989 = vmatprep.subr.bf16.mxu0 %v1435_v1 }
  0xa6   : > { %1030 = vmatprep.subr.bf16.mxu1 %v1437_v2 }
  0xa8   : > { %990 = vmatpush2.bf16.msra.mxu0 %v1439_v3 }
  0xa9   : > { %1031 = vmatpush2.bf16.msra.mxu1 %v1440_v4 }
  0xab   : > { %992 = vmatmul.mubr.bf16.vlgmr.msra.gmra.mxu0 %v1214_v5 }
  0xac   : > { %1033 = vmatmul.mubr.bf16.vlgmr.msra.gmra.mxu1 %v1216_v6 }
 0x16b   : > { %v993_v7 = vpop.f32.mrf.mxu0 }
 0x16c   : > { %v1034_v9 = vpop.f32.mrf.mxu1 }
 0x16d   : > { %v1035_v10 = vadd.f32 %v1034_v9, %v993_v7  ;;  %v995_v11 = vpop.f32.mrf.mxu0 }
 0x16e   : > { %v1036_v13 = vpop.f32.mrf.mxu1 }
 0x16f   : > { %v1041_v14 = vadd.f32 %v1035_v10, %v557_v8  ;;  %v1037_v15 = vadd.f32 %v1036_v13, %v995_v11  ;;  %v997_v16 = vpop.f32.mrf.mxu0  ;;  %1048 = sbr.rel (%p1282_p13) target bundleno = 385 (0x181), region = 78 }
 0x170   : > { %v1038_v17 = vpop.f32.mrf.mxu1 }
 0x171   : > { %1043 = vst [vmem:[#allocation2] sm:$0xff] %v1041_v14  ;;  %v1042_v18 = vadd.f32 %v1037_v15, %v558_v12  ;;  %v998_v19 = vpop.f32.mrf.mxu0 }
 0x172   : > { %v1039_v20 = vpop.f32.mrf.mxu1 }
 0x173   : > { %1044 = vst [vmem:[#allocation2 + $0x8] sm:$0xff] %v1042_v18 }
 0x174   : > { %v1053_v21 = vlaneseq  ;;  %v1051_v23 = vld [vmem:[%s539_s12] sm:$0x3] }
 0x176   : > { %v1054_v22 = vshrl.u32 %v1053_v21, 7 }
 0x178   : > { %v1055_v24 = vsub.s32 0, %v1054_v22  ;;  %v1059_v25 = vsub.s32 1, %v1054_v22  ;;  %v1049_v26 = vld [vmem:[#allocation2] sm:$0xff] }
 0x17a   : > { %v1050_v27 = vld [vmem:[#allocation2 + $0x8] sm:$0xff]  ;;  %v1056_v28 = vrot.slane %v1051_v23, %v1055_v24  ;;  %v1060_v29 = vrot.slane %v1051_v23, %v1059_v25 }
 0x17c   : > { %v1063_v30 = vadd.f32 %v1056_v28, %v1049_v26  ;;  %v1064_v31 = vadd.f32 %v1060_v29, %v1050_v27 }
 0x17e   : > { %v1287_v32 = vpack.c.bf16 %v1064_v31, %v1063_v30 }
 0x180   : > { %1073 = vst [vmem:[%s1734_s15] sm:$0xff] %v1287_v32 }
 0x181 PF: > { %s13_s18 = sadd.s32 1, %s1499_s18   ;;  %s1837_s12 = smov %s1479_s13 }
 0x182   : > { %p10_p0 = scmp.ge.s32.totalorder %s13_s18, 18   ;;  %s1838_s13 = smov %s1573_s25 }
 0x183   : > { %s1839_s14 = smov %s1491_s16  ;;  %s1840_s15 = smov %s1495_s17 }
 0x184   : > { %s1841_s16 = smov %s1844_s19  ;;  %s1842_s17 = smov %s1848_s20 }
 0x185   :  { %12 = sbr.rel (!%p10_p0) target bundleno = 4 (0x4), region = 119 }

// kernel: forward.34
= control target key start
LH: loop header
LB: loop body
LE: loop exit
PB: predicated region body
PF: predicated region fallthrough
CT: control target
= control target key end

     0   :  { %s1577_s15 = smov 0   ;;  %s1579_s16 = smov 0   ;;  %s1868_s0 = inlined_call_operand.vmem [shape: bf16[8,512], index: 0, kind: input, shape index: {}]   ;;  %s1869_s1 = inlined_call_operand.vmem [shape: bf16[512,2048], index: 1, kind: input, shape index: {}]   ;;  %s1870_s2 = inlined_call_operand.vmem [shape: f32[1,2048], index: 2, kind: input, shape index: {}]   ;;  %s1871_s3 = inlined_call_operand.vmem [shape: bf16[8,2048], index: 3, kind: input, shape index: {}]   ;;  %s1872_s4 = inlined_call_operand.vmem [shape: bf16[8,2048], index: 4, kind: output, shape index: {}]  }
   0x1   :  { %s1581_s17 = smov 0   ;;  %s1583_s18 = smov 0  }
   0x2   :  { %s1585_s19 = smov 0  }
   0x3 LB: > { %s29_s20 = sadd.s32 1, %s1546_s18  ;;  %p77_p1 = scmp.ne.s32.totalorder %s1538_s16, %s1534_s15  ;;  %s1550_s19 = sphi %s1585_s19, %s14_s19   ;;  %s1546_s18 = sphi %s1583_s18, %s1876_s18   ;;  %s1542_s17 = sphi %s1581_s17, %s1875_s17   ;;  %s1538_s16 = sphi %s1579_s16, %s1874_s16   ;;  %s1534_s15 = sphi %s1577_s15, %s1873_s15  }
   0x4   : > { %p31_p0 = scmp.ge.s32.totalorder %s29_s20, 8  ;;  %p78_p2 = scmp.eq.s32.totalorder %s1550_s19, 0 }
   0x5   : > { %s70_s22 = sadd.s32 1, %s1538_s16  ;;  %p1288_p5 = scmp.ge.s32.totalorder %s1550_s19, 8 }
   0x6   : > { %s1878_s20 = smov (%p31_p0, %s29_s20), 0  ;;  %p79_p3 = por %p78_p2, %p77_p1 }
   0x7   : > { %s66_s21 = ssub.s32 %s1546_s18, %s1878_s20  ;;  %198 = sbr.rel (%p1288_p5) target bundleno = 80 (0x50), region = 20 }
   0x8   : > { %p68_p4 = scmp.eq.s32.totalorder %s66_s21, 0 }
   0xa   : > { %s1612_s23 = scalar_select %p68_p4, %s1538_s16, %s70_s22  }
   0xc   : > { %201 = sbr.rel (!%p79_p3) target bundleno = 80 (0x50), region = 24  ;;  %s203_s24 = sand.u32 (%p79_p3), 1, %s1538_s16  }
   0xd   : > { %s1370_s25 = sshll.u32 (%p79_p3), %s1546_s18, 3  ;;  %s1289_s26 = sshll.u32 (%p79_p3), %s203_s24, 9 }
   0xe   : > { %s1620_s29 = scalar_lea.vmem (%p79_p3), %s1869_s1, %s1370_s25  ;;  %s1625_s30 = scalar_lea.vmem (%p79_p3), [#allocation3], %s1289_s26 }
   0xf   : > { %v366_v0 = vld [vmem:[%s1620_s29] sm:$0xff] (%p79_p3) }
  0x10   : > { %v368_v1 = vld [vmem:[%s1620_s29 + $0x40] sm:$0xff] (%p79_p3)  ;;  %367 = vst [vmem:[%s1625_s30] sm:$0xff] (%p79_p3), %v366_v0 }
  0x11   : > { %v370_v2 = vld [vmem:[%s1620_s29 + $0x80] sm:$0xff]  ;;  %369 = vst [vmem:[%s1625_s30 + $0x8] sm:$0xff] %v368_v1 }
  0x12   : > { %371 = vst [vmem:[%s1625_s30 + $0x10] sm:$0xff] %v370_v2  ;;  %v372_v3 = vld [vmem:[%s1620_s29 + $0xc0] sm:$0xff] }
  0x13   : > { %v374_v4 = vld [vmem:[%s1620_s29 + $0x100] sm:$0xff]  ;;  %373 = vst [vmem:[%s1625_s30 + $0x18] sm:$0xff] %v372_v3 }
  0x14   : > { %v376_v5 = vld [vmem:[%s1620_s29 + $0x140] sm:$0xff]  ;;  %375 = vst [vmem:[%s1625_s30 + $0x20] sm:$0xff] %v374_v4 }
  0x15   : > { %377 = vst [vmem:[%s1625_s30 + $0x28] sm:$0xff] %v376_v5  ;;  %v378_v6 = vld [vmem:[%s1620_s29 + $0x180] sm:$0xff] }
  0x16   : > { %v380_v7 = vld [vmem:[%s1620_s29 + $0x1c0] sm:$0xff]  ;;  %379 = vst [vmem:[%s1625_s30 + $0x30] sm:$0xff] %v378_v6 }
  0x17   : > { %v382_v8 = vld [vmem:[%s1620_s29 + $0x200] sm:$0xff]  ;;  %381 = vst [vmem:[%s1625_s30 + $0x38] sm:$0xff] %v380_v7 }
  0x18   : > { %383 = vst [vmem:[%s1625_s30 + $0x40] sm:$0xff] %v382_v8  ;;  %v384_v9 = vld [vmem:[%s1620_s29 + $0x240] sm:$0xff] }
  0x19   : > { %v386_v10 = vld [vmem:[%s1620_s29 + $0x280] sm:$0xff]  ;;  %385 = vst [vmem:[%s1625_s30 + $0x48] sm:$0xff] %v384_v9 }
  0x1a   : > { %v388_v11 = vld [vmem:[%s1620_s29 + $0x2c0] sm:$0xff]  ;;  %387 = vst [vmem:[%s1625_s30 + $0x50] sm:$0xff] %v386_v10 }
  0x1b   : > { %389 = vst [vmem:[%s1625_s30 + $0x58] sm:$0xff] %v388_v11  ;;  %v390_v12 = vld [vmem:[%s1620_s29 + $0x300] sm:$0xff] }
  0x1c   : > { %v392_v13 = vld [vmem:[%s1620_s29 + $0x340] sm:$0xff]  ;;  %391 = vst [vmem:[%s1625_s30 + $0x60] sm:$0xff] %v390_v12 }
  0x1d   : > { %v394_v14 = vld [vmem:[%s1620_s29 + $0x380] sm:$0xff]  ;;  %393 = vst [vmem:[%s1625_s30 + $0x68] sm:$0xff] %v392_v13 }
  0x1e   : > { %395 = vst [vmem:[%s1625_s30 + $0x70] sm:$0xff] %v394_v14  ;;  %v396_v15 = vld [vmem:[%s1620_s29 + $0x3c0] sm:$0xff] }
  0x1f   : > { %v398_v16 = vld [vmem:[%s1620_s29 + $0x400] sm:$0xff]  ;;  %397 = vst [vmem:[%s1625_s30 + $0x78] sm:$0xff] %v396_v15 }
  0x20   : > { %v400_v17 = vld [vmem:[%s1620_s29 + $0x440] sm:$0xff]  ;;  %399 = vst [vmem:[%s1625_s30 + $0x80] sm:$0xff] %v398_v16 }
  0x21   : > { %401 = vst [vmem:[%s1625_s30 + $0x88] sm:$0xff] %v400_v17  ;;  %v402_v18 = vld [vmem:[%s1620_s29 + $0x480] sm:$0xff] }
  0x22   : > { %v404_v19 = vld [vmem:[%s1620_s29 + $0x4c0] sm:$0xff]  ;;  %403 = vst [vmem:[%s1625_s30 + $0x90] sm:$0xff] %v402_v18 }
  0x23   : > { %v406_v20 = vld [vmem:[%s1620_s29 + $0x500] sm:$0xff]  ;;  %405 = vst [vmem:[%s1625_s30 + $0x98] sm:$0xff] %v404_v19 }
  0x24   : > { %407 = vst [vmem:[%s1625_s30 + $0xa0] sm:$0xff] %v406_v20  ;;  %v408_v21 = vld [vmem:[%s1620_s29 + $0x540] sm:$0xff] }
  0x25   : > { %v410_v22 = vld [vmem:[%s1620_s29 + $0x580] sm:$0xff]  ;;  %409 = vst [vmem:[%s1625_s30 + $0xa8] sm:$0xff] %v408_v21 }
  0x26   : > { %v412_v23 = vld [vmem:[%s1620_s29 + $0x5c0] sm:$0xff]  ;;  %411 = vst [vmem:[%s1625_s30 + $0xb0] sm:$0xff] %v410_v22 }
  0x27   : > { %413 = vst [vmem:[%s1625_s30 + $0xb8] sm:$0xff] %v412_v23  ;;  %v414_v24 = vld [vmem:[%s1620_s29 + $0x600] sm:$0xff] }
  0x28   : > { %v416_v25 = vld [vmem:[%s1620_s29 + $0x640] sm:$0xff]  ;;  %415 = vst [vmem:[%s1625_s30 + $0xc0] sm:$0xff] %v414_v24 }
  0x29   : > { %v418_v26 = vld [vmem:[%s1620_s29 + $0x680] sm:$0xff]  ;;  %417 = vst [vmem:[%s1625_s30 + $0xc8] sm:$0xff] %v416_v25 }
  0x2a   : > { %419 = vst [vmem:[%s1625_s30 + $0xd0] sm:$0xff] %v418_v26  ;;  %v420_v27 = vld [vmem:[%s1620_s29 + $0x6c0] sm:$0xff] }
  0x2b   : > { %v422_v28 = vld [vmem:[%s1620_s29 + $0x700] sm:$0xff]  ;;  %421 = vst [vmem:[%s1625_s30 + $0xd8] sm:$0xff] %v420_v27 }
  0x2c   : > { %v424_v29 = vld [vmem:[%s1620_s29 + $0x740] sm:$0xff]  ;;  %423 = vst [vmem:[%s1625_s30 + $0xe0] sm:$0xff] %v422_v28 }
  0x2d   : > { %425 = vst [vmem:[%s1625_s30 + $0xe8] sm:$0xff] %v424_v29  ;;  %v426_v30 = vld [vmem:[%s1620_s29 + $0x780] sm:$0xff] }
  0x2e   : > { %v428_v31 = vld [vmem:[%s1620_s29 + $0x7c0] sm:$0xff]  ;;  %427 = vst [vmem:[%s1625_s30 + $0xf0] sm:$0xff] %v426_v30 }
  0x2f   : > { %v430_v32 = vld [vmem:[%s1620_s29 + $0x800] sm:$0xff]  ;;  %429 = vst [vmem:[%s1625_s30 + $0xf8] sm:$0xff] %v428_v31 }
  0x30   : > { %431 = vst [vmem:[%s1625_s30 + $0x100] sm:$0xff] %v430_v32  ;;  %v432_v33 = vld [vmem:[%s1620_s29 + $0x840] sm:$0xff] }
  0x31   : > { %v434_v34 = vld [vmem:[%s1620_s29 + $0x880] sm:$0xff]  ;;  %433 = vst [vmem:[%s1625_s30 + $0x108] sm:$0xff] %v432_v33 }
  0x32   : > { %v436_v35 = vld [vmem:[%s1620_s29 + $0x8c0] sm:$0xff]  ;;  %435 = vst [vmem:[%s1625_s30 + $0x110] sm:$0xff] %v434_v34 }
  0x33   : > { %437 = vst [vmem:[%s1625_s30 + $0x118] sm:$0xff] %v436_v35  ;;  %v438_v36 = vld [vmem:[%s1620_s29 + $0x900] sm:$0xff] }
  0x34   : > { %v440_v37 = vld [vmem:[%s1620_s29 + $0x940] sm:$0xff]  ;;  %439 = vst [vmem:[%s1625_s30 + $0x120] sm:$0xff] %v438_v36 }
  0x35   : > { %v442_v38 = vld [vmem:[%s1620_s29 + $0x980] sm:$0xff]  ;;  %441 = vst [vmem:[%s1625_s30 + $0x128] sm:$0xff] %v440_v37 }
  0x36   : > { %443 = vst [vmem:[%s1625_s30 + $0x130] sm:$0xff] %v442_v38  ;;  %v444_v39 = vld [vmem:[%s1620_s29 + $0x9c0] sm:$0xff] }
  0x37   : > { %v446_v40 = vld [vmem:[%s1620_s29 + $0xa00] sm:$0xff]  ;;  %445 = vst [vmem:[%s1625_s30 + $0x138] sm:$0xff] %v444_v39 }
  0x38   : > { %v448_v41 = vld [vmem:[%s1620_s29 + $0xa40] sm:$0xff]  ;;  %447 = vst [vmem:[%s1625_s30 + $0x140] sm:$0xff] %v446_v40 }
  0x39   : > { %449 = vst [vmem:[%s1625_s30 + $0x148] sm:$0xff] %v448_v41  ;;  %v450_v42 = vld [vmem:[%s1620_s29 + $0xa80] sm:$0xff] }
  0x3a   : > { %v452_v43 = vld [vmem:[%s1620_s29 + $0xac0] sm:$0xff]  ;;  %451 = vst [vmem:[%s1625_s30 + $0x150] sm:$0xff] %v450_v42 }
  0x3b   : > { %v454_v44 = vld [vmem:[%s1620_s29 + $0xb00] sm:$0xff]  ;;  %453 = vst [vmem:[%s1625_s30 + $0x158] sm:$0xff] %v452_v43 }
  0x3c   : > { %455 = vst [vmem:[%s1625_s30 + $0x160] sm:$0xff] %v454_v44  ;;  %v456_v45 = vld [vmem:[%s1620_s29 + $0xb40] sm:$0xff] }
  0x3d   : > { %v458_v46 = vld [vmem:[%s1620_s29 + $0xb80] sm:$0xff]  ;;  %457 = vst [vmem:[%s1625_s30 + $0x168] sm:$0xff] %v456_v45 }
  0x3e   : > { %v460_v47 = vld [vmem:[%s1620_s29 + $0xbc0] sm:$0xff]  ;;  %459 = vst [vmem:[%s1625_s30 + $0x170] sm:$0xff] %v458_v46 }
  0x3f   : > { %461 = vst [vmem:[%s1625_s30 + $0x178] sm:$0xff] %v460_v47  ;;  %v462_v48 = vld [vmem:[%s1620_s29 + $0xc00] sm:$0xff] }
  0x40   : > { %v464_v49 = vld [vmem:[%s1620_s29 + $0xc40] sm:$0xff]  ;;  %463 = vst [vmem:[%s1625_s30 + $0x180] sm:$0xff] %v462_v48 }
  0x41   : > { %v466_v50 = vld [vmem:[%s1620_s29 + $0xc80] sm:$0xff]  ;;  %465 = vst [vmem:[%s1625_s30 + $0x188] sm:$0xff] %v464_v49 }
  0x42   : > { %467 = vst [vmem:[%s1625_s30 + $0x190] sm:$0xff] %v466_v50  ;;  %v468_v51 = vld [vmem:[%s1620_s29 + $0xcc0] sm:$0xff] }
  0x43   : > { %v470_v52 = vld [vmem:[%s1620_s29 + $0xd00] sm:$0xff]  ;;  %469 = vst [vmem:[%s1625_s30 + $0x198] sm:$0xff] %v468_v51 }
  0x44   : > { %v472_v53 = vld [vmem:[%s1620_s29 + $0xd40] sm:$0xff]  ;;  %471 = vst [vmem:[%s1625_s30 + $0x1a0] sm:$0xff] %v470_v52 }
  0x45   : > { %473 = vst [vmem:[%s1625_s30 + $0x1a8] sm:$0xff] %v472_v53  ;;  %v474_v54 = vld [vmem:[%s1620_s29 + $0xd80] sm:$0xff] }
  0x46   : > { %v476_v55 = vld [vmem:[%s1620_s29 + $0xdc0] sm:$0xff]  ;;  %475 = vst [vmem:[%s1625_s30 + $0x1b0] sm:$0xff] %v474_v54 }
  0x47   : > { %v478_v56 = vld [vmem:[%s1620_s29 + $0xe00] sm:$0xff]  ;;  %477 = vst [vmem:[%s1625_s30 + $0x1b8] sm:$0xff] %v476_v55 }
  0x48   : > { %479 = vst [vmem:[%s1625_s30 + $0x1c0] sm:$0xff] %v478_v56  ;;  %v480_v57 = vld [vmem:[%s1620_s29 + $0xe40] sm:$0xff] }
  0x49   : > { %v482_v58 = vld [vmem:[%s1620_s29 + $0xe80] sm:$0xff]  ;;  %481 = vst [vmem:[%s1625_s30 + $0x1c8] sm:$0xff] %v480_v57 }
  0x4a   : > { %v484_v59 = vld [vmem:[%s1620_s29 + $0xec0] sm:$0xff]  ;;  %483 = vst [vmem:[%s1625_s30 + $0x1d0] sm:$0xff] %v482_v58 }
  0x4b   : > { %485 = vst [vmem:[%s1625_s30 + $0x1d8] sm:$0xff] %v484_v59  ;;  %v486_v60 = vld [vmem:[%s1620_s29 + $0xf00] sm:$0xff] }
  0x4c   : > { %v488_v61 = vld [vmem:[%s1620_s29 + $0xf40] sm:$0xff]  ;;  %487 = vst [vmem:[%s1625_s30 + $0x1e0] sm:$0xff] %v486_v60 }
  0x4d   : > { %v490_v62 = vld [vmem:[%s1620_s29 + $0xf80] sm:$0xff]  ;;  %489 = vst [vmem:[%s1625_s30 + $0x1e8] sm:$0xff] %v488_v61 }
  0x4e   : > { %491 = vst [vmem:[%s1625_s30 + $0x1f0] sm:$0xff] %v490_v62  ;;  %v492_v63 = vld [vmem:[%s1620_s29 + $0xfc0] sm:$0xff] }
  0x4f   : > { %493 = vst [vmem:[%s1625_s30 + $0x1f8] sm:$0xff] %v492_v63 }
  0x50 PF: > { %p1292_p6 = scmp.ge.s32.totalorder %s1550_s19, 1  ;;  %p519_p7 = scmp.lt.s32.totalorder %s1550_s19, 9 }
  0x52   : > { %p520_p8 = pnand %p1292_p6, %p519_p7 }
  0x53   : > { %s526_s5 = sand.u32 (!%p520_p8), 1, %s1534_s15   ;;  %s1294_s12 = sshll.u32 (!%p520_p8), %s1542_s17, 1 }
  0x54   : > { %523 = sbr.rel (%p520_p8) target bundleno = 362 (0x16a), region = 70  ;;  %s1293_s10 = sshll.u32 (!%p520_p8), %s526_s5, 9 }
  0x55   : > { %s1769_s11 = scalar_lea.vmem (!%p520_p8), [#allocation3], %s1293_s10  ;;  %p590_p9 = scmp.lt.s32.totalorder (!%p520_p8), %s1294_s12, 15 }
  0x59   : > { %v1758_v0 = vld [vmem:[%s1868_s0] sm:$0xff]  ;;  %v1763_v1 = vld [vmem:[%s1868_s0 + $0x8] sm:$0xff]  ;;  %v1412_v4 = vld [vmem:[%s1769_s11 + $0x74] ss:$8 sps:$4 sm:$0xff]   ;;  %s1880_s12 = smov (!%p590_p9, %s1294_s12), 15 }
  0x5a   : > { %v1300_v2 = vcombine.high %v1758_v0, %v1758_v0  ;;  %v1302_v3 = vcombine.high %v1763_v1, %v1763_v1  ;;  %v1414_v5 = vld [vmem:[%s1769_s11 + $0x174] ss:$8 sps:$4 sm:$0xff]   ;;  %1022 = vmatprep.subr.bf16.mxu0 %v1412_v4  ;;  %v1416_v6 = vld [vmem:[%s1769_s11 + $0x70] ss:$8 sps:$4 sm:$0xff]   ;;  %v1418_v8 = vld [vmem:[%s1769_s11 + $0x64] ss:$8 sps:$4 sm:$0xff]   ;;  %s592_s21 = scalar_lea.vmem %s1870_s2, %s1880_s12 }
  0x5b   : > { %v1417_v7 = vld [vmem:[%s1769_s11 + $0x170] ss:$8 sps:$4 sm:$0xff]   ;;  %1063 = vmatprep.subr.bf16.mxu1 %v1414_v5  ;;  %1023 = vmatpush1.bf16.msra.mxu0 %v1416_v6  ;;  %v1420_v9 = vld [vmem:[%s1769_s11 + $0x164] ss:$8 sps:$4 sm:$0xff]   ;;  %v1422_v10 = vld [vmem:[%s1769_s11 + $0x60] ss:$8 sps:$4 sm:$0xff]   ;;  %v1299_v6 = vcombine.low %v1758_v0, %v1758_v0 }
  0x5c   : > { %1054 = vmatprep.mubr.bf16.mxu0 %v1300_v2  ;;  %1095 = vmatprep.mubr.bf16.mxu1 %v1302_v3  ;;  %v1423_v11 = vld [vmem:[%s1769_s11 + $0x160] ss:$8 sps:$4 sm:$0xff]   ;;  %v1424_v12 = vld [vmem:[%s1769_s11 + $0x54] ss:$8 sps:$4 sm:$0xff]   ;;  %v1428_v14 = vld [vmem:[%s1769_s11 + $0x50] ss:$8 sps:$4 sm:$0xff]  }
  0x5d   : > { %1064 = vmatpush1.bf16.msra.mxu1 %v1417_v7  ;;  %1024 = vmatprep.subr.bf16.mxu0 %v1418_v8  ;;  %v1426_v13 = vld [vmem:[%s1769_s11 + $0x154] ss:$8 sps:$4 sm:$0xff]   ;;  %v1429_v15 = vld [vmem:[%s1769_s11 + $0x150] ss:$8 sps:$4 sm:$0xff]   ;;  %v1430_v16 = vld [vmem:[%s1769_s11 + $0x44] ss:$8 sps:$4 sm:$0xff]   ;;  %v1301_v7 = vcombine.low %v1763_v1, %v1763_v1  ;;  %v1115_v8 = vlaneseq }
  0x5e   : > { %1065 = vmatprep.subr.bf16.mxu1 %v1420_v9  ;;  %v1432_v17 = vld [vmem:[%s1769_s11 + $0x144] ss:$8 sps:$4 sm:$0xff]   ;;  %v1434_v18 = vld [vmem:[%s1769_s11 + $0x40] ss:$8 sps:$4 sm:$0xff]   ;;  %v1436_v20 = vld [vmem:[%s1769_s11 + $0x34] ss:$8 sps:$4 sm:$0xff]  }
  0x5f   : > { %1025 = vmatpush1.bf16.msra.mxu0 %v1422_v10  ;;  %v1435_v19 = vld [vmem:[%s1769_s11 + $0x140] ss:$8 sps:$4 sm:$0xff]   ;;  %v1438_v21 = vld [vmem:[%s1769_s11 + $0x134] ss:$8 sps:$4 sm:$0xff]   ;;  %v1440_v22 = vld [vmem:[%s1769_s11 + $0x30] ss:$8 sps:$4 sm:$0xff]  }
  0x60   : > { %1026 = vmatprep.subr.bf16.mxu0 %v1424_v12  ;;  %v1441_v23 = vld [vmem:[%s1769_s11 + $0x130] ss:$8 sps:$4 sm:$0xff]   ;;  %v1442_v24 = vld [vmem:[%s1769_s11 + $0x24] ss:$8 sps:$4 sm:$0xff]   ;;  %v1446_v26 = vld [vmem:[%s1769_s11 + $0x20] ss:$8 sps:$4 sm:$0xff]  }
  0x61   : > { %1066 = vmatpush1.bf16.msra.mxu1 %v1423_v11  ;;  %v1444_v25 = vld [vmem:[%s1769_s11 + $0x124] ss:$8 sps:$4 sm:$0xff]   ;;  %v1447_v27 = vld [vmem:[%s1769_s11 + $0x120] ss:$8 sps:$4 sm:$0xff]   ;;  %v1448_v28 = vld [vmem:[%s1769_s11 + $0x14] ss:$8 sps:$4 sm:$0xff]  }
  0x62   : > { %1067 = vmatprep.subr.bf16.mxu1 %v1426_v13  ;;  %v1450_v29 = vld [vmem:[%s1769_s11 + $0x114] ss:$8 sps:$4 sm:$0xff]   ;;  %v1452_v30 = vld [vmem:[%s1769_s11 + $0x10] ss:$8 sps:$4 sm:$0xff]   ;;  %v1454_v32 = vld [vmem:[%s1769_s11 + $0x4] ss:$8 sps:$4 sm:$0xff]  }
  0x63   : > { %1027 = vmatpush1.bf16.msra.mxu0 %v1428_v14  ;;  %v1453_v31 = vld [vmem:[%s1769_s11 + $0x110] ss:$8 sps:$4 sm:$0xff]   ;;  %v1456_v33 = vld [vmem:[%s1769_s11 + $0x104] ss:$8 sps:$4 sm:$0xff]   ;;  %v1458_v34 = vld [vmem:[%s1769_s11] ss:$8 sps:$4 sm:$0xff]  }
  0x64   : > { %1028 = vmatprep.subr.bf16.mxu0 %v1430_v16  ;;  %v1459_v35 = vld [vmem:[%s1769_s11 + $0x100] ss:$8 sps:$4 sm:$0xff]   ;;  %v1460_v36 = vld [vmem:[%s1769_s11 + $0xf4] ss:$8 sps:$4 sm:$0xff]   ;;  %v1464_v38 = vld [vmem:[%s1769_s11 + $0xf0] ss:$8 sps:$4 sm:$0xff]  }
  0x65   : > { %1068 = vmatpush1.bf16.msra.mxu1 %v1429_v15  ;;  %v1462_v37 = vld [vmem:[%s1769_s11 + $0x1f4] ss:$8 sps:$4 sm:$0xff]   ;;  %v1465_v39 = vld [vmem:[%s1769_s11 + $0x1f0] ss:$8 sps:$4 sm:$0xff]   ;;  %v1466_v40 = vld [vmem:[%s1769_s11 + $0xe4] ss:$8 sps:$4 sm:$0xff]  }
  0x66   : > { %1069 = vmatprep.subr.bf16.mxu1 %v1432_v17  ;;  %v1468_v41 = vld [vmem:[%s1769_s11 + $0x1e4] ss:$8 sps:$4 sm:$0xff]   ;;  %v1470_v42 = vld [vmem:[%s1769_s11 + $0xe0] ss:$8 sps:$4 sm:$0xff]   ;;  %v1472_v44 = vld [vmem:[%s1769_s11 + $0xd4] ss:$8 sps:$4 sm:$0xff]  }
  0x67   : > { %1029 = vmatpush1.bf16.msra.mxu0 %v1434_v18  ;;  %v1471_v43 = vld [vmem:[%s1769_s11 + $0x1e0] ss:$8 sps:$4 sm:$0xff]   ;;  %v1474_v45 = vld [vmem:[%s1769_s11 + $0x1d4] ss:$8 sps:$4 sm:$0xff]   ;;  %v1476_v46 = vld [vmem:[%s1769_s11 + $0xd0] ss:$8 sps:$4 sm:$0xff]  }
  0x68   : > { %1030 = vmatprep.subr.bf16.mxu0 %v1436_v20  ;;  %v1477_v47 = vld [vmem:[%s1769_s11 + $0x1d0] ss:$8 sps:$4 sm:$0xff]   ;;  %v1478_v48 = vld [vmem:[%s1769_s11 + $0xc4] ss:$8 sps:$4 sm:$0xff]   ;;  %v1482_v50 = vld [vmem:[%s1769_s11 + $0xc0] ss:$8 sps:$4 sm:$0xff]  }
  0x69   : > { %1070 = vmatpush1.bf16.msra.mxu1 %v1435_v19  ;;  %v1480_v49 = vld [vmem:[%s1769_s11 + $0x1c4] ss:$8 sps:$4 sm:$0xff]   ;;  %v1483_v51 = vld [vmem:[%s1769_s11 + $0x1c0] ss:$8 sps:$4 sm:$0xff]   ;;  %v1484_v52 = vld [vmem:[%s1769_s11 + $0xb4] ss:$8 sps:$4 sm:$0xff]  }
  0x6a   : > { %1071 = vmatprep.subr.bf16.mxu1 %v1438_v21  ;;  %v1486_v53 = vld [vmem:[%s1769_s11 + $0x1b4] ss:$8 sps:$4 sm:$0xff]   ;;  %v1488_v54 = vld [vmem:[%s1769_s11 + $0xb0] ss:$8 sps:$4 sm:$0xff]   ;;  %v1490_v56 = vld [vmem:[%s1769_s11 + $0xa4] ss:$8 sps:$4 sm:$0xff]  }
  0x6b   : > { %1031 = vmatpush1.bf16.msra.mxu0 %v1440_v22  ;;  %v1489_v55 = vld [vmem:[%s1769_s11 + $0x1b0] ss:$8 sps:$4 sm:$0xff]   ;;  %v1492_v57 = vld [vmem:[%s1769_s11 + $0x1a4] ss:$8 sps:$4 sm:$0xff]   ;;  %v1494_v58 = vld [vmem:[%s1769_s11 + $0xa0] ss:$8 sps:$4 sm:$0xff]  }
  0x6c   : > { %1032 = vmatprep.subr.bf16.mxu0 %v1442_v24  ;;  %v1495_v59 = vld [vmem:[%s1769_s11 + $0x1a0] ss:$8 sps:$4 sm:$0xff]   ;;  %v1496_v60 = vld [vmem:[%s1769_s11 + $0x94] ss:$8 sps:$4 sm:$0xff]   ;;  %v1500_v62 = vld [vmem:[%s1769_s11 + $0x90] ss:$8 sps:$4 sm:$0xff]  }
  0x6d   : > { %1072 = vmatpush1.bf16.msra.mxu1 %v1441_v23  ;;  %v1498_v61 = vld [vmem:[%s1769_s11 + $0x194] ss:$8 sps:$4 sm:$0xff]   ;;  %v1501_v63 = vld [vmem:[%s1769_s11 + $0x190] ss:$8 sps:$4 sm:$0xff]   ;;  %v1502_v2 = vld [vmem:[%s1769_s11 + $0x84] ss:$8 sps:$4 sm:$0xff]  }
  0x6e   : > { %1073 = vmatprep.subr.bf16.mxu1 %v1444_v25  ;;  %v1504_v3 = vld [vmem:[%s1769_s11 + $0x184] ss:$8 sps:$4 sm:$0xff]   ;;  %v1506_v4 = vld [vmem:[%s1769_s11 + $0x80] ss:$8 sps:$4 sm:$0xff]   ;;  %v1116_v9 = vshrl.u32 %v1115_v8, 7  ;;  %s1296_s13 = sshll.u32 %s1880_s12, 2 }
  0x6f   : > { %1033 = vmatpush1.bf16.msra.mxu0 %v1446_v26  ;;  %v1507_v5 = vld [vmem:[%s1769_s11 + $0x180] ss:$8 sps:$4 sm:$0xff]   ;;  %s602_s25 = scalar_lea.vmem %s1871_s3, %s1296_s13  ;;  %s612_s27 = scalar_lea.vmem %s1872_s4, %s1296_s13 }
  0x70   : > { %1034 = vmatprep.subr.bf16.mxu0 %v1448_v28  ;;  %v1117_v0 = vsub.s32 0, %v1116_v9  ;;  %v1113_v1 = vld [vmem:[%s592_s21] sm:$0x3]  ;;  %v1121_v10 = vsub.s32 1, %v1116_v9 }
  0x71   : > { %1074 = vmatpush1.bf16.msra.mxu1 %v1447_v27  ;;  %v1127_v11 = vld [vmem:[%s602_s25] sm:$0xff] }
  0x72   : > { %1075 = vmatprep.subr.bf16.mxu1 %v1450_v29  ;;  %v1118_v12 = vrot.slane %v1113_v1, %v1117_v0  ;;  %v1128_v16 = vunpack.c.l.bf16 %v1127_v11  ;;  %v1122_v17 = vrot.slane %v1113_v1, %v1121_v10  ;;  %v1129_v22 = vunpack.c.h.bf16 %v1127_v11 }
  0x73   : > { %1035 = vmatpush1.bf16.msra.mxu0 %v1452_v30 }
  0x74   : > { %1036 = vmatprep.subr.bf16.mxu0 %v1454_v32 }
  0x75   : > { %1076 = vmatpush1.bf16.msra.mxu1 %v1453_v31 }
  0x76   : > { %1077 = vmatprep.subr.bf16.mxu1 %v1456_v33 }
  0x77   : > { %1037 = vmatpush1.bf16.msra.mxu0 %v1458_v34 }
  0x78   : > { %1038 = vmatprep.subr.bf16.mxu0 %v1460_v36 }
  0x79   : > { %1078 = vmatpush1.bf16.msra.mxu1 %v1459_v35 }
  0x7a   : > { %1079 = vmatprep.subr.bf16.mxu1 %v1462_v37 }
  0x7b   : > { %1039 = vmatpush2.bf16.msra.mxu0 %v1464_v38 }
  0x7c   : > { %1040 = vmatprep.subr.bf16.mxu0 %v1466_v40 }
  0x7d   : > { %1080 = vmatpush2.bf16.msra.mxu1 %v1465_v39 }
  0x7e   : > { %1081 = vmatprep.subr.bf16.mxu1 %v1468_v41 }
  0x7f   : > { %1041 = vmatpush2.bf16.msra.mxu0 %v1470_v42 }
  0x80   : > { %1042 = vmatprep.subr.bf16.mxu0 %v1472_v44 }
  0x81   : > { %1082 = vmatpush2.bf16.msra.mxu1 %v1471_v43 }
  0x82   : > { %1083 = vmatprep.subr.bf16.mxu1 %v1474_v45 }
  0x83   : > { %1043 = vmatpush2.bf16.msra.mxu0 %v1476_v46 }
  0x84   : > { %1044 = vmatprep.subr.bf16.mxu0 %v1478_v48 }
  0x85   : > { %1084 = vmatpush2.bf16.msra.mxu1 %v1477_v47 }
  0x86   : > { %1085 = vmatprep.subr.bf16.mxu1 %v1480_v49 }
  0x87   : > { %1045 = vmatpush2.bf16.msra.mxu0 %v1482_v50 }
  0x88   : > { %1046 = vmatprep.subr.bf16.mxu0 %v1484_v52 }
  0x89   : > { %1086 = vmatpush2.bf16.msra.mxu1 %v1483_v51 }
  0x8a   : > { %1087 = vmatprep.subr.bf16.mxu1 %v1486_v53 }
  0x8b   : > { %1047 = vmatpush2.bf16.msra.mxu0 %v1488_v54 }
  0x8c   : > { %1048 = vmatprep.subr.bf16.mxu0 %v1490_v56 }
  0x8d   : > { %1088 = vmatpush2.bf16.msra.mxu1 %v1489_v55 }
  0x8e   : > { %1089 = vmatprep.subr.bf16.mxu1 %v1492_v57 }
  0x8f   : > { %1049 = vmatpush2.bf16.msra.mxu0 %v1494_v58 }
  0x90   : > { %1050 = vmatprep.subr.bf16.mxu0 %v1496_v60 }
  0x91   : > { %1090 = vmatpush2.bf16.msra.mxu1 %v1495_v59 }
  0x92   : > { %1091 = vmatprep.subr.bf16.mxu1 %v1498_v61 }
  0x93   : > { %1051 = vmatpush2.bf16.msra.mxu0 %v1500_v62 }
  0x94   : > { %1052 = vmatprep.subr.bf16.mxu0 %v1502_v2 }
  0x95   : > { %1092 = vmatpush2.bf16.msra.mxu1 %v1501_v63 }
  0x96   : > { %1093 = vmatprep.subr.bf16.mxu1 %v1504_v3 }
  0x97   : > { %1053 = vmatpush2.bf16.msra.mxu0 %v1506_v4 }
  0x99   : > { %1094 = vmatpush2.bf16.msra.mxu1 %v1507_v5 }
  0x9a   : > { %1055 = vmatmul.mubr.bf16.vlgmr.msra.gmra.mxu0 %v1299_v6 }
  0x9c   : > { %1096 = vmatmul.mubr.bf16.vlgmr.msra.gmra.mxu1 %v1301_v7 }
 0x15a   : > { %v1056_v13 = vpop.f32.mrf.mxu0 }
 0x15c   : > { %v1097_v14 = vpop.f32.mrf.mxu1  ;;  %v1058_v18 = vpop.f32.mrf.mxu0 }
 0x15d   : > { %v1098_v15 = vadd.f32 %v1097_v14, %v1056_v13 }
 0x15e   : > { %v1099_v19 = vpop.f32.mrf.mxu1  ;;  %v1060_v23 = vpop.f32.mrf.mxu0 }
 0x15f   : > { %v1125_v20 = vadd.f32 %v1118_v12, %v1098_v15  ;;  %v1100_v21 = vadd.f32 %v1099_v19, %v1058_v18 }
 0x160   : > { %v1101_v24 = vpop.f32.mrf.mxu1  ;;  %v1061_v27 = vpop.f32.mrf.mxu0 }
 0x161   : > { %v1130_v25 = vadd.f32 %v1128_v16, %v1125_v20  ;;  %v1126_v26 = vadd.f32 %v1122_v17, %v1100_v21 }
 0x162   : > { %v1102_v28 = vpop.f32.mrf.mxu1 }
 0x163   : > { %v1131_v29 = vadd.f32 %v1129_v22, %v1126_v26  ;;  %v1132_v30 = vmax.f32 %v1130_v25, 0.0 }
 0x165   : > { %v1133_v31 = vmax.f32 %v1131_v29, 0.0 }
 0x167   : > { %v1371_v32 = vpack.c.bf16 %v1133_v31, %v1132_v30 }
 0x169   : > { %1142 = vst [vmem:[%s612_s27] sm:$0xff] %v1371_v32 }
 0x16a PF: > { %s14_s19 = sadd.s32 1, %s1550_s19   ;;  %s1873_s15 = smov %s1538_s16 }
 0x16b   : > { %p11_p10 = scmp.ge.s32.totalorder %s14_s19, 10   ;;  %s1874_s16 = smov %s1612_s23 }
 0x16c   : > { %s1875_s17 = smov %s1546_s18  ;;  %s1876_s18 = smov %s1878_s20 }
 0x16d   :  { %13 = sbr.rel (!%p11_p10) target bundleno = 3 (0x3), region = 126 }

// kernel: forward.35
= control target key start
LH: loop header
LB: loop body
LE: loop exit
PB: predicated region body
PF: predicated region fallthrough
CT: control target
= control target key end

     0   :  { %v44_v23 = vlaneseq  ;;  %vm564_vm0 = vcmask 1041409   ;;  %s2690_s0 = inlined_call_operand.vmem [shape: bf16[2,1,2048], index: 0, kind: input, shape index: {}]   ;;  %s2691_s1 = inlined_call_operand.vmem [shape: bf16[2048,128], index: 1, kind: input, shape index: {}]   ;;  %s2692_s2 = inlined_call_operand.vmem [shape: f32[1,128], index: 2, kind: input, shape index: {}]   ;;  %s2693_s3 = inlined_call_operand.hbm [shape: f32[2,128], index: 3, kind: output, shape index: {}]  }
   0x1   :  { %v2037_v0 = vld [vmem:[%s2691_s1 + $0x78] sm:$0xff]   ;;  %v2041_v4 = vld [vmem:[%s2691_s1 + $0x70] sm:$0xff]   ;;  %v2045_v8 = vld [vmem:[%s2691_s1 + $0x68] sm:$0xff]  }
   0x2   :  { %v2038_v1 = vld [vmem:[%s2691_s1 + $0xf8] sm:$0xff]   ;;  %1860 = vmatprep.subr.bf16.mxu0 %v2037_v0  ;;  %v2042_v5 = vld [vmem:[%s2691_s1 + $0xf0] sm:$0xff]   ;;  %v2046_v9 = vld [vmem:[%s2691_s1 + $0xe8] sm:$0xff]   ;;  %v45_v28 = vshrl.u32 %v44_v23, 7 }
   0x3   :  { %v2039_v2 = vld [vmem:[%s2691_s1 + $0x38] sm:$0xff]   ;;  %1882 = vmatprep.subr.bf16.mxu1 %v2038_v1  ;;  %v2043_v6 = vld [vmem:[%s2691_s1 + $0x30] sm:$0xff]   ;;  %v2047_v10 = vld [vmem:[%s2691_s1 + $0x28] sm:$0xff]  }
   0x4   :  { %v2040_v3 = vld [vmem:[%s2691_s1 + $0xb8] sm:$0xff]   ;;  %1861 = vmatpush3.bf16.msra.mxu0 %v2039_v2  ;;  %v2044_v7 = vld [vmem:[%s2691_s1 + $0xb0] sm:$0xff]   ;;  %v2048_v11 = vld [vmem:[%s2691_s1 + $0xa8] sm:$0xff]   ;;  %v2301_v33 = vsub.s32 2, %v45_v28  ;;  %v2306_v35 = vsub.s32 6, %v45_v28  ;;  %v2314_v38 = vsub.s32 0, %v45_v28 }
   0x5   :  { %1883 = vmatpush3.bf16.msra.mxu1 %v2040_v3  ;;  %1862 = vmatprep.subr.bf16.mxu0 %v2041_v4  ;;  %v2049_v12 = vld [vmem:[%s2691_s1 + $0x60] sm:$0xff]   ;;  %v2053_v16 = vld [vmem:[%s2691_s1 + $0x58] sm:$0xff]   ;;  %v2057_v20 = vld [vmem:[%s2691_s1 + $0x50] sm:$0xff]   ;;  %v2316_v39 = vsub.s32 4, %v45_v28 }
   0x6   :  { %1884 = vmatprep.subr.bf16.mxu1 %v2042_v5  ;;  %v2050_v13 = vld [vmem:[%s2691_s1 + $0xe0] sm:$0xff]   ;;  %v2054_v17 = vld [vmem:[%s2691_s1 + $0xd8] sm:$0xff]   ;;  %v2058_v21 = vld [vmem:[%s2691_s1 + $0xd0] sm:$0xff]  }
   0x7   :  { %v2051_v14 = vld [vmem:[%s2691_s1 + $0x20] sm:$0xff]   ;;  %v2055_v18 = vld [vmem:[%s2691_s1 + $0x18] sm:$0xff]   ;;  %v2059_v22 = vld [vmem:[%s2691_s1 + $0x10] sm:$0xff]  }
   0x8   :  { %1863 = vmatpush3.bf16.msra.mxu0 %v2043_v6  ;;  %v2052_v15 = vld [vmem:[%s2691_s1 + $0xa0] sm:$0xff]   ;;  %v2056_v19 = vld [vmem:[%s2691_s1 + $0x98] sm:$0xff]   ;;  %v2060_v24 = vld [vmem:[%s2691_s1 + $0x90] sm:$0xff]  }
   0x9   :  { %1885 = vmatpush3.bf16.msra.mxu1 %v2044_v7  ;;  %1864 = vmatprep.subr.bf16.mxu0 %v2045_v8  ;;  %v2061_v25 = vld [vmem:[%s2691_s1 + $0x48] sm:$0xff]   ;;  %v2065_v30 = vld [vmem:[%s2691_s1 + $0x40] sm:$0xff]   ;;  %v18_v37 = vld [vmem:[%s2690_s0 + $0x10] sm:$0xff] }
   0xa   :  { %1886 = vmatprep.subr.bf16.mxu1 %v2046_v9  ;;  %v2062_v26 = vld [vmem:[%s2691_s1 + $0xc8] sm:$0xff]   ;;  %v2066_v31 = vld [vmem:[%s2691_s1 + $0xc0] sm:$0xff]   ;;  %v24_v41 = vunpack.c.l.bf16 %v18_v37  ;;  %v2069_v42 = vld [vmem:[%s2691_s1 + $0x178] sm:$0xff]   ;;  %v2323_v44 = vunpack.c.h.bf16 %v18_v37 }
   0xb   :  { %v2063_v27 = vld [vmem:[%s2691_s1 + $0x8] sm:$0xff]   ;;  %v2067_v32 = vld [vmem:[%s2691_s1] sm:$0xff]   ;;  %v2070_v45 = vld [vmem:[%s2691_s1 + $0x1f8] sm:$0xff]  }
   0xc   :  { %1865 = vmatpush3.bf16.msra.mxu0 %v2047_v10  ;;  %v2064_v29 = vld [vmem:[%s2691_s1 + $0x88] sm:$0xff]   ;;  %v2068_v34 = vld [vmem:[%s2691_s1 + $0x80] sm:$0xff]   ;;  %v115_v47 = vrot.slane %v24_v41, %v2301_v33  ;;  %v123_v49 = vrot.slane %v24_v41, %v2306_v35  ;;  %v111_v51 = vrot.slane %v24_v41, %v2314_v38  ;;  %v119_v53 = vrot.slane %v24_v41, %v2316_v39 }
   0xd   :  { %1887 = vmatpush3.bf16.msra.mxu1 %v2048_v11  ;;  %1866 = vmatprep.subr.bf16.mxu0 %v2049_v12  ;;  %v16_v36 = vld [vmem:[%s2690_s0] sm:$0xff]  ;;  %v131_v9 = vrot.slane %v2323_v44, %v2301_v33  ;;  %v2071_v12 = vld [vmem:[%s2691_s1 + $0x138] sm:$0xff]   ;;  %v2077_v37 = vld [vmem:[%s2691_s1 + $0x168] sm:$0xff]  }
   0xe   :  { %1888 = vmatprep.subr.bf16.mxu1 %v2050_v13  ;;  %v20_v40 = vunpack.c.l.bf16 %v16_v36  ;;  %v2321_v43 = vunpack.c.h.bf16 %v16_v36  ;;  %v221_v55 = vpack.c.bf16 %v115_v47, %v115_v47  ;;  %v223_v57 = vpack.c.bf16 %v123_v49, %v123_v49  ;;  %v2080_v49 = vld [vmem:[%s2691_s1 + $0x1a8] sm:$0xff]  }
   0xf   :  { %v220_v59 = vpack.c.bf16 %v111_v51, %v111_v51  ;;  %v222_v61 = vpack.c.bf16 %v119_v53, %v119_v53 }
  0x10   :  { %1867 = vmatpush3.bf16.msra.mxu0 %v2051_v14  ;;  %v51_v46 = vrot.slane %v20_v40, %v2301_v33  ;;  %v59_v48 = vrot.slane %v20_v40, %v2306_v35  ;;  %v47_v50 = vrot.slane %v20_v40, %v2314_v38  ;;  %v55_v52 = vrot.slane %v20_v40, %v2316_v39 }
  0x11   :  { %1889 = vmatpush3.bf16.msra.mxu1 %v2052_v15  ;;  %1868 = vmatprep.subr.bf16.mxu0 %v2053_v16  ;;  %v548_v63 = vunpack.c.l.b16 %v221_v55  ;;  %v550_v1 = vunpack.c.l.b16 %v223_v57  ;;  %v547_v3 = vunpack.c.l.b16 %v220_v59  ;;  %v549_v5 = vunpack.c.l.b16 %v222_v61  ;;  %v2084_v55 = vld [vmem:[%s2691_s1 + $0x1a0] sm:$0xff]   ;;  %v2085_v57 = vld [vmem:[%s2691_s1 + $0x158] sm:$0xff]  }
  0x12   :  { %1890 = vmatprep.subr.bf16.mxu1 %v2054_v17  ;;  %v205_v54 = vpack.c.bf16 %v51_v46, %v51_v46  ;;  %v207_v56 = vpack.c.bf16 %v59_v48, %v59_v48  ;;  %v204_v58 = vpack.c.bf16 %v47_v50, %v47_v50  ;;  %v206_v60 = vpack.c.bf16 %v55_v52, %v55_v52  ;;  %v2072_v17 = vld [vmem:[%s2691_s1 + $0x1b8] sm:$0xff]   ;;  %v2079_v46 = vld [vmem:[%s2691_s1 + $0x128] sm:$0xff]   ;;  %v2081_v50 = vld [vmem:[%s2691_s1 + $0x160] sm:$0xff]  }
  0x13   :  { %v566_v6 = vrot.slane %v548_v63, 7  ;;  %v570_v7 = vrot.slane %v550_v1, 7  ;;  %v67_v8 = vrot.slane %v2321_v43, %v2301_v33  ;;  %v563_v10 = vrot.slane %v547_v3, 7  ;;  %v2082_v52 = vld [vmem:[%s2691_s1 + $0x1e0] sm:$0xff]   ;;  %v2086_v59 = vld [vmem:[%s2691_s1 + $0x1d8] sm:$0xff]   ;;  %v2091_v3 = vld [vmem:[%s2691_s1 + $0x110] sm:$0xff]  }
  0x14   :  { %1869 = vmatpush3.bf16.msra.mxu0 %v2055_v18  ;;  %v532_v62 = vunpack.c.l.b16 %v205_v54  ;;  %v534_v0 = vunpack.c.l.b16 %v207_v56  ;;  %v531_v2 = vunpack.c.l.b16 %v204_v58  ;;  %v533_v4 = vunpack.c.l.b16 %v206_v60  ;;  %v2083_v54 = vld [vmem:[%s2691_s1 + $0x120] sm:$0xff]   ;;  %v2087_v60 = vld [vmem:[%s2691_s1 + $0x118] sm:$0xff]  }
  0x15   :  { %1891 = vmatpush3.bf16.msra.mxu1 %v2056_v19  ;;  %1870 = vmatprep.subr.bf16.mxu0 %v2057_v20  ;;  %v568_v11 = vrot.slane %v549_v5, 7  ;;  %v75_v13 = vrot.slane %v2321_v43, %v2306_v35  ;;  %v139_v14 = vrot.slane %v2323_v44, %v2306_v35  ;;  %v209_v18 = vpack.c.bf16 %v67_v8, %v67_v8  ;;  %v2088_v61 = vld [vmem:[%s2691_s1 + $0x198] sm:$0xff]  }
  0x16   :  { %1892 = vmatprep.subr.bf16.mxu1 %v2058_v21  ;;  %v567_v15 = vsel %vm564_vm0, %v566_v6, %v532_v62  ;;  %v571_v16 = vsel %vm564_vm0, %v570_v7, %v534_v0  ;;  %v225_v19 = vpack.c.bf16 %v131_v9, %v131_v9  ;;  %v127_v56 = vrot.slane %v2323_v44, %v2314_v38  ;;  %v2094_v9 = vld [vmem:[%s2691_s1 + $0x1c8] sm:$0xff]  }
  0x17   :  { %v597_v20 = vpack.c.b16 %v567_v15, %v567_v15  ;;  %v599_v21 = vpack.c.b16 %v571_v16, %v571_v16  ;;  %v569_v23 = vsel %vm564_vm0, %v568_v11, %v533_v4  ;;  %v536_v28 = vunpack.c.l.b16 %v209_v18  ;;  %v2092_v4 = vld [vmem:[%s2691_s1 + $0x190] sm:$0xff]   ;;  %v2096_v11 = vld [vmem:[%s2691_s1 + $0x188] sm:$0xff]   ;;  %v2099_v18 = vld [vmem:[%s2691_s1 + $0x100] sm:$0xff]  }
  0x18   :  { %1871 = vmatpush3.bf16.msra.mxu0 %v2059_v22  ;;  %v565_v22 = vsel %vm564_vm0, %v563_v10, %v531_v2  ;;  %v135_v58 = vrot.slane %v2323_v44, %v2316_v39  ;;  %v224_v62 = vpack.c.bf16 %v127_v56, %v127_v56  ;;  %v2089_v44 = vld [vmem:[%s2691_s1 + $0x150] sm:$0xff]   ;;  %v63_v63 = vrot.slane %v2321_v43, %v2314_v38  ;;  %v2095_v10 = vld [vmem:[%s2691_s1 + $0x108] sm:$0xff]  }
  0x19   :  { %1893 = vmatpush3.bf16.msra.mxu1 %v2060_v24  ;;  %1872 = vmatprep.subr.bf16.mxu0 %v2061_v25  ;;  %v2073_v24 = vld [vmem:[%s2691_s1 + $0x170] sm:$0xff]   ;;  %v596_v25 = vpack.c.b16 %v565_v22, %v565_v22  ;;  %v71_v0 = vrot.slane %v2321_v43, %v2316_v39  ;;  %v2093_v43 = vld [vmem:[%s2691_s1 + $0x148] sm:$0xff]   ;;  %v2101_v22 = vld [vmem:[%s2691_s1 + $0x278] sm:$0xff]  }
  0x1a   :  { %1894 = vmatprep.subr.bf16.mxu1 %v2062_v26  ;;  %v598_v26 = vpack.c.b16 %v569_v23, %v569_v23  ;;  %1428 = vmatprep.mubr.bf16.mxu0 %v597_v20  ;;  %v226_v1 = vpack.c.bf16 %v135_v58, %v135_v58  ;;  %v2090_v2 = vld [vmem:[%s2691_s1 + $0x1d0] sm:$0xff]   ;;  %v551_v5 = vunpack.c.l.b16 %v224_v62  ;;  %v208_v6 = vpack.c.bf16 %v63_v63, %v63_v63  ;;  %v2102_v23 = vld [vmem:[%s2691_s1 + $0x2f8] sm:$0xff]   ;;  %v17_v56 = vld [vmem:[%s2690_s0 + $0x8] sm:$0xff] }
  0x1b   :  { %1468 = vmatprep.mubr.bf16.mxu1 %v599_v21  ;;  %v210_v7 = vpack.c.bf16 %v71_v0, %v71_v0  ;;  %v2127_v58 = vld [vmem:[%s2691_s1 + $0x208] sm:$0xff]   ;;  %v2129_v62 = vld [vmem:[%s2691_s1 + $0x240] sm:$0xff]  }
  0x1c   :  { %1873 = vmatpush3.bf16.msra.mxu0 %v2063_v27  ;;  %v2074_v27 = vld [vmem:[%s2691_s1 + $0x1f0] sm:$0xff]   ;;  %v553_v8 = vunpack.c.l.b16 %v226_v1  ;;  %v2546_v1 = vunpack.c.h.bf16 %v17_v56 }
  0x1d   :  { %1895 = vmatpush3.bf16.msra.mxu1 %v2064_v29  ;;  %1874 = vmatprep.subr.bf16.mxu0 %v2065_v30  ;;  %v552_v29 = vunpack.c.l.b16 %v225_v19  ;;  %v2075_v30 = vld [vmem:[%s2691_s1 + $0x130] sm:$0xff]   ;;  %v537_v15 = vunpack.c.l.b16 %v210_v7  ;;  %v2100_v19 = vld [vmem:[%s2691_s1 + $0x180] sm:$0xff]  }
  0x1e   :  { %1896 = vmatprep.subr.bf16.mxu1 %v2066_v31  ;;  %v211_v31 = vpack.c.bf16 %v75_v13, %v75_v13  ;;  %v2097_v13 = vld [vmem:[%s2691_s1 + $0x140] sm:$0xff]   ;;  %v576_v16 = vrot.slane %v553_v8, 7 }
  0x1f   :  { %v574_v36 = vrot.slane %v552_v29, 7  ;;  %v2106_v29 = vld [vmem:[%s2691_s1 + $0x2f0] sm:$0xff]  }
  0x20   :  { %1875 = vmatpush3.bf16.msra.mxu0 %v2067_v32  ;;  %v227_v32 = vpack.c.bf16 %v139_v14, %v139_v14  ;;  %v538_v40 = vunpack.c.l.b16 %v211_v31  ;;  %v535_v14 = vunpack.c.l.b16 %v208_v6  ;;  %v577_v21 = vsel %vm564_vm0, %v576_v16, %v537_v15  ;;  %v2108_v31 = vld [vmem:[%s2691_s1 + $0x2b0] sm:$0xff]   ;;  %v2131_v6 = vld [vmem:[%s2691_s1 + $0x200] sm:$0xff]  }
  0x21   :  { %1897 = vmatpush3.bf16.msra.mxu1 %v2068_v34  ;;  %1904 = vmatprep.subr.bf16.mxu0 %v2069_v42  ;;  %v2076_v34 = vld [vmem:[%s2691_s1 + $0x1b0] sm:$0xff]   ;;  %v2078_v42 = vld [vmem:[%s2691_s1 + $0x1e8] sm:$0xff]  }
  0x22   :  { %1926 = vmatprep.subr.bf16.mxu1 %v2070_v45  ;;  %v554_v41 = vunpack.c.l.b16 %v227_v32  ;;  %v575_v45 = vsel %vm564_vm0, %v574_v36, %v536_v28  ;;  %v2105_v28 = vld [vmem:[%s2691_s1 + $0x270] sm:$0xff]   ;;  %v2109_v32 = vld [vmem:[%s2691_s1 + $0x268] sm:$0xff]  }
  0x23   :  { %1429 = vmatmul.mubr.bf16.vlgmr.msra.gmra.mxu0 %v596_v25  ;;  %v601_v47 = vpack.c.b16 %v575_v45, %v575_v45  ;;  %v2111_v36 = vld [vmem:[%s2691_s1 + $0x228] sm:$0xff]   ;;  %v2116_v45 = vld [vmem:[%s2691_s1 + $0x2a0] sm:$0xff]  }
  0x24   :  { %1469 = vmatmul.mubr.bf16.vlgmr.msra.gmra.mxu1 %v598_v26  ;;  %1905 = vmatpush3.bf16.msra.mxu0 %v2071_v12  ;;  %v578_v48 = vrot.slane %v554_v41, 7  ;;  %v572_v12 = vrot.slane %v551_v5, 7  ;;  %v602_v26 = vpack.c.b16 %v577_v21, %v577_v21  ;;  %v2114_v41 = vld [vmem:[%s2691_s1 + $0x2e0] sm:$0xff]  }
  0x25   :  { %1927 = vmatpush3.bf16.msra.mxu1 %v2072_v17  ;;  %1906 = vmatprep.subr.bf16.mxu0 %v2073_v24  ;;  %v2098_v17 = vld [vmem:[%s2691_s1 + $0x1c0] sm:$0xff]   ;;  %v2103_v24 = vld [vmem:[%s2691_s1 + $0x238] sm:$0xff]  }
  0x26   :  { %1928 = vmatprep.subr.bf16.mxu1 %v2074_v27  ;;  %v579_v51 = vsel %vm564_vm0, %v578_v48, %v538_v40  ;;  %1508 = vmatprep.mubr.bf16.mxu0 %v601_v47  ;;  %v573_v20 = vsel %vm564_vm0, %v572_v12, %v535_v14  ;;  %v2104_v27 = vld [vmem:[%s2691_s1 + $0x2b8] sm:$0xff]   ;;  %v2113_v40 = vld [vmem:[%s2691_s1 + $0x260] sm:$0xff]  }
  0x27   :  { %v603_v53 = vpack.c.b16 %v579_v51, %v579_v51  ;;  %v600_v25 = vpack.c.b16 %v573_v20, %v573_v20  ;;  %v2118_v47 = vld [vmem:[%s2691_s1 + $0x2d8] sm:$0xff]   ;;  %v2122_v51 = vld [vmem:[%s2691_s1 + $0x2d0] sm:$0xff]  }
  0x28   :  { %1907 = vmatpush3.bf16.msra.mxu0 %v2075_v30  ;;  %v2107_v30 = vld [vmem:[%s2691_s1 + $0x230] sm:$0xff]   ;;  %v2119_v48 = vld [vmem:[%s2691_s1 + $0x218] sm:$0xff]  }
  0x29   :  { %1929 = vmatpush3.bf16.msra.mxu1 %v2076_v34  ;;  %1908 = vmatprep.subr.bf16.mxu0 %v2077_v37  ;;  %v2110_v34 = vld [vmem:[%s2691_s1 + $0x2e8] sm:$0xff]   ;;  %v2133_v20 = vld [vmem:[%s2691_s1 + $0x378] sm:$0xff]  }
  0x2a   :  { %1930 = vmatprep.subr.bf16.mxu1 %v2078_v42  ;;  %1548 = vmatprep.mubr.bf16.mxu1 %v603_v53  ;;  %v2112_v37 = vld [vmem:[%s2691_s1 + $0x2a8] sm:$0xff]   ;;  %v2115_v42 = vld [vmem:[%s2691_s1 + $0x220] sm:$0xff]   ;;  %v2124_v53 = vld [vmem:[%s2691_s1 + $0x290] sm:$0xff]  }
  0x2c   :  { %1909 = vmatpush3.bf16.msra.mxu0 %v2079_v46  ;;  %v2117_v46 = vld [vmem:[%s2691_s1 + $0x258] sm:$0xff]  }
  0x2d   :  { %1931 = vmatpush3.bf16.msra.mxu1 %v2080_v49  ;;  %1910 = vmatprep.subr.bf16.mxu0 %v2081_v50  ;;  %v2120_v49 = vld [vmem:[%s2691_s1 + $0x298] sm:$0xff]   ;;  %v2121_v50 = vld [vmem:[%s2691_s1 + $0x250] sm:$0xff]  }
  0x2e   :  { %1932 = vmatprep.subr.bf16.mxu1 %v2082_v52  ;;  %v2123_v52 = vld [vmem:[%s2691_s1 + $0x210] sm:$0xff]  }
  0x30   :  { %1911 = vmatpush3.bf16.msra.mxu0 %v2083_v54  ;;  %v2125_v54 = vld [vmem:[%s2691_s1 + $0x248] sm:$0xff]  }
  0x31   :  { %1933 = vmatpush3.bf16.msra.mxu1 %v2084_v55  ;;  %1912 = vmatprep.subr.bf16.mxu0 %v2085_v57  ;;  %v2126_v55 = vld [vmem:[%s2691_s1 + $0x2c8] sm:$0xff]   ;;  %v19_v57 = vld [vmem:[%s2690_s0 + $0x18] sm:$0xff] }
  0x32   :  { %1934 = vmatprep.subr.bf16.mxu1 %v2086_v59  ;;  %v22_v59 = vunpack.c.l.bf16 %v17_v56 }
  0x34   :  { %1913 = vmatpush3.bf16.msra.mxu0 %v2087_v60  ;;  %v26_v60 = vunpack.c.l.bf16 %v19_v57  ;;  %v91_v0 = vrot.slane %v22_v59, %v2306_v35 }
  0x35   :  { %1935 = vmatpush3.bf16.msra.mxu1 %v2088_v61  ;;  %1914 = vmatprep.subr.bf16.mxu0 %v2089_v44  ;;  %v2128_v61 = vld [vmem:[%s2691_s1 + $0x288] sm:$0xff]   ;;  %v83_v44 = vrot.slane %v22_v59, %v2301_v33 }
  0x36   :  { %1936 = vmatprep.subr.bf16.mxu1 %v2090_v2  ;;  %v147_v63 = vrot.slane %v26_v60, %v2301_v33  ;;  %v2130_v2 = vld [vmem:[%s2691_s1 + $0x2c0] sm:$0xff]   ;;  %v143_v5 = vrot.slane %v26_v60, %v2314_v38  ;;  %v151_v15 = vrot.slane %v26_v60, %v2316_v39 }
  0x37   :  { %v213_v7 = vpack.c.bf16 %v83_v44, %v83_v44 }
  0x38   :  { %1915 = vmatpush3.bf16.msra.mxu0 %v2091_v3  ;;  %v155_v3 = vrot.slane %v26_v60, %v2306_v35  ;;  %v229_v8 = vpack.c.bf16 %v147_v63, %v147_v63  ;;  %v228_v14 = vpack.c.bf16 %v143_v5, %v143_v5  ;;  %v2145_v5 = vld [vmem:[%s2691_s1 + $0x360] sm:$0xff]  }
  0x39   :  { %1937 = vmatpush3.bf16.msra.mxu1 %v2092_v4  ;;  %1916 = vmatprep.subr.bf16.mxu0 %v2093_v43  ;;  %v79_v4 = vrot.slane %v22_v59, %v2314_v38  ;;  %v2554_v43 = vunpack.c.h.bf16 %v19_v57  ;;  %v540_v16 = vunpack.c.l.b16 %v213_v7  ;;  %v2138_v57 = vld [vmem:[%s2691_s1 + $0x3f0] sm:$0xff]  }
  0x3a   :  { %1938 = vmatprep.subr.bf16.mxu1 %v2094_v9  ;;  %v215_v9 = vpack.c.bf16 %v91_v0, %v91_v0  ;;  %v231_v12 = vpack.c.bf16 %v155_v3, %v155_v3  ;;  %v2143_v3 = vld [vmem:[%s2691_s1 + $0x328] sm:$0xff]  }
  0x3c   :  { %1917 = vmatpush3.bf16.msra.mxu0 %v2095_v10  ;;  %v87_v10 = vrot.slane %v22_v59, %v2316_v39  ;;  %v558_v21 = vunpack.c.l.b16 %v231_v12  ;;  %v2139_v59 = vld [vmem:[%s2691_s1 + $0x330] sm:$0xff]   ;;  %v2149_v12 = vld [vmem:[%s2691_s1 + $0x358] sm:$0xff]  }
  0x3d   :  { %1939 = vmatpush3.bf16.msra.mxu1 %v2096_v11  ;;  %1918 = vmatprep.subr.bf16.mxu0 %v2097_v13  ;;  %v2132_v11 = vld [vmem:[%s2691_s1 + $0x280] sm:$0xff]   ;;  %v212_v13 = vpack.c.bf16 %v79_v4, %v79_v4 }
  0x3e   :  { %1940 = vmatprep.subr.bf16.mxu1 %v2098_v17  ;;  %v556_v17 = vunpack.c.l.b16 %v229_v8  ;;  %v2146_v8 = vld [vmem:[%s2691_s1 + $0x3e0] sm:$0xff]  }
  0x40   :  { %1919 = vmatpush3.bf16.msra.mxu0 %v2099_v18  ;;  %v542_v18 = vunpack.c.l.b16 %v215_v9 }
  0x41   :  { %1941 = vmatpush3.bf16.msra.mxu1 %v2100_v19  ;;  %1948 = vmatprep.subr.bf16.mxu0 %v2101_v22  ;;  %v214_v19 = vpack.c.bf16 %v87_v10, %v87_v10  ;;  %v539_v22 = vunpack.c.l.b16 %v212_v13  ;;  %v2147_v10 = vld [vmem:[%s2691_s1 + $0x320] sm:$0xff]  }
  0x42   :  { %1970 = vmatprep.subr.bf16.mxu1 %v2102_v23  ;;  %v555_v23 = vunpack.c.l.b16 %v228_v14  ;;  %v2148_v13 = vld [vmem:[%s2691_s1 + $0x3a0] sm:$0xff]   ;;  %v167_v14 = vrot.slane %v2554_v43, %v2316_v39 }
  0x43   :  { %1509 = vmatmul.mubr.bf16.vlgmr.msra.gmra.mxu0 %v600_v25  ;;  %v2134_v25 = vld [vmem:[%s2691_s1 + $0x3f8] sm:$0xff]  }
  0x44   :  { %1549 = vmatmul.mubr.bf16.vlgmr.msra.gmra.mxu1 %v602_v26  ;;  %1949 = vmatpush3.bf16.msra.mxu0 %v2103_v24  ;;  %v230_v24 = vpack.c.bf16 %v151_v15, %v151_v15  ;;  %v582_v26 = vrot.slane %v556_v17, 7  ;;  %v2150_v15 = vld [vmem:[%s2691_s1 + $0x3d8] sm:$0xff]   ;;  %v95_v17 = vrot.slane %v2546_v1, %v2314_v38 }
  0x45   :  { %1971 = vmatpush3.bf16.msra.mxu1 %v2104_v27  ;;  %1950 = vmatprep.subr.bf16.mxu0 %v2105_v28  ;;  %v541_v27 = vunpack.c.l.b16 %v214_v19  ;;  %v99_v28 = vrot.slane %v2546_v1, %v2301_v33  ;;  %v2153_v19 = vld [vmem:[%s2691_s1 + $0x350] sm:$0xff]  }
  0x46   :  { %1972 = vmatprep.subr.bf16.mxu1 %v2106_v29  ;;  %v163_v29 = vrot.slane %v2554_v43, %v2301_v33  ;;  %v2135_v33 = vld [vmem:[%s2691_s1 + $0x338] sm:$0xff]  }
  0x48   :  { %1951 = vmatpush3.bf16.msra.mxu0 %v2107_v30  ;;  %v586_v30 = vrot.slane %v558_v21, 7  ;;  %v234_v21 = vpack.c.bf16 %v167_v14, %v167_v14 }
  0x49   :  { %1973 = vmatpush3.bf16.msra.mxu1 %v2108_v31  ;;  %1952 = vmatprep.subr.bf16.mxu0 %v2109_v32  ;;  %v580_v31 = vrot.slane %v555_v23, 7  ;;  %v557_v32 = vunpack.c.l.b16 %v230_v24  ;;  %v216_v23 = vpack.c.bf16 %v95_v17, %v95_v17 }
  0x4a   :  { %1974 = vmatprep.subr.bf16.mxu1 %v2110_v34  ;;  %v107_v34 = vrot.slane %v2546_v1, %v2306_v35 }
  0x4c   :  { %1953 = vmatpush3.bf16.msra.mxu0 %v2111_v36  ;;  %v583_v36 = vsel %vm564_vm0, %v582_v26, %v540_v16  ;;  %v2151_v16 = vld [vmem:[%s2691_s1 + $0x318] sm:$0xff]  }
  0x4d   :  { %1975 = vmatpush3.bf16.msra.mxu1 %v2112_v37  ;;  %1954 = vmatprep.subr.bf16.mxu0 %v2113_v40  ;;  %v217_v37 = vpack.c.bf16 %v99_v28, %v99_v28  ;;  %v233_v40 = vpack.c.bf16 %v163_v29, %v163_v29 }
  0x4e   :  { %1976 = vmatprep.subr.bf16.mxu1 %v2114_v41  ;;  %v605_v41 = vpack.c.b16 %v583_v36, %v583_v36 }
  0x50   :  { %1955 = vmatpush3.bf16.msra.mxu0 %v2115_v42  ;;  %v587_v42 = vsel %vm564_vm0, %v586_v30, %v542_v18  ;;  %1588 = vmatprep.mubr.bf16.mxu0 %v605_v41 }
  0x51   :  { %1977 = vmatpush3.bf16.msra.mxu1 %v2116_v45  ;;  %1956 = vmatprep.subr.bf16.mxu0 %v2117_v46  ;;  %v581_v45 = vsel %vm564_vm0, %v580_v31, %v539_v22  ;;  %v584_v46 = vrot.slane %v557_v32, 7  ;;  %v2155_v22 = vld [vmem:[%s2691_s1 + $0x310] sm:$0xff]  }
  0x52   :  { %1978 = vmatprep.subr.bf16.mxu1 %v2118_v47  ;;  %v607_v47 = vpack.c.b16 %v587_v42, %v587_v42 }
  0x54   :  { %1957 = vmatpush3.bf16.msra.mxu0 %v2119_v48  ;;  %v604_v48 = vpack.c.b16 %v581_v45, %v581_v45  ;;  %1628 = vmatprep.mubr.bf16.mxu1 %v607_v47 }
  0x55   :  { %1979 = vmatpush3.bf16.msra.mxu1 %v2120_v49  ;;  %1958 = vmatprep.subr.bf16.mxu0 %v2121_v50  ;;  %v2137_v49 = vld [vmem:[%s2691_s1 + $0x370] sm:$0xff]   ;;  %v544_v50 = vunpack.c.l.b16 %v217_v37 }
  0x56   :  { %1980 = vmatprep.subr.bf16.mxu1 %v2122_v51  ;;  %v560_v51 = vunpack.c.l.b16 %v233_v40 }
  0x58   :  { %1959 = vmatpush3.bf16.msra.mxu0 %v2123_v52  ;;  %v585_v52 = vsel %vm564_vm0, %v584_v46, %v541_v27 }
  0x59   :  { %1981 = vmatpush3.bf16.msra.mxu1 %v2124_v53  ;;  %1960 = vmatprep.subr.bf16.mxu0 %v2125_v54  ;;  %v2136_v53 = vld [vmem:[%s2691_s1 + $0x3b8] sm:$0xff]   ;;  %v171_v54 = vrot.slane %v2554_v43, %v2306_v35  ;;  %v606_v56 = vpack.c.b16 %v585_v52, %v585_v52  ;;  %v2141_v35 = vld [vmem:[%s2691_s1 + $0x368] sm:$0xff]  }
  0x5a   :  { %1982 = vmatprep.subr.bf16.mxu1 %v2126_v55  ;;  %v219_v55 = vpack.c.bf16 %v107_v34, %v107_v34 }
  0x5b   :  { %v235_v60 = vpack.c.bf16 %v171_v54, %v171_v54 }
  0x5c   :  { %1961 = vmatpush3.bf16.msra.mxu0 %v2127_v58  ;;  %v590_v58 = vrot.slane %v560_v51, 7  ;;  %v546_v63 = vunpack.c.l.b16 %v219_v55 }
  0x5d   :  { %1983 = vmatpush3.bf16.msra.mxu1 %v2128_v61  ;;  %1962 = vmatprep.subr.bf16.mxu0 %v2129_v62  ;;  %v2140_v62 = vld [vmem:[%s2691_s1 + $0x3b0] sm:$0xff]   ;;  %v562_v0 = vunpack.c.l.b16 %v235_v60 }
  0x5e   :  { %1984 = vmatprep.subr.bf16.mxu1 %v2130_v2  ;;  %v591_v61 = vsel %vm564_vm0, %v590_v58, %v544_v50  ;;  %v2142_v2 = vld [vmem:[%s2691_s1 + $0x3e8] sm:$0xff]  }
  0x5f   :  { %v609_v44 = vpack.c.b16 %v591_v61, %v591_v61  ;;  %v594_v4 = vrot.slane %v562_v0, 7 }
  0x60   :  { %1963 = vmatpush3.bf16.msra.mxu0 %v2131_v6  ;;  %v2144_v6 = vld [vmem:[%s2691_s1 + $0x3a8] sm:$0xff]  }
  0x61   :  { %1985 = vmatpush3.bf16.msra.mxu1 %v2132_v11  ;;  %1992 = vmatprep.subr.bf16.mxu0 %v2133_v20  ;;  %v595_v7 = vsel %vm564_vm0, %v594_v4, %v546_v63  ;;  %v159_v11 = vrot.slane %v2554_v43, %v2314_v38  ;;  %v2152_v43 = vld [vmem:[%s2691_s1 + $0x398] sm:$0xff]   ;;  %v103_v20 = vrot.slane %v2546_v1, %v2316_v39  ;;  %v2154_v38 = vld [vmem:[%s2691_s1 + $0x3d0] sm:$0xff]  }
  0x62   :  { %2014 = vmatprep.subr.bf16.mxu1 %v2134_v25  ;;  %v611_v9 = vpack.c.b16 %v595_v7, %v595_v7  ;;  %v2157_v25 = vld [vmem:[%s2691_s1 + $0x348] sm:$0xff]  }
  0x63   :  { %1589 = vmatmul.mubr.bf16.vlgmr.msra.gmra.mxu0 %v604_v48  ;;  %v232_v18 = vpack.c.bf16 %v159_v11, %v159_v11 }
  0x64   :  { %1993 = vmatpush3.bf16.msra.mxu0 %v2135_v33  ;;  %1629 = vmatmul.mubr.bf16.vlgmr.msra.gmra.mxu1 %v606_v56 }
  0x65   :  { %1994 = vmatprep.subr.bf16.mxu0 %v2137_v49  ;;  %2015 = vmatpush3.bf16.msra.mxu1 %v2136_v53  ;;  %v559_v24 = vunpack.c.l.b16 %v232_v18 }
  0x66   :  { %2016 = vmatprep.subr.bf16.mxu1 %v2138_v57  ;;  %1668 = vmatprep.mubr.bf16.mxu0 %v609_v44 }
  0x67   :  { %1708 = vmatprep.mubr.bf16.mxu1 %v611_v9 }
  0x68   :  { %1995 = vmatpush3.bf16.msra.mxu0 %v2139_v59 }
  0x69   :  { %1996 = vmatprep.subr.bf16.mxu0 %v2141_v35  ;;  %2017 = vmatpush3.bf16.msra.mxu1 %v2140_v62 }
  0x6a   :  { %2018 = vmatprep.subr.bf16.mxu1 %v2142_v2 }
  0x6c   :  { %1997 = vmatpush3.bf16.msra.mxu0 %v2143_v3 }
  0x6d   :  { %1998 = vmatprep.subr.bf16.mxu0 %v2145_v5  ;;  %2019 = vmatpush3.bf16.msra.mxu1 %v2144_v6 }
  0x6e   :  { %2020 = vmatprep.subr.bf16.mxu1 %v2146_v8 }
  0x70   :  { %1999 = vmatpush3.bf16.msra.mxu0 %v2147_v10 }
  0x71   :  { %2000 = vmatprep.subr.bf16.mxu0 %v2149_v12  ;;  %2021 = vmatpush3.bf16.msra.mxu1 %v2148_v13 }
  0x72   :  { %2022 = vmatprep.subr.bf16.mxu1 %v2150_v15 }
  0x74   :  { %2001 = vmatpush3.bf16.msra.mxu0 %v2151_v16 }
  0x75   :  { %2002 = vmatprep.subr.bf16.mxu0 %v2153_v19 }
  0x76   :  { %8 = vsyncpa [#allocation3], 0  ;;  %2023 = vmatpush3.bf16.msra.mxu1 %v2152_v43  ;;  %v2156_v39 = vld [vmem:[%s2691_s1 + $0x390] sm:$0xff]   ;;  %v218_v1 = vpack.c.bf16 %v103_v20, %v103_v20  ;;  %v561_v26 = vunpack.c.l.b16 %v234_v21  ;;  %v2158_v27 = vld [vmem:[%s2691_s1 + $0x3c8] sm:$0xff]   ;;  %v543_v29 = vunpack.c.l.b16 %v216_v23  ;;  %v588_v30 = vrot.slane %v559_v24, 7 }
  0x77   :  { %2024 = vmatprep.subr.bf16.mxu1 %v2154_v38  ;;  %v2159_v28 = vld [vmem:[%s2691_s1 + $0x308] sm:$0xff]   ;;  %v2161_v31 = vld [vmem:[%s2691_s1 + $0x340] sm:$0xff]  }
  0x78   :  { %2003 = vmatpush3.bf16.msra.mxu0 %v2155_v22  ;;  %v2160_v32 = vld [vmem:[%s2691_s1 + $0x388] sm:$0xff]   ;;  %v545_v34 = vunpack.c.l.b16 %v218_v1  ;;  %v592_v36 = vrot.slane %v561_v26, 7  ;;  %v2162_v37 = vld [vmem:[%s2691_s1 + $0x3c0] sm:$0xff]   ;;  %v589_v41 = vsel %vm564_vm0, %v588_v30, %v543_v29 }
  0x79   :  { %2004 = vmatprep.subr.bf16.mxu0 %v2157_v25  ;;  %v2163_v40 = vld [vmem:[%s2691_s1 + $0x300] sm:$0xff]   ;;  %v608_v46 = vpack.c.b16 %v589_v41, %v589_v41 }
  0x7a   :  { %2025 = vmatpush3.bf16.msra.mxu1 %v2156_v39  ;;  %v2164_v42 = vld [vmem:[%s2691_s1 + $0x380] sm:$0xff]   ;;  %v593_v45 = vsel %vm564_vm0, %v592_v36, %v545_v34  ;;  %s2187_s1 = smov [#allocation2]  }
  0x7b   :  { %2026 = vmatprep.subr.bf16.mxu1 %v2158_v27  ;;  %v610_v33 = vpack.c.b16 %v593_v45, %v593_v45  ;;  %v1731_v49 = vld [vmem:[%s2692_s2] ss:$0 sm:$0xff]  ;;  %s1723_s2 = sshll.u32 %s2187_s1, 4  ;;  %s1724_s2 = int_to_ptr.vmem [resolvable:$true] %s1723_s2 }
  0x7c   :  { %2005 = vmatpush3.bf16.msra.mxu0 %v2159_v28  ;;  %s2165_s5 = scalar_lea.vmem %s1724_s2, 32  ;;  %p2170_p1 = scmp.lt.s32.totalorder %s1724_s2, %s1724_s2 }
  0x7d   :  { %2006 = vmatprep.subr.bf16.mxu0 %v2161_v31  ;;  %p2166_p0 = scmp.ne.s32.totalorder %s1724_s2, %s2165_s5  ;;  %p2171_p2 = scmp.lt.s32.totalorder %s2165_s5, %s2165_s5 }
  0x7e   :  { %2027 = vmatpush3.bf16.msra.mxu1 %v2160_v32 }
  0x7f   :  { %2028 = vmatprep.subr.bf16.mxu1 %v2162_v37  ;;  %p2172_p3 = por %p2171_p2, %p2170_p1 }
  0x80   :  { %2007 = vmatpush3.bf16.msra.mxu0 %v2163_v40 }
  0x81   :  { %p2173_p4 = pnand %p2172_p3, %p2166_p0 }
  0x82   :  { %2029 = vmatpush3.bf16.msra.mxu1 %v2164_v42 }
  0x83   :  { %1669 = vmatmul.mubr.bf16.vlgmr.msra.gmra.mxu0 %v608_v46 }
  0x85   :  { %1709 = vmatmul.mubr.bf16.vlgmr.msra.gmra.mxu1 %v610_v33 }
  0xe3   :  { %v1876_v47 = vpop.f32.mrf.mxu0 }
  0xe4   :  { %v1898_v48 = vpop.f32.mrf.mxu1 }
  0xe5   :  { %v1877_v50 = vpop.f32.mrf.mxu0 }
  0xe6   :  { %v1899_v51 = vpop.f32.mrf.mxu1  ;;  %v1878_v52 = vadd.f32 %v1877_v50, %v1876_v47 }
  0xe7   :  { %v1900_v53 = vadd.f32 %v1899_v51, %v1898_v48  ;;  %v1879_v54 = vpop.f32.mrf.mxu0 }
  0xe8   :  { %v1901_v55 = vpop.f32.mrf.mxu1  ;;  %v1431_v56 = vadd.f32 %v1878_v52, %v1731_v49 }
  0xe9   :  { %v1880_v57 = vpop.f32.mrf.mxu0 }
  0xea   :  { %v1902_v58 = vpop.f32.mrf.mxu1  ;;  %v1471_v59 = vadd.f32 %v1900_v53, %v1431_v56 }
 0x103   :  { %v1920_v60 = vpop.f32.mrf.mxu0 }
 0x104   :  { %v1942_v35 = vpop.f32.mrf.mxu1 }
 0x105   :  { %v1921_v61 = vpop.f32.mrf.mxu0 }
 0x106   :  { %v1943_v62 = vpop.f32.mrf.mxu1  ;;  %v1922_v11 = vadd.f32 %v1921_v61, %v1920_v60 }
 0x107   :  { %v1923_v44 = vpop.f32.mrf.mxu0  ;;  %v1944_v13 = vadd.f32 %v1943_v62, %v1942_v35 }
 0x108   :  { %v1945_v63 = vpop.f32.mrf.mxu1  ;;  %v1511_v12 = vadd.f32 %v1922_v11, %v1471_v59 }
 0x109   :  { %v1924_v0 = vpop.f32.mrf.mxu0 }
 0x10a   :  { %v1946_v2 = vpop.f32.mrf.mxu1  ;;  %v1551_v15 = vadd.f32 %v1944_v13, %v1511_v12 }
 0x123   :  { %v1964_v3 = vpop.f32.mrf.mxu0 }
 0x124   :  { %v1986_v4 = vpop.f32.mrf.mxu1 }
 0x125   :  { %v1965_v5 = vpop.f32.mrf.mxu0 }
 0x126   :  { %v1987_v6 = vpop.f32.mrf.mxu1  ;;  %v1966_v14 = vadd.f32 %v1965_v5, %v1964_v3 }
 0x127   :  { %v1967_v7 = vpop.f32.mrf.mxu0  ;;  %v1988_v17 = vadd.f32 %v1987_v6, %v1986_v4 }
 0x128   :  { %v1989_v8 = vpop.f32.mrf.mxu1  ;;  %v1591_v16 = vadd.f32 %v1966_v14, %v1551_v15 }
 0x129   :  { %v1968_v9 = vpop.f32.mrf.mxu0 }
 0x12a   :  { %v1990_v10 = vpop.f32.mrf.mxu1  ;;  %v1631_v20 = vadd.f32 %v1988_v17, %v1591_v16 }
 0x143   :  { %v2008_v18 = vpop.f32.mrf.mxu0 }
 0x145   :  { %v2030_v19 = vpop.f32.mrf.mxu1  ;;  %v2009_v43 = vpop.f32.mrf.mxu0 }
 0x146   :  { %v2010_v21 = vadd.f32 %v2009_v43, %v2008_v18 }
 0x147   :  { %v2031_v38 = vpop.f32.mrf.mxu1  ;;  %v2011_v22 = vpop.f32.mrf.mxu0 }
 0x148   :  { %v1671_v23 = vadd.f32 %v2010_v21, %v1631_v20  ;;  %v2032_v24 = vadd.f32 %v2031_v38, %v2030_v19 }
 0x149   :  { %v2033_v25 = vpop.f32.mrf.mxu1  ;;  %v2012_v39 = vpop.f32.mrf.mxu0 }
 0x14a   :  { %v1711_v1 = vadd.f32 %v2032_v24, %v1671_v23 }
 0x14b   :  { %v2034_v26 = vpop.f32.mrf.mxu1 }
 0x14c   :  { %1716 = vst [vmem:[#allocation2] sm:$0x3] %v1711_v1 }
 0x14d   :  { %2176 = shalt.err (!%p2173_p4)
}
 0x14e   :  { %1726 = dma.vmem_to_hbm [thread:$0]  %s1724_s2, 32, %s2693_s3, [#allocation3]  }
 0x14f   :  { %2185 = dma.done.wait [#allocation3], 32  }
 0x150   :  { %2186 = vsyncadd [#allocation3], 4294967264 }
 0x151   :  { %1730 = vsyncpa [#allocation3], 1 }

</bundles_post_ra>
